<compile_context>
chip_gen: v5e
topology: v5e:2x2
jax: 0.10.0
libtpu: 0.0.40
codegen_flags: <defaults>
</compile_context>

<pallas_src>
import functools
import math

import jax
import jax.numpy as jnp
from jax.experimental import pallas as pl
from jax.experimental.pallas import tpu as pltpu

F32_MIN = float(jnp.finfo(jnp.float32).min)

# Preferred tile sizes (clipped to the actual dims by _fit()).
TM_PREF = 512      # rows of the flattened (B*S) axis for weight-streaming matmuls
TN_PREF = 256      # output-feature tile (multiple of 128 -> lane-dense stores)
TK_PREF = 512      # contraction tile for the down_proj reduction
TQ_PREF = 256      # attention query tile
TKV_PREF = 256     # attention key/value tile
VMEM_LIMIT = 64 * 1024 * 1024


def _fit(dim, pref):
    t = min(pref, dim)
    assert dim % t == 0, f"dim {dim} not divisible by tile {t}"
    return t


# --------------------------------------------------------------------------
# Kernel 1: fused input RMSNorm (cached per row-tile) + per-head QKV projection
#           with RoPE and the 1/sqrt(hd) scale fused into the epilogue.
# --------------------------------------------------------------------------
def _norm_qkv_rope_kernel(x_ref, g_ref, w_ref, cos_ref, sin_ref, o_ref, h_scr,
                          *, eps, num_q, num_kv, scale):
    h_idx = pl.program_id(1)
    hd = o_ref.shape[-1]

    # RMSNorm once per row-tile (head axis is "arbitrary": scratch reused).
    @pl.when(h_idx == 0)
    def _():
        x = x_ref[...].astype(jnp.float32)
        var = jnp.mean(x * x, axis=-1, keepdims=True)
        h_scr[...] = ((x * jax.lax.rsqrt(var + eps)) * g_ref[...]).astype(jnp.bfloat16)

    y = jnp.dot(h_scr[...], w_ref[0], preferred_element_type=jnp.float32)  # (tm, hd)

    # rotate_half(y)*sin == roll(y, hd//2) * sin_signed  (sign folded into table)
    def rope(t):
        return t * cos_ref[...] + pltpu.roll(t, shift=hd // 2, axis=1) * sin_ref[...]

    @pl.when(h_idx < num_q)                                   # Q: RoPE + scale
    def _():
        o_ref[0] = (rope(y) * scale).astype(o_ref.dtype)

    @pl.when(jnp.logical_and(h_idx >= num_q, h_idx < num_q + num_kv))   # K: RoPE
    def _():
        o_ref[0] = rope(y).astype(o_ref.dtype)

    @pl.when(h_idx >= num_q + num_kv)                         # V: plain
    def _():
        o_ref[0] = y.astype(o_ref.dtype)


def fused_norm_qkv_rope(x2d, ln_w, wqkv, cos_m, sin_m, eps, *, num_q, num_kv,
                        head_dim):
    M, H = x2d.shape
    n_tot = wqkv.shape[0]
    tm = _fit(M, TM_PREF)
    scale = 1.0 / math.sqrt(head_dim)
    return pl.pallas_call(
        functools.partial(_norm_qkv_rope_kernel, eps=eps, num_q=num_q,
                          num_kv=num_kv, scale=scale),
        grid=(M // tm, n_tot),
        in_specs=[
            pl.BlockSpec((tm, H), lambda i, h: (i, 0)),
            pl.BlockSpec((1, H), lambda i, h: (0, 0)),
            pl.BlockSpec((1, H, head_dim), lambda i, h: (h, 0, 0)),
            pl.BlockSpec((tm, head_dim), lambda i, h: (i, 0)),
            pl.BlockSpec((tm, head_dim), lambda i, h: (i, 0)),
        ],
        out_specs=pl.BlockSpec((1, tm, head_dim), lambda i, h: (h, i, 0)),
        out_shape=jax.ShapeDtypeStruct((n_tot, M, head_dim), jnp.bfloat16),
        scratch_shapes=[pltpu.VMEM((tm, H), jnp.bfloat16)],
        compiler_params=pltpu.CompilerParams(
            dimension_semantics=("parallel", "arbitrary"),
            vmem_limit_bytes=VMEM_LIMIT),
    )(x2d, ln_w, wqkv, cos_m, sin_m)


# --------------------------------------------------------------------------
# Kernel 2: GQA flash attention (RoPE/scale already folded in).  Grid over KV
#           heads; each step handles all `groups` Q heads sharing that KV head.
#           Causal KV blocks past the diagonal issue no new DMA (index clamp).
# --------------------------------------------------------------------------
def _flash_attn_kernel(q_ref, k_ref, v_ref, o_ref, m_scr, l_scr, acc_scr, *,
                       groups):
    qi = pl.program_id(2)
    ki = pl.program_id(3)
    tq, hd = q_ref.shape[2], q_ref.shape[3]
    tkv = k_ref.shape[2]

    @pl.when(ki == 0)
    def _():
        m_scr[...] = jnp.full(m_scr.shape, -jnp.inf, m_scr.dtype)
        l_scr[...] = jnp.zeros(l_scr.shape, l_scr.dtype)
        acc_scr[...] = jnp.zeros(acc_scr.shape, acc_scr.dtype)

    # Skip compute for fully-masked (strictly upper-triangular) kv blocks.
    @pl.when(qi * tq + (tq - 1) >= ki * tkv)
    def _():
        k = k_ref[0, 0]                    # (tkv, hd) bf16
        v = v_ref[0, 0]                    # (tkv, hd) bf16
        # causal mask (HF semantics: masked scores pinned to finfo.min),
        # shared across all groups of this kv head.
        row = qi * tq + jax.lax.broadcasted_iota(jnp.int32, (tq, tkv), 0)
        col = ki * tkv + jax.lax.broadcasted_iota(jnp.int32, (tq, tkv), 1)
        keep = col <= row

        for g in range(groups):
            q = q_ref[g, 0]                # (tq, hd) bf16, pre-scaled + RoPE'd
            s = jax.lax.dot_general(q, k, (((1,), (1,)), ((), ())),
                                    preferred_element_type=jnp.float32)
            s = jnp.where(keep, s, F32_MIN)

            m_prev = m_scr[g]
            m_new = jnp.maximum(m_prev, jnp.max(s, axis=-1, keepdims=True))
            alpha = jnp.exp(m_prev - m_new)
            p = jnp.exp(s - m_new)
            l_scr[g] = alpha * l_scr[g] + jnp.sum(p, axis=-1, keepdims=True)
            acc_scr[g] = alpha * acc_scr[g] + jnp.dot(
                p.astype(jnp.bfloat16), v, preferred_element_type=jnp.float32)
            m_scr[g] = m_new

    @pl.when(ki == pl.num_programs(3) - 1)
    def _():
        for g in range(groups):
            o_ref[g, 0] = (acc_scr[g] *
                           pl.reciprocal(l_scr[g], approx=True)).astype(o_ref.dtype)


def flash_attention(qkv, *, num_heads, num_kv_heads, head_dim):
    # qkv: (nH + 2*nKV, B, S, hd) bf16 (q pre-scaled + RoPE'd, k RoPE'd)
    n_tot, B, S, hd = qkv.shape
    groups = num_heads // num_kv_heads
    tq = _fit(S, TQ_PREF)
    tkv = _fit(S, TKV_PREF)

    def last_kv_block(qi):
        return ((qi + 1) * tq - 1) // tkv

    q_spec = pl.BlockSpec((groups, 1, tq, hd),
                          lambda b, g, qi, ki: (g, b, qi, 0))
    k_spec = pl.BlockSpec(
        (1, 1, tkv, hd),
        lambda b, g, qi, ki: (num_heads + g, b,
                              jnp.minimum(ki, last_kv_block(qi)), 0))
    v_spec = pl.BlockSpec(
        (1, 1, tkv, hd),
        lambda b, g, qi, ki: (num_heads + num_kv_heads + g, b,
                              jnp.minimum(ki, last_kv_block(qi)), 0))
    out_spec = pl.BlockSpec((groups, 1, tq, hd),
                            lambda b, g, qi, ki: (g, b, qi, 0))

    return pl.pallas_call(
        functools.partial(_flash_attn_kernel, groups=groups),
        grid=(B, num_kv_heads, S // tq, S // tkv),
        in_specs=[q_spec, k_spec, v_spec],
        out_specs=out_spec,
        out_shape=jax.ShapeDtypeStruct((num_heads, B, S, hd), jnp.bfloat16),
        scratch_shapes=[pltpu.VMEM((groups, tq, 1), jnp.float32),
                        pltpu.VMEM((groups, tq, 1), jnp.float32),
                        pltpu.VMEM((groups, tq, hd), jnp.float32)],
        compiler_params=pltpu.CompilerParams(
            dimension_semantics=("parallel", "parallel", "parallel", "arbitrary"),
            vmem_limit_bytes=VMEM_LIMIT),
    )(qkv, qkv, qkv)


# --------------------------------------------------------------------------
# Kernel 3: K-tiled bf16 matmul with fp32 accumulator + fused residual add.
#           3-D inputs (o_proj) reduce several heads per grid step.
# --------------------------------------------------------------------------
def _kred_matmul_residual_kernel(x_ref, w_ref, r_ref, o_ref, acc_ref):
    @pl.when(pl.program_id(2) == 0)
    def _():
        acc_ref[...] = jnp.zeros(acc_ref.shape, acc_ref.dtype)

    if x_ref.ndim == 3:                       # per-head layout: several heads / step
        for t in range(x_ref.shape[0]):
            acc_ref[...] += jnp.dot(x_ref[t], w_ref[t],
                                    preferred_element_type=jnp.float32)
    else:
        acc_ref[...] += jnp.dot(x_ref[...], w_ref[...],
                                preferred_element_type=jnp.float32)

    @pl.when(pl.program_id(2) == pl.num_programs(2) - 1)
    def _():
        o_ref[...] = (r_ref[...].astype(jnp.float32) + acc_ref[...]).astype(o_ref.dtype)


def o_proj_residual(attn, wo, resid):
    # attn: (nH, M, hd) bf16 ; wo: (nH, hd, H) bf16 ; resid: (M, H) bf16
    nH, M, hd = attn.shape
    H = wo.shape[-1]
    tm = _fit(M, TM_PREF)
    tn = _fit(H, TN_PREF)
    hps = max(d for d in (8, 4, 2, 1) if nH % d == 0)   # heads per reduction step
    return pl.pallas_call(
        _kred_matmul_residual_kernel,
        grid=(M // tm, H // tn, nH // hps),
        in_specs=[
            pl.BlockSpec((hps, tm, hd), lambda i, j, k: (k, i, 0)),
            pl.BlockSpec((hps, hd, tn), lambda i, j, k: (k, 0, j)),
            pl.BlockSpec((tm, tn), lambda i, j, k: (i, j)),
        ],
        out_specs=pl.BlockSpec((tm, tn), lambda i, j, k: (i, j)),
        out_shape=jax.ShapeDtypeStruct((M, H), jnp.bfloat16),
        scratch_shapes=[pltpu.VMEM((tm, tn), jnp.float32)],
        compiler_params=pltpu.CompilerParams(
            dimension_semantics=("parallel", "parallel", "arbitrary"),
            vmem_limit_bytes=VMEM_LIMIT),
    )(attn, wo, resid)


def down_proj_residual(act, wd, resid):
    # act: (M, I) bf16 ; wd: (I, H) bf16 ; resid: (M, H) bf16
    M, I = act.shape
    H = wd.shape[-1]
    tm = _fit(M, TM_PREF)
    tn = _fit(H, TN_PREF)
    tk = _fit(I, TK_PREF)
    return pl.pallas_call(
        _kred_matmul_residual_kernel,
        grid=(M // tm, H // tn, I // tk),
        in_specs=[
            pl.BlockSpec((tm, tk), lambda i, j, k: (i, k)),
            pl.BlockSpec((tk, tn), lambda i, j, k: (k, j)),
            pl.BlockSpec((tm, tn), lambda i, j, k: (i, j)),
        ],
        out_specs=pl.BlockSpec((tm, tn), lambda i, j, k: (i, j)),
        out_shape=jax.ShapeDtypeStruct((M, H), jnp.bfloat16),
        scratch_shapes=[pltpu.VMEM((tm, tn), jnp.float32)],
        compiler_params=pltpu.CompilerParams(
            dimension_semantics=("parallel", "parallel", "arbitrary"),
            vmem_limit_bytes=VMEM_LIMIT),
    )(act, wd, resid)


# --------------------------------------------------------------------------
# Kernel 4: fused post-attention RMSNorm (cached per row-tile) + gate/up + SiLU*up
# --------------------------------------------------------------------------
def _norm_gate_up_kernel(x_ref, g_ref, wg_ref, wu_ref, o_ref, h_scr, *, eps):
    # TODO(synk): PyTorch applies `.half()` (fp16) after post_attention_layernorm;
    # the TPU MXU path consumes bf16, so that fp16 rounding is approximated by bf16.
    @pl.when(pl.program_id(1) == 0)
    def _():
        x = x_ref[...].astype(jnp.float32)
        var = jnp.mean(x * x, axis=-1, keepdims=True)
        h_scr[...] = ((x * jax.lax.rsqrt(var + eps)) * g_ref[...]).astype(jnp.bfloat16)

    hb = h_scr[...]
    gate = jnp.dot(hb, wg_ref[...], preferred_element_type=jnp.float32)
    up = jnp.dot(hb, wu_ref[...], preferred_element_type=jnp.float32)
    o_ref[...] = (gate * jax.nn.sigmoid(gate) * up).astype(o_ref.dtype)


def fused_norm_gate_up(x2d, ln_w, wg, wu, eps):
    M, H = x2d.shape
    I = wg.shape[-1]
    tm = _fit(M, TM_PREF)
    tn = _fit(I, TN_PREF)
    return pl.pallas_call(
        functools.partial(_norm_gate_up_kernel, eps=eps),
        grid=(M // tm, I // tn),
        in_specs=[
            pl.BlockSpec((tm, H), lambda i, j: (i, 0)),
            pl.BlockSpec((1, H), lambda i, j: (0, 0)),
            pl.BlockSpec((H, tn), lambda i, j: (0, j)),
            pl.BlockSpec((H, tn), lambda i, j: (0, j)),
        ],
        out_specs=pl.BlockSpec((tm, tn), lambda i, j: (i, j)),
        out_shape=jax.ShapeDtypeStruct((M, I), jnp.bfloat16),
        scratch_shapes=[pltpu.VMEM((tm, H), jnp.bfloat16)],
        compiler_params=pltpu.CompilerParams(
            dimension_semantics=("parallel", "arbitrary"),
            vmem_limit_bytes=VMEM_LIMIT),
    )(x2d, ln_w, wg, wu)


# --------------------------------------------------------------------------
# glue
# --------------------------------------------------------------------------
def _rope_tables(seq_len, head_dim, theta):
    inv_freq = 1.0 / (theta ** (jnp.arange(0, head_dim, 2, dtype=jnp.float32) / head_dim))
    pos = jnp.arange(seq_len, dtype=jnp.float32)
    freqs = pos[:, None] * inv_freq[None, :]
    emb = jnp.concatenate([freqs, freqs], axis=-1)
    return jnp.cos(emb), jnp.sin(emb)


def decoder_layer_forward(x, params, cfg, attention_mask=None):
    # TODO(synk): the causal additive mask is generated inside the attention
    # kernel; arbitrary (e.g. padding) attention_mask tensors are not plumbed.
    B, S, H = x.shape
    nH, nKV, hd = cfg["num_heads"], cfg["num_kv_heads"], cfg["head_dim"]
    eps = cfg["eps"]
    M = B * S

    # bf16 residual stream (fp32 only inside accumulators / RMSNorm math).
    x2d = x.reshape(M, H).astype(jnp.bfloat16)

    # RoPE tables: sign of rotate_half folded into sin, tiled over batch so the
    # QKV kernel can index them with the flattened (B*S) row tile.
    cos, sin = _rope_tables(S, hd, cfg["rope_theta"])
    sin_signed = jnp.concatenate([-sin[:, :hd // 2], sin[:, hd // 2:]], axis=-1)
    cos_m = jnp.tile(cos, (B, 1))
    sin_m = jnp.tile(sin_signed, (B, 1))

    # --- self-attention block ---
    qkv = fused_norm_qkv_rope(x2d, params["input_ln_w"], params["wqkv"],
                              cos_m, sin_m, eps, num_q=nH, num_kv=nKV, head_dim=hd)
    attn = flash_attention(qkv.reshape(-1, B, S, hd),
                           num_heads=nH, num_kv_heads=nKV, head_dim=hd)
    h1 = o_proj_residual(attn.reshape(nH, M, hd), params["wo"], x2d)

    # --- MLP block ---
    act = fused_norm_gate_up(h1, params["post_ln_w"], params["wg"], params["wu"], eps)
    out = down_proj_residual(act, params["wd"], h1)
    return out.reshape(B, S, H)


def prepare_params(torch_style, num_heads, num_kv_heads, head_dim):
    """Re-layout PyTorch nn.Linear (out_features, in_features) weights for the kernels."""
    def per_head(w_out_in, n):
        # (n*hd, H) -> (n, H, hd)
        return jnp.transpose(w_out_in.T.reshape(-1, n, head_dim), (1, 0, 2))

    H = torch_style["q_proj"].shape[1]
    wqkv = jnp.concatenate([
        per_head(torch_style["q_proj"], num_heads),
        per_head(torch_style["k_proj"], num_kv_heads),
        per_head(torch_style["v_proj"], num_kv_heads)], axis=0).astype(jnp.bfloat16)
    wo = torch_style["o_proj"].T.reshape(num_heads, head_dim, H).astype(jnp.bfloat16)
    return {
        "wqkv": wqkv,                                            # (nH+2*nKV, H, hd)
        "wo": wo,                                                # (nH, hd, H)
        "wg": torch_style["gate_proj"].T.astype(jnp.bfloat16),   # (H, I)
        "wu": torch_style["up_proj"].T.astype(jnp.bfloat16),     # (H, I)
        "wd": torch_style["down_proj"].T.astype(jnp.bfloat16),   # (I, H)
        "input_ln_w": torch_style["input_ln"].reshape(1, -1).astype(jnp.float32),
        "post_ln_w": torch_style["post_ln"].reshape(1, -1).astype(jnp.float32),
    }


def reference_forward(x, params, cfg):
    """Pure-JAX fp32 reference using the same (bf16-stored) weights."""
    B, S, H = x.shape
    nH, nKV, hd = cfg["num_heads"], cfg["num_kv_heads"], cfg["head_dim"]
    eps = cfg["eps"]
    groups = nH // nKV

    def rmsnorm(v, w):
        var = jnp.mean(v * v, axis=-1, keepdims=True)
        return v * jax.lax.rsqrt(var + eps) * w

    wqkv = params["wqkv"].astype(jnp.float32)
    wo = params["wo"].astype(jnp.float32)
    wg = params["wg"].astype(jnp.float32)
    wu = params["wu"].astype(jnp.float32)
    wd = params["wd"].astype(jnp.float32)

    x2d = x.reshape(B * S, H).astype(jnp.float32)
    h = rmsnorm(x2d, params["input_ln_w"])
    qkv = jnp.einsum("mk,nkd->nmd", h, wqkv).reshape(-1, B, S, hd)
    q = qkv[:nH]
    k = jnp.repeat(qkv[nH:nH + nKV], groups, axis=0)
    v = jnp.repeat(qkv[nH + nKV:], groups, axis=0)

    cos, sin = _rope_tables(S, hd, cfg["rope_theta"])

    def rope(t):
        t1, t2 = t[..., :hd // 2], t[..., hd // 2:]
        return t * cos + jnp.concatenate([-t2, t1], axis=-1) * sin

    q, k = rope(q), rope(k)
    s = jnp.einsum("hbqd,hbkd->hbqk", q, k) / math.sqrt(hd)
    causal = jnp.tril(jnp.ones((S, S), dtype=bool))
    s = jnp.where(causal[None, None], s, F32_MIN)
    p = jax.nn.softmax(s, axis=-1)
    a = jnp.einsum("hbqk,hbkd->hbqd", p, v).reshape(nH, B * S, hd)
    h1 = x2d + jnp.einsum("hmd,hdo->mo", a, wo)

    h2 = rmsnorm(h1, params["post_ln_w"])
    gate = h2 @ wg
    up = h2 @ wu
    out = h1 + (gate * jax.nn.sigmoid(gate) * up) @ wd
    return out.reshape(B, S, H)


if __name__ == "__main__":
    B, S = 2, 256
    nH, nKV, hd = 4, 2, 128
    H = nH * hd           # 512
    I = 1024
    cfg = dict(num_heads=nH, num_kv_heads=nKV, head_dim=hd, eps=1e-6,
               rope_theta=10000.0)

    key = jax.random.PRNGKey(0)
    keys = jax.random.split(key, 10)

    def w(k, shape, scale=0.05):
        return (scale * jax.random.normal(k, shape)).astype(jnp.float32)

    # PyTorch nn.Linear layout: (out_features, in_features)
    torch_style = {
        "q_proj": w(keys[0], (nH * hd, H)),
        "k_proj": w(keys[1], (nKV * hd, H)),
        "v_proj": w(keys[2], (nKV * hd, H)),
        "o_proj": w(keys[3], (H, nH * hd)),
        "gate_proj": w(keys[4], (I, H)),
        "up_proj": w(keys[5], (I, H)),
        "down_proj": w(keys[6], (H, I)),
        "input_ln": 1.0 + 0.1 * jax.random.normal(keys[7], (H,)),
        "post_ln": 1.0 + 0.1 * jax.random.normal(keys[8], (H,)),
    }
    params = prepare_params(torch_style, nH, nKV, hd)
    x = jax.random.normal(keys[9], (B, S, H), dtype=jnp.float32)

    out = decoder_layer_forward(x, params, cfg)
    jax.block_until_ready(out)

    ref = reference_forward(x, params, cfg)
    out32 = out.astype(jnp.float32)
    err = float(jnp.max(jnp.abs(out32 - ref)))
    scale = float(jnp.max(jnp.abs(ref)))

    assert out.shape == (B, S, H)
    assert jnp.all(jnp.isfinite(out32))
    assert err / scale < 0.05, f"relative error too large: {err} / {scale}"
    print("KERNEL_OK")
</pallas_src>

<mosaic_0001>
module attributes {stable_mosaic.version = 11 : i64} {
  func.func @_norm_qkv_rope_kernel(%arg0: i32, %arg1: i32, %arg2: memref<512x512xbf16, #tpu.memory_space<vmem>>, %arg3: memref<1x512xf32, #tpu.memory_space<vmem>>, %arg4: memref<1x512x128xbf16, #tpu.memory_space<vmem>>, %arg5: memref<512x128xf32, #tpu.memory_space<vmem>>, %arg6: memref<512x128xf32, #tpu.memory_space<vmem>>, %arg7: memref<1x512x128xbf16, #tpu.memory_space<vmem>>, %arg8: memref<512x512xbf16, #tpu.memory_space<vmem>>) attributes {dimension_semantics = [#tpu.dimension_semantics<parallel>, #tpu.dimension_semantics<arbitrary>], iteration_bounds = array<i64: 1, 8>, scalar_prefetch = 0 : i64, scratch_operands = 1 : i64, tpu.core_type = #tpu.core_type<tc>, window_params = [{transform_indices = @transform_0, window_bounds = array<i64: 512, 512>}, {pipeline_mode = #tpu.pipeline_mode<synchronous>, transform_indices = @transform_1, window_bounds = array<i64: 1, 512>}, {transform_indices = @transform_2, window_bounds = array<i64: 1, 512, 128>}, {transform_indices = @transform_3, window_bounds = array<i64: 512, 128>}, {transform_indices = @transform_4, window_bounds = array<i64: 512, 128>}, {transform_indices = @transform_5, window_bounds = array<i64: 1, 512, 128>}]} {
    %c0_i32 = arith.constant 0 : i32
    %0 = arith.cmpi eq, %arg1, %c0_i32 : i32
    %1 = arith.extui %0 : i1 to i32
    %c0_i32_0 = arith.constant 0 : i32
    %2 = arith.cmpi ne, %1, %c0_i32_0 : i32
    scf.if %2 {
      %c0_10 = arith.constant 0 : index
      %c0_11 = arith.constant 0 : index
      %18 = vector.load %arg2[%c0_10, %c0_11] : memref<512x512xbf16, #tpu.memory_space<vmem>>, vector<512x512xbf16>
      %19 = arith.extf %18 : vector<512x512xbf16> to vector<512x512xf32>
      %20 = arith.mulf %19, %19 : vector<512x512xf32>
      %cst_12 = arith.constant dense<0.000000e+00> : vector<512xf32>
      %21 = vector.multi_reduction <add>, %20, %cst_12 [1] : vector<512x512xf32> to vector<512xf32>
      %22 = vector.shape_cast %21 : vector<512xf32> to vector<512x1xf32>
      %cst_13 = arith.constant 5.120000e+02 : f32
      %23 = vector.broadcast %cst_13 : f32 to vector<512x1xf32>
      %24 = arith.divf %22, %23 : vector<512x1xf32>
      %cst_14 = arith.constant 9.99999997E-7 : f32
      %25 = vector.broadcast %cst_14 : f32 to vector<512x1xf32>
      %26 = arith.addf %24, %25 : vector<512x1xf32>
      %27 = math.rsqrt %26 : vector<512x1xf32>
      %28 = vector.broadcast %27 : vector<512x1xf32> to vector<512x512xf32>
      %29 = arith.mulf %19, %28 : vector<512x512xf32>
      %c0_15 = arith.constant 0 : index
      %c0_16 = arith.constant 0 : index
      %30 = vector.load %arg3[%c0_15, %c0_16] : memref<1x512xf32, #tpu.memory_space<vmem>>, vector<1x512xf32>
      %31 = vector.broadcast %30 : vector<1x512xf32> to vector<512x512xf32>
      %32 = arith.mulf %29, %31 : vector<512x512xf32>
      %33 = arith.truncf %32 : vector<512x512xf32> to vector<512x512xbf16>
      %c0_17 = arith.constant 0 : index
      %c0_18 = arith.constant 0 : index
      %34 = vector.load %arg8[%c0_17, %c0_18] : memref<512x512xbf16, #tpu.memory_space<vmem>>, vector<512x512xbf16>
      tpu.vector_store %arg8[%c0_17, %c0_18], %33 {strides = array<i32>} : memref<512x512xbf16, #tpu.memory_space<vmem>>, vector<512x512xbf16>,
    } else {
    }
    %c0 = arith.constant 0 : index
    %c0_1 = arith.constant 0 : index
    %3 = vector.load %arg8[%c0, %c0_1] : memref<512x512xbf16, #tpu.memory_space<vmem>>, vector<512x512xbf16>
    %c0_2 = arith.constant 0 : index
    %c0_3 = arith.constant 0 : index
    %c0_4 = arith.constant 0 : index
    %4 = vector.load %arg4[%c0_2, %c0_3, %c0_4] : memref<1x512x128xbf16, #tpu.memory_space<vmem>>, vector<1x512x128xbf16>
    %5 = vector.shape_cast %4 : vector<1x512x128xbf16> to vector<512x128xbf16>
    %cst = arith.constant dense<0.000000e+00> : vector<512x128xf32>
    %6 = tpu.matmul %3, %5, %cst {dimension_numbers = #tpu.dot_dimension_numbers<[1], [0], [0], [1], [0, 0, 1, 1], [], []>} : vector<512x512xbf16>, vector<512x128xbf16>, vector<512x128xf32> -> vector<512x128xf32>
    %c4_i32 = arith.constant 4 : i32
    %7 = arith.cmpi slt, %arg1, %c4_i32 : i32
    %8 = arith.extui %7 : i1 to i32
    %c0_i32_5 = arith.constant 0 : i32
    %9 = arith.cmpi ne, %8, %c0_i32_5 : i32
    scf.if %9 {
      %c0_10 = arith.constant 0 : index
      %c0_11 = arith.constant 0 : index
      %18 = vector.load %arg5[%c0_10, %c0_11] : memref<512x128xf32, #tpu.memory_space<vmem>>, vector<512x128xf32>
      %19 = arith.mulf %6, %18 : vector<512x128xf32>
      %c64_i32 = arith.constant 64 : i32
      %20 = tpu.dynamic_rotate %6 by %c64_i32 dim 1 : vector<512x128xf32>, i32 -> vector<512x128xf32>
      %c0_12 = arith.constant 0 : index
      %c0_13 = arith.constant 0 : index
      %21 = vector.load %arg6[%c0_12, %c0_13] : memref<512x128xf32, #tpu.memory_space<vmem>>, vector<512x128xf32>
      %22 = arith.mulf %20, %21 : vector<512x128xf32>
      %23 = arith.addf %19, %22 : vector<512x128xf32>
      %cst_14 = arith.constant 0.0883883461 : f32
      %24 = vector.broadcast %cst_14 : f32 to vector<512x128xf32>
      %25 = arith.mulf %23, %24 : vector<512x128xf32>
      %26 = arith.truncf %25 : vector<512x128xf32> to vector<512x128xbf16>
      %c0_15 = arith.constant 0 : index
      %c0_16 = arith.constant 0 : index
      %c0_17 = arith.constant 0 : index
      %27 = vector.load %arg7[%c0_15, %c0_16, %c0_17] : memref<1x512x128xbf16, #tpu.memory_space<vmem>>, vector<1x512x128xbf16>
      %28 = vector.shape_cast %27 : vector<1x512x128xbf16> to vector<512x128xbf16>
      %29 = vector.shape_cast %26 : vector<512x128xbf16> to vector<1x512x128xbf16>
      tpu.vector_store %arg7[%c0_15, %c0_16, %c0_17], %29 {strides = array<i32>} : memref<1x512x128xbf16, #tpu.memory_space<vmem>>, vector<1x512x128xbf16>,
    } else {
    }
    %c4_i32_6 = arith.constant 4 : i32
    %10 = arith.cmpi sge, %arg1, %c4_i32_6 : i32
    %c6_i32 = arith.constant 6 : i32
    %11 = arith.cmpi slt, %arg1, %c6_i32 : i32
    %12 = arith.andi %10, %11 : i1
    %13 = arith.extui %12 : i1 to i32
    %c0_i32_7 = arith.constant 0 : i32
    %14 = arith.cmpi ne, %13, %c0_i32_7 : i32
    scf.if %14 {
      %c0_10 = arith.constant 0 : index
      %c0_11 = arith.constant 0 : index
      %18 = vector.load %arg5[%c0_10, %c0_11] : memref<512x128xf32, #tpu.memory_space<vmem>>, vector<512x128xf32>
      %19 = arith.mulf %6, %18 : vector<512x128xf32>
      %c64_i32 = arith.constant 64 : i32
      %20 = tpu.dynamic_rotate %6 by %c64_i32 dim 1 : vector<512x128xf32>, i32 -> vector<512x128xf32>
      %c0_12 = arith.constant 0 : index
      %c0_13 = arith.constant 0 : index
      %21 = vector.load %arg6[%c0_12, %c0_13] : memref<512x128xf32, #tpu.memory_space<vmem>>, vector<512x128xf32>
      %22 = arith.mulf %20, %21 : vector<512x128xf32>
      %23 = arith.addf %19, %22 : vector<512x128xf32>
      %24 = arith.truncf %23 : vector<512x128xf32> to vector<512x128xbf16>
      %c0_14 = arith.constant 0 : index
      %c0_15 = arith.constant 0 : index
      %c0_16 = arith.constant 0 : index
      %25 = vector.load %arg7[%c0_14, %c0_15, %c0_16] : memref<1x512x128xbf16, #tpu.memory_space<vmem>>, vector<1x512x128xbf16>
      %26 = vector.shape_cast %25 : vector<1x512x128xbf16> to vector<512x128xbf16>
      %27 = vector.shape_cast %24 : vector<512x128xbf16> to vector<1x512x128xbf16>
      tpu.vector_store %arg7[%c0_14, %c0_15, %c0_16], %27 {strides = array<i32>} : memref<1x512x128xbf16, #tpu.memory_space<vmem>>, vector<1x512x128xbf16>,
    } else {
    }
    %c6_i32_8 = arith.constant 6 : i32
    %15 = arith.cmpi sge, %arg1, %c6_i32_8 : i32
    %16 = arith.extui %15 : i1 to i32
    %c0_i32_9 = arith.constant 0 : i32
    %17 = arith.cmpi ne, %16, %c0_i32_9 : i32
    scf.if %17 {
      %18 = arith.truncf %6 : vector<512x128xf32> to vector<512x128xbf16>
      %c0_10 = arith.constant 0 : index
      %c0_11 = arith.constant 0 : index
      %c0_12 = arith.constant 0 : index
      %19 = vector.load %arg7[%c0_10, %c0_11, %c0_12] : memref<1x512x128xbf16, #tpu.memory_space<vmem>>, vector<1x512x128xbf16>
      %20 = vector.shape_cast %19 : vector<1x512x128xbf16> to vector<512x128xbf16>
      %21 = vector.shape_cast %18 : vector<512x128xbf16> to vector<1x512x128xbf16>
      tpu.vector_store %arg7[%c0_10, %c0_11, %c0_12], %21 {strides = array<i32>} : memref<1x512x128xbf16, #tpu.memory_space<vmem>>, vector<1x512x128xbf16>,
    } else {
    }
    return
  }
  func.func @transform_0(%arg0: i32, %arg1: i32) -> (i32, i32) {
    %c0_i32 = arith.constant 0 : i32
    %c0_i32_0 = arith.constant 0 : i32
    return %arg0, %c0_i32 : i32, i32
  }
  func.func @transform_1(%arg0: i32, %arg1: i32) -> (i32, i32) {
    %c0_i32 = arith.constant 0 : i32
    %c0_i32_0 = arith.constant 0 : i32
    %c0_i32_1 = arith.constant 0 : i32
    return %c0_i32, %c0_i32_0 : i32, i32
  }
  func.func @transform_2(%arg0: i32, %arg1: i32) -> (i32, i32, i32) {
    %c0_i32 = arith.constant 0 : i32
    %c0_i32_0 = arith.constant 0 : i32
    %c0_i32_1 = arith.constant 0 : i32
    return %arg1, %c0_i32, %c0_i32_0 : i32, i32, i32
  }
  func.func @transform_3(%arg0: i32, %arg1: i32) -> (i32, i32) {
    %c0_i32 = arith.constant 0 : i32
    %c0_i32_0 = arith.constant 0 : i32
    return %arg0, %c0_i32 : i32, i32
  }
  func.func @transform_4(%arg0: i32, %arg1: i32) -> (i32, i32) {
    %c0_i32 = arith.constant 0 : i32
    %c0_i32_0 = arith.constant 0 : i32
    return %arg0, %c0_i32 : i32, i32
  }
  func.func @transform_5(%arg0: i32, %arg1: i32) -> (i32, i32, i32) {
    %c0_i32 = arith.constant 0 : i32
    %c0_i32_0 = arith.constant 0 : i32
    return %arg1, %arg0, %c0_i32 : i32, i32, i32
  }
}

</mosaic_0001>

<bundles_post_ra>
// kernel: tpu_custom_call.1
= control target key start
LH: loop header
LB: loop body
LE: loop exit
PB: predicated region body
PF: predicated region fallthrough
CT: control target
= control target key end

     0   :  { %s11447_s0 = inlined_call_operand.hbm [shape: bf16[512,512], index: 0, kind: input, shape index: {}]   ;;  %s11448_s1 = inlined_call_operand.hbm [shape: f32[1,512], index: 1, kind: input, shape index: {}]   ;;  %s11449_s2 = inlined_call_operand.hbm [shape: bf16[8,512,128], index: 2, kind: input, shape index: {}]   ;;  %s11450_s3 = inlined_call_operand.hbm [shape: f32[512,128], index: 3, kind: input, shape index: {}]   ;;  %s11451_s4 = inlined_call_operand.hbm [shape: f32[512,128], index: 4, kind: input, shape index: {}]   ;;  %s11452_s5 = inlined_call_operand.hbm [shape: bf16[8,512,128], index: 5, kind: output, shape index: {}]  }
   0x1   :  { %11749 = sst [smem:[#allocation240_spill]] %s11447_s0 }
   0x2   :  { %11750 = sst [smem:[#allocation241_spill]] %s11448_s1 }
   0x3   :  { %11751 = sst [smem:[#allocation242_spill]] %s11450_s3 }
   0x4   :  { %10 = vsyncpa [#allocation4], 0 }
   0x5   :  { %11 = vsyncpa [#allocation7], 0 }
   0x6   :  { %12 = vsyncpa [#allocation11], 0 }
   0x7   :  { %13 = vsyncpa [#allocation5], 0 }
   0x8   :  { %15 = vsyncpa [#allocation5 + $0x1], 0  ;;  %s8011_s18 = smov 0   ;;  %s8013_s19 = smov 0  }
   0x9   :  { %s8015_s20 = smov 0   ;;  %s8017_s21 = smov 0  }
   0xa   :  { %s8019_s22 = smov 0   ;;  %s8021_s23 = smov 0  }
   0xb LB: > { %s8042_s24 = sadd.s32 4294967295, %s7964_s23   ;;  %s6072_s25 = sadd.s32 4294967294, %s7964_s23   ;;  %s7964_s23 = sphi %s8021_s23, %s21_s23   ;;  %s7960_s22 = sphi %s8019_s22, %s12353_s22   ;;  %s7956_s21 = sphi %s8017_s21, %s12352_s21   ;;  %s7952_s20 = sphi %s8015_s20, %s12351_s20   ;;  %s7948_s19 = sphi %s8013_s19, %s12350_s19   ;;  %s7944_s18 = sphi %s8011_s18, %s12349_s18  }
   0xc   : > { %p100_p0 = scmp.ne.s32.totalorder %s7948_s19, %s7944_s18  ;;  %p101_p1 = scmp.eq.s32.totalorder %s8042_s24, 0 }
   0xd   : > { %p178_p2 = scmp.eq.s32.totalorder %s8042_s24, 7  ;;  %p184_p3 = scmp.eq.s32.totalorder %s6072_s25, 7 }
   0xe   : > { %p8051_p4 = por %p101_p1, %p100_p0  ;;  %p6073_p5 = scmp.ge.s32.totalorder %s7964_s23, 1 }
   0xf   : > { %p8056_p6 = por %p184_p3, %p100_p0  ;;  %p191_p7 = scmp.lt.s32.totalorder %s7964_s23, 9 }
  0x10   : > { %s11754_s0 = sld [smem:[#allocation240_spill]]  ;;  %s7966_s7 = smov [#allocation3]  }
  0x11   : > { %p8064_p8 = pnand %p6073_p5, %p191_p7  ;;  %s208_s8 = sshll.u32 %s7966_s7, 4  ;;  %s209_s8 = int_to_ptr.vmem [resolvable:$true] %s208_s8 }
  0x12   : > { %s11757_s1 = sld [smem:[#allocation241_spill]]  ;;  %s7967_s13 = smov 256  }
  0x13   : > { %p7492_p9 = pneg %p8064_p8  ;;  %s7968_s14 = smov 16  }
  0x14   : > { %s7969_s15 = smov [#allocation6]   ;;  %s11758_s3 = sld [smem:[#allocation242_spill]] }
  0x15   : > { %p8072_p10 = pnand %p7492_p9, %p101_p1  ;;  %s223_s16 = sshll.u32 %s7969_s15, 4  ;;  %s224_s16 = int_to_ptr.vmem [resolvable:$true] %s223_s16 }
  0x16   : > { %s206_s30 = sshll.u32 %s11754_s0, 4  ;;  %s7970_s29 = smov [#allocation9]   ;;  %s207_s30 = int_to_ptr.hbm [resolvable:$true] %s206_s30 }
  0x17   : > { %7495 = dma.hbm_to_vmem [thread:$0]  (!%p8072_p10), %s207_s30, 16384, %s209_s8, [#allocation4], %s7967_s13, %s7967_s13, %s7968_s14  }
  0x18   : > { %s221_s12 = sshll.u32 %s11757_s1, 4  ;;  %s237_s7 = sshll.u32 %s7970_s29, 4  ;;  %s222_s12 = int_to_ptr.hbm [resolvable:$true] %s221_s12  ;;  %s238_s7 = int_to_ptr.vmem [resolvable:$true] %s237_s7 }
  0x19   : > { %7498 = dma.hbm_to_vmem [thread:$0]  (!%p8072_p10), %s222_s12, 64, %s224_s16, [#allocation7]  }
  0x1a   : > { %s235_s28 = sshll.u32 %s11758_s3, 4  ;;  %s252_s10 = sshll.u32 %s11451_s4, 4  ;;  %s236_s28 = int_to_ptr.hbm [resolvable:$true] %s235_s28  ;;  %s253_s10 = int_to_ptr.hbm [resolvable:$true] %s252_s10 }
  0x1b   : > { %s7971_s11 = smov 128   ;;  %s7972_s13 = smov 8  }
  0x1c   : > { %7501 = dma.hbm_to_vmem [thread:$0]  (!%p8072_p10), %s236_s28, 8192, %s238_s7, [#allocation7], %s7971_s11, %s7971_s11, %s7972_s13  }
  0x1d   : > { %s7973_s12 = smov [#allocation10]   ;;  %s30_s15 = sadd.s32 1, %s7960_s22 }
  0x1e   : > { %s254_s14 = sshll.u32 %s7973_s12, 4  ;;  %s87_s16 = sadd.s32 1, %s7952_s20  ;;  %s255_s14 = int_to_ptr.vmem [resolvable:$true] %s254_s14 }
  0x1f   : > { %7504 = dma.hbm_to_vmem [thread:$0]  (!%p8072_p10), %s253_s10, 8192, %s255_s14, [#allocation11], %s7971_s11, %s7971_s11, %s7972_s13  }
  0x20   : > { %p31_p11 = scmp.ge.s32.totalorder %s30_s15, 8  ;;  %p94_p12 = scmp.ne.s32.totalorder %s7952_s20, %s7948_s19 }
  0x21   : > { %p95_p13 = scmp.eq.s32.totalorder %s7964_s23, 0  ;;  %p7517_p0 = scmp.lt.s32.totalorder %s7964_s23, 8 }
  0x22   : > { %s12355_s15 = smov (%p31_p11, %s30_s15), 0  ;;  %p8107_p5 = por %p178_p2, %p94_p12 }
  0x23   : > { %p8101_p3 = por %p95_p13, %p94_p12  ;;  %s84_s25 = ssub.s32 %s7960_s22, %s12355_s15 }
  0x24   : > { %s268_s28 = sand.u32 1, %s7964_s23   ;;  %p85_p7 = scmp.eq.s32.totalorder %s84_s25, 0 }
  0x25   : > { %s270_s29 = sand.u32 1, %s7952_s20   ;;  %s6737_s7 = sshll.u32 %s7960_s22, 8 }
  0x26   : > { %s8117_s30 = scalar_select %p85_p7, %s7952_s20, %s87_s16  }
  0x27   : > { %s6079_s8 = sshll.u32 %s270_s29, 8  ;;  %s277_s13 = scalar_lea.hbm %s11449_s2, %s6737_s7 }
  0x28   : > { %s278_s12 = sshll.u32 %s277_s13, 4  ;;  %s272_s14 = scalar_lea.vmem [#allocation8], %s6079_s8  ;;  %s279_s12 = int_to_ptr.hbm [resolvable:$true] %s278_s12 }
  0x29   : > { %s280_s0 = sshll.u32 %s272_s14, 4  ;;  %p7506_p2 = pnand %p7517_p0, %p8101_p3  ;;  %s281_s0 = int_to_ptr.vmem [resolvable:$true] %s280_s0 }
  0x2a   : > { %s269_s1 = scalar_lea.sflag [#allocation4], %s268_s28  ;;  %s7974_s3 = smov 64  }
  0x2b   : > { %s7975_s25 = smov 4   ;;  %292 = sbr.rel (%p8064_p8) target bundleno = 1955 (0x7a3), region = 40 }
  0x2c   : > { %7508 = dma.hbm_to_vmem [thread:$0]  (!%p7506_p2), %s279_s12, 4096, %s281_s0, %s269_s1, %s7974_s3, %s7974_s3, %s7975_s25  }
  0x30   : > { %7919 = dma.done.wait (%p101_p1), [#allocation4], 16384  }
  0x31   : > { %7921 = vsyncadd (%p101_p1), [#allocation4], 4294950912 }
  0x32   : > { %7923 = dma.done.wait (%p101_p1), [#allocation7], 64  }
  0x33   : > { %7925 = vsyncadd (%p101_p1), [#allocation7], 4294967232  ;;  %s304_s0 = sand.u32 1, %s8042_s24   ;;  %s306_s1 = sand.u32 1, %s7948_s19  }
  0x34   : > { %s6085_s3 = sshll.u32 %s306_s1, 8  ;;  %s305_s6 = scalar_lea.sflag [#allocation4], %s304_s0 }
  0x35   : > { %s8140_s16 = scalar_lea.vmem [#allocation8], %s6085_s3 }
  0x36   : > { %7927 = dma.done.wait (%p8051_p4), %s305_s6, 4096  }
  0x37   : > { %7929 = vsyncadd (%p8051_p4), %s305_s6, 4294963200 }
  0x38   : > { %7931 = dma.done.wait (%p101_p1), [#allocation7], 8192  }
  0x39   : > { %7933 = vsyncadd (%p101_p1), [#allocation7], 4294959104 }
  0x3a   : > { %7935 = dma.done.wait (%p101_p1), [#allocation11], 8192  }
  0x3b   : > { %7937 = vsyncadd (%p101_p1), [#allocation11], 4294959104  ;;  %s8154_s17 = scalar_lea.vmem [#allocation12], %s6085_s3  ;;  %p6089_p8 = scmp.ne.s32.totalorder %s7956_s21, 0 }
  0x3d   : > { %353 = sbr.rel (%p6089_p8) target bundleno = 635 (0x27b), region = 64 }
  0x42   : > { %v362_v0 = vld [vmem:[#allocation3 + $0x40] sm:$0xff]  ;;  %v363_v1 = vld [vmem:[#allocation3 + $0x48] sm:$0xff]  ;;  %v364_v18 = vld [vmem:[#allocation3 + $0x50] sm:$0xff] }
  0x43   : > { %v358_v2 = vld [vmem:[#allocation3 + $0x20] sm:$0xff]  ;;  %v8157_v3 = vunpack.c.l.bf16 %v362_v0  ;;  %v8159_v4 = vunpack.c.h.bf16 %v362_v0  ;;  %v8161_v5 = vunpack.c.l.bf16 %v363_v1  ;;  %v8163_v6 = vunpack.c.h.bf16 %v363_v1  ;;  %v359_v7 = vld [vmem:[#allocation3 + $0x28] sm:$0xff]  ;;  %v365_v27 = vld [vmem:[#allocation3 + $0x58] sm:$0xff] }
  0x44   : > { %v8165_v8 = vunpack.c.l.bf16 %v358_v2  ;;  %v8167_v9 = vunpack.c.h.bf16 %v358_v2  ;;  %v8169_v10 = vunpack.c.l.bf16 %v359_v7  ;;  %v8171_v11 = vunpack.c.h.bf16 %v359_v7  ;;  %v354_v12 = vld [vmem:[#allocation3] sm:$0xff]  ;;  %v355_v13 = vld [vmem:[#allocation3 + $0x8] sm:$0xff]  ;;  %v360_v36 = vld [vmem:[#allocation3 + $0x30] sm:$0xff] }
  0x45   : > { %v754_v14 = vmul.f32 %v8157_v3, %v8157_v3  ;;  %v755_v15 = vmul.f32 %v8159_v4, %v8159_v4  ;;  %v756_v16 = vmul.f32 %v8161_v5, %v8161_v5  ;;  %v757_v17 = vmul.f32 %v8163_v6, %v8163_v6  ;;  %v361_v41 = vld [vmem:[#allocation3 + $0x38] sm:$0xff]  ;;  %v356_v46 = vld [vmem:[#allocation3 + $0x10] sm:$0xff]  ;;  %v370_v60 = vld [vmem:[#allocation3 + $0x80] sm:$0xff] }
  0x46   : > { %v746_v19 = vmul.f32 %v8165_v8, %v8165_v8  ;;  %v747_v20 = vmul.f32 %v8167_v9, %v8167_v9  ;;  %v748_v21 = vmul.f32 %v8169_v10, %v8169_v10  ;;  %v749_v22 = vmul.f32 %v8171_v11, %v8171_v11  ;;  %v357_v55 = vld [vmem:[#allocation3 + $0x18] sm:$0xff]  ;;  %v371_v1 = vld [vmem:[#allocation3 + $0x88] sm:$0xff] }
  0x47   : > { %v1014_v23 = vadd.f32 %v755_v15, %v754_v14  ;;  %v8189_v24 = vunpack.c.l.bf16 %v354_v12  ;;  %v8191_v25 = vunpack.c.h.bf16 %v354_v12  ;;  %v8193_v26 = vunpack.c.l.bf16 %v355_v13 }
  0x48   : > { %v1004_v28 = vadd.f32 %v747_v20, %v746_v19  ;;  %v8195_v29 = vunpack.c.h.bf16 %v355_v13  ;;  %v8197_v30 = vunpack.c.l.bf16 %v364_v18  ;;  %v8199_v31 = vunpack.c.h.bf16 %v364_v18  ;;  %v368_v18 = vld [vmem:[#allocation3 + $0x70] sm:$0xff] }
  0x49   : > { %v1015_v32 = vadd.f32 %v1014_v23, %v756_v16  ;;  %v738_v33 = vmul.f32 %v8189_v24, %v8189_v24  ;;  %v739_v34 = vmul.f32 %v8191_v25, %v8191_v25  ;;  %v740_v35 = vmul.f32 %v8193_v26, %v8193_v26  ;;  %v369_v23 = vld [vmem:[#allocation3 + $0x78] sm:$0xff] }
  0x4a   : > { %v1005_v37 = vadd.f32 %v1004_v28, %v748_v21  ;;  %v741_v38 = vmul.f32 %v8195_v29, %v8195_v29  ;;  %v8209_v39 = vunpack.c.l.bf16 %v365_v27  ;;  %v8211_v40 = vunpack.c.h.bf16 %v365_v27 }
  0x4b   : > { %v1016_v42 = vadd.f32 %v1015_v32, %v757_v17  ;;  %v994_v43 = vadd.f32 %v739_v34, %v738_v33  ;;  %v758_v44 = vmul.f32 %v8197_v30, %v8197_v30  ;;  %v759_v45 = vmul.f32 %v8199_v31, %v8199_v31 }
  0x4c   : > { %v1006_v47 = vadd.f32 %v1005_v37, %v749_v22  ;;  %v760_v48 = vmul.f32 %v8209_v39, %v8209_v39  ;;  %v761_v49 = vmul.f32 %v8211_v40, %v8211_v40  ;;  %v8221_v50 = vunpack.c.l.bf16 %v360_v36 }
  0x4d   : > { %1017 = vadd.xlane.f32.xlu2 %v1016_v42  ;;  %v995_v51 = vadd.f32 %v994_v43, %v740_v35  ;;  %v1019_v52 = vadd.f32 %v759_v45, %v758_v44  ;;  %v8223_v53 = vunpack.c.h.bf16 %v360_v36  ;;  %v8225_v54 = vunpack.c.l.bf16 %v361_v41  ;;  %v367_v45 = vld [vmem:[#allocation3 + $0x68] sm:$0xff] }
  0x4e   : > { %1007 = vadd.xlane.f32.xlu1 %v1006_v47  ;;  %v8227_v56 = vunpack.c.h.bf16 %v361_v41  ;;  %v750_v57 = vmul.f32 %v8221_v50, %v8221_v50  ;;  %v8231_v58 = vunpack.c.l.bf16 %v356_v46  ;;  %v8233_v59 = vunpack.c.h.bf16 %v356_v46 }
  0x4f   : > { %v996_v61 = vadd.f32 %v995_v51, %v741_v38  ;;  %v1020_v62 = vadd.f32 %v1019_v52, %v760_v48  ;;  %v751_v63 = vmul.f32 %v8223_v53, %v8223_v53  ;;  %v752_v0 = vmul.f32 %v8225_v54, %v8225_v54  ;;  %v366_v38 = vld [vmem:[#allocation3 + $0x60] sm:$0xff]  ;;  %v376_v51 = vld [vmem:[#allocation3 + $0xb0] sm:$0xff] }
  0x50   : > { %v753_v2 = vmul.f32 %v8227_v56, %v8227_v56  ;;  %v8241_v7 = vunpack.c.l.bf16 %v357_v55  ;;  %v8243_v12 = vunpack.c.h.bf16 %v357_v55  ;;  %v742_v13 = vmul.f32 %v8231_v58, %v8231_v58 }
  0x51   : > { %997 = vadd.xlane.f32.xlu0 %v996_v61  ;;  %v1021_v14 = vadd.f32 %v1020_v62, %v761_v49  ;;  %v1009_v15 = vadd.f32 %v751_v63, %v750_v57  ;;  %v743_v16 = vmul.f32 %v8233_v59, %v8233_v59  ;;  %v8249_v17 = vunpack.c.l.bf16 %v370_v60 }
  0x52   : > { %v744_v19 = vmul.f32 %v8241_v7, %v8241_v7  ;;  %v745_v20 = vmul.f32 %v8243_v12, %v8243_v12  ;;  %v8255_v21 = vunpack.c.h.bf16 %v370_v60  ;;  %v8257_v22 = vunpack.c.l.bf16 %v371_v1 }
  0x53   : > { %v1010_v27 = vadd.f32 %v1009_v15, %v752_v0  ;;  %v999_v28 = vadd.f32 %v743_v16, %v742_v13  ;;  %v8259_v32 = vunpack.c.h.bf16 %v371_v1  ;;  %v770_v33 = vmul.f32 %v8249_v17, %v8249_v17  ;;  %v377_v1 = vld [vmem:[#allocation3 + $0xb8] sm:$0xff]  ;;  %v374_v16 = vld [vmem:[#allocation3 + $0xa0] sm:$0xff] }
  0x54   : > { %11761 = vst [vmem:[#allocation19_spill] sm:$0xff] %v8257_v22  ;;  %v771_v34 = vmul.f32 %v8255_v21, %v8255_v21  ;;  %v772_v35 = vmul.f32 %v8257_v22, %v8257_v22  ;;  %v8267_v36 = vunpack.c.l.bf16 %v368_v18  ;;  %v8269_v37 = vunpack.c.h.bf16 %v368_v18 }
  0x55   : > { %11762 = vst [vmem:[#allocation20_spill] sm:$0xff] %v8259_v32  ;;  %1022 = vadd.xlane.f32.xlu2 %v1021_v14  ;;  %v1011_v41 = vadd.f32 %v1010_v27, %v753_v2  ;;  %v1000_v42 = vadd.f32 %v999_v28, %v744_v19  ;;  %v773_v43 = vmul.f32 %v8259_v32, %v8259_v32  ;;  %v8273_v44 = vunpack.c.l.bf16 %v369_v23 }
  0x56   : > { %11763 = vst [vmem:[#allocation21_spill] sm:$0xff] %v8267_v36  ;;  %v1034_v46 = vadd.f32 %v771_v34, %v770_v33  ;;  %v8275_v47 = vunpack.c.h.bf16 %v369_v23  ;;  %v766_v48 = vmul.f32 %v8267_v36, %v8267_v36  ;;  %v767_v49 = vmul.f32 %v8269_v37, %v8269_v37 }
  0x57   : > { %11764 = vst [vmem:[#allocation22_spill] sm:$0xff] %v8269_v37  ;;  %1012 = vadd.xlane.f32.xlu1 %v1011_v41  ;;  %v1001_v52 = vadd.f32 %v1000_v42, %v745_v20  ;;  %v768_v55 = vmul.f32 %v8273_v44, %v8273_v44  ;;  %v8283_v57 = vunpack.c.l.bf16 %v366_v38  ;;  %v8285_v60 = vunpack.c.h.bf16 %v366_v38 }
  0x58   : > { %11765 = vst [vmem:[#allocation23_spill] sm:$0xff] %v8273_v44  ;;  %v1035_v61 = vadd.f32 %v1034_v46, %v772_v35  ;;  %v769_v62 = vmul.f32 %v8275_v47, %v8275_v47  ;;  %v1029_v63 = vadd.f32 %v767_v49, %v766_v48  ;;  %v8289_v0 = vunpack.c.l.bf16 %v367_v45  ;;  %v375_v35 = vld [vmem:[#allocation3 + $0xa8] sm:$0xff] }
  0x59   : > { %11766 = vst [vmem:[#allocation24_spill] sm:$0xff] %v8275_v47  ;;  %1002 = vadd.xlane.f32.xlu0 %v1001_v52  ;;  %v8291_v2 = vunpack.c.h.bf16 %v367_v45  ;;  %v762_v13 = vmul.f32 %v8283_v57, %v8283_v57  ;;  %v763_v14 = vmul.f32 %v8285_v60, %v8285_v60  ;;  %v8297_v15 = vunpack.c.l.bf16 %v376_v51  ;;  %v372_v45 = vld [vmem:[#allocation3 + $0x90] sm:$0xff]  ;;  %v373_v52 = vld [vmem:[#allocation3 + $0x98] sm:$0xff] }
  0x5a   : > { %11767 = vst [vmem:[#allocation25_spill] sm:$0xff] %v8283_v57  ;;  %v1036_v18 = vadd.f32 %v1035_v61, %v773_v43  ;;  %v1030_v19 = vadd.f32 %v1029_v63, %v768_v55  ;;  %v764_v20 = vmul.f32 %v8289_v0, %v8289_v0  ;;  %v8301_v23 = vunpack.c.h.bf16 %v376_v51 }
  0x5b   : > { %11768 = vst [vmem:[#allocation26_spill] sm:$0xff] %v8285_v60  ;;  %v765_v27 = vmul.f32 %v8291_v2, %v8291_v2  ;;  %v1024_v28 = vadd.f32 %v763_v14, %v762_v13  ;;  %v8305_v33 = vunpack.c.l.bf16 %v377_v1  ;;  %v8307_v34 = vunpack.c.h.bf16 %v377_v1 }
  0x5c   : > { %11769 = vst [vmem:[#allocation27_spill] sm:$0xff] %v8289_v0  ;;  %v1031_v38 = vadd.f32 %v1030_v19, %v769_v62  ;;  %v782_v41 = vmul.f32 %v8297_v15, %v8297_v15  ;;  %v783_v42 = vmul.f32 %v8301_v23, %v8301_v23  ;;  %v8313_v43 = vunpack.c.l.bf16 %v374_v16 }
  0x5d   : > { %11770 = vst [vmem:[#allocation28_spill] sm:$0xff] %v8291_v2  ;;  %1037 = vadd.xlane.f32.xlu2 %v1036_v18  ;;  %v1025_v46 = vadd.f32 %v1024_v28, %v764_v20  ;;  %v784_v48 = vmul.f32 %v8305_v33, %v8305_v33  ;;  %v785_v49 = vmul.f32 %v8307_v34, %v8307_v34  ;;  %v8319_v51 = vunpack.c.h.bf16 %v374_v16  ;;  %v382_v16 = vld [vmem:[#allocation3 + $0xe0] sm:$0xff] }
  0x5e   : > { %11771 = vst [vmem:[#allocation29_spill] sm:$0xff] %v8297_v15  ;;  %v1049_v55 = vadd.f32 %v783_v42, %v782_v41  ;;  %v8321_v61 = vunpack.c.l.bf16 %v375_v35  ;;  %v8323_v62 = vunpack.c.h.bf16 %v375_v35  ;;  %v778_v63 = vmul.f32 %v8313_v43, %v8313_v43  ;;  %v383_v41 = vld [vmem:[#allocation3 + $0xe8] sm:$0xff] }
  0x5f   : > { %11772 = vst [vmem:[#allocation30_spill] sm:$0xff] %v8301_v23  ;;  %1032 = vadd.xlane.f32.xlu1 %v1031_v38  ;;  %v1026_v1 = vadd.f32 %v1025_v46, %v765_v27  ;;  %v779_v13 = vmul.f32 %v8319_v51, %v8319_v51  ;;  %v8329_v14 = vunpack.c.l.bf16 %v372_v45  ;;  %v8331_v18 = vunpack.c.h.bf16 %v372_v45  ;;  %v380_v46 = vld [vmem:[#allocation3 + $0xd0] sm:$0xff] }
  0x60   : > { %11773 = vst [vmem:[#allocation31_spill] sm:$0xff] %v8305_v33  ;;  %v1050_v19 = vadd.f32 %v1049_v55, %v784_v48  ;;  %v780_v20 = vmul.f32 %v8321_v61, %v8321_v61  ;;  %v781_v28 = vmul.f32 %v8323_v62, %v8323_v62  ;;  %v8337_v35 = vunpack.c.l.bf16 %v373_v52 }
  0x61   : > { %11774 = vst [vmem:[#allocation32_spill] sm:$0xff] %v8307_v34  ;;  %1027 = vadd.xlane.f32.xlu0 %v1026_v1  ;;  %v1044_v27 = vadd.f32 %v779_v13, %v778_v63  ;;  %v8339_v38 = vunpack.c.h.bf16 %v373_v52  ;;  %v774_v42 = vmul.f32 %v8329_v14, %v8329_v14  ;;  %v775_v45 = vmul.f32 %v8331_v18, %v8331_v18  ;;  %v381_v13 = vld [vmem:[#allocation3 + $0xd8] sm:$0xff] }
  0x62   : > { %11775 = vst [vmem:[#allocation33_spill] sm:$0xff] %v8313_v43  ;;  %v1051_v48 = vadd.f32 %v1050_v19, %v785_v49  ;;  %v776_v55 = vmul.f32 %v8337_v35, %v8337_v35  ;;  %v8353_v1 = vunpack.c.l.bf16 %v383_v41 }
  0x63   : > { %11776 = vst [vmem:[#allocation34_spill] sm:$0xff] %v8319_v51  ;;  %v1045_v51 = vadd.f32 %v1044_v27, %v780_v20  ;;  %v777_v52 = vmul.f32 %v8339_v38, %v8339_v38  ;;  %v1039_v63 = vadd.f32 %v775_v45, %v774_v42  ;;  %v8365_v45 = vunpack.c.h.bf16 %v380_v46 }
  0x64   : > { %11777 = vst [vmem:[#allocation35_spill] sm:$0xff] %v8321_v61  ;;  %v8347_v61 = vunpack.c.l.bf16 %v382_v16  ;;  %v796_v42 = vmul.f32 %v8353_v1, %v8353_v1 }
  0x65   : > { %11778 = vst [vmem:[#allocation36_spill] sm:$0xff] %v8323_v62  ;;  %v8349_v62 = vunpack.c.h.bf16 %v382_v16  ;;  %v378_v16 = vld [vmem:[#allocation3 + $0xc0] sm:$0xff]  ;;  %1052 = vadd.xlane.f32.xlu2 %v1051_v48  ;;  %v1046_v20 = vadd.f32 %v1045_v51, %v781_v28  ;;  %v1040_v27 = vadd.f32 %v1039_v63, %v776_v55  ;;  %v791_v28 = vmul.f32 %v8365_v45, %v8365_v45 }
  0x66   : > { %11779 = vst [vmem:[#allocation37_spill] sm:$0xff] %v8329_v14  ;;  %v8355_v14 = vunpack.c.h.bf16 %v383_v41  ;;  %v794_v49 = vmul.f32 %v8347_v61, %v8347_v61  ;;  %v8377_v48 = vunpack.c.l.bf16 %v378_v16 }
  0x67   : > { %11780 = vst [vmem:[#allocation38_spill] sm:$0xff] %v8331_v18  ;;  %v795_v19 = vmul.f32 %v8349_v62, %v8349_v62  ;;  %v8369_v18 = vunpack.c.l.bf16 %v381_v13  ;;  %1047 = vadd.xlane.f32.xlu1 %v1046_v20  ;;  %v1041_v43 = vadd.f32 %v1040_v27, %v777_v52 }
  0x68   : > { %11781 = vst [vmem:[#allocation39_spill] sm:$0xff] %v8337_v35  ;;  %v8361_v35 = vunpack.c.l.bf16 %v380_v46  ;;  %v797_v41 = vmul.f32 %v8355_v14, %v8355_v14  ;;  %v388_v46 = vld [vmem:[#allocation3 + $0x110] sm:$0xff] }
  0x69   : > { %11782 = vst [vmem:[#allocation40_spill] sm:$0xff] %v8339_v38  ;;  %v1064_v38 = vadd.f32 %v795_v19, %v794_v49  ;;  %v792_v63 = vmul.f32 %v8369_v18, %v8369_v18  ;;  %v8383_v49 = vunpack.c.h.bf16 %v378_v16  ;;  %v389_v19 = vld [vmem:[#allocation3 + $0x118] sm:$0xff]  ;;  %1042 = vadd.xlane.f32.xlu0 %v1041_v43  ;;  %v386_v16 = vld [vmem:[#allocation3 + $0x100] sm:$0xff] }
  0x6a   : > { %11783 = vst [vmem:[#allocation41_spill] sm:$0xff] %v8347_v61  ;;  %v8371_v61 = vunpack.c.h.bf16 %v381_v13  ;;  %v790_v51 = vmul.f32 %v8361_v35, %v8361_v35 }
  0x6b   : > { %11784 = vst [vmem:[#allocation42_spill] sm:$0xff] %v8349_v62  ;;  %v379_v62 = vld [vmem:[#allocation3 + $0xc8] sm:$0xff]  ;;  %v1065_v55 = vadd.f32 %v1064_v38, %v796_v42  ;;  %v787_v38 = vmul.f32 %v8383_v49, %v8383_v49  ;;  %v8393_v42 = vunpack.c.l.bf16 %v388_v46 }
  0x6c   : > { %11785 = vst [vmem:[#allocation43_spill] sm:$0xff] %v8353_v1  ;;  %v793_v13 = vmul.f32 %v8371_v61, %v8371_v61  ;;  %v1059_v52 = vadd.f32 %v791_v28, %v790_v51  ;;  %v8385_v20 = vunpack.c.l.bf16 %v379_v62  ;;  %v8387_v27 = vunpack.c.h.bf16 %v379_v62  ;;  %v387_v28 = vld [vmem:[#allocation3 + $0x108] sm:$0xff] }
  0x6d   : > { %11786 = vst [vmem:[#allocation44_spill] sm:$0xff] %v8355_v14  ;;  %v8401_v51 = vunpack.c.l.bf16 %v389_v19 }
  0x6e   : > { %11787 = vst [vmem:[#allocation45_spill] sm:$0xff] %v8361_v35  ;;  %v1066_v35 = vadd.f32 %v1065_v55, %v797_v41  ;;  %v788_v43 = vmul.f32 %v8385_v20, %v8385_v20  ;;  %v789_v62 = vmul.f32 %v8387_v27, %v8387_v27  ;;  %v8403_v41 = vunpack.c.h.bf16 %v389_v19 }
  0x6f   : > { %11788 = vst [vmem:[#allocation46_spill] sm:$0xff] %v8365_v45  ;;  %v786_v45 = vmul.f32 %v8377_v48, %v8377_v48  ;;  %v806_v55 = vmul.f32 %v8393_v42, %v8393_v42 }
  0x70   : > { %11789 = vst [vmem:[#allocation47_spill] sm:$0xff] %v8369_v18  ;;  %v8395_v18 = vunpack.c.h.bf16 %v388_v46  ;;  %1067 = vadd.xlane.f32.xlu2 %v1066_v35 }
  0x71   : > { %11790 = vst [vmem:[#allocation48_spill] sm:$0xff] %v8371_v61  ;;  %v1060_v61 = vadd.f32 %v1059_v52, %v792_v63  ;;  %v808_v52 = vmul.f32 %v8401_v51, %v8401_v51 }
  0x72   : > { %11791 = vst [vmem:[#allocation49_spill] sm:$0xff] %v8377_v48  ;;  %v1054_v48 = vadd.f32 %v787_v38, %v786_v45  ;;  %v807_v46 = vmul.f32 %v8395_v18, %v8395_v18  ;;  %v809_v45 = vmul.f32 %v8403_v41, %v8403_v41  ;;  %v8417_v38 = vunpack.c.l.bf16 %v387_v28 }
  0x73   : > { %11792 = vst [vmem:[#allocation50_spill] sm:$0xff] %v8383_v49  ;;  %v384_v49 = vld [vmem:[#allocation3 + $0xf0] sm:$0xff]  ;;  %v1061_v63 = vadd.f32 %v1060_v61, %v793_v13 }
  0x74   : > { %11793 = vst [vmem:[#allocation51_spill] sm:$0xff] %v8385_v20  ;;  %v8411_v20 = vunpack.c.l.bf16 %v386_v16  ;;  %v1055_v14 = vadd.f32 %v1054_v48, %v788_v43  ;;  %v1079_v19 = vadd.f32 %v807_v46, %v806_v55  ;;  %v8425_v13 = vunpack.c.l.bf16 %v384_v49 }
  0x75   : > { %11794 = vst [vmem:[#allocation52_spill] sm:$0xff] %v8387_v27  ;;  %v8413_v27 = vunpack.c.h.bf16 %v386_v16  ;;  %1062 = vadd.xlane.f32.xlu1 %v1061_v63  ;;  %v394_v16 = vld [vmem:[#allocation3 + $0x140] sm:$0xff]  ;;  %v804_v55 = vmul.f32 %v8417_v38, %v8417_v38  ;;  %v8429_v46 = vunpack.c.h.bf16 %v384_v49  ;;  %v392_v49 = vld [vmem:[#allocation3 + $0x130] sm:$0xff] }
  0x76   : > { %11795 = vst [vmem:[#allocation53_spill] sm:$0xff] %v8393_v42  ;;  %v385_v42 = vld [vmem:[#allocation3 + $0xf8] sm:$0xff]  ;;  %v802_v61 = vmul.f32 %v8411_v20, %v8411_v20  ;;  %v1056_v48 = vadd.f32 %v1055_v14, %v789_v62  ;;  %v1080_v43 = vadd.f32 %v1079_v19, %v808_v52  ;;  %v798_v14 = vmul.f32 %v8425_v13, %v8425_v13 }
  0x77   : > { %11796 = vst [vmem:[#allocation54_spill] sm:$0xff] %v8395_v18  ;;  %v8419_v18 = vunpack.c.h.bf16 %v387_v28  ;;  %v803_v35 = vmul.f32 %v8413_v27, %v8413_v27  ;;  %v799_v62 = vmul.f32 %v8429_v46, %v8429_v46  ;;  %v8441_v52 = vunpack.c.l.bf16 %v394_v16 }
  0x78   : > { %11797 = vst [vmem:[#allocation55_spill] sm:$0xff] %v8401_v51  ;;  %v395_v51 = vld [vmem:[#allocation3 + $0x148] sm:$0xff]  ;;  %1057 = vadd.xlane.f32.xlu0 %v1056_v48  ;;  %v393_v48 = vld [vmem:[#allocation3 + $0x138] sm:$0xff] }
  0x79   : > { %11798 = vst [vmem:[#allocation56_spill] sm:$0xff] %v8403_v41  ;;  %v805_v28 = vmul.f32 %v8419_v18, %v8419_v18  ;;  %v1074_v63 = vadd.f32 %v803_v35, %v802_v61  ;;  %v8433_v41 = vunpack.c.l.bf16 %v385_v42  ;;  %v8447_v35 = vunpack.c.h.bf16 %v394_v16  ;;  %v390_v16 = vld [vmem:[#allocation3 + $0x120] sm:$0xff] }
  0x7a   : > { %11799 = vst [vmem:[#allocation57_spill] sm:$0xff] %v8411_v20  ;;  %v8435_v20 = vunpack.c.h.bf16 %v385_v42 }
  0x7b   : > { %11800 = vst [vmem:[#allocation58_spill] sm:$0xff] %v8413_v27  ;;  %v1081_v27 = vadd.f32 %v1080_v43, %v809_v45  ;;  %v1075_v19 = vadd.f32 %v1074_v63, %v804_v55  ;;  %v800_v61 = vmul.f32 %v8433_v41, %v8433_v41  ;;  %v1069_v45 = vadd.f32 %v799_v62, %v798_v14 }
  0x7c   : > { %11801 = vst [vmem:[#allocation59_spill] sm:$0xff] %v8417_v38  ;;  %v801_v42 = vmul.f32 %v8435_v20, %v8435_v20  ;;  %v8449_v43 = vunpack.c.l.bf16 %v395_v51  ;;  %v819_v55 = vmul.f32 %v8447_v35, %v8447_v35  ;;  %v8457_v63 = vunpack.c.l.bf16 %v392_v49 }
  0x7d   : > { %11802 = vst [vmem:[#allocation60_spill] sm:$0xff] %v8419_v18  ;;  %1082 = vadd.xlane.f32.xlu2 %v1081_v27  ;;  %v1076_v18 = vadd.f32 %v1075_v19, %v805_v28  ;;  %v8465_v62 = vunpack.c.l.bf16 %v393_v48  ;;  %v8467_v28 = vunpack.c.h.bf16 %v393_v48 }
  0x7e   : > { %11803 = vst [vmem:[#allocation61_spill] sm:$0xff] %v8425_v13  ;;  %v8451_v13 = vunpack.c.h.bf16 %v395_v51  ;;  %v820_v14 = vmul.f32 %v8449_v43, %v8449_v43  ;;  %v814_v19 = vmul.f32 %v8457_v63, %v8457_v63 }
  0x7f   : > { %11804 = vst [vmem:[#allocation62_spill] sm:$0xff] %v8429_v46  ;;  %v818_v46 = vmul.f32 %v8441_v52, %v8441_v52  ;;  %1077 = vadd.xlane.f32.xlu1 %v1076_v18  ;;  %v817_v18 = vmul.f32 %v8467_v28, %v8467_v28 }
  0x80   : > { %11805 = vst [vmem:[#allocation63_spill] sm:$0xff] %v8433_v41  ;;  %v8459_v41 = vunpack.c.h.bf16 %v392_v49  ;;  %v821_v51 = vmul.f32 %v8451_v13, %v8451_v13 }
  0x81   : > { %11806 = vst [vmem:[#allocation64_spill] sm:$0xff] %v8435_v20  ;;  %v1070_v20 = vadd.f32 %v1069_v45, %v800_v61  ;;  %v1094_v27 = vadd.f32 %v819_v55, %v818_v46  ;;  %v400_v61 = vld [vmem:[#allocation3 + $0x170] sm:$0xff]  ;;  %v401_v55 = vld [vmem:[#allocation3 + $0x178] sm:$0xff] }
  0x82   : > { %11807 = vst [vmem:[#allocation65_spill] sm:$0xff] %v8441_v52  ;;  %v391_v52 = vld [vmem:[#allocation3 + $0x128] sm:$0xff]  ;;  %v815_v49 = vmul.f32 %v8459_v41, %v8459_v41 }
  0x83   : > { %11808 = vst [vmem:[#allocation66_spill] sm:$0xff] %v8447_v35  ;;  %v1071_v45 = vadd.f32 %v1070_v20, %v801_v42  ;;  %v8475_v35 = vunpack.c.l.bf16 %v390_v16  ;;  %v1095_v38 = vadd.f32 %v1094_v27, %v820_v14  ;;  %v8481_v48 = vunpack.c.l.bf16 %v391_v52 }
  0x84   : > { %11809 = vst [vmem:[#allocation67_spill] sm:$0xff] %v8449_v43  ;;  %v816_v43 = vmul.f32 %v8465_v62, %v8465_v62  ;;  %v1089_v46 = vadd.f32 %v815_v49, %v814_v19  ;;  %v8493_v49 = vunpack.c.h.bf16 %v400_v61 }
  0x85   : > { %11810 = vst [vmem:[#allocation68_spill] sm:$0xff] %v8451_v13  ;;  %v8477_v13 = vunpack.c.h.bf16 %v390_v16  ;;  %1072 = vadd.xlane.f32.xlu0 %v1071_v45  ;;  %v810_v20 = vmul.f32 %v8475_v35, %v8475_v35  ;;  %v398_v16 = vld [vmem:[#allocation3 + $0x160] sm:$0xff]  ;;  %v1096_v14 = vadd.f32 %v1095_v38, %v821_v51  ;;  %v812_v19 = vmul.f32 %v8481_v48, %v8481_v48 }
  0x86   : > { %11811 = vst [vmem:[#allocation69_spill] sm:$0xff] %v8457_v63  ;;  %v8483_v63 = vunpack.c.h.bf16 %v391_v52  ;;  %v1090_v27 = vadd.f32 %v1089_v46, %v816_v43  ;;  %v831_v43 = vmul.f32 %v8493_v49, %v8493_v49  ;;  %v8505_v51 = vunpack.c.l.bf16 %v398_v16 }
  0x87   : > { %11812 = vst [vmem:[#allocation70_spill] sm:$0xff] %v8459_v41  ;;  %v811_v42 = vmul.f32 %v8477_v13, %v8477_v13  ;;  %v399_v41 = vld [vmem:[#allocation3 + $0x168] sm:$0xff]  ;;  %1097 = vadd.xlane.f32.xlu2 %v1096_v14  ;;  %v397_v14 = vld [vmem:[#allocation3 + $0x158] sm:$0xff] }
  0x88   : > { %11813 = vst [vmem:[#allocation71_spill] sm:$0xff] %v8465_v62  ;;  %v8489_v62 = vunpack.c.l.bf16 %v400_v61  ;;  %v813_v52 = vmul.f32 %v8483_v63, %v8483_v63  ;;  %v396_v61 = vld [vmem:[#allocation3 + $0x150] sm:$0xff] }
  0x89   : > { %11814 = vst [vmem:[#allocation72_spill] sm:$0xff] %v8467_v28  ;;  %v1084_v45 = vadd.f32 %v811_v42, %v810_v20  ;;  %v8497_v28 = vunpack.c.l.bf16 %v401_v55  ;;  %v8511_v42 = vunpack.c.h.bf16 %v398_v16  ;;  %v406_v16 = vld [vmem:[#allocation3 + $0x1a0] sm:$0xff] }
  0x8a   : > { %11815 = vst [vmem:[#allocation73_spill] sm:$0xff] %v8475_v35  ;;  %v8499_v35 = vunpack.c.h.bf16 %v401_v55  ;;  %v830_v38 = vmul.f32 %v8489_v62, %v8489_v62 }
  0x8b   : > { %11816 = vst [vmem:[#allocation74_spill] sm:$0xff] %v8477_v13  ;;  %v1091_v13 = vadd.f32 %v1090_v27, %v817_v18  ;;  %v1085_v46 = vadd.f32 %v1084_v45, %v812_v19  ;;  %v832_v20 = vmul.f32 %v8497_v28, %v8497_v28  ;;  %v8513_v27 = vunpack.c.l.bf16 %v399_v41 }
  0x8c   : > { %11817 = vst [vmem:[#allocation75_spill] sm:$0xff] %v8481_v48  ;;  %v833_v55 = vmul.f32 %v8499_v35, %v8499_v35  ;;  %v1109_v18 = vadd.f32 %v831_v43, %v830_v38  ;;  %v827_v19 = vmul.f32 %v8511_v42, %v8511_v42  ;;  %v8521_v45 = vunpack.c.l.bf16 %v396_v61  ;;  %v407_v43 = vld [vmem:[#allocation3 + $0x1a8] sm:$0xff] }
  0x8d   : > { %11818 = vst [vmem:[#allocation76_spill] sm:$0xff] %v8483_v63  ;;  %1092 = vadd.xlane.f32.xlu1 %v1091_v13  ;;  %v1086_v63 = vadd.f32 %v1085_v46, %v813_v52  ;;  %v828_v13 = vmul.f32 %v8513_v27, %v8513_v27  ;;  %v8529_v38 = vunpack.c.l.bf16 %v397_v14  ;;  %v8531_v46 = vunpack.c.h.bf16 %v397_v14 }
  0x8e   : > { %11819 = vst [vmem:[#allocation77_spill] sm:$0xff] %v8489_v62  ;;  %v8515_v62 = vunpack.c.h.bf16 %v399_v41  ;;  %v8545_v14 = vunpack.c.l.bf16 %v407_v43 }
  0x8f   : > { %11820 = vst [vmem:[#allocation78_spill] sm:$0xff] %v8493_v49  ;;  %v826_v49 = vmul.f32 %v8505_v51, %v8505_v51  ;;  %1087 = vadd.xlane.f32.xlu0 %v1086_v63  ;;  %v825_v63 = vmul.f32 %v8531_v46, %v8531_v46 }
  0x90   : > { %11821 = vst [vmem:[#allocation79_spill] sm:$0xff] %v8497_v28  ;;  %v8523_v28 = vunpack.c.h.bf16 %v396_v61  ;;  %v829_v41 = vmul.f32 %v8515_v62, %v8515_v62 }
  0x91   : > { %11822 = vst [vmem:[#allocation80_spill] sm:$0xff] %v8499_v35  ;;  %v1110_v35 = vadd.f32 %v1109_v18, %v832_v20  ;;  %v1104_v52 = vadd.f32 %v827_v19, %v826_v49  ;;  %v404_v20 = vld [vmem:[#allocation3 + $0x190] sm:$0xff]  ;;  %v405_v19 = vld [vmem:[#allocation3 + $0x198] sm:$0xff] }
  0x92   : > { %11823 = vst [vmem:[#allocation81_spill] sm:$0xff] %v8505_v51  ;;  %v823_v61 = vmul.f32 %v8523_v28, %v8523_v28  ;;  %v8539_v51 = vunpack.c.l.bf16 %v406_v16 }
  0x93   : > { %11824 = vst [vmem:[#allocation82_spill] sm:$0xff] %v8511_v42  ;;  %v822_v42 = vmul.f32 %v8521_v45, %v8521_v45  ;;  %v1111_v18 = vadd.f32 %v1110_v35, %v833_v55  ;;  %v1105_v48 = vadd.f32 %v1104_v52, %v828_v13 }
  0x94   : > { %11825 = vst [vmem:[#allocation83_spill] sm:$0xff] %v8513_v27  ;;  %v824_v27 = vmul.f32 %v8529_v38, %v8529_v38  ;;  %v842_v35 = vmul.f32 %v8539_v51, %v8539_v51 }
  0x95   : > { %11826 = vst [vmem:[#allocation84_spill] sm:$0xff] %v8515_v62  ;;  %v8541_v62 = vunpack.c.h.bf16 %v406_v16  ;;  %v1099_v49 = vadd.f32 %v823_v61, %v822_v42  ;;  %1112 = vadd.xlane.f32.xlu2 %v1111_v18  ;;  %v402_v16 = vld [vmem:[#allocation3 + $0x180] sm:$0xff]  ;;  %v1106_v13 = vadd.f32 %v1105_v48, %v829_v41  ;;  %v844_v42 = vmul.f32 %v8545_v14, %v8545_v14 }
  0x96   : > { %11827 = vst [vmem:[#allocation85_spill] sm:$0xff] %v8521_v45  ;;  %v8547_v45 = vunpack.c.h.bf16 %v407_v43  ;;  %v8557_v61 = vunpack.c.h.bf16 %v404_v20  ;;  %v8569_v41 = vunpack.c.l.bf16 %v402_v16 }
  0x97   : > { %11828 = vst [vmem:[#allocation86_spill] sm:$0xff] %v8523_v28  ;;  %v843_v55 = vmul.f32 %v8541_v62, %v8541_v62  ;;  %v1100_v52 = vadd.f32 %v1099_v49, %v824_v27  ;;  %v403_v28 = vld [vmem:[#allocation3 + $0x188] sm:$0xff]  ;;  %1107 = vadd.xlane.f32.xlu1 %v1106_v13  ;;  %v413_v13 = vld [vmem:[#allocation3 + $0x1d8] sm:$0xff] }
  0x98   : > { %11829 = vst [vmem:[#allocation87_spill] sm:$0xff] %v8529_v38  ;;  %v8553_v38 = vunpack.c.l.bf16 %v404_v20  ;;  %v845_v43 = vmul.f32 %v8547_v45, %v8547_v45  ;;  %v839_v27 = vmul.f32 %v8557_v61, %v8557_v61  ;;  %v412_v20 = vld [vmem:[#allocation3 + $0x1d0] sm:$0xff] }
  0x99   : > { %11830 = vst [vmem:[#allocation88_spill] sm:$0xff] %v8531_v46  ;;  %v1124_v18 = vadd.f32 %v843_v55, %v842_v35  ;;  %v8561_v46 = vunpack.c.l.bf16 %v405_v19  ;;  %v8575_v55 = vunpack.c.h.bf16 %v402_v16  ;;  %v410_v16 = vld [vmem:[#allocation3 + $0x1c0] sm:$0xff] }
  0x9a   : > { %11831 = vst [vmem:[#allocation89_spill] sm:$0xff] %v8539_v51  ;;  %v8563_v51 = vunpack.c.h.bf16 %v405_v19  ;;  %v838_v48 = vmul.f32 %v8553_v38, %v8553_v38 }
  0x9b   : > { %11832 = vst [vmem:[#allocation90_spill] sm:$0xff] %v8541_v62  ;;  %v1101_v62 = vadd.f32 %v1100_v52, %v825_v63  ;;  %v1125_v49 = vadd.f32 %v1124_v18, %v844_v42  ;;  %v840_v35 = vmul.f32 %v8561_v46, %v8561_v46  ;;  %v8577_v52 = vunpack.c.l.bf16 %v403_v28 }
  0x9c   : > { %11833 = vst [vmem:[#allocation91_spill] sm:$0xff] %v8545_v14  ;;  %v841_v19 = vmul.f32 %v8563_v51, %v8563_v51  ;;  %v1119_v63 = vadd.f32 %v839_v27, %v838_v48  ;;  %v835_v42 = vmul.f32 %v8575_v55, %v8575_v55  ;;  %v8585_v18 = vunpack.c.l.bf16 %v412_v20  ;;  %v411_v27 = vld [vmem:[#allocation3 + $0x1c8] sm:$0xff] }
  0x9d   : > { %11834 = vst [vmem:[#allocation92_spill] sm:$0xff] %v8547_v45  ;;  %1102 = vadd.xlane.f32.xlu0 %v1101_v62  ;;  %v1126_v45 = vadd.f32 %v1125_v49, %v845_v43  ;;  %v836_v62 = vmul.f32 %v8577_v52, %v8577_v52  ;;  %v8593_v48 = vunpack.c.l.bf16 %v413_v13  ;;  %v8595_v49 = vunpack.c.h.bf16 %v413_v13 }
  0x9e   : > { %11835 = vst [vmem:[#allocation93_spill] sm:$0xff] %v8553_v38  ;;  %v8579_v38 = vunpack.c.h.bf16 %v403_v28  ;;  %v8609_v13 = vunpack.c.l.bf16 %v411_v27 }
  0x9f   : > { %11836 = vst [vmem:[#allocation94_spill] sm:$0xff] %v8557_v61  ;;  %v834_v61 = vmul.f32 %v8569_v41, %v8569_v41  ;;  %1127 = vadd.xlane.f32.xlu2 %v1126_v45  ;;  %v857_v45 = vmul.f32 %v8595_v49, %v8595_v49 }
  0xa0   : > { %11837 = vst [vmem:[#allocation95_spill] sm:$0xff] %v8561_v46  ;;  %v8587_v46 = vunpack.c.h.bf16 %v412_v20  ;;  %v837_v28 = vmul.f32 %v8579_v38, %v8579_v38 }
  0xa1   : > { %11838 = vst [vmem:[#allocation96_spill] sm:$0xff] %v8563_v51  ;;  %v1120_v51 = vadd.f32 %v1119_v63, %v840_v35  ;;  %v1114_v43 = vadd.f32 %v835_v42, %v834_v61  ;;  %v408_v35 = vld [vmem:[#allocation3 + $0x1b0] sm:$0xff]  ;;  %v409_v42 = vld [vmem:[#allocation3 + $0x1b8] sm:$0xff] }
  0xa2   : > { %11839 = vst [vmem:[#allocation97_spill] sm:$0xff] %v8569_v41  ;;  %v855_v20 = vmul.f32 %v8587_v46, %v8587_v46  ;;  %v8603_v41 = vunpack.c.l.bf16 %v410_v16 }
  0xa3   : > { %11840 = vst [vmem:[#allocation98_spill] sm:$0xff] %v8575_v55  ;;  %v854_v55 = vmul.f32 %v8585_v18, %v8585_v18  ;;  %v1121_v63 = vadd.f32 %v1120_v51, %v841_v19  ;;  %v1115_v14 = vadd.f32 %v1114_v43, %v836_v62 }
  0xa4   : > { %11841 = vst [vmem:[#allocation99_spill] sm:$0xff] %v8577_v52  ;;  %v856_v52 = vmul.f32 %v8593_v48, %v8593_v48  ;;  %v850_v51 = vmul.f32 %v8603_v41, %v8603_v41 }
  0xa5   : > { %11842 = vst [vmem:[#allocation100_spill] sm:$0xff] %v8579_v38  ;;  %v8605_v38 = vunpack.c.h.bf16 %v410_v16  ;;  %v1139_v61 = vadd.f32 %v855_v20, %v854_v55  ;;  %1122 = vadd.xlane.f32.xlu1 %v1121_v63  ;;  %v418_v16 = vld [vmem:[#allocation3 + $0x200] sm:$0xff]  ;;  %v1116_v62 = vadd.f32 %v1115_v14, %v837_v28  ;;  %v852_v55 = vmul.f32 %v8609_v13, %v8609_v13 }
  0xa6   : > { %11843 = vst [vmem:[#allocation101_spill] sm:$0xff] %v8585_v18  ;;  %v8611_v18 = vunpack.c.h.bf16 %v411_v27  ;;  %v8621_v20 = vunpack.c.h.bf16 %v408_v35  ;;  %v8633_v28 = vunpack.c.l.bf16 %v418_v16 }
  0xa7   : > { %11844 = vst [vmem:[#allocation102_spill] sm:$0xff] %v8587_v46  ;;  %v851_v19 = vmul.f32 %v8605_v38, %v8605_v38  ;;  %v1140_v43 = vadd.f32 %v1139_v61, %v856_v52  ;;  %v419_v46 = vld [vmem:[#allocation3 + $0x208] sm:$0xff]  ;;  %1117 = vadd.xlane.f32.xlu0 %v1116_v62  ;;  %v417_v62 = vld [vmem:[#allocation3 + $0x1f8] sm:$0xff] }
  0xa8   : > { %11845 = vst [vmem:[#allocation103_spill] sm:$0xff] %v8593_v48  ;;  %v8617_v48 = vunpack.c.l.bf16 %v408_v35  ;;  %v853_v27 = vmul.f32 %v8611_v18, %v8611_v18  ;;  %v847_v52 = vmul.f32 %v8621_v20, %v8621_v20  ;;  %v416_v35 = vld [vmem:[#allocation3 + $0x1f0] sm:$0xff] }
  0xa9   : > { %11846 = vst [vmem:[#allocation104_spill] sm:$0xff] %v8595_v49  ;;  %v1134_v63 = vadd.f32 %v851_v19, %v850_v51  ;;  %v8625_v49 = vunpack.c.l.bf16 %v409_v42  ;;  %v8639_v19 = vunpack.c.h.bf16 %v418_v16  ;;  %v414_v16 = vld [vmem:[#allocation3 + $0x1e0] sm:$0xff] }
  0xaa   : > { %11847 = vst [vmem:[#allocation105_spill] sm:$0xff] %v8603_v41  ;;  %v8627_v41 = vunpack.c.h.bf16 %v409_v42  ;;  %v846_v14 = vmul.f32 %v8617_v48, %v8617_v48 }
  0xab   : > { %11848 = vst [vmem:[#allocation106_spill] sm:$0xff] %v8605_v38  ;;  %v1141_v38 = vadd.f32 %v1140_v43, %v857_v45  ;;  %v1135_v61 = vadd.f32 %v1134_v63, %v852_v55  ;;  %v848_v51 = vmul.f32 %v8625_v49, %v8625_v49  ;;  %v8641_v43 = vunpack.c.l.bf16 %v419_v46 }
  0xac   : > { %11849 = vst [vmem:[#allocation107_spill] sm:$0xff] %v8609_v13  ;;  %v849_v42 = vmul.f32 %v8627_v41, %v8627_v41  ;;  %v1129_v45 = vadd.f32 %v847_v52, %v846_v14  ;;  %v867_v55 = vmul.f32 %v8639_v19, %v8639_v19  ;;  %v8649_v63 = vunpack.c.l.bf16 %v416_v35  ;;  %v415_v52 = vld [vmem:[#allocation3 + $0x1e8] sm:$0xff] }
  0xad   : > { %11850 = vst [vmem:[#allocation108_spill] sm:$0xff] %v8611_v18  ;;  %1142 = vadd.xlane.f32.xlu2 %v1141_v38  ;;  %v1136_v18 = vadd.f32 %v1135_v61, %v853_v27  ;;  %v868_v38 = vmul.f32 %v8641_v43, %v8641_v43  ;;  %v8657_v14 = vunpack.c.l.bf16 %v417_v62  ;;  %v8659_v61 = vunpack.c.h.bf16 %v417_v62 }
  0xae   : > { %11851 = vst [vmem:[#allocation109_spill] sm:$0xff] %v8617_v48  ;;  %v8643_v48 = vunpack.c.h.bf16 %v419_v46  ;;  %v8673_v62 = vunpack.c.l.bf16 %v415_v52 }
  0xaf   : > { %11852 = vst [vmem:[#allocation110_spill] sm:$0xff] %v8621_v20  ;;  %v866_v20 = vmul.f32 %v8633_v28, %v8633_v28  ;;  %1137 = vadd.xlane.f32.xlu1 %v1136_v18  ;;  %v865_v18 = vmul.f32 %v8659_v61, %v8659_v61 }
  0xb0   : > { %11853 = vst [vmem:[#allocation111_spill] sm:$0xff] %v8625_v49  ;;  %v8651_v49 = vunpack.c.h.bf16 %v416_v35  ;;  %v869_v46 = vmul.f32 %v8643_v48, %v8643_v48 }
  0xb1   : > { %11854 = vst [vmem:[#allocation112_spill] sm:$0xff] %v8627_v41  ;;  %v1130_v41 = vadd.f32 %v1129_v45, %v848_v51  ;;  %v1154_v27 = vadd.f32 %v867_v55, %v866_v20  ;;  %v424_v51 = vld [vmem:[#allocation3 + $0x230] sm:$0xff]  ;;  %v425_v55 = vld [vmem:[#allocation3 + $0x238] sm:$0xff] }
  0xb2   : > { %11855 = vst [vmem:[#allocation113_spill] sm:$0xff] %v8633_v28  ;;  %v863_v35 = vmul.f32 %v8651_v49, %v8651_v49  ;;  %v8667_v28 = vunpack.c.l.bf16 %v414_v16 }
  0xb3   : > { %11856 = vst [vmem:[#allocation114_spill] sm:$0xff] %v8639_v19  ;;  %v862_v19 = vmul.f32 %v8649_v63, %v8649_v63  ;;  %v1131_v45 = vadd.f32 %v1130_v41, %v849_v42  ;;  %v1155_v13 = vadd.f32 %v1154_v27, %v868_v38 }
  0xb4   : > { %11857 = vst [vmem:[#allocation115_spill] sm:$0xff] %v8641_v43  ;;  %v864_v43 = vmul.f32 %v8657_v14, %v8657_v14  ;;  %v858_v41 = vmul.f32 %v8667_v28, %v8667_v28 }
  0xb5   : > { %11858 = vst [vmem:[#allocation116_spill] sm:$0xff] %v8643_v48  ;;  %v8669_v48 = vunpack.c.h.bf16 %v414_v16  ;;  %v1149_v20 = vadd.f32 %v863_v35, %v862_v19  ;;  %1132 = vadd.xlane.f32.xlu0 %v1131_v45  ;;  %v422_v16 = vld [vmem:[#allocation3 + $0x220] sm:$0xff]  ;;  %v1156_v38 = vadd.f32 %v1155_v13, %v869_v46  ;;  %v860_v19 = vmul.f32 %v8673_v62, %v8673_v62 }
  0xb6   : > { %11859 = vst [vmem:[#allocation117_spill] sm:$0xff] %v8649_v63  ;;  %v8675_v63 = vunpack.c.h.bf16 %v415_v52  ;;  %v8685_v35 = vunpack.c.h.bf16 %v424_v51  ;;  %v8697_v46 = vunpack.c.l.bf16 %v422_v16 }
  0xb7   : > { %11860 = vst [vmem:[#allocation118_spill] sm:$0xff] %v8651_v49  ;;  %v859_v42 = vmul.f32 %v8669_v48, %v8669_v48  ;;  %v1150_v27 = vadd.f32 %v1149_v20, %v864_v43  ;;  %v423_v49 = vld [vmem:[#allocation3 + $0x228] sm:$0xff]  ;;  %1157 = vadd.xlane.f32.xlu2 %v1156_v38  ;;  %v421_v38 = vld [vmem:[#allocation3 + $0x218] sm:$0xff] }
  0xb8   : > { %11861 = vst [vmem:[#allocation119_spill] sm:$0xff] %v8657_v14  ;;  %v8681_v14 = vunpack.c.l.bf16 %v424_v51  ;;  %v861_v52 = vmul.f32 %v8675_v63, %v8675_v63  ;;  %v879_v43 = vmul.f32 %v8685_v35, %v8685_v35  ;;  %v420_v51 = vld [vmem:[#allocation3 + $0x210] sm:$0xff] }
  0xb9   : > { %11862 = vst [vmem:[#allocation120_spill] sm:$0xff] %v8659_v61  ;;  %v1144_v45 = vadd.f32 %v859_v42, %v858_v41  ;;  %v8689_v61 = vunpack.c.l.bf16 %v425_v55  ;;  %v8703_v42 = vunpack.c.h.bf16 %v422_v16  ;;  %v430_v16 = vld [vmem:[#allocation3 + $0x260] sm:$0xff] }
  0xba   : > { %11863 = vst [vmem:[#allocation121_spill] sm:$0xff] %v8667_v28  ;;  %v8691_v28 = vunpack.c.h.bf16 %v425_v55  ;;  %v878_v13 = vmul.f32 %v8681_v14, %v8681_v14 }
  0xbb   : > { %11864 = vst [vmem:[#allocation122_spill] sm:$0xff] %v8669_v48  ;;  %v1151_v48 = vadd.f32 %v1150_v27, %v865_v18  ;;  %v1145_v20 = vadd.f32 %v1144_v45, %v860_v19  ;;  %v880_v41 = vmul.f32 %v8689_v61, %v8689_v61  ;;  %v8705_v27 = vunpack.c.l.bf16 %v423_v49 }
  0xbc   : > { %11865 = vst [vmem:[#allocation123_spill] sm:$0xff] %v8673_v62  ;;  %v881_v55 = vmul.f32 %v8691_v28, %v8691_v28  ;;  %v1169_v18 = vadd.f32 %v879_v43, %v878_v13  ;;  %v875_v19 = vmul.f32 %v8703_v42, %v8703_v42  ;;  %v8713_v45 = vunpack.c.l.bf16 %v420_v51  ;;  %v431_v43 = vld [vmem:[#allocation3 + $0x268] sm:$0xff] }
  0xbd   : > { %11866 = vst [vmem:[#allocation124_spill] sm:$0xff] %v8675_v63  ;;  %1152 = vadd.xlane.f32.xlu1 %v1151_v48  ;;  %v1146_v63 = vadd.f32 %v1145_v20, %v861_v52  ;;  %v876_v48 = vmul.f32 %v8705_v27, %v8705_v27  ;;  %v8721_v13 = vunpack.c.l.bf16 %v421_v38  ;;  %v8723_v20 = vunpack.c.h.bf16 %v421_v38 }
  0xbe   : > { %11867 = vst [vmem:[#allocation125_spill] sm:$0xff] %v8681_v14  ;;  %v8707_v14 = vunpack.c.h.bf16 %v423_v49  ;;  %v8737_v38 = vunpack.c.l.bf16 %v431_v43 }
  0xbf   : > { %11868 = vst [vmem:[#allocation126_spill] sm:$0xff] %v8685_v35  ;;  %v874_v35 = vmul.f32 %v8697_v46, %v8697_v46  ;;  %1147 = vadd.xlane.f32.xlu0 %v1146_v63  ;;  %v873_v63 = vmul.f32 %v8723_v20, %v8723_v20 }
  0xc0   : > { %11869 = vst [vmem:[#allocation127_spill] sm:$0xff] %v8689_v61  ;;  %v8715_v61 = vunpack.c.h.bf16 %v420_v51  ;;  %v877_v49 = vmul.f32 %v8707_v14, %v8707_v14 }
  0xc1   : > { %11870 = vst [vmem:[#allocation128_spill] sm:$0xff] %v8691_v28  ;;  %v1170_v28 = vadd.f32 %v1169_v18, %v880_v41  ;;  %v1164_v52 = vadd.f32 %v875_v19, %v874_v35  ;;  %v428_v41 = vld [vmem:[#allocation3 + $0x250] sm:$0xff]  ;;  %v429_v19 = vld [vmem:[#allocation3 + $0x258] sm:$0xff] }
  0xc2   : > { %11871 = vst [vmem:[#allocation129_spill] sm:$0xff] %v8697_v46  ;;  %v871_v51 = vmul.f32 %v8715_v61, %v8715_v61  ;;  %v8731_v46 = vunpack.c.l.bf16 %v430_v16 }
  0xc3   : > { %11872 = vst [vmem:[#allocation130_spill] sm:$0xff] %v8703_v42  ;;  %v870_v42 = vmul.f32 %v8713_v45, %v8713_v45  ;;  %v1171_v18 = vadd.f32 %v1170_v28, %v881_v55  ;;  %v1165_v62 = vadd.f32 %v1164_v52, %v876_v48 }
  0xc4   : > { %11873 = vst [vmem:[#allocation131_spill] sm:$0xff] %v8705_v27  ;;  %v872_v27 = vmul.f32 %v8721_v13, %v8721_v13  ;;  %v890_v28 = vmul.f32 %v8731_v46, %v8731_v46 }
  0xc5   : > { %11874 = vst [vmem:[#allocation132_spill] sm:$0xff] %v8707_v14  ;;  %v8733_v14 = vunpack.c.h.bf16 %v430_v16  ;;  %v1159_v35 = vadd.f32 %v871_v51, %v870_v42  ;;  %1172 = vadd.xlane.f32.xlu2 %v1171_v18  ;;  %v426_v16 = vld [vmem:[#allocation3 + $0x240] sm:$0xff]  ;;  %v1166_v48 = vadd.f32 %v1165_v62, %v877_v49  ;;  %v892_v42 = vmul.f32 %v8737_v38, %v8737_v38 }
  0xc6   : > { %11875 = vst [vmem:[#allocation133_spill] sm:$0xff] %v8713_v45  ;;  %v8739_v45 = vunpack.c.h.bf16 %v431_v43  ;;  %v8749_v51 = vunpack.c.h.bf16 %v428_v41  ;;  %v8761_v49 = vunpack.c.l.bf16 %v426_v16 }
  0xc7   : > { %11876 = vst [vmem:[#allocation134_spill] sm:$0xff] %v8715_v61  ;;  %v891_v55 = vmul.f32 %v8733_v14, %v8733_v14  ;;  %v1160_v52 = vadd.f32 %v1159_v35, %v872_v27  ;;  %v427_v61 = vld [vmem:[#allocation3 + $0x248] sm:$0xff]  ;;  %1167 = vadd.xlane.f32.xlu1 %v1166_v48  ;;  %v437_v48 = vld [vmem:[#allocation3 + $0x298] sm:$0xff] }
  0xc8   : > { %11877 = vst [vmem:[#allocation135_spill] sm:$0xff] %v8721_v13  ;;  %v8745_v13 = vunpack.c.l.bf16 %v428_v41  ;;  %v893_v43 = vmul.f32 %v8739_v45, %v8739_v45  ;;  %v887_v27 = vmul.f32 %v8749_v51, %v8749_v51  ;;  %v436_v41 = vld [vmem:[#allocation3 + $0x290] sm:$0xff] }
  0xc9   : > { %11878 = vst [vmem:[#allocation136_spill] sm:$0xff] %v8723_v20  ;;  %v1184_v18 = vadd.f32 %v891_v55, %v890_v28  ;;  %v8753_v20 = vunpack.c.l.bf16 %v429_v19  ;;  %v8767_v55 = vunpack.c.h.bf16 %v426_v16  ;;  %v434_v16 = vld [vmem:[#allocation3 + $0x280] sm:$0xff] }
  0xca   : > { %11879 = vst [vmem:[#allocation137_spill] sm:$0xff] %v8731_v46  ;;  %v8755_v46 = vunpack.c.h.bf16 %v429_v19  ;;  %v886_v62 = vmul.f32 %v8745_v13, %v8745_v13 }
  0xcb   : > { %11880 = vst [vmem:[#allocation138_spill] sm:$0xff] %v8733_v14  ;;  %v1161_v14 = vadd.f32 %v1160_v52, %v873_v63  ;;  %v1185_v35 = vadd.f32 %v1184_v18, %v892_v42  ;;  %v888_v28 = vmul.f32 %v8753_v20, %v8753_v20  ;;  %v8769_v52 = vunpack.c.l.bf16 %v427_v61 }
  0xcc   : > { %11881 = vst [vmem:[#allocation139_spill] sm:$0xff] %v8737_v38  ;;  %v889_v19 = vmul.f32 %v8755_v46, %v8755_v46  ;;  %v1179_v63 = vadd.f32 %v887_v27, %v886_v62  ;;  %v883_v42 = vmul.f32 %v8767_v55, %v8767_v55  ;;  %v8777_v18 = vunpack.c.l.bf16 %v436_v41  ;;  %v435_v27 = vld [vmem:[#allocation3 + $0x288] sm:$0xff] }
  0xcd   : > { %11882 = vst [vmem:[#allocation140_spill] sm:$0xff] %v8739_v45  ;;  %1162 = vadd.xlane.f32.xlu0 %v1161_v14  ;;  %v1186_v45 = vadd.f32 %v1185_v35, %v893_v43  ;;  %v884_v14 = vmul.f32 %v8769_v52, %v8769_v52  ;;  %v8785_v62 = vunpack.c.l.bf16 %v437_v48  ;;  %v8787_v35 = vunpack.c.h.bf16 %v437_v48 }
  0xce   : > { %11883 = vst [vmem:[#allocation141_spill] sm:$0xff] %v8745_v13  ;;  %v8771_v13 = vunpack.c.h.bf16 %v427_v61  ;;  %v8801_v48 = vunpack.c.l.bf16 %v435_v27 }
  0xcf   : > { %11884 = vst [vmem:[#allocation142_spill] sm:$0xff] %v8749_v51  ;;  %v882_v51 = vmul.f32 %v8761_v49, %v8761_v49  ;;  %1187 = vadd.xlane.f32.xlu2 %v1186_v45  ;;  %v905_v45 = vmul.f32 %v8787_v35, %v8787_v35 }
  0xd0   : > { %11885 = vst [vmem:[#allocation143_spill] sm:$0xff] %v8753_v20  ;;  %v8779_v20 = vunpack.c.h.bf16 %v436_v41  ;;  %v885_v61 = vmul.f32 %v8771_v13, %v8771_v13 }
  0xd1   : > { %11886 = vst [vmem:[#allocation144_spill] sm:$0xff] %v8755_v46  ;;  %v1180_v46 = vadd.f32 %v1179_v63, %v888_v28  ;;  %v1174_v43 = vadd.f32 %v883_v42, %v882_v51  ;;  %v432_v28 = vld [vmem:[#allocation3 + $0x270] sm:$0xff]  ;;  %v433_v42 = vld [vmem:[#allocation3 + $0x278] sm:$0xff] }
  0xd2   : > { %11887 = vst [vmem:[#allocation145_spill] sm:$0xff] %v8761_v49  ;;  %v903_v41 = vmul.f32 %v8779_v20, %v8779_v20  ;;  %v8795_v49 = vunpack.c.l.bf16 %v434_v16 }
  0xd3   : > { %11888 = vst [vmem:[#allocation146_spill] sm:$0xff] %v8767_v55  ;;  %v902_v55 = vmul.f32 %v8777_v18, %v8777_v18  ;;  %v1181_v63 = vadd.f32 %v1180_v46, %v889_v19  ;;  %v1175_v38 = vadd.f32 %v1174_v43, %v884_v14 }
  0xd4   : > { %11889 = vst [vmem:[#allocation147_spill] sm:$0xff] %v8769_v52  ;;  %v904_v52 = vmul.f32 %v8785_v62, %v8785_v62  ;;  %v898_v46 = vmul.f32 %v8795_v49, %v8795_v49 }
  0xd5   : > { %11890 = vst [vmem:[#allocation148_spill] sm:$0xff] %v8771_v13  ;;  %v8797_v13 = vunpack.c.h.bf16 %v434_v16  ;;  %v1199_v51 = vadd.f32 %v903_v41, %v902_v55  ;;  %1182 = vadd.xlane.f32.xlu1 %v1181_v63  ;;  %v442_v16 = vld [vmem:[#allocation3 + $0x2c0] sm:$0xff]  ;;  %v1176_v14 = vadd.f32 %v1175_v38, %v885_v61  ;;  %v900_v55 = vmul.f32 %v8801_v48, %v8801_v48 }
  0xd6   : > { %11891 = vst [vmem:[#allocation149_spill] sm:$0xff] %v8777_v18  ;;  %v8803_v18 = vunpack.c.h.bf16 %v435_v27  ;;  %v8813_v41 = vunpack.c.h.bf16 %v432_v28  ;;  %v8825_v61 = vunpack.c.l.bf16 %v442_v16 }
  0xd7   : > { %11892 = vst [vmem:[#allocation150_spill] sm:$0xff] %v8779_v20  ;;  %v899_v19 = vmul.f32 %v8797_v13, %v8797_v13  ;;  %v1200_v43 = vadd.f32 %v1199_v51, %v904_v52  ;;  %v443_v20 = vld [vmem:[#allocation3 + $0x2c8] sm:$0xff]  ;;  %1177 = vadd.xlane.f32.xlu0 %v1176_v14  ;;  %v441_v14 = vld [vmem:[#allocation3 + $0x2b8] sm:$0xff] }
  0xd8   : > { %11893 = vst [vmem:[#allocation151_spill] sm:$0xff] %v8785_v62  ;;  %v8809_v62 = vunpack.c.l.bf16 %v432_v28  ;;  %v901_v27 = vmul.f32 %v8803_v18, %v8803_v18  ;;  %v895_v52 = vmul.f32 %v8813_v41, %v8813_v41  ;;  %v440_v28 = vld [vmem:[#allocation3 + $0x2b0] sm:$0xff] }
  0xd9   : > { %11894 = vst [vmem:[#allocation152_spill] sm:$0xff] %v8787_v35  ;;  %v1194_v63 = vadd.f32 %v899_v19, %v898_v46  ;;  %v8817_v35 = vunpack.c.l.bf16 %v433_v42  ;;  %v8831_v19 = vunpack.c.h.bf16 %v442_v16  ;;  %v438_v16 = vld [vmem:[#allocation3 + $0x2a0] sm:$0xff] }
  0xda   : > { %11895 = vst [vmem:[#allocation153_spill] sm:$0xff] %v8795_v49  ;;  %v8819_v49 = vunpack.c.h.bf16 %v433_v42  ;;  %v894_v38 = vmul.f32 %v8809_v62, %v8809_v62 }
  0xdb   : > { %11896 = vst [vmem:[#allocation154_spill] sm:$0xff] %v8797_v13  ;;  %v1201_v13 = vadd.f32 %v1200_v43, %v905_v45  ;;  %v1195_v51 = vadd.f32 %v1194_v63, %v900_v55  ;;  %v896_v46 = vmul.f32 %v8817_v35, %v8817_v35  ;;  %v8833_v43 = vunpack.c.l.bf16 %v443_v20 }
  0xdc   : > { %11897 = vst [vmem:[#allocation155_spill] sm:$0xff] %v8801_v48  ;;  %v897_v42 = vmul.f32 %v8819_v49, %v8819_v49  ;;  %v1189_v45 = vadd.f32 %v895_v52, %v894_v38  ;;  %v915_v55 = vmul.f32 %v8831_v19, %v8831_v19  ;;  %v8841_v63 = vunpack.c.l.bf16 %v440_v28  ;;  %v439_v52 = vld [vmem:[#allocation3 + $0x2a8] sm:$0xff]  ;;  %v8879_v48 = vpop.xlane.xlu2 %1017 }
  0xdd   : > { %11898 = vst [vmem:[#allocation156_spill] sm:$0xff] %v8803_v18  ;;  %1202 = vadd.xlane.f32.xlu2 %v1201_v13  ;;  %v1196_v18 = vadd.f32 %v1195_v51, %v901_v27  ;;  %v916_v13 = vmul.f32 %v8833_v43, %v8833_v43  ;;  %v8849_v38 = vunpack.c.l.bf16 %v441_v14  ;;  %v8851_v51 = vunpack.c.h.bf16 %v441_v14 }
  0xde   : > { %11899 = vst [vmem:[#allocation157_spill] sm:$0xff] %v8809_v62  ;;  %v8835_v62 = vunpack.c.h.bf16 %v443_v20  ;;  %v8865_v14 = vunpack.c.l.bf16 %v439_v52 }
  0xdf   : > { %11900 = vst [vmem:[#allocation158_spill] sm:$0xff] %v8813_v41  ;;  %v914_v41 = vmul.f32 %v8825_v61, %v8825_v61  ;;  %1197 = vadd.xlane.f32.xlu1 %v1196_v18  ;;  %v913_v18 = vmul.f32 %v8851_v51, %v8851_v51 }
  0xe0   : > { %11901 = vst [vmem:[#allocation159_spill] sm:$0xff] %v8817_v35  ;;  %v8843_v35 = vunpack.c.h.bf16 %v440_v28  ;;  %v917_v20 = vmul.f32 %v8835_v62, %v8835_v62 }
  0xe1   : > { %11902 = vst [vmem:[#allocation160_spill] sm:$0xff] %v8819_v49  ;;  %v1190_v49 = vadd.f32 %v1189_v45, %v896_v46  ;;  %v1214_v27 = vadd.f32 %v915_v55, %v914_v41  ;;  %v912_v45 = vmul.f32 %v8849_v38, %v8849_v38  ;;  %v8867_v55 = vunpack.c.h.bf16 %v439_v52 }
  0xe2   : > { %11903 = vst [vmem:[#allocation161_spill] sm:$0xff] %v8825_v61  ;;  %v911_v28 = vmul.f32 %v8843_v35, %v8843_v35 }
  0xe3   : > { %11904 = vst [vmem:[#allocation162_spill] sm:$0xff] %v8831_v19  ;;  %v910_v19 = vmul.f32 %v8841_v63, %v8841_v63  ;;  %v1191_v46 = vadd.f32 %v1190_v49, %v897_v42  ;;  %v1215_v61 = vadd.f32 %v1214_v27, %v916_v13  ;;  %v908_v13 = vmul.f32 %v8865_v14, %v8865_v14 }
  0xe4   : > { %11905 = vst [vmem:[#allocation163_spill] sm:$0xff] %v8833_v43  ;;  %v8859_v43 = vunpack.c.l.bf16 %v438_v16  ;;  %v7976_v27 = vmov 512.0  }
  0xe5   : > { %11906 = vst [vmem:[#allocation164_spill] sm:$0xff] %v8835_v62  ;;  %v8861_v62 = vunpack.c.h.bf16 %v438_v16  ;;  %v1209_v41 = vadd.f32 %v911_v28, %v910_v19  ;;  %1192 = vadd.xlane.f32.xlu0 %v1191_v46  ;;  %7586 = vrcp.f32 %v7976_v27  ;;  %v449_v19 = vld [vmem:[#allocation3 + $0x2f8] sm:$0xff]  ;;  %v909_v28 = vmul.f32 %v8867_v55, %v8867_v55  ;;  %v446_v46 = vld [vmem:[#allocation3 + $0x2e0] sm:$0xff] }
  0xe6   : > { %11907 = vst [vmem:[#allocation165_spill] sm:$0xff] %v8841_v63  ;;  %v906_v49 = vmul.f32 %v8859_v43, %v8859_v43 }
  0xe7   : > { %11908 = vst [vmem:[#allocation166_spill] sm:$0xff] %v8843_v35  ;;  %v907_v42 = vmul.f32 %v8861_v62, %v8861_v62  ;;  %v1216_v35 = vadd.f32 %v1215_v61, %v917_v20  ;;  %v1210_v16 = vadd.f32 %v1209_v41, %v912_v45  ;;  %v8883_v20 = vunpack.c.l.bf16 %v449_v19  ;;  %v8887_v41 = vpop.xlane.xlu1 %1007 }
  0xe8   : > { %11909 = vst [vmem:[#allocation167_spill] sm:$0xff] %v8849_v38  ;;  %v448_v38 = vld [vmem:[#allocation3 + $0x2f0] sm:$0xff]  ;;  %v8885_v45 = vunpack.c.h.bf16 %v449_v19  ;;  %v445_v19 = vld [vmem:[#allocation3 + $0x2d8] sm:$0xff] }
  0xe9   : > { %11910 = vst [vmem:[#allocation168_spill] sm:$0xff] %v8851_v51  ;;  %v1204_v52 = vadd.f32 %v907_v42, %v906_v49  ;;  %v447_v51 = vld [vmem:[#allocation3 + $0x2e8] sm:$0xff]  ;;  %1217 = vadd.xlane.f32.xlu2 %v1216_v35  ;;  %v8877_v63 = vunpack.c.l.bf16 %v448_v38  ;;  %v8881_v61 = vunpack.c.h.bf16 %v448_v38  ;;  %v8891_v42 = vunpack.c.l.bf16 %v446_v46 }
  0xea   : > { %11911 = vst [vmem:[#allocation169_spill] sm:$0xff] %v8859_v43  ;;  %v1211_v43 = vadd.f32 %v1210_v16, %v913_v18  ;;  %v8893_v35 = vunpack.c.h.bf16 %v446_v46  ;;  %v8895_v18 = vunpack.c.l.bf16 %v447_v51  ;;  %v444_v16 = vld [vmem:[#allocation3 + $0x2d0] sm:$0xff]  ;;  %v928_v27 = vmul.f32 %v8883_v20, %v8883_v20 }
  0xeb   : > { %11912 = vst [vmem:[#allocation170_spill] sm:$0xff] %v8861_v62  ;;  %v1205_v62 = vadd.f32 %v1204_v52, %v908_v13  ;;  %v926_v49 = vmul.f32 %v8877_v63, %v8877_v63  ;;  %v927_v38 = vmul.f32 %v8881_v61, %v8881_v61  ;;  %v7587_v52 = vpop.eup %7586  ;;  %v922_v46 = vmul.f32 %v8891_v42, %v8891_v42 }
  0xec   : > { %11913 = vst [vmem:[#allocation171_spill] sm:$0xff] %v8865_v14  ;;  %1212 = vadd.xlane.f32.xlu1 %v1211_v43  ;;  %v929_v43 = vmul.f32 %v8885_v45, %v8885_v45  ;;  %vm1319_vm0 = vweird.f32 %v7587_v52  ;;  %v8911_v14 = vunpack.c.l.bf16 %v444_v16  ;;  %v8915_v34 = vunpack.c.h.bf16 %v444_v16 }
  0xed   : > { %11914 = vst [vmem:[#allocation172_spill] sm:$0xff] %v8867_v55  ;;  %v1206_v13 = vadd.f32 %v1205_v62, %v909_v28  ;;  %v923_v55 = vmul.f32 %v8893_v35, %v8893_v35  ;;  %v924_v62 = vmul.f32 %v8895_v18, %v8895_v18  ;;  %v1315_v28 = vmul.f32 512.0, %v7587_v52 }
  0xee   : > { %11915 = vst [vmem:[#allocation173_spill] sm:$0xff] %v8877_v63  ;;  %v8903_v63 = vunpack.c.h.bf16 %v447_v51  ;;  %v8919_v23 = vunpack.c.h.bf16 %v445_v19 }
  0xef   : > { %11916 = vst [vmem:[#allocation174_spill] sm:$0xff] %v8881_v61  ;;  %1207 = vadd.xlane.f32.xlu0 %v1206_v13  ;;  %v1229_v61 = vadd.f32 %v927_v38, %v926_v49  ;;  %v1224_v1 = vadd.f32 %v923_v55, %v922_v46  ;;  %v918_v13 = vmul.f32 %v8911_v14, %v8911_v14 }
  0xf0   : > { %11917 = vst [vmem:[#allocation175_spill] sm:$0xff] %v8883_v20  ;;  %v998_v20 = vpop.xlane.xlu0 %997  ;;  %v925_v51 = vmul.f32 %v8903_v63, %v8903_v63  ;;  %v919_v38 = vmul.f32 %v8915_v34, %v8915_v34 }
  0xf1   : > { %11918 = vst [vmem:[#allocation176_spill] sm:$0xff] %v8885_v45  ;;  %v454_v45 = vld [vmem:[#allocation3 + $0x320] sm:$0xff]  ;;  %v1230_v33 = vadd.f32 %v1229_v61, %v928_v27  ;;  %v1225_v49 = vadd.f32 %v1224_v1, %v924_v62  ;;  %v921_v61 = vmul.f32 %v8919_v23, %v8919_v23  ;;  %v1023_v27 = vpop.xlane.xlu2 %1022 }
  0xf2   : > { %11919 = vst [vmem:[#allocation177_spill] sm:$0xff] %v8891_v42  ;;  %v8917_v42 = vunpack.c.l.bf16 %v445_v19  ;;  %v8927_v55 = vunpack.c.l.bf16 %v454_v45  ;;  %v8931_v19 = vunpack.c.h.bf16 %v454_v45  ;;  %v1219_v15 = vadd.f32 %v919_v38, %v918_v13  ;;  %v1013_v45 = vpop.xlane.xlu1 %1012 }
  0xf3   : > { %11920 = vst [vmem:[#allocation178_spill] sm:$0xff] %v8893_v35  ;;  %v1316_v35 = vsub.f32 1.0, %v1315_v28  ;;  %v1231_v46 = vadd.f32 %v1230_v33, %v929_v43  ;;  %v452_v28 = vld [vmem:[#allocation3 + $0x310] sm:$0xff] }
  0xf4   : > { %11921 = vst [vmem:[#allocation179_spill] sm:$0xff] %v8895_v18  ;;  %v455_v18 = vld [vmem:[#allocation3 + $0x328] sm:$0xff]  ;;  %v939_v33 = vmul.f32 %v8931_v19, %v8931_v19 }
  0xf5   : > { %11922 = vst [vmem:[#allocation180_spill] sm:$0xff] %v8903_v63  ;;  %v920_v63 = vmul.f32 %v8917_v42, %v8917_v42  ;;  %v1317_v16 = vmul.f32 %v7587_v52, %v1316_v35  ;;  %v8933_v1 = vunpack.c.l.bf16 %v455_v18  ;;  %v8935_v62 = vunpack.c.h.bf16 %v455_v18  ;;  %1232 = vadd.xlane.f32.xlu2 %v1231_v46 }
  0xf6   : > { %11923 = vst [vmem:[#allocation181_spill] sm:$0xff] %v8911_v14  ;;  %v1226_v14 = vadd.f32 %v1225_v49, %v925_v51  ;;  %v938_v35 = vmul.f32 %v8927_v55, %v8927_v55  ;;  %v8945_v18 = vunpack.c.l.bf16 %v452_v28  ;;  %v8950_v46 = vunpack.c.h.bf16 %v452_v28 }
  0xf7   : > { %11924 = vst [vmem:[#allocation182_spill] sm:$0xff] %v8915_v34  ;;  %v453_v34 = vld [vmem:[#allocation3 + $0x318] sm:$0xff]  ;;  %v1318_v2 = vadd.f32 %v7587_v52, %v1317_v16  ;;  %v1220_v43 = vadd.f32 %v1219_v15, %v920_v63  ;;  %v940_v51 = vmul.f32 %v8933_v1, %v8933_v1  ;;  %v941_v13 = vmul.f32 %v8935_v62, %v8935_v62 }
  0xf8   : > { %11925 = vst [vmem:[#allocation183_spill] sm:$0xff] %v8917_v42  ;;  %1227 = vadd.xlane.f32.xlu1 %v1226_v14  ;;  %v1003_v38 = vpop.xlane.xlu0 %1002  ;;  %v1244_v16 = vadd.f32 %v939_v33, %v938_v35 }
  0xf9   : > { %11926 = vst [vmem:[#allocation184_spill] sm:$0xff] %v8919_v23  ;;  %v8948_v49 = vsel %vm1319_vm0, %v7587_v52, %v1318_v2 }
  0xfa   : > { %11927 = vst [vmem:[#allocation185_spill] sm:$0xff] %v8927_v55  ;;  %v8952_v55 = vunpack.c.l.bf16 %v453_v34  ;;  %v1325_v15 = vmul.f32 %v8948_v49, %v8879_v48  ;;  %v1323_v63 = vmul.f32 %v8948_v49, %v8887_v41  ;;  %v1321_v14 = vmul.f32 %v8948_v49, %v998_v20 }
  0xfb   : > { %11928 = vst [vmem:[#allocation186_spill] sm:$0xff] %v8931_v19  ;;  %v1326_v19 = vmul.f32 %v8948_v49, %v1023_v27  ;;  %v1324_v2 = vmul.f32 %v8948_v49, %v1013_v45  ;;  %v1322_v52 = vmul.f32 %v8948_v49, %v1003_v38  ;;  %v1245_v28 = vadd.f32 %v1244_v16, %v940_v51  ;;  %v450_v45 = vld [vmem:[#allocation3 + $0x300] sm:$0xff]  ;;  %v451_v51 = vld [vmem:[#allocation3 + $0x308] sm:$0xff] }
  0xfc   : > { %11929 = vst [vmem:[#allocation187_spill] sm:$0xff] %v8933_v1  ;;  %v2345_v1 = vld [vmem:[#allocation6] sm:$0xf]  ;;  %v8962_v35 = vadd.f32 1e-06, %v1325_v15  ;;  %v8968_v48 = vunpack.c.h.bf16 %v453_v34 }
  0xfd   : > { %11930 = vst [vmem:[#allocation188_spill] sm:$0xff] %v8935_v62  ;;  %v1221_v62 = vadd.f32 %v1220_v43, %v921_v61  ;;  %v8964_v33 = vadd.f32 1e-06, %v1323_v63  ;;  %v8966_v23 = vadd.f32 1e-06, %v1321_v14  ;;  %v1246_v20 = vadd.f32 %v1245_v28, %v941_v13 }
  0xfe   : > { %11931 = vst [vmem:[#allocation189_spill] sm:$0xff] %v8945_v18  ;;  %v8970_v41 = vadd.f32 1e-06, %v1326_v19  ;;  %v8972_v61 = vperm.slane %v2345_v1, 0  ;;  %7588 = vrsqrt.f32 %v8962_v35  ;;  %v8975_v27 = vadd.f32 1e-06, %v1324_v2  ;;  %v1038_v19 = vpop.xlane.xlu2 %1037 }
  0xff   : > { %11932 = vst [vmem:[#allocation190_spill] sm:$0xff] %v8948_v49  ;;  %1222 = vadd.xlane.f32.xlu0 %v1221_v62  ;;  %v934_v43 = vmul.f32 %v8945_v18, %v8945_v18  ;;  %v8979_v38 = vperm.slane %v2345_v1, 1  ;;  %v8981_v16 = vperm.slane %v2345_v1, 2  ;;  %7590 = vrsqrt.f32 %v8964_v33  ;;  %1247 = vadd.xlane.f32.xlu2 %v1246_v20 }
 0x100   : > { %11933 = vst [vmem:[#allocation191_spill] sm:$0xff] %v8950_v46  ;;  %v8984_v34 = vadd.f32 1e-06, %v1322_v52  ;;  %7592 = vrsqrt.f32 %v8966_v23  ;;  %v935_v62 = vmul.f32 %v8950_v46, %v8950_v46  ;;  %v936_v13 = vmul.f32 %v8952_v55, %v8952_v55  ;;  %v1033_v46 = vpop.xlane.xlu1 %1032 }
 0x101   : > { %11934 = vst [vmem:[#allocation192_spill] sm:$0xff] %v8952_v55  ;;  %v937_v15 = vmul.f32 %v8968_v48, %v8968_v48  ;;  %7594 = vrsqrt.f32 %v8970_v41  ;;  %v8994_v63 = vunpack.c.l.bf16 %v450_v45  ;;  %v8996_v14 = vunpack.c.h.bf16 %v450_v45 }
 0x102   : > { %11935 = vst [vmem:[#allocation193_spill] sm:$0xff] %v8968_v48  ;;  %v8998_v2 = vunpack.c.l.bf16 %v451_v51  ;;  %7596 = vrsqrt.f32 %v8975_v27  ;;  %v1239_v52 = vadd.f32 %v935_v62, %v934_v43  ;;  %v9001_v28 = vunpack.c.h.bf16 %v451_v51 }
 0x103   : > { %11936 = vst [vmem:[#allocation194_spill] sm:$0xff] %v8994_v63  ;;  %v1329_v20 = vmul.f32 %v8948_v49, %v1038_v19  ;;  %7598 = vrsqrt.f32 %v8984_v34  ;;  %v930_v48 = vmul.f32 %v8994_v63, %v8994_v63  ;;  %v931_v55 = vmul.f32 %v8996_v14, %v8996_v14 }
 0x104   : > { %11937 = vst [vmem:[#allocation195_spill] sm:$0xff] %v8996_v14  ;;  %v932_v45 = vmul.f32 %v8998_v2, %v8998_v2  ;;  %v7589_v18 = vpop.eup %7588  ;;  %v9011_v42 = vperm.slane %v2345_v1, 3  ;;  %vm1495_vm1 = vweird.f32 %v8962_v35  ;;  %v1240_v43 = vadd.f32 %v1239_v52, %v936_v13 }
 0x105   : > { %11938 = vst [vmem:[#allocation196_spill] sm:$0xff] %v8998_v2  ;;  %v9014_v51 = vadd.f32 1e-06, %v1329_v20  ;;  %v9016_v19 = vpop.eup %7590  ;;  %v1490_v62 = vmul.f32 %v7589_v18, %v8962_v35  ;;  %vm1475_vm2 = vweird.f32 %v8964_v33  ;;  %v933_v14 = vmul.f32 %v9001_v28, %v9001_v28  ;;  %v1028_v2 = vpop.xlane.xlu0 %1027 }
 0x106   : > { %11939 = vst [vmem:[#allocation197_spill] sm:$0xff] %v9001_v28  ;;  %v1234_v63 = vadd.f32 %v931_v55, %v930_v48  ;;  %v7593_v0 = vpop.eup %7592  ;;  %v1470_v1 = vmul.f32 %v9016_v19, %v8964_v33  ;;  %v1241_v60 = vadd.f32 %v1240_v43, %v937_v15  ;;  %v1328_v13 = vmul.f32 %v8948_v49, %v1033_v46 }
 0x107   : > { %7600 = vrsqrt.f32 %v9014_v51  ;;  %v9026_v52 = vpop.eup %7594  ;;  %v1491_v20 = vmul.f32 %v7589_v18, %v1490_v62  ;;  %vm1496_vm3 = vweird.f32 %v7589_v18  ;;  %v1450_v57 = vmul.f32 %v7593_v0, %v8966_v23 }
 0x108   : > { %vm1455_vm4 = vweird.f32 %v8966_v23  ;;  %v1235_v28 = vadd.f32 %v1234_v63, %v932_v45  ;;  %v9030_v55 = vpop.eup %7596  ;;  %v1471_v48 = vmul.f32 %v9016_v19, %v1470_v1  ;;  %vm1476_vm5 = vweird.f32 %v9016_v19  ;;  %1242 = vadd.xlane.f32.xlu1 %v1241_v60  ;;  %vm1497_vm11 = vmor %vm1495_vm1, %vm1496_vm3 }
 0x109   : > { %v1500_v15 = vmul.f32 %v9026_v52, %v8970_v41  ;;  %v9037_v46 = vmul.f32 %v8948_v49, %v1028_v2  ;;  %v9039_v43 = vpop.eup %7598  ;;  %v1492_v62 = vmul.f32 0.5, %v1491_v20  ;;  %v1451_v47 = vmul.f32 %v7593_v0, %v1450_v57  ;;  %vm1477_vm12 = vmor %vm1475_vm2, %vm1476_vm5 }
 0x10a   : > { %vm1456_vm6 = vweird.f32 %v7593_v0  ;;  %v1480_v63 = vmul.f32 %v9030_v55, %v8975_v27  ;;  %v1472_v45 = vmul.f32 0.5, %v1471_v48  ;;  %vm1505_vm7 = vweird.f32 %v8970_v41 }
 0x10b   : > { %v1501_v1 = vmul.f32 %v9026_v52, %v1500_v15  ;;  %vm1506_vm8 = vweird.f32 %v9026_v52  ;;  %v1460_v60 = vmul.f32 %v9039_v43, %v8984_v34  ;;  %v1493_v2 = vsub.f32 1.5, %v1492_v62  ;;  %vm1457_vm13 = vmor %vm1455_vm4, %vm1456_vm6 }
 0x10c   : > { %v1452_v44 = vmul.f32 0.5, %v1451_v47  ;;  %v1481_v37 = vmul.f32 %v9030_v55, %v1480_v63  ;;  %vm1485_vm9 = vweird.f32 %v8975_v27  ;;  %v1236_v57 = vadd.f32 %v1235_v28, %v933_v14  ;;  %vm1507_vm15 = vmor %vm1505_vm7, %vm1506_vm8 }
 0x10d   : > { %v9050_v20 = vpop.eup %7600  ;;  %v1473_v36 = vsub.f32 1.5, %v1472_v45  ;;  %v1502_v48 = vmul.f32 0.5, %v1501_v1  ;;  %vm1486_vm10 = vweird.f32 %v9030_v55  ;;  %v1461_v15 = vmul.f32 %v9039_v43, %v1460_v60 }
 0x10e   : > { %v1494_v49 = vmul.f32 %v7589_v18, %v1493_v2  ;;  %v1453_v32 = vsub.f32 1.5, %v1452_v44  ;;  %v1482_v22 = vmul.f32 0.5, %v1481_v37  ;;  %1237 = vadd.xlane.f32.xlu0 %v1236_v57  ;;  %v1530_v47 = vmul.f32 %v9050_v20, %v9014_v51  ;;  %vm1487_vm0 = vmor %vm1485_vm9, %vm1486_vm10 }
 0x10f   : > { %v1474_v14 = vmul.f32 %v9016_v19, %v1473_v36  ;;  %v1503_v28 = vsub.f32 1.5, %v1502_v48  ;;  %v9060_v62 = vmul.f32 0.5, %v1461_v15  ;;  %v9062_v63 = vadd.f32 1e-06, %v1328_v13 }
 0x110   : > { %v1498_v45 = vsel %vm1497_vm11, %v7589_v18, %v1494_v49  ;;  %v1454_v37 = vmul.f32 %v7593_v0, %v1453_v32  ;;  %v1483_v44 = vsub.f32 1.5, %v1482_v22  ;;  %v9069_v1 = vmul.f32 %v9050_v20, %v1530_v47 }
 0x111   : > { %v2105_v35 = vmul.f32 %v1498_v45, %v8157_v3  ;;  %v2106_v36 = vmul.f32 %v1498_v45, %v8159_v4  ;;  %v2107_v60 = vmul.f32 %v1498_v45, %v8161_v5  ;;  %v2108_v13 = vmul.f32 %v1498_v45, %v8163_v6 }
 0x112   : > { %v1478_v18 = vsel %vm1477_vm12, %v9016_v19, %v1474_v14  ;;  %v1458_v49 = vsel %vm1457_vm13, %v7593_v0, %v1454_v37  ;;  %v1504_v22 = vmul.f32 %v9026_v52, %v1503_v28  ;;  %v1484_v32 = vmul.f32 %v9030_v55, %v1483_v44 }
 0x113   : > { %v2371_v33 = vmul.f32 %v8972_v61, %v2105_v35  ;;  %v2372_v3 = vmul.f32 %v8979_v38, %v2106_v36  ;;  %v2373_v4 = vmul.f32 %v8981_v16, %v2107_v60  ;;  %v2374_v5 = vmul.f32 %v9011_v42, %v2108_v13 }
 0x114   : > { %v2097_v6 = vmul.f32 %v1478_v18, %v8165_v8  ;;  %v2098_v23 = vmul.f32 %v1478_v18, %v8167_v9  ;;  %v2099_v2 = vmul.f32 %v1478_v18, %v8169_v10  ;;  %v2100_v0 = vmul.f32 %v1478_v18, %v8171_v11 }
 0x115   : > { %v2619_v19 = vpack.c.bf16 %v2372_v3, %v2371_v33  ;;  %v2620_v57 = vpack.c.bf16 %v2374_v5, %v2373_v4  ;;  %v2089_v48 = vmul.f32 %v1458_v49, %v8189_v24  ;;  %v2090_v15 = vmul.f32 %v1458_v49, %v8191_v25  ;;  %v460_v33 = vld [vmem:[#allocation3 + $0x350] sm:$0xff] }
 0x116   : > { %vm1466_vm14 = vweird.f32 %v9039_v43  ;;  %v2363_v47 = vmul.f32 %v8972_v61, %v2097_v6  ;;  %v2364_v14 = vmul.f32 %v8979_v38, %v2098_v23  ;;  %v2365_v8 = vmul.f32 %v8981_v16, %v2099_v2  ;;  %v461_v6 = vld [vmem:[#allocation3 + $0x358] sm:$0xff] }
 0x117   : > { %v2366_v9 = vmul.f32 %v9011_v42, %v2100_v0  ;;  %2747 = vst [vmem:[#allocation2 + $0x40] sm:$0xff] %v2619_v19  ;;  %v2091_v10 = vmul.f32 %v1458_v49, %v8193_v26  ;;  %v2092_v11 = vmul.f32 %v1458_v49, %v8195_v29  ;;  %v2355_v24 = vmul.f32 %v8972_v61, %v2089_v48 }
 0x118   : > { %v2356_v25 = vmul.f32 %v8979_v38, %v2090_v15  ;;  %vm1465_vm1 = vweird.f32 %v8984_v34  ;;  %2748 = vst [vmem:[#allocation2 + $0x48] sm:$0xff] %v2620_v57  ;;  %v2615_v28 = vpack.c.bf16 %v2364_v14, %v2363_v47  ;;  %v1508_v45 = vsel %vm1507_vm15, %v9026_v52, %v1504_v22 }
 0x119   : > { %v2616_v41 = vpack.c.bf16 %v2366_v9, %v2365_v8  ;;  %v1488_v26 = vsel %vm1487_vm0, %v9030_v55, %v1484_v32  ;;  %v2357_v29 = vmul.f32 %v8981_v16, %v2091_v10  ;;  %v2358_v37 = vmul.f32 %v9011_v42, %v2092_v11  ;;  %vm1467_vm4 = vmor %vm1465_vm1, %vm1466_vm14 }
 0x11a   : > { %v2611_v44 = vpack.c.bf16 %v2356_v25, %v2355_v24  ;;  %v2109_v35 = vmul.f32 %v1508_v45, %v8197_v30  ;;  %vm1535_vm2 = vweird.f32 %v9014_v51  ;;  %2743 = vst [vmem:[#allocation2 + $0x20] sm:$0xff] %v2615_v28  ;;  %v2110_v27 = vmul.f32 %v1508_v45, %v8199_v31  ;;  %v458_v28 = vld [vmem:[#allocation3 + $0x340] sm:$0xff] }
 0x11b   : > { %v2111_v36 = vmul.f32 %v1508_v45, %v8209_v39  ;;  %v2112_v60 = vmul.f32 %v1508_v45, %v8211_v40  ;;  %v2101_v52 = vmul.f32 %v1488_v26, %v8221_v50  ;;  %2744 = vst [vmem:[#allocation2 + $0x28] sm:$0xff] %v2616_v41  ;;  %v2612_v55 = vpack.c.bf16 %v2358_v37, %v2357_v29  ;;  %v11940_v29 = vld [vmem:[#allocation19_spill] sm:$0xff]  ;;  %v11941_v37 = vld [vmem:[#allocation20_spill] sm:$0xff] }
 0x11c   : > { %v2375_v13 = vmul.f32 %v8972_v61, %v2109_v35  ;;  %v2102_v18 = vmul.f32 %v1488_v26, %v8223_v53  ;;  %v2103_v49 = vmul.f32 %v1488_v26, %v8225_v54  ;;  %2739 = vst [vmem:[#allocation2] sm:$0xff] %v2611_v44  ;;  %v2376_v30 = vmul.f32 %v8979_v38, %v2110_v27 }
 0x11d   : > { %v2377_v22 = vmul.f32 %v8981_v16, %v2111_v36  ;;  %v2378_v31 = vmul.f32 %v9011_v42, %v2112_v60  ;;  %v2104_v39 = vmul.f32 %v1488_v26, %v8227_v56  ;;  %2740 = vst [vmem:[#allocation2 + $0x8] sm:$0xff] %v2612_v55  ;;  %v2367_v40 = vmul.f32 %v8972_v61, %v2101_v52  ;;  %v459_v52 = vld [vmem:[#allocation3 + $0x348] sm:$0xff] }
 0x11e   : > { %v2368_v50 = vmul.f32 %v8979_v38, %v2102_v18  ;;  %v2369_v32 = vmul.f32 %v8981_v16, %v2103_v49  ;;  %v1463_v53 = vsub.f32 1.5, %v9060_v62  ;;  %v2621_v54 = vpack.c.bf16 %v2376_v30, %v2375_v13 }
 0x11f   : > { %v2622_v3 = vpack.c.bf16 %v2378_v31, %v2377_v22  ;;  %v2370_v4 = vmul.f32 %v9011_v42, %v2104_v39  ;;  %v1532_v5 = vmul.f32 0.5, %v9069_v1  ;;  %vm1536_vm3 = vweird.f32 %v9050_v20  ;;  %v456_v39 = vld [vmem:[#allocation3 + $0x330] sm:$0xff] }
 0x120   : > { %v2617_v23 = vpack.c.bf16 %v2368_v50, %v2367_v40  ;;  %v1464_v56 = vmul.f32 %v9039_v43, %v1463_v53  ;;  %7602 = vrsqrt.f32 %v9062_v63  ;;  %2749 = vst [vmem:[#allocation2 + $0x50] sm:$0xff] %v2621_v54  ;;  %v9140_v0 = vadd.f32 1e-06, %v9037_v46  ;;  %vm1537_vm5 = vmor %vm1535_vm2, %vm1536_vm3 }
 0x121   : > { %v2618_v2 = vpack.c.bf16 %v2370_v4, %v2369_v32  ;;  %v1533_v62 = vsub.f32 1.5, %v1532_v5  ;;  %v9142_v1 = vunpack.c.l.bf16 %v460_v33  ;;  %2750 = vst [vmem:[#allocation2 + $0x58] sm:$0xff] %v2622_v3  ;;  %v9145_v57 = vunpack.c.h.bf16 %v460_v33  ;;  %v457_v33 = vld [vmem:[#allocation3 + $0x338] sm:$0xff] }
 0x122   : > { %v1468_v19 = vsel %vm1467_vm4, %v9039_v43, %v1464_v56  ;;  %v9147_v48 = vunpack.c.l.bf16 %v461_v6  ;;  %v9149_v15 = vunpack.c.h.bf16 %v461_v6  ;;  %2745 = vst [vmem:[#allocation2 + $0x30] sm:$0xff] %v2617_v23  ;;  %7604 = vrsqrt.f32 %v9140_v0  ;;  %v1053_v6 = vpop.xlane.xlu2 %1052 }
 0x123   : > { %v2093_v47 = vmul.f32 %v1468_v19, %v8231_v58  ;;  %v2094_v34 = vmul.f32 %v1468_v19, %v8233_v59  ;;  %v2095_v14 = vmul.f32 %v1468_v19, %v8241_v7  ;;  %v2096_v46 = vmul.f32 %v1468_v19, %v8243_v12  ;;  %2746 = vst [vmem:[#allocation2 + $0x38] sm:$0xff] %v2618_v2 }
 0x124   : > { %v1534_v8 = vmul.f32 %v9050_v20, %v1533_v62  ;;  %v950_v43 = vmul.f32 %v9142_v1, %v9142_v1  ;;  %vm1525_vm6 = vweird.f32 %v9062_v63  ;;  %v951_v11 = vmul.f32 %v9145_v57, %v9145_v57 }
 0x125   : > { %v2359_v9 = vmul.f32 %v8972_v61, %v2093_v47  ;;  %v2360_v10 = vmul.f32 %v8979_v38, %v2094_v34  ;;  %v2361_v58 = vmul.f32 %v8981_v16, %v2095_v14  ;;  %v2362_v59 = vmul.f32 %v9011_v42, %v2096_v46  ;;  %v1048_v46 = vpop.xlane.xlu1 %1047 }
 0x126   : > { %v9167_v7 = vpop.eup %7602  ;;  %v1538_v12 = vsel %vm1537_vm5, %v9050_v20, %v1534_v8  ;;  %v952_v24 = vmul.f32 %v9147_v48, %v9147_v48  ;;  %v953_v25 = vmul.f32 %v9149_v15, %v9149_v15  ;;  %v1259_v60 = vadd.f32 %v951_v11, %v950_v43 }
 0x127   : > { %v2613_v41 = vpack.c.bf16 %v2360_v10, %v2359_v9  ;;  %v2614_v45 = vpack.c.bf16 %v2362_v59, %v2361_v58  ;;  %v2121_v51 = vmul.f32 %v1538_v12, %v8249_v17  ;;  %v2122_v26 = vmul.f32 %v1538_v12, %v8255_v21  ;;  %v11942_v10 = vld [vmem:[#allocation190_spill] sm:$0xff] }
 0x128   : > { %v2123_v20 = vmul.f32 %v1538_v12, %v11940_v29  ;;  %v2124_v44 = vmul.f32 %v1538_v12, %v11941_v37  ;;  %v1520_v35 = vmul.f32 %v9167_v7, %v9062_v63  ;;  %vm1526_vm7 = vweird.f32 %v9167_v7  ;;  %v7605_v17 = vpop.eup %7604 }
 0x129   : > { %2741 = vst [vmem:[#allocation2 + $0x10] sm:$0xff] %v2613_v41  ;;  %v2387_v27 = vmul.f32 %v8972_v61, %v2121_v51  ;;  %v2388_v36 = vmul.f32 %v8979_v38, %v2122_v26  ;;  %v9186_v55 = vunpack.c.l.bf16 %v458_v28  ;;  %v9191_v49 = vunpack.c.h.bf16 %v458_v28  ;;  %vm1527_vm10 = vmor %vm1525_vm6, %vm1526_vm7  ;;  %v11943_v51 = vld [vmem:[#allocation21_spill] sm:$0xff]  ;;  %v11944_v26 = vld [vmem:[#allocation22_spill] sm:$0xff] }
 0x12a   : > { %2742 = vst [vmem:[#allocation2 + $0x18] sm:$0xff] %v2614_v45  ;;  %v2389_v21 = vmul.f32 %v8981_v16, %v2123_v20  ;;  %v2390_v13 = vmul.f32 %v9011_v42, %v2124_v44  ;;  %v1521_v18 = vmul.f32 %v9167_v7, %v1520_v35  ;;  %v1510_v22 = vmul.f32 %v7605_v17, %v9140_v0  ;;  %v11945_v20 = vld [vmem:[#allocation23_spill] sm:$0xff]  ;;  %v11946_v44 = vld [vmem:[#allocation24_spill] sm:$0xff] }
 0x12b   : > { %v2627_v30 = vpack.c.bf16 %v2388_v36, %v2387_v27  ;;  %vm1516_vm8 = vweird.f32 %v7605_v17  ;;  %v1260_v31 = vadd.f32 %v1259_v60, %v952_v24  ;;  %vm1515_vm9 = vweird.f32 %v9140_v0 }
 0x12c   : > { %v2628_v40 = vpack.c.bf16 %v2390_v13, %v2389_v21  ;;  %v1522_v50 = vmul.f32 0.5, %v1521_v18  ;;  %v9195_v32 = vunpack.c.l.bf16 %v459_v52  ;;  %v9197_v53 = vunpack.c.h.bf16 %v459_v52  ;;  %vm1517_vm11 = vmor %vm1515_vm9, %vm1516_vm8 }
 0x12d   : > { %2755 = vst [vmem:[#allocation2 + $0x80] sm:$0xff] %v2627_v30  ;;  %v1511_v54 = vmul.f32 %v7605_v17, %v1510_v22  ;;  %v1261_v3 = vadd.f32 %v1260_v31, %v953_v25  ;;  %v946_v4 = vmul.f32 %v9186_v55, %v9186_v55  ;;  %v947_v5 = vmul.f32 %v9191_v49, %v9191_v49  ;;  %v1043_v31 = vpop.xlane.xlu0 %1042 }
 0x12e   : > { %2756 = vst [vmem:[#allocation2 + $0x88] sm:$0xff] %v2628_v40  ;;  %v1523_v23 = vsub.f32 1.5, %v1522_v50  ;;  %v948_v56 = vmul.f32 %v9195_v32, %v9195_v32  ;;  %v949_v2 = vmul.f32 %v9197_v53, %v9197_v53  ;;  %v9207_v62 = vunpack.c.l.bf16 %v456_v39  ;;  %v11947_v50 = vld [vmem:[#allocation25_spill] sm:$0xff] }
 0x12f   : > { %v1512_v19 = vmul.f32 0.5, %v1511_v54  ;;  %1262 = vadd.xlane.f32.xlu2 %v1261_v3  ;;  %v1254_v47 = vadd.f32 %v947_v5, %v946_v4  ;;  %v9209_v34 = vunpack.c.h.bf16 %v456_v39  ;;  %v9211_v14 = vunpack.c.l.bf16 %v457_v33  ;;  %v11948_v54 = vld [vmem:[#allocation26_spill] sm:$0xff]  ;;  %v466_v4 = vld [vmem:[#allocation3 + $0x380] sm:$0xff]  ;;  %v11949_v5 = vld [vmem:[#allocation27_spill] sm:$0xff] }
 0x130   : > { %v1524_v8 = vmul.f32 %v9167_v7, %v1523_v23  ;;  %v9214_v43 = vunpack.c.h.bf16 %v457_v33  ;;  %v942_v9 = vmul.f32 %v9207_v62, %v9207_v62  ;;  %v1332_v58 = vmul.f32 %v11942_v10, %v1053_v6  ;;  %v11950_v23 = vld [vmem:[#allocation28_spill] sm:$0xff] }
 0x131   : > { %v1513_v59 = vsub.f32 1.5, %v1512_v19  ;;  %v1255_v12 = vadd.f32 %v1254_v47, %v948_v56  ;;  %v943_v11 = vmul.f32 %v9209_v34, %v9209_v34  ;;  %v944_v24 = vmul.f32 %v9211_v14, %v9211_v14  ;;  %v467_v47 = vld [vmem:[#allocation3 + $0x388] sm:$0xff] }
 0x132   : > { %v1528_v25 = vsel %vm1527_vm10, %v9167_v7, %v1524_v8  ;;  %v945_v28 = vmul.f32 %v9214_v43, %v9214_v43  ;;  %v9230_v41 = vadd.f32 1e-06, %v1332_v58  ;;  %v1331_v45 = vmul.f32 %v11942_v10, %v1048_v46 }
 0x133   : > { %v2117_v63 = vmul.f32 %v1528_v25, %v11943_v51  ;;  %v2118_v29 = vmul.f32 %v1528_v25, %v11944_v26  ;;  %v2119_v37 = vmul.f32 %v1528_v25, %v11945_v20  ;;  %v2120_v35 = vmul.f32 %v1528_v25, %v11946_v44  ;;  %v464_v25 = vld [vmem:[#allocation3 + $0x370] sm:$0xff]  ;;  %v465_v20 = vld [vmem:[#allocation3 + $0x378] sm:$0xff] }
 0x134   : > { %v1514_v27 = vmul.f32 %v7605_v17, %v1513_v59  ;;  %v1256_v36 = vadd.f32 %v1255_v12, %v949_v2  ;;  %v1249_v60 = vadd.f32 %v943_v11, %v942_v9  ;;  %7606 = vrsqrt.f32 %v9230_v41 }
 0x135   : > { %v2383_v7 = vmul.f32 %v8972_v61, %v2117_v63  ;;  %v2384_v52 = vmul.f32 %v8979_v38, %v2118_v29  ;;  %v2385_v21 = vmul.f32 %v8981_v16, %v2119_v37  ;;  %v2386_v13 = vmul.f32 %v9011_v42, %v2120_v35 }
 0x136   : > { %v1518_v18 = vsel %vm1517_vm11, %v7605_v17, %v1514_v27  ;;  %1257 = vadd.xlane.f32.xlu1 %v1256_v36  ;;  %v1250_v30 = vadd.f32 %v1249_v60, %v944_v24  ;;  %v9245_v22 = vadd.f32 1e-06, %v1331_v45  ;;  %v1330_v19 = vmul.f32 %v11942_v10, %v1043_v31  ;;  %v462_v60 = vld [vmem:[#allocation3 + $0x360] sm:$0xff] }
 0x137   : > { %v2625_v39 = vpack.c.bf16 %v2384_v52, %v2383_v7  ;;  %v2626_v40 = vpack.c.bf16 %v2386_v13, %v2385_v21  ;;  %v2113_v33 = vmul.f32 %v1518_v18, %v11947_v50  ;;  %v2114_v3 = vmul.f32 %v1518_v18, %v11948_v54 }
 0x138   : > { %v2115_v6 = vmul.f32 %v1518_v18, %v11949_v5  ;;  %v2116_v56 = vmul.f32 %v1518_v18, %v11950_v23  ;;  %v1251_v2 = vadd.f32 %v1250_v30, %v945_v28  ;;  %7608 = vrsqrt.f32 %v9245_v22 }
 0x139   : > { %2753 = vst [vmem:[#allocation2 + $0x70] sm:$0xff] %v2625_v39  ;;  %v2379_v0 = vmul.f32 %v8972_v61, %v2113_v33  ;;  %v2380_v17 = vmul.f32 %v8979_v38, %v2114_v3  ;;  %v9257_v58 = vunpack.c.l.bf16 %v466_v4  ;;  %v9259_v59 = vunpack.c.h.bf16 %v466_v4  ;;  %v463_v39 = vld [vmem:[#allocation3 + $0x368] sm:$0xff] }
 0x13a   : > { %v7607_v46 = vpop.eup %7606  ;;  %2754 = vst [vmem:[#allocation2 + $0x78] sm:$0xff] %v2626_v40  ;;  %v2381_v8 = vmul.f32 %v8981_v16, %v2115_v6  ;;  %v2382_v9 = vmul.f32 %v9011_v42, %v2116_v56  ;;  %1252 = vadd.xlane.f32.xlu0 %v1251_v2  ;;  %vm1565_vm12 = vweird.f32 %v9230_v41  ;;  %v9263_v24 = vadd.f32 1e-06, %v1330_v19 }
 0x13b   : > { %v2623_v12 = vpack.c.bf16 %v2380_v17, %v2379_v0  ;;  %v1560_v11 = vmul.f32 %v7607_v46, %v9230_v41  ;;  %v9265_v45 = vunpack.c.l.bf16 %v467_v47  ;;  %v9267_v51 = vunpack.c.h.bf16 %v467_v47 }
 0x13c   : > { %v2624_v28 = vpack.c.bf16 %v2382_v9, %v2381_v8  ;;  %v962_v63 = vmul.f32 %v9257_v58, %v9257_v58  ;;  %vm1566_vm13 = vweird.f32 %v7607_v46  ;;  %vm1555_vm14 = vweird.f32 %v9245_v22 }
 0x13d   : > { %2751 = vst [vmem:[#allocation2 + $0x60] sm:$0xff] %v2623_v12  ;;  %v1561_v26 = vmul.f32 %v7607_v46, %v1560_v11  ;;  %7610 = vrsqrt.f32 %v9263_v24  ;;  %v963_v29 = vmul.f32 %v9259_v59, %v9259_v59  ;;  %v964_v44 = vmul.f32 %v9265_v45, %v9265_v45  ;;  %vm1567_vm0 = vmor %vm1565_vm12, %vm1566_vm13 }
 0x13e   : > { %v7609_v37 = vpop.eup %7608  ;;  %2752 = vst [vmem:[#allocation2 + $0x68] sm:$0xff] %v2624_v28  ;;  %v965_v35 = vmul.f32 %v9267_v51, %v9267_v51  ;;  %v9279_v27 = vunpack.c.l.bf16 %v464_v25  ;;  %v9281_v36 = vunpack.c.h.bf16 %v464_v25  ;;  %v9284_v13 = vunpack.c.l.bf16 %v465_v20  ;;  %v11957_v28 = vld [vmem:[#allocation29_spill] sm:$0xff] }
 0x13f   : > { %v1562_v7 = vmul.f32 0.5, %v1561_v26  ;;  %v1550_v52 = vmul.f32 %v7609_v37, %v9245_v22  ;;  %vm1556_vm15 = vweird.f32 %v7609_v37  ;;  %v1274_v21 = vadd.f32 %v963_v29, %v962_v63  ;;  %v11958_v63 = vld [vmem:[#allocation30_spill] sm:$0xff]  ;;  %v11959_v29 = vld [vmem:[#allocation31_spill] sm:$0xff] }
 0x140   : > { %11951 = vst [vmem:[#allocation19_spill] sm:$0xff] %v9284_v13  ;;  %v9286_v18 = vunpack.c.h.bf16 %v465_v20  ;;  %v958_v30 = vmul.f32 %v9279_v27, %v9279_v27  ;;  %v959_v31 = vmul.f32 %v9281_v36, %v9281_v36  ;;  %v9292_v54 = vunpack.c.l.bf16 %v462_v60  ;;  %vm1557_vm3 = vmor %vm1555_vm14, %vm1556_vm15 }
 0x141   : > { %v1563_v40 = vsub.f32 1.5, %v1562_v7  ;;  %v1551_v50 = vmul.f32 %v7609_v37, %v1550_v52  ;;  %v1275_v33 = vadd.f32 %v1274_v21, %v964_v44  ;;  %v960_v3 = vmul.f32 %v9284_v13, %v9284_v13  ;;  %v11960_v44 = vld [vmem:[#allocation32_spill] sm:$0xff] }
 0x142   : > { %11952 = vst [vmem:[#allocation20_spill] sm:$0xff] %v9286_v18  ;;  %v961_v4 = vmul.f32 %v9286_v18, %v9286_v18  ;;  %v1269_v5 = vadd.f32 %v959_v31, %v958_v30  ;;  %v9298_v6 = vunpack.c.h.bf16 %v462_v60  ;;  %v9300_v17 = vunpack.c.l.bf16 %v463_v39  ;;  %v12030_v18 = vld [vmem:[#allocation74_spill] sm:$0xff] }
 0x143   : > { %11953 = vst [vmem:[#allocation190_spill] sm:$0xff] %v9292_v54  ;;  %v7611_v23 = vpop.eup %7610  ;;  %v1564_v56 = vmul.f32 %v7607_v46, %v1563_v40  ;;  %v1552_v2 = vmul.f32 0.5, %v1551_v50  ;;  %v1276_v0 = vadd.f32 %v1275_v33, %v965_v35  ;;  %v9306_v8 = vunpack.c.h.bf16 %v463_v39 }
 0x144   : > { %11954 = vst [vmem:[#allocation21_spill] sm:$0xff] %v9298_v6  ;;  %v1540_v19 = vmul.f32 %v7611_v23, %v9263_v24  ;;  %vm1546_vm1 = vweird.f32 %v7611_v23  ;;  %v1270_v47 = vadd.f32 %v1269_v5, %v960_v3  ;;  %vm1545_vm2 = vweird.f32 %v9263_v24  ;;  %v1063_v5 = vpop.xlane.xlu1 %1062  ;;  %v11969_v24 = vld [vmem:[#allocation40_spill] sm:$0xff] }
 0x145   : > { %11955 = vst [vmem:[#allocation22_spill] sm:$0xff] %v9300_v17  ;;  %v1568_v9 = vsel %vm1567_vm0, %v7607_v46, %v1564_v56  ;;  %v1553_v12 = vsub.f32 1.5, %v1552_v2  ;;  %1277 = vadd.xlane.f32.xlu2 %v1276_v0  ;;  %v954_v11 = vmul.f32 %v9292_v54, %v9292_v54  ;;  %v955_v25 = vmul.f32 %v9298_v6, %v9298_v6  ;;  %v11961_v0 = vld [vmem:[#allocation33_spill] sm:$0xff]  ;;  %vm1547_vm4 = vmor %vm1545_vm2, %vm1546_vm1  ;;  %v12027_v6 = vld [vmem:[#allocation71_spill] sm:$0xff] }
 0x146   : > { %11956 = vst [vmem:[#allocation23_spill] sm:$0xff] %v9306_v8  ;;  %v2133_v41 = vmul.f32 %v1568_v9, %v11957_v28  ;;  %v2134_v26 = vmul.f32 %v1568_v9, %v11958_v63  ;;  %v2135_v20 = vmul.f32 %v1568_v9, %v11959_v29  ;;  %v2136_v35 = vmul.f32 %v1568_v9, %v11960_v44  ;;  %v472_v44 = vld [vmem:[#allocation3 + $0x3b0] sm:$0xff] }
 0x147   : > { %v1554_v60 = vmul.f32 %v7609_v37, %v1553_v12  ;;  %v1541_v46 = vmul.f32 %v7611_v23, %v1540_v19  ;;  %v1271_v7 = vadd.f32 %v1270_v47, %v961_v4  ;;  %v956_v52 = vmul.f32 %v9300_v17, %v9300_v17  ;;  %v1068_v4 = vpop.xlane.xlu2 %1067  ;;  %v11962_v47 = vld [vmem:[#allocation34_spill] sm:$0xff]  ;;  %v11963_v12 = vld [vmem:[#allocation35_spill] sm:$0xff] }
 0x148   : > { %v2399_v21 = vmul.f32 %v8972_v61, %v2133_v41  ;;  %v2400_v30 = vmul.f32 %v8979_v38, %v2134_v26  ;;  %v2401_v31 = vmul.f32 %v8981_v16, %v2135_v20  ;;  %v2402_v39 = vmul.f32 %v9011_v42, %v2136_v35  ;;  %v11964_v41 = vld [vmem:[#allocation36_spill] sm:$0xff]  ;;  %v1058_v26 = vpop.xlane.xlu0 %1057 }
 0x149   : > { %v1558_v40 = vsel %vm1557_vm3, %v7609_v37, %v1554_v60  ;;  %v1542_v50 = vmul.f32 0.5, %v1541_v46  ;;  %1272 = vadd.xlane.f32.xlu1 %v1271_v7  ;;  %v957_v33 = vmul.f32 %v9306_v8, %v9306_v8  ;;  %v1264_v3 = vadd.f32 %v955_v25, %v954_v11  ;;  %v12009_v8 = vld [vmem:[#allocation60_spill] sm:$0xff] }
 0x14a   : > { %v2633_v56 = vpack.c.bf16 %v2400_v30, %v2399_v21  ;;  %v2634_v2 = vpack.c.bf16 %v2402_v39, %v2401_v31  ;;  %v2129_v19 = vmul.f32 %v1558_v40, %v11961_v0  ;;  %v2130_v9 = vmul.f32 %v1558_v40, %v11962_v47 }
 0x14b   : > { %v2131_v28 = vmul.f32 %v1558_v40, %v11963_v12  ;;  %v2132_v22 = vmul.f32 %v1558_v40, %v11964_v41  ;;  %v1543_v63 = vsub.f32 1.5, %v1542_v50  ;;  %v1265_v37 = vadd.f32 %v1264_v3, %v956_v52  ;;  %v11966_v3 = vld [vmem:[#allocation37_spill] sm:$0xff] }
 0x14c   : > { %2761 = vst [vmem:[#allocation2 + $0xb0] sm:$0xff] %v2633_v56  ;;  %v2395_v29 = vmul.f32 %v8972_v61, %v2129_v19  ;;  %v2396_v11 = vmul.f32 %v8979_v38, %v2130_v9  ;;  %v1335_v25 = vmul.f32 %v11942_v10, %v1068_v4  ;;  %v1334_v20 = vmul.f32 %v11942_v10, %v1063_v5  ;;  %v11968_v56 = vld [vmem:[#allocation39_spill] sm:$0xff] }
 0x14d   : > { %2762 = vst [vmem:[#allocation2 + $0xb8] sm:$0xff] %v2634_v2  ;;  %v2397_v35 = vmul.f32 %v8981_v16, %v2131_v28  ;;  %v2398_v60 = vmul.f32 %v9011_v42, %v2132_v22  ;;  %v1544_v46 = vmul.f32 %v7611_v23, %v1543_v63  ;;  %v1266_v7 = vadd.f32 %v1265_v37, %v957_v33  ;;  %v11967_v33 = vld [vmem:[#allocation38_spill] sm:$0xff]  ;;  %v473_v19 = vld [vmem:[#allocation3 + $0x3b8] sm:$0xff]  ;;  %v470_v22 = vld [vmem:[#allocation3 + $0x3a0] sm:$0xff] }
 0x14e   : > { %v2631_v21 = vpack.c.bf16 %v2396_v11, %v2395_v29  ;;  %v9341_v52 = vadd.f32 1e-06, %v1335_v25  ;;  %v1333_v30 = vmul.f32 %v11942_v10, %v1058_v26  ;;  %v9344_v40 = vadd.f32 1e-06, %v1334_v20  ;;  %v471_v26 = vld [vmem:[#allocation3 + $0x3a8] sm:$0xff]  ;;  %v468_v29 = vld [vmem:[#allocation3 + $0x390] sm:$0xff] }
 0x14f   : > { %v2632_v31 = vpack.c.bf16 %v2398_v60, %v2397_v35  ;;  %v1548_v39 = vsel %vm1547_vm4, %v7611_v23, %v1544_v46  ;;  %1267 = vadd.xlane.f32.xlu0 %v1266_v7  ;;  %v9346_v50 = vunpack.c.l.bf16 %v472_v44  ;;  %v9355_v23 = vunpack.c.h.bf16 %v472_v44  ;;  %v469_v46 = vld [vmem:[#allocation3 + $0x398] sm:$0xff] }
 0x150   : > { %2759 = vst [vmem:[#allocation2 + $0xa0] sm:$0xff] %v2631_v21  ;;  %v2125_v4 = vmul.f32 %v1548_v39, %v11966_v3  ;;  %v2126_v5 = vmul.f32 %v1548_v39, %v11967_v33  ;;  %v2127_v2 = vmul.f32 %v1548_v39, %v11968_v56  ;;  %v2128_v0 = vmul.f32 %v1548_v39, %v11969_v24 }
 0x151   : > { %11965 = vst [vmem:[#allocation24_spill] sm:$0xff] %v9346_v50  ;;  %7612 = vrsqrt.f32 %v9341_v52  ;;  %v9353_v47 = vadd.f32 1e-06, %v1333_v30  ;;  %v9362_v63 = vunpack.c.l.bf16 %v473_v19  ;;  %v9364_v37 = vunpack.c.h.bf16 %v473_v19 }
 0x152   : > { %2760 = vst [vmem:[#allocation2 + $0xa8] sm:$0xff] %v2632_v31  ;;  %v2391_v9 = vmul.f32 %v8972_v61, %v2125_v4  ;;  %v2392_v12 = vmul.f32 %v8979_v38, %v2126_v5  ;;  %v2393_v28 = vmul.f32 %v8981_v16, %v2127_v2  ;;  %v2394_v41 = vmul.f32 %v9011_v42, %v2128_v0 }
 0x153   : > { %11970 = vst [vmem:[#allocation25_spill] sm:$0xff] %v9355_v23  ;;  %7614 = vrsqrt.f32 %v9344_v40  ;;  %v974_v20 = vmul.f32 %v9346_v50, %v9346_v50  ;;  %v975_v44 = vmul.f32 %v9355_v23, %v9355_v23  ;;  %v976_v35 = vmul.f32 %v9362_v63, %v9362_v63 }
 0x154   : > { %11971 = vst [vmem:[#allocation26_spill] sm:$0xff] %v9362_v63  ;;  %v2629_v11 = vpack.c.bf16 %v2392_v12, %v2391_v9  ;;  %v2630_v25 = vpack.c.bf16 %v2394_v41, %v2393_v28  ;;  %7616 = vrsqrt.f32 %v9353_v47  ;;  %v9373_v60 = vunpack.c.l.bf16 %v470_v22  ;;  %v12007_v63 = vld [vmem:[#allocation58_spill] sm:$0xff] }
 0x155   : > { %11972 = vst [vmem:[#allocation27_spill] sm:$0xff] %v9364_v37  ;;  %vm1595_vm5 = vweird.f32 %v9341_v52  ;;  %v9376_v7 = vunpack.c.h.bf16 %v470_v22  ;;  %v9378_v21 = vunpack.c.l.bf16 %v471_v26  ;;  %v9380_v30 = vunpack.c.h.bf16 %v471_v26 }
 0x156   : > { %11973 = vst [vmem:[#allocation28_spill] sm:$0xff] %v9373_v60  ;;  %v9382_v31 = vunpack.c.l.bf16 %v468_v29  ;;  %v977_v3 = vmul.f32 %v9364_v37, %v9364_v37  ;;  %v1289_v4 = vadd.f32 %v975_v44, %v974_v20  ;;  %v970_v33 = vmul.f32 %v9373_v60, %v9373_v60  ;;  %v12005_v37 = vld [vmem:[#allocation56_spill] sm:$0xff] }
 0x157   : > { %2757 = vst [vmem:[#allocation2 + $0x90] sm:$0xff] %v2629_v11  ;;  %v7613_v39 = vpop.eup %7612  ;;  %v9388_v5 = vunpack.c.h.bf16 %v468_v29  ;;  %v971_v2 = vmul.f32 %v9376_v7, %v9376_v7  ;;  %v972_v24 = vmul.f32 %v9378_v21, %v9378_v21  ;;  %v9395_v0 = vunpack.c.l.bf16 %v469_v46 }
 0x158   : > { %11974 = vst [vmem:[#allocation29_spill] sm:$0xff] %v9376_v7  ;;  %v1590_v56 = vmul.f32 %v7613_v39, %v9341_v52  ;;  %vm1585_vm6 = vweird.f32 %v9344_v40  ;;  %v1290_v9 = vadd.f32 %v1289_v4, %v976_v35  ;;  %v9398_v12 = vunpack.c.h.bf16 %v469_v46  ;;  %v1078_v46 = vpop.xlane.xlu1 %1077 }
 0x159   : > { %11975 = vst [vmem:[#allocation30_spill] sm:$0xff] %v9378_v21  ;;  %v7615_v19 = vpop.eup %7614  ;;  %v966_v28 = vmul.f32 %v9382_v31, %v9382_v31  ;;  %v973_v29 = vmul.f32 %v9380_v30, %v9380_v30  ;;  %v1284_v11 = vadd.f32 %v971_v2, %v970_v33  ;;  %vm1596_vm7 = vweird.f32 %v7613_v39 }
 0x15a   : > { %11976 = vst [vmem:[#allocation31_spill] sm:$0xff] %v9380_v30  ;;  %v9402_v41 = vpop.eup %7616  ;;  %v1591_v22 = vmul.f32 %v7613_v39, %v1590_v56  ;;  %v1580_v26 = vmul.f32 %v7615_v19, %v9344_v40  ;;  %v1291_v44 = vadd.f32 %v1290_v9, %v977_v3  ;;  %v967_v35 = vmul.f32 %v9388_v5, %v9388_v5  ;;  %v1073_v3 = vpop.xlane.xlu0 %1072  ;;  %vm1597_vm9 = vmor %vm1595_vm5, %vm1596_vm7  ;;  %v11987_v40 = vld [vmem:[#allocation46_spill] sm:$0xff] }
 0x15b   : > { %11977 = vst [vmem:[#allocation32_spill] sm:$0xff] %v9382_v31  ;;  %v1570_v20 = vmul.f32 %v9402_v41, %v9353_v47  ;;  %v1285_v21 = vadd.f32 %v1284_v11, %v972_v24  ;;  %v968_v56 = vmul.f32 %v9395_v0, %v9395_v0  ;;  %v969_v33 = vmul.f32 %v9398_v12, %v9398_v12 }
 0x15c   : > { %2758 = vst [vmem:[#allocation2 + $0x98] sm:$0xff] %v2630_v25  ;;  %v1083_v25 = vpop.xlane.xlu2 %1082  ;;  %v1592_v4 = vmul.f32 0.5, %v1591_v22  ;;  %v1581_v31 = vmul.f32 %v7615_v19, %v1580_v26  ;;  %1292 = vadd.xlane.f32.xlu2 %v1291_v44  ;;  %v1279_v2 = vadd.f32 %v967_v35, %v966_v28  ;;  %v1337_v22 = vmul.f32 %v11942_v10, %v1078_v46  ;;  %v11983_v46 = vld [vmem:[#allocation43_spill] sm:$0xff] }
 0x15d   : > { %11978 = vst [vmem:[#allocation33_spill] sm:$0xff] %v9388_v5  ;;  %v1571_v7 = vmul.f32 %v9402_v41, %v1570_v20  ;;  %v1338_v30 = vmul.f32 %v11942_v10, %v1083_v25  ;;  %v1286_v5 = vadd.f32 %v1285_v21, %v973_v29  ;;  %vm1586_vm8 = vweird.f32 %v7615_v19  ;;  %v11982_v25 = vld [vmem:[#allocation42_spill] sm:$0xff] }
 0x15e   : > { %11979 = vst [vmem:[#allocation34_spill] sm:$0xff] %v9395_v0  ;;  %v1593_v9 = vsub.f32 1.5, %v1592_v4  ;;  %v1582_v60 = vmul.f32 0.5, %v1581_v31  ;;  %v1280_v26 = vadd.f32 %v1279_v2, %v968_v56  ;;  %v9420_v44 = vadd.f32 1e-06, %v1337_v22  ;;  %v11984_v4 = vld [vmem:[#allocation44_spill] sm:$0xff]  ;;  %vm1587_vm12 = vmor %vm1585_vm6, %vm1586_vm8 }
 0x15f   : > { %11980 = vst [vmem:[#allocation35_spill] sm:$0xff] %v9398_v12  ;;  %v1572_v24 = vmul.f32 0.5, %v1571_v7  ;;  %v9418_v11 = vadd.f32 1e-06, %v1338_v30  ;;  %1287 = vadd.xlane.f32.xlu1 %v1286_v5  ;;  %v1336_v28 = vmul.f32 %v11942_v10, %v1073_v3  ;;  %vm1575_vm10 = vweird.f32 %v9353_v47  ;;  %v478_v7 = vld [vmem:[#allocation3 + $0x3e0] sm:$0xff] }
 0x160   : > { %v1594_v0 = vmul.f32 %v7613_v39, %v1593_v9  ;;  %v1583_v20 = vsub.f32 1.5, %v1582_v60  ;;  %v1281_v21 = vadd.f32 %v1280_v26, %v969_v33  ;;  %vm1576_vm11 = vweird.f32 %v9402_v41  ;;  %v11981_v60 = vld [vmem:[#allocation41_spill] sm:$0xff] }
 0x161   : > { %v1573_v31 = vsub.f32 1.5, %v1572_v24  ;;  %7618 = vrsqrt.f32 %v9418_v11  ;;  %v9440_v2 = vunpack.c.l.bf16 %v478_v7  ;;  %v11986_v26 = vld [vmem:[#allocation45_spill] sm:$0xff]  ;;  %vm1577_vm13 = vmor %vm1575_vm10, %vm1576_vm11  ;;  %vm1625_vm14 = vweird.f32 %v9418_v11 }
 0x162   : > { %v1598_v30 = vsel %vm1597_vm9, %v7613_v39, %v1594_v0  ;;  %v1584_v29 = vmul.f32 %v7615_v19, %v1583_v20  ;;  %7620 = vrsqrt.f32 %v9420_v44  ;;  %1282 = vadd.xlane.f32.xlu0 %v1281_v21  ;;  %v9438_v0 = vadd.f32 1e-06, %v1336_v28  ;;  %v11988_v21 = vld [vmem:[#allocation47_spill] sm:$0xff]  ;;  %v11990_v47 = vld [vmem:[#allocation49_spill] sm:$0xff] }
 0x163   : > { %v2145_v5 = vmul.f32 %v1598_v30, %v11981_v60  ;;  %v2146_v35 = vmul.f32 %v1598_v30, %v11982_v25  ;;  %v2147_v52 = vmul.f32 %v1598_v30, %v11983_v46  ;;  %v2148_v56 = vmul.f32 %v1598_v30, %v11984_v4  ;;  %11985 = vst [vmem:[#allocation36_spill] sm:$0xff] %v9440_v2 }
 0x164   : > { %v1588_v33 = vsel %vm1587_vm12, %v7615_v19, %v1584_v29  ;;  %v1574_v39 = vmul.f32 %v9402_v41, %v1573_v31  ;;  %v11989_v29 = vld [vmem:[#allocation48_spill] sm:$0xff]  ;;  %7622 = vrsqrt.f32 %v9438_v0  ;;  %vm1615_vm15 = vweird.f32 %v9420_v44 }
 0x165   : > { %v2411_v3 = vmul.f32 %v8972_v61, %v2145_v5  ;;  %v2412_v9 = vmul.f32 %v8979_v38, %v2146_v35  ;;  %v2413_v22 = vmul.f32 %v8981_v16, %v2147_v52  ;;  %v2414_v24 = vmul.f32 %v9011_v42, %v2148_v56 }
 0x166   : > { %v2141_v20 = vmul.f32 %v1588_v33, %v11986_v26  ;;  %v2142_v30 = vmul.f32 %v1588_v33, %v11987_v40  ;;  %v2143_v19 = vmul.f32 %v1588_v33, %v11988_v21  ;;  %v2144_v31 = vmul.f32 %v1588_v33, %v11989_v29 }
 0x167   : > { %v9454_v28 = vpop.eup %7618  ;;  %v2639_v60 = vpack.c.bf16 %v2412_v9, %v2411_v3  ;;  %v2640_v5 = vpack.c.bf16 %v2414_v24, %v2413_v22  ;;  %v1578_v25 = vsel %vm1577_vm13, %v9402_v41, %v1574_v39  ;;  %v11991_v3 = vld [vmem:[#allocation50_spill] sm:$0xff]  ;;  %v11992_v41 = vld [vmem:[#allocation51_spill] sm:$0xff]  ;;  %v11993_v22 = vld [vmem:[#allocation52_spill] sm:$0xff]  ;;  %v9472_v21 = vunpack.c.h.bf16 %v478_v7 }
 0x168   : > { %v9458_v35 = vpop.eup %7620  ;;  %v2407_v46 = vmul.f32 %v8972_v61, %v2141_v20  ;;  %v2408_v52 = vmul.f32 %v8979_v38, %v2142_v30  ;;  %v2409_v4 = vmul.f32 %v8981_v16, %v2143_v19  ;;  %v2410_v56 = vmul.f32 %v9011_v42, %v2144_v31  ;;  %v479_v30 = vld [vmem:[#allocation3 + $0x3e8] sm:$0xff]  ;;  %v9474_v19 = vpop.xlane.xlu2 %1097 }
 0x169   : > { %2767 = vst [vmem:[#allocation2 + $0xe0] sm:$0xff] %v2639_v60  ;;  %v2137_v33 = vmul.f32 %v1578_v25, %v11990_v47  ;;  %v2138_v9 = vmul.f32 %v1578_v25, %v11991_v3  ;;  %v2139_v39 = vmul.f32 %v1578_v25, %v11992_v41  ;;  %v2140_v24 = vmul.f32 %v1578_v25, %v11993_v22 }
 0x16a   : > { %2768 = vst [vmem:[#allocation2 + $0xe8] sm:$0xff] %v2640_v5  ;;  %v2637_v26 = vpack.c.bf16 %v2408_v52, %v2407_v46  ;;  %v2638_v20 = vpack.c.bf16 %v2410_v56, %v2409_v4  ;;  %v1620_v40 = vmul.f32 %v9454_v28, %v9418_v11  ;;  %vm1626_vm0 = vweird.f32 %v9454_v28  ;;  %v9485_v7 = vpop.eup %7622  ;;  %v12002_v11 = vld [vmem:[#allocation53_spill] sm:$0xff] }
 0x16b   : > { %11994 = vst [vmem:[#allocation37_spill] sm:$0xff] %v9472_v21  ;;  %v2403_v29 = vmul.f32 %v8972_v61, %v2137_v33  ;;  %v2404_v31 = vmul.f32 %v8979_v38, %v2138_v9  ;;  %v2405_v60 = vmul.f32 %v8981_v16, %v2139_v39  ;;  %v2406_v5 = vmul.f32 %v9011_v42, %v2140_v24  ;;  %v476_v33 = vld [vmem:[#allocation3 + $0x3d0] sm:$0xff]  ;;  %v477_v39 = vld [vmem:[#allocation3 + $0x3d8] sm:$0xff]  ;;  %vm1627_vm4 = vmor %vm1625_vm14, %vm1626_vm0 }
 0x16c   : > { %2765 = vst [vmem:[#allocation2 + $0xd0] sm:$0xff] %v2637_v26  ;;  %v1621_v25 = vmul.f32 %v9454_v28, %v1620_v40  ;;  %v1610_v46 = vmul.f32 %v9458_v35, %v9420_v44  ;;  %vm1616_vm1 = vweird.f32 %v9458_v35  ;;  %v9487_v56 = vunpack.c.l.bf16 %v479_v30  ;;  %v12008_v44 = vld [vmem:[#allocation59_spill] sm:$0xff] }
 0x16d   : > { %2766 = vst [vmem:[#allocation2 + $0xd8] sm:$0xff] %v2638_v20  ;;  %v2635_v52 = vpack.c.bf16 %v2404_v31, %v2403_v29  ;;  %v2636_v4 = vpack.c.bf16 %v2406_v5, %v2405_v60  ;;  %v9489_v47 = vunpack.c.h.bf16 %v479_v30  ;;  %v1600_v41 = vmul.f32 %v9485_v7, %v9438_v0  ;;  %v9507_v60 = vpop.xlane.xlu1 %1092  ;;  %vm1617_vm5 = vmor %vm1615_vm15, %vm1616_vm1 }
 0x16e   : > { %11995 = vst [vmem:[#allocation38_spill] sm:$0xff] %v9487_v56  ;;  %v1622_v3 = vmul.f32 0.5, %v1621_v25  ;;  %v1611_v9 = vmul.f32 %v9458_v35, %v1610_v46  ;;  %vm1606_vm2 = vweird.f32 %v9485_v7  ;;  %vm1605_vm3 = vweird.f32 %v9438_v0  ;;  %v12011_v0 = vld [vmem:[#allocation62_spill] sm:$0xff] }
 0x16f   : > { %11996 = vst [vmem:[#allocation39_spill] sm:$0xff] %v9489_v47  ;;  %v986_v22 = vmul.f32 %v9440_v2, %v9440_v2  ;;  %v987_v24 = vmul.f32 %v9472_v21, %v9472_v21  ;;  %v988_v26 = vmul.f32 %v9487_v56, %v9487_v56  ;;  %v989_v20 = vmul.f32 %v9489_v47, %v9489_v47  ;;  %v474_v56 = vld [vmem:[#allocation3 + $0x3c0] sm:$0xff]  ;;  %vm1607_vm6 = vmor %vm1605_vm3, %vm1606_vm2 }
 0x170   : > { %2763 = vst [vmem:[#allocation2 + $0xc0] sm:$0xff] %v2635_v52  ;;  %v1623_v40 = vsub.f32 1.5, %v1622_v3  ;;  %v1612_v30 = vmul.f32 0.5, %v1611_v9  ;;  %v1601_v29 = vmul.f32 %v9485_v7, %v1600_v41  ;;  %v9505_v31 = vunpack.c.l.bf16 %v476_v33  ;;  %v9518_v9 = vpop.xlane.xlu0 %1087 }
 0x171   : > { %2764 = vst [vmem:[#allocation2 + $0xc8] sm:$0xff] %v2636_v4  ;;  %v1304_v5 = vadd.f32 %v987_v24, %v986_v22  ;;  %v9509_v25 = vunpack.c.h.bf16 %v476_v33  ;;  %v9511_v46 = vunpack.c.l.bf16 %v477_v39  ;;  %v9513_v52 = vunpack.c.h.bf16 %v477_v39 }
 0x172   : > { %11997 = vst [vmem:[#allocation40_spill] sm:$0xff] %v9505_v31  ;;  %v1624_v21 = vmul.f32 %v9454_v28, %v1623_v40  ;;  %v1613_v47 = vsub.f32 1.5, %v1612_v30  ;;  %v1602_v4 = vmul.f32 0.5, %v1601_v29  ;;  %v982_v3 = vmul.f32 %v9505_v31, %v9505_v31  ;;  %v9534_v31 = vpop.xlane.xlu2 %1112 }
 0x173   : > { %11998 = vst [vmem:[#allocation41_spill] sm:$0xff] %v9509_v25  ;;  %v1305_v33 = vadd.f32 %v1304_v5, %v988_v26  ;;  %v983_v41 = vmul.f32 %v9509_v25, %v9509_v25  ;;  %v984_v39 = vmul.f32 %v9511_v46, %v9511_v46  ;;  %v985_v22 = vmul.f32 %v9513_v52, %v9513_v52  ;;  %v12003_v5 = vld [vmem:[#allocation54_spill] sm:$0xff]  ;;  %v12004_v25 = vld [vmem:[#allocation55_spill] sm:$0xff] }
 0x174   : > { %11999 = vst [vmem:[#allocation42_spill] sm:$0xff] %v9511_v46  ;;  %v1628_v24 = vsel %vm1627_vm4, %v9454_v28, %v1624_v21  ;;  %v1614_v40 = vmul.f32 %v9458_v35, %v1613_v47  ;;  %v1603_v30 = vsub.f32 1.5, %v1602_v4  ;;  %v9532_v29 = vunpack.c.l.bf16 %v474_v56 }
 0x175   : > { %12000 = vst [vmem:[#allocation43_spill] sm:$0xff] %v9513_v52  ;;  %v2157_v26 = vmul.f32 %v1628_v24, %v12002_v11  ;;  %v2158_v2 = vmul.f32 %v1628_v24, %v12003_v5  ;;  %v2159_v12 = vmul.f32 %v1628_v24, %v12004_v25  ;;  %v2160_v46 = vmul.f32 %v1628_v24, %v12005_v37  ;;  %v12006_v37 = vld [vmem:[#allocation57_spill] sm:$0xff] }
 0x176   : > { %12001 = vst [vmem:[#allocation44_spill] sm:$0xff] %v9532_v29  ;;  %v1618_v28 = vsel %vm1617_vm5, %v9458_v35, %v1614_v40  ;;  %v1604_v21 = vmul.f32 %v9485_v7, %v1603_v30  ;;  %v1306_v47 = vadd.f32 %v1305_v33, %v989_v20  ;;  %v1299_v4 = vadd.f32 %v983_v41, %v982_v3  ;;  %v12010_v40 = vld [vmem:[#allocation61_spill] sm:$0xff] }
 0x177   : > { %v2423_v52 = vmul.f32 %v8972_v61, %v2157_v26  ;;  %v2424_v11 = vmul.f32 %v8979_v38, %v2158_v2  ;;  %v2425_v5 = vmul.f32 %v8981_v16, %v2159_v12  ;;  %v2426_v25 = vmul.f32 %v9011_v42, %v2160_v46 }
 0x178   : > { %v2153_v24 = vmul.f32 %v1618_v28, %v12006_v37  ;;  %v2154_v23 = vmul.f32 %v1618_v28, %v12007_v63  ;;  %v2155_v50 = vmul.f32 %v1618_v28, %v12008_v44  ;;  %v2156_v35 = vmul.f32 %v1618_v28, %v12009_v8  ;;  %1307 = vadd.xlane.f32.xlu2 %v1306_v47  ;;  %v1108_v8 = vpop.xlane.xlu1 %1107  ;;  %v12012_v28 = vld [vmem:[#allocation63_spill] sm:$0xff]  ;;  %v12013_v47 = vld [vmem:[#allocation64_spill] sm:$0xff] }
 0x179   : > { %v2645_v20 = vpack.c.bf16 %v2424_v11, %v2423_v52  ;;  %v2646_v2 = vpack.c.bf16 %v2426_v25, %v2425_v5  ;;  %v1608_v12 = vsel %vm1607_vm6, %v9485_v7, %v1604_v21  ;;  %v1300_v3 = vadd.f32 %v1299_v4, %v984_v39  ;;  %v475_v7 = vld [vmem:[#allocation3 + $0x3c8] sm:$0xff] }
 0x17a   : > { %v2419_v46 = vmul.f32 %v8972_v61, %v2153_v24  ;;  %v2420_v33 = vmul.f32 %v8979_v38, %v2154_v23  ;;  %v2421_v63 = vmul.f32 %v8981_v16, %v2155_v50  ;;  %v2422_v41 = vmul.f32 %v9011_v42, %v2156_v35  ;;  %v1103_v50 = vpop.xlane.xlu0 %1102 }
 0x17b   : > { %2773 = vst [vmem:[#allocation2 + $0x110] sm:$0xff] %v2645_v20  ;;  %v2149_v30 = vmul.f32 %v1608_v12, %v12010_v40  ;;  %v2150_v26 = vmul.f32 %v1608_v12, %v12011_v0  ;;  %v2151_v52 = vmul.f32 %v1608_v12, %v12012_v28  ;;  %v2152_v11 = vmul.f32 %v1608_v12, %v12013_v47  ;;  %v480_v20 = vld [vmem:[#allocation3 + $0x3f0] sm:$0xff] }
 0x17c   : > { %2774 = vst [vmem:[#allocation2 + $0x118] sm:$0xff] %v2646_v2  ;;  %v2643_v39 = vpack.c.bf16 %v2420_v33, %v2419_v46  ;;  %v2644_v21 = vpack.c.bf16 %v2422_v41, %v2421_v63  ;;  %v1301_v4 = vadd.f32 %v1300_v3, %v985_v22  ;;  %v9567_v23 = vunpack.c.h.bf16 %v474_v56  ;;  %v1128_v2 = vpop.xlane.xlu2 %1127  ;;  %v481_v63 = vld [vmem:[#allocation3 + $0x3f8] sm:$0xff] }
 0x17d   : > { %v2415_v5 = vmul.f32 %v8972_v61, %v2149_v30  ;;  %v2416_v25 = vmul.f32 %v8979_v38, %v2150_v26  ;;  %v2417_v37 = vmul.f32 %v8981_v16, %v2151_v52  ;;  %v2418_v24 = vmul.f32 %v9011_v42, %v2152_v11 }
 0x17e   : > { %12014 = vst [vmem:[#allocation45_spill] sm:$0xff] %v9567_v23  ;;  %1302 = vadd.xlane.f32.xlu1 %v1301_v4  ;;  %v9573_v44 = vunpack.c.l.bf16 %v475_v7  ;;  %v9575_v35 = vunpack.c.h.bf16 %v475_v7  ;;  %v978_v22 = vmul.f32 %v9532_v29, %v9532_v29  ;;  %v979_v56 = vmul.f32 %v9567_v23, %v9567_v23  ;;  %v12026_v29 = vld [vmem:[#allocation70_spill] sm:$0xff] }
 0x17f   : > { %2771 = vst [vmem:[#allocation2 + $0x100] sm:$0xff] %v2643_v39  ;;  %v2641_v12 = vpack.c.bf16 %v2416_v25, %v2415_v5  ;;  %v2642_v3 = vpack.c.bf16 %v2418_v24, %v2417_v37  ;;  %v1341_v46 = vmul.f32 %v11942_v10, %v9474_v19  ;;  %v1340_v33 = vmul.f32 %v11942_v10, %v9507_v60 }
 0x180   : > { %12015 = vst [vmem:[#allocation46_spill] sm:$0xff] %v9573_v44  ;;  %v980_v41 = vmul.f32 %v9573_v44, %v9573_v44  ;;  %v981_v40 = vmul.f32 %v9575_v35, %v9575_v35  ;;  %v1294_v30 = vadd.f32 %v979_v56, %v978_v22  ;;  %v1339_v0 = vmul.f32 %v11942_v10, %v9518_v9  ;;  %v1123_v4 = vpop.xlane.xlu1 %1122 }
 0x181   : > { %12016 = vst [vmem:[#allocation47_spill] sm:$0xff] %v9575_v35  ;;  %v9591_v26 = vadd.f32 1e-06, %v1341_v46  ;;  %v9593_v28 = vadd.f32 1e-06, %v1340_v33  ;;  %v9595_v19 = vunpack.c.l.bf16 %v480_v20  ;;  %v9597_v52 = vunpack.c.h.bf16 %v480_v20 }
 0x182   : > { %2772 = vst [vmem:[#allocation2 + $0x108] sm:$0xff] %v2644_v21  ;;  %v1295_v60 = vadd.f32 %v1294_v30, %v980_v41  ;;  %v9599_v47 = vadd.f32 1e-06, %v1339_v0  ;;  %v9601_v11 = vunpack.c.l.bf16 %v481_v63  ;;  %v9603_v7 = vunpack.c.h.bf16 %v481_v63  ;;  %v1118_v20 = vpop.xlane.xlu0 %1117 }
 0x183   : > { %2769 = vst [vmem:[#allocation2 + $0xf0] sm:$0xff] %v2641_v12  ;;  %7624 = vrsqrt.f32 %v9591_v26  ;;  %v990_v9 = vmul.f32 %v9595_v19, %v9595_v19  ;;  %v991_v21 = vmul.f32 %v9597_v52, %v9597_v52  ;;  %v1344_v25 = vmul.f32 %v11942_v10, %v9534_v31 }
 0x184   : > { %12017 = vst [vmem:[#allocation48_spill] sm:$0xff] %v9595_v19  ;;  %v1296_v39 = vadd.f32 %v1295_v60, %v981_v40  ;;  %7626 = vrsqrt.f32 %v9593_v28  ;;  %v992_v5 = vmul.f32 %v9601_v11, %v9601_v11  ;;  %v993_v37 = vmul.f32 %v9603_v7, %v9603_v7  ;;  %v1143_v41 = vpop.xlane.xlu2 %1142  ;;  %v12024_v19 = vld [vmem:[#allocation68_spill] sm:$0xff] }
 0x185   : > { %12018 = vst [vmem:[#allocation49_spill] sm:$0xff] %v9597_v52  ;;  %7628 = vrsqrt.f32 %v9599_v47  ;;  %v1309_v24 = vadd.f32 %v991_v21, %v990_v9  ;;  %v1343_v22 = vmul.f32 %v11942_v10, %v1108_v8  ;;  %v1342_v56 = vmul.f32 %v11942_v10, %v1103_v50 }
 0x186   : > { %2770 = vst [vmem:[#allocation2 + $0xf8] sm:$0xff] %v2642_v3  ;;  %1297 = vadd.xlane.f32.xlu0 %v1296_v39  ;;  %v9620_v12 = vadd.f32 1e-06, %v1344_v25  ;;  %v1347_v3 = vmul.f32 %v11942_v10, %v1128_v2  ;;  %v1346_v31 = vmul.f32 %v11942_v10, %v1123_v4  ;;  %v1345_v8 = vmul.f32 %v11942_v10, %v1118_v20 }
 0x187   : > { %12019 = vst [vmem:[#allocation50_spill] sm:$0xff] %v9601_v11  ;;  %v1310_v46 = vadd.f32 %v1309_v24, %v992_v5  ;;  %v9623_v33 = vadd.f32 1e-06, %v1343_v22  ;;  %v9625_v63 = vadd.f32 1e-06, %v1342_v56  ;;  %v1350_v39 = vmul.f32 %v11942_v10, %v1143_v41  ;;  %v12022_v11 = vld [vmem:[#allocation66_spill] sm:$0xff] }
 0x188   : > { %12020 = vst [vmem:[#allocation51_spill] sm:$0xff] %v9603_v7  ;;  %7630 = vrsqrt.f32 %v9620_v12  ;;  %v9637_v9 = vadd.f32 1e-06, %v1347_v3  ;;  %vm1655_vm7 = vweird.f32 %v9591_v26  ;;  %v9642_v5 = vadd.f32 1e-06, %v1346_v31  ;;  %v1138_v56 = vpop.xlane.xlu1 %1137  ;;  %v12021_v7 = vld [vmem:[#allocation65_spill] sm:$0xff] }
 0x189   : > { %v7625_v40 = vpop.eup %7624  ;;  %v1311_v0 = vadd.f32 %v1310_v46, %v993_v37  ;;  %7632 = vrsqrt.f32 %v9623_v33  ;;  %vm1645_vm8 = vweird.f32 %v9593_v28  ;;  %vm1635_vm9 = vweird.f32 %v9599_v47 }
 0x18a   : > { %v9630_v30 = vpop.eup %7626  ;;  %v1650_v50 = vmul.f32 %v7625_v40, %v9591_v26  ;;  %7634 = vrsqrt.f32 %v9625_v63  ;;  %v9647_v37 = vadd.f32 1e-06, %v1345_v8  ;;  %vm1656_vm10 = vweird.f32 %v7625_v40 }
 0x18b   : > { %v7629_v2 = vpop.eup %7628  ;;  %v1640_v60 = vmul.f32 %v9630_v30, %v9593_v28  ;;  %vm1646_vm11 = vweird.f32 %v9630_v30  ;;  %7636 = vrsqrt.f32 %v9637_v9  ;;  %v9653_v46 = vadd.f32 1e-06, %v1350_v39  ;;  %vm1657_vm14 = vmor %vm1655_vm7, %vm1656_vm10 }
 0x18c   : > { %v1651_v21 = vmul.f32 %v7625_v40, %v1650_v50  ;;  %v1630_v4 = vmul.f32 %v7629_v2, %v9599_v47  ;;  %vm1636_vm12 = vweird.f32 %v7629_v2  ;;  %7638 = vrsqrt.f32 %v9642_v5  ;;  %vm1647_vm0 = vmor %vm1645_vm8, %vm1646_vm11 }
 0x18d   : > { %v1641_v25 = vmul.f32 %v9630_v30, %v1640_v60  ;;  %7640 = vrsqrt.f32 %v9647_v37  ;;  %v9666_v39 = vmul.f32 %v11942_v10, %v1138_v56  ;;  %vm1685_vm13 = vweird.f32 %v9620_v12  ;;  %vm1637_vm3 = vmor %vm1635_vm9, %vm1636_vm12 }
 0x18e   : > { %v1652_v24 = vmul.f32 0.5, %v1651_v21  ;;  %v1631_v22 = vmul.f32 %v7629_v2, %v1630_v4  ;;  %1312 = vadd.xlane.f32.xlu0 %v1311_v0  ;;  %v9650_v20 = vpop.eup %7630  ;;  %7642 = vrsqrt.f32 %v9653_v46  ;;  %vm1675_vm1 = vweird.f32 %v9623_v33 }
 0x18f   : > { %v1642_v3 = vmul.f32 0.5, %v1641_v25  ;;  %v9655_v31 = vpop.eup %7632  ;;  %v1680_v50 = vmul.f32 %v9650_v20, %v9620_v12  ;;  %vm1686_vm15 = vweird.f32 %v9650_v20  ;;  %vm1665_vm4 = vweird.f32 %v9625_v63 }
 0x190   : > { %v1653_v41 = vsub.f32 1.5, %v1652_v24  ;;  %v1632_v8 = vmul.f32 0.5, %v1631_v22  ;;  %v9660_v60 = vpop.eup %7634  ;;  %v1670_v21 = vmul.f32 %v9655_v31, %v9623_v33  ;;  %vm1676_vm2 = vweird.f32 %v9655_v31  ;;  %vm1687_vm5 = vmor %vm1685_vm13, %vm1686_vm15 }
 0x191   : > { %v1643_v0 = vsub.f32 1.5, %v1642_v3  ;;  %v1681_v24 = vmul.f32 %v9650_v20, %v1680_v50  ;;  %v1660_v22 = vmul.f32 %v9660_v60, %v9625_v63  ;;  %vm1715_vm6 = vweird.f32 %v9637_v9  ;;  %vm1677_vm8 = vmor %vm1675_vm1, %vm1676_vm2  ;;  %v12044_v63 = vld [vmem:[#allocation88_spill] sm:$0xff] }
 0x192   : > { %v1654_v4 = vmul.f32 %v7625_v40, %v1653_v41  ;;  %v1633_v25 = vsub.f32 1.5, %v1632_v8  ;;  %v1671_v56 = vmul.f32 %v9655_v31, %v1670_v21  ;;  %vm1666_vm7 = vweird.f32 %v9660_v60 }
 0x193   : > { %v1644_v3 = vmul.f32 %v9630_v30, %v1643_v0  ;;  %v1682_v50 = vmul.f32 0.5, %v1681_v24  ;;  %v1661_v26 = vmul.f32 %v9660_v60, %v1660_v22  ;;  %v9686_v0 = vpop.eup %7636  ;;  %vm1705_vm9 = vweird.f32 %v9642_v5  ;;  %vm1667_vm10 = vmor %vm1665_vm4, %vm1666_vm7 }
 0x194   : > { %v1658_v41 = vsel %vm1657_vm14, %v7625_v40, %v1654_v4  ;;  %v1634_v8 = vmul.f32 %v7629_v2, %v1633_v25  ;;  %v12023_v40 = vld [vmem:[#allocation67_spill] sm:$0xff]  ;;  %v9695_v28 = vpop.eup %7638  ;;  %v1672_v44 = vmul.f32 0.5, %v1671_v56  ;;  %vm1716_vm11 = vweird.f32 %v9686_v0 }
 0x195   : > { %v2169_v21 = vmul.f32 %v1658_v41, %v12021_v7  ;;  %v2170_v52 = vmul.f32 %v1658_v41, %v12022_v11  ;;  %v2171_v4 = vmul.f32 %v1658_v41, %v12023_v40  ;;  %v2172_v35 = vmul.f32 %v1658_v41, %v12024_v19  ;;  %v9698_v23 = vpop.eup %7640  ;;  %v12025_v41 = vld [vmem:[#allocation69_spill] sm:$0xff]  ;;  %vm1717_vm12 = vmor %vm1715_vm6, %vm1716_vm11 }
 0x196   : > { %v1648_v25 = vsel %vm1647_vm0, %v9630_v30, %v1644_v3  ;;  %v1638_v24 = vsel %vm1637_vm3, %v7629_v2, %v1634_v8  ;;  %v1683_v22 = vsub.f32 1.5, %v1682_v50  ;;  %v12028_v30 = vld [vmem:[#allocation72_spill] sm:$0xff]  ;;  %v9708_v3 = vpop.eup %7642  ;;  %v12029_v50 = vld [vmem:[#allocation73_spill] sm:$0xff]  ;;  %vm1706_vm13 = vweird.f32 %v9695_v28 }
 0x197   : > { %v2435_v7 = vmul.f32 %v8972_v61, %v2169_v21  ;;  %v2436_v11 = vmul.f32 %v8979_v38, %v2170_v52  ;;  %v2437_v40 = vmul.f32 %v8981_v16, %v2171_v4  ;;  %v2438_v19 = vmul.f32 %v9011_v42, %v2172_v35  ;;  %vm1707_vm1 = vmor %vm1705_vm9, %vm1706_vm13 }
 0x198   : > { %v2165_v47 = vmul.f32 %v1648_v25, %v12025_v41  ;;  %v2166_v17 = vmul.f32 %v1648_v25, %v12026_v29  ;;  %v2167_v54 = vmul.f32 %v1648_v25, %v12027_v6  ;;  %v2168_v2 = vmul.f32 %v1648_v25, %v12028_v30  ;;  %v12031_v6 = vld [vmem:[#allocation75_spill] sm:$0xff]  ;;  %v12032_v25 = vld [vmem:[#allocation76_spill] sm:$0xff] }
 0x199   : > { %v2651_v56 = vpack.c.bf16 %v2436_v11, %v2435_v7  ;;  %v2652_v8 = vpack.c.bf16 %v2438_v19, %v2437_v40  ;;  %v2161_v21 = vmul.f32 %v1638_v24, %v12029_v50  ;;  %v2162_v52 = vmul.f32 %v1638_v24, %v12030_v18 }
 0x19a   : > { %v2431_v4 = vmul.f32 %v8972_v61, %v2165_v47  ;;  %v2432_v35 = vmul.f32 %v8979_v38, %v2166_v17  ;;  %v2433_v41 = vmul.f32 %v8981_v16, %v2167_v54  ;;  %v2434_v29 = vmul.f32 %v9011_v42, %v2168_v2 }
 0x19b   : > { %2779 = vst [vmem:[#allocation2 + $0x140] sm:$0xff] %v2651_v56  ;;  %v2163_v13 = vmul.f32 %v1638_v24, %v12031_v6  ;;  %v2164_v30 = vmul.f32 %v1638_v24, %v12032_v25  ;;  %v2427_v7 = vmul.f32 %v8972_v61, %v2161_v21  ;;  %v2428_v11 = vmul.f32 %v8979_v38, %v2162_v52  ;;  %v12034_v21 = vld [vmem:[#allocation78_spill] sm:$0xff]  ;;  %v12035_v52 = vld [vmem:[#allocation79_spill] sm:$0xff] }
 0x19c   : > { %2780 = vst [vmem:[#allocation2 + $0x148] sm:$0xff] %v2652_v8  ;;  %v2649_v18 = vpack.c.bf16 %v2432_v35, %v2431_v4  ;;  %v2650_v40 = vpack.c.bf16 %v2434_v29, %v2433_v41  ;;  %v1684_v17 = vmul.f32 %v9650_v20, %v1683_v22  ;;  %v1673_v19 = vsub.f32 1.5, %v1672_v44  ;;  %v12033_v22 = vld [vmem:[#allocation77_spill] sm:$0xff] }
 0x19d   : > { %v2429_v54 = vmul.f32 %v8981_v16, %v2163_v13  ;;  %v2430_v47 = vmul.f32 %v9011_v42, %v2164_v30  ;;  %v2647_v2 = vpack.c.bf16 %v2428_v11, %v2427_v7  ;;  %v1662_v24 = vmul.f32 0.5, %v1661_v26  ;;  %v12037_v7 = vld [vmem:[#allocation81_spill] sm:$0xff] }
 0x19e   : > { %2777 = vst [vmem:[#allocation2 + $0x130] sm:$0xff] %v2649_v18  ;;  %v1688_v56 = vsel %vm1687_vm5, %v9650_v20, %v1684_v17  ;;  %v1674_v8 = vmul.f32 %v9655_v31, %v1673_v19  ;;  %v1710_v13 = vmul.f32 %v9686_v0, %v9637_v9  ;;  %v12036_v20 = vld [vmem:[#allocation80_spill] sm:$0xff]  ;;  %v12038_v18 = vld [vmem:[#allocation82_spill] sm:$0xff]  ;;  %v12039_v17 = vld [vmem:[#allocation83_spill] sm:$0xff]  ;;  %vm1695_vm14 = vweird.f32 %v9647_v37 }
 0x19f   : > { %2778 = vst [vmem:[#allocation2 + $0x138] sm:$0xff] %v2650_v40  ;;  %v2648_v44 = vpack.c.bf16 %v2430_v47, %v2429_v54  ;;  %v2181_v50 = vmul.f32 %v1688_v56, %v12033_v22  ;;  %v2182_v12 = vmul.f32 %v1688_v56, %v12034_v21  ;;  %v2183_v26 = vmul.f32 %v1688_v56, %v12035_v52  ;;  %v12040_v54 = vld [vmem:[#allocation84_spill] sm:$0xff] }
 0x1a0   : > { %2775 = vst [vmem:[#allocation2 + $0x120] sm:$0xff] %v2647_v2  ;;  %v2184_v4 = vmul.f32 %v1688_v56, %v12036_v20  ;;  %v1678_v35 = vsel %vm1677_vm8, %v9655_v31, %v1674_v8  ;;  %v1663_v41 = vsub.f32 1.5, %v1662_v24  ;;  %v1711_v29 = vmul.f32 %v9686_v0, %v1710_v13  ;;  %v12041_v20 = vld [vmem:[#allocation85_spill] sm:$0xff] }
 0x1a1   : > { %2776 = vst [vmem:[#allocation2 + $0x128] sm:$0xff] %v2648_v44  ;;  %v2447_v6 = vmul.f32 %v8972_v61, %v2181_v50  ;;  %v2448_v25 = vmul.f32 %v8979_v38, %v2182_v12  ;;  %v2449_v30 = vmul.f32 %v8981_v16, %v2183_v26  ;;  %v2177_v11 = vmul.f32 %v1678_v35, %v12037_v7 }
 0x1a2   : > { %v2450_v33 = vmul.f32 %v9011_v42, %v2184_v4  ;;  %v2178_v40 = vmul.f32 %v1678_v35, %v12038_v18  ;;  %v2179_v19 = vmul.f32 %v1678_v35, %v12039_v17  ;;  %v2180_v31 = vmul.f32 %v1678_v35, %v12040_v54  ;;  %v12042_v35 = vld [vmem:[#allocation86_spill] sm:$0xff]  ;;  %v1133_v54 = vpop.xlane.xlu0 %1132 }
 0x1a3   : > { %v2657_v47 = vpack.c.bf16 %v2448_v25, %v2447_v6  ;;  %v2443_v2 = vmul.f32 %v8972_v61, %v2177_v11  ;;  %v1664_v24 = vmul.f32 %v9660_v60, %v1663_v41  ;;  %v1712_v56 = vmul.f32 0.5, %v1711_v29  ;;  %v12043_v29 = vld [vmem:[#allocation87_spill] sm:$0xff] }
 0x1a4   : > { %v2658_v8 = vpack.c.bf16 %v2450_v33, %v2449_v30  ;;  %v2444_v13 = vmul.f32 %v8979_v38, %v2178_v40  ;;  %v2445_v44 = vmul.f32 %v8981_v16, %v2179_v19  ;;  %v2446_v22 = vmul.f32 %v9011_v42, %v2180_v31 }
 0x1a5   : > { %2785 = vst [vmem:[#allocation2 + $0x170] sm:$0xff] %v2657_v47  ;;  %v1668_v50 = vsel %vm1667_vm10, %v9660_v60, %v1664_v24  ;;  %v1713_v21 = vsub.f32 1.5, %v1712_v56  ;;  %v1700_v12 = vmul.f32 %v9695_v28, %v9642_v5  ;;  %v1690_v33 = vmul.f32 %v9698_v23, %v9647_v37  ;;  %v12045_v47 = vld [vmem:[#allocation89_spill] sm:$0xff]  ;;  %v12047_v56 = vld [vmem:[#allocation91_spill] sm:$0xff] }
 0x1a6   : > { %2786 = vst [vmem:[#allocation2 + $0x178] sm:$0xff] %v2658_v8  ;;  %v2655_v52 = vpack.c.bf16 %v2444_v13, %v2443_v2  ;;  %v2656_v26 = vpack.c.bf16 %v2446_v22, %v2445_v44  ;;  %v2173_v4 = vmul.f32 %v1668_v50, %v12041_v20  ;;  %v2174_v41 = vmul.f32 %v1668_v50, %v12042_v35  ;;  %v12046_v2 = vld [vmem:[#allocation90_spill] sm:$0xff]  ;;  %v12048_v44 = vld [vmem:[#allocation92_spill] sm:$0xff]  ;;  %v1158_v20 = vpop.xlane.xlu2 %1157  ;;  %v12051_v5 = vld [vmem:[#allocation95_spill] sm:$0xff] }
 0x1a7   : > { %v2175_v6 = vmul.f32 %v1668_v50, %v12043_v29  ;;  %v2176_v25 = vmul.f32 %v1668_v50, %v12044_v63  ;;  %v1714_v30 = vmul.f32 %v9686_v0, %v1713_v21  ;;  %v1701_v60 = vmul.f32 %v9695_v28, %v1700_v12 }
 0x1a8   : > { %2783 = vst [vmem:[#allocation2 + $0x160] sm:$0xff] %v2655_v52  ;;  %v2439_v7 = vmul.f32 %v8972_v61, %v2173_v4  ;;  %v2440_v11 = vmul.f32 %v8979_v38, %v2174_v41  ;;  %v1691_v21 = vmul.f32 %v9698_v23, %v1690_v33  ;;  %vm1745_vm15 = vweird.f32 %v9653_v46  ;;  %v12049_v33 = vld [vmem:[#allocation93_spill] sm:$0xff] }
 0x1a9   : > { %2784 = vst [vmem:[#allocation2 + $0x168] sm:$0xff] %v2656_v26  ;;  %v2441_v18 = vmul.f32 %v8981_v16, %v2175_v6  ;;  %v2442_v40 = vmul.f32 %v9011_v42, %v2176_v25  ;;  %v1718_v17 = vsel %vm1717_vm12, %v9686_v0, %v1714_v30  ;;  %v1702_v19 = vmul.f32 0.5, %v1701_v60 }
 0x1aa   : > { %v2653_v31 = vpack.c.bf16 %v2440_v11, %v2439_v7  ;;  %v2193_v9 = vmul.f32 %v1718_v17, %v12045_v47  ;;  %v2194_v24 = vmul.f32 %v1718_v17, %v12046_v2  ;;  %v2195_v8 = vmul.f32 %v1718_v17, %v12047_v56  ;;  %v1153_v56 = vpop.xlane.xlu1 %1152 }
 0x1ab   : > { %v2654_v13 = vpack.c.bf16 %v2442_v40, %v2441_v18  ;;  %v2196_v22 = vmul.f32 %v1718_v17, %v12048_v44  ;;  %v1703_v50 = vsub.f32 1.5, %v1702_v19  ;;  %v1740_v26 = vmul.f32 %v9708_v3, %v9653_v46  ;;  %v12050_v40 = vld [vmem:[#allocation94_spill] sm:$0xff] }
 0x1ac   : > { %2781 = vst [vmem:[#allocation2 + $0x150] sm:$0xff] %v2653_v31  ;;  %v2459_v0 = vmul.f32 %v8972_v61, %v2193_v9  ;;  %v2460_v12 = vmul.f32 %v8979_v38, %v2194_v24  ;;  %v2461_v52 = vmul.f32 %v8981_v16, %v2195_v8  ;;  %v1692_v41 = vmul.f32 0.5, %v1691_v21  ;;  %v12052_v31 = vld [vmem:[#allocation96_spill] sm:$0xff] }
 0x1ad   : > { %2782 = vst [vmem:[#allocation2 + $0x158] sm:$0xff] %v2654_v13  ;;  %v2462_v4 = vmul.f32 %v9011_v42, %v2196_v22  ;;  %v1704_v35 = vmul.f32 %v9695_v28, %v1703_v50  ;;  %vm1696_vm0 = vweird.f32 %v9698_v23  ;;  %v1741_v6 = vmul.f32 %v9708_v3, %v1740_v26  ;;  %v1148_v50 = vpop.xlane.xlu0 %1147  ;;  %v12054_v26 = vld [vmem:[#allocation98_spill] sm:$0xff] }
 0x1ae   : > { %v2663_v29 = vpack.c.bf16 %v2460_v12, %v2459_v0  ;;  %v9803_v63 = vadd.f32 1e-06, %v9666_v39  ;;  %v1348_v25 = vmul.f32 %v11942_v10, %v1133_v54  ;;  %v1693_v7 = vsub.f32 1.5, %v1692_v41  ;;  %vm1697_vm3 = vmor %vm1695_vm14, %vm1696_vm0  ;;  %v12053_v12 = vld [vmem:[#allocation97_spill] sm:$0xff]  ;;  %v12056_v41 = vld [vmem:[#allocation100_spill] sm:$0xff] }
 0x1af   : > { %v2664_v30 = vpack.c.bf16 %v2462_v4, %v2461_v52  ;;  %v1708_v60 = vsel %vm1707_vm1, %v9695_v28, %v1704_v35  ;;  %v1353_v11 = vmul.f32 %v11942_v10, %v1158_v20  ;;  %v1742_v9 = vmul.f32 0.5, %v1741_v6  ;;  %v12055_v4 = vld [vmem:[#allocation99_spill] sm:$0xff] }
 0x1b0   : > { %2791 = vst [vmem:[#allocation2 + $0x1a0] sm:$0xff] %v2663_v29  ;;  %v2189_v18 = vmul.f32 %v1708_v60, %v12049_v33  ;;  %v2190_v17 = vmul.f32 %v1708_v60, %v12050_v40  ;;  %v2191_v19 = vmul.f32 %v1708_v60, %v12051_v5  ;;  %v2192_v47 = vmul.f32 %v1708_v60, %v12052_v31  ;;  %v12057_v33 = vld [vmem:[#allocation101_spill] sm:$0xff]  ;;  %v12058_v40 = vld [vmem:[#allocation102_spill] sm:$0xff]  ;;  %v12059_v5 = vld [vmem:[#allocation103_spill] sm:$0xff]  ;;  %v1173_v31 = vpop.xlane.xlu2 %1172 }
 0x1b1   : > { %2792 = vst [vmem:[#allocation2 + $0x1a8] sm:$0xff] %v2664_v30  ;;  %v1694_v39 = vmul.f32 %v9698_v23, %v1693_v7  ;;  %vm1746_vm2 = vweird.f32 %v9708_v3  ;;  %7644 = vrsqrt.f32 %v9803_v63  ;;  %v1743_v13 = vsub.f32 1.5, %v1742_v9 }
 0x1b2   : > { %v2455_v28 = vmul.f32 %v8972_v61, %v2189_v18  ;;  %v2456_v54 = vmul.f32 %v8979_v38, %v2190_v17  ;;  %v2457_v2 = vmul.f32 %v8981_v16, %v2191_v19  ;;  %v2458_v24 = vmul.f32 %v9011_v42, %v2192_v47  ;;  %vm1747_vm4 = vmor %vm1745_vm15, %vm1746_vm2  ;;  %v12060_v47 = vld [vmem:[#allocation104_spill] sm:$0xff] }
 0x1b3   : > { %v1698_v8 = vsel %vm1697_vm3, %v9698_v23, %v1694_v39  ;;  %v9824_v44 = vadd.f32 1e-06, %v1348_v25  ;;  %v9826_v22 = vadd.f32 1e-06, %v1353_v11  ;;  %v1744_v29 = vmul.f32 %v9708_v3, %v1743_v13 }
 0x1b4   : > { %v2661_v21 = vpack.c.bf16 %v2456_v54, %v2455_v28  ;;  %v2662_v0 = vpack.c.bf16 %v2458_v24, %v2457_v2  ;;  %v2185_v52 = vmul.f32 %v1698_v8, %v12053_v12  ;;  %v2186_v20 = vmul.f32 %v1698_v8, %v12054_v26 }
 0x1b5   : > { %v2187_v35 = vmul.f32 %v1698_v8, %v12055_v4  ;;  %v2188_v37 = vmul.f32 %v1698_v8, %v12056_v41  ;;  %7646 = vrsqrt.f32 %v9824_v44  ;;  %v1748_v7 = vsel %vm1747_vm4, %v9708_v3, %v1744_v29  ;;  %v1168_v4 = vpop.xlane.xlu1 %1167 }
 0x1b6   : > { %2789 = vst [vmem:[#allocation2 + $0x190] sm:$0xff] %v2661_v21  ;;  %v2451_v23 = vmul.f32 %v8972_v61, %v2185_v52  ;;  %v2452_v6 = vmul.f32 %v8979_v38, %v2186_v20  ;;  %7648 = vrsqrt.f32 %v9826_v22  ;;  %v2205_v18 = vmul.f32 %v1748_v7, %v12057_v33 }
 0x1b7   : > { %v7645_v25 = vpop.eup %7644  ;;  %2790 = vst [vmem:[#allocation2 + $0x198] sm:$0xff] %v2662_v0  ;;  %v2453_v30 = vmul.f32 %v8981_v16, %v2187_v35  ;;  %v2454_v60 = vmul.f32 %v9011_v42, %v2188_v37  ;;  %v2206_v17 = vmul.f32 %v1748_v7, %v12058_v40  ;;  %v2207_v19 = vmul.f32 %v1748_v7, %v12059_v5  ;;  %v1163_v37 = vpop.xlane.xlu0 %1162 }
 0x1b8   : > { %v2659_v11 = vpack.c.bf16 %v2452_v6, %v2451_v23  ;;  %v2208_v39 = vmul.f32 %v1748_v7, %v12060_v47  ;;  %v1730_v9 = vmul.f32 %v7645_v25, %v9803_v63  ;;  %v2471_v28 = vmul.f32 %v8972_v61, %v2205_v18 }
 0x1b9   : > { %v2660_v46 = vpack.c.bf16 %v2454_v60, %v2453_v30  ;;  %v2472_v54 = vmul.f32 %v8979_v38, %v2206_v17  ;;  %v2473_v3 = vmul.f32 %v8981_v16, %v2207_v19  ;;  %v1352_v2 = vmul.f32 %v11942_v10, %v1153_v56  ;;  %v1188_v17 = vpop.xlane.xlu2 %1187 }
 0x1ba   : > { %2787 = vst [vmem:[#allocation2 + $0x180] sm:$0xff] %v2659_v11  ;;  %v2474_v8 = vmul.f32 %v9011_v42, %v2208_v39  ;;  %v1731_v13 = vmul.f32 %v7645_v25, %v1730_v9  ;;  %v1351_v21 = vmul.f32 %v11942_v10, %v1148_v50  ;;  %v1356_v0 = vmul.f32 %v11942_v10, %v1173_v31  ;;  %v12061_v39 = vld [vmem:[#allocation105_spill] sm:$0xff] }
 0x1bb   : > { %v7647_v24 = vpop.eup %7646  ;;  %2788 = vst [vmem:[#allocation2 + $0x188] sm:$0xff] %v2660_v46  ;;  %v2669_v52 = vpack.c.bf16 %v2472_v54, %v2471_v28  ;;  %v9857_v20 = vadd.f32 1e-06, %v1352_v2  ;;  %vm1735_vm5 = vweird.f32 %v9803_v63  ;;  %vm1736_vm6 = vweird.f32 %v7645_v25  ;;  %v12062_v28 = vld [vmem:[#allocation106_spill] sm:$0xff]  ;;  %v12063_v63 = vld [vmem:[#allocation107_spill] sm:$0xff]  ;;  %v12064_v2 = vld [vmem:[#allocation108_spill] sm:$0xff] }
 0x1bc   : > { %v7649_v12 = vpop.eup %7648  ;;  %v1720_v26 = vmul.f32 %v7647_v24, %v9824_v44  ;;  %v2670_v35 = vpack.c.bf16 %v2474_v8, %v2473_v3  ;;  %v1732_v41 = vmul.f32 0.5, %v1731_v13  ;;  %v9862_v50 = vadd.f32 1e-06, %v1351_v21  ;;  %vm1737_vm9 = vmor %vm1735_vm5, %vm1736_vm6 }
 0x1bd   : > { %v1770_v56 = vmul.f32 %v7649_v12, %v9826_v22  ;;  %2797 = vst [vmem:[#allocation2 + $0x1d0] sm:$0xff] %v2669_v52  ;;  %7650 = vrsqrt.f32 %v9857_v20  ;;  %v9864_v30 = vadd.f32 1e-06, %v1356_v0  ;;  %v1355_v60 = vmul.f32 %v11942_v10, %v1168_v4 }
 0x1be   : > { %v1721_v29 = vmul.f32 %v7647_v24, %v1720_v26  ;;  %2798 = vst [vmem:[#allocation2 + $0x1d8] sm:$0xff] %v2670_v35  ;;  %v1733_v23 = vsub.f32 1.5, %v1732_v41  ;;  %7652 = vrsqrt.f32 %v9862_v50  ;;  %v1354_v11 = vmul.f32 %v11942_v10, %v1163_v37 }
 0x1bf   : > { %v1771_v6 = vmul.f32 %v7649_v12, %v1770_v56  ;;  %vm1725_vm7 = vweird.f32 %v9824_v44  ;;  %vm1775_vm8 = vweird.f32 %v9826_v22  ;;  %vm1726_vm10 = vweird.f32 %v7647_v24 }
 0x1c0   : > { %v1722_v7 = vmul.f32 0.5, %v1721_v29  ;;  %v1734_v33 = vmul.f32 %v7645_v25, %v1733_v23  ;;  %vm1776_vm11 = vweird.f32 %v7649_v12  ;;  %7654 = vrsqrt.f32 %v9864_v30  ;;  %vm1727_vm12 = vmor %vm1725_vm7, %vm1726_vm10 }
 0x1c1   : > { %v1772_v18 = vmul.f32 0.5, %v1771_v6  ;;  %v9875_v31 = vadd.f32 1e-06, %v1355_v60  ;;  %v9877_v46 = vadd.f32 1e-06, %v1354_v11  ;;  %v1359_v0 = vmul.f32 %v11942_v10, %v1188_v17  ;;  %vm1777_vm13 = vmor %vm1775_vm8, %vm1776_vm11  ;;  %v12068_v17 = vld [vmem:[#allocation112_spill] sm:$0xff] }
 0x1c2   : > { %v1723_v40 = vsub.f32 1.5, %v1722_v7  ;;  %v1738_v5 = vsel %vm1737_vm9, %v7645_v25, %v1734_v33  ;;  %vm1765_vm14 = vweird.f32 %v9857_v20  ;;  %v12065_v7 = vld [vmem:[#allocation109_spill] sm:$0xff]  ;;  %v12066_v33 = vld [vmem:[#allocation110_spill] sm:$0xff]  ;;  %vm1755_vm0 = vweird.f32 %v9862_v50 }
 0x1c3   : > { %v1773_v19 = vsub.f32 1.5, %v1772_v18  ;;  %v9879_v47 = vpop.eup %7650  ;;  %v2201_v9 = vmul.f32 %v1738_v5, %v12061_v39  ;;  %v2202_v54 = vmul.f32 %v1738_v5, %v12062_v28  ;;  %v2203_v3 = vmul.f32 %v1738_v5, %v12063_v63 }
 0x1c4   : > { %v2204_v8 = vmul.f32 %v1738_v5, %v12064_v2  ;;  %v1724_v13 = vmul.f32 %v7647_v24, %v1723_v40  ;;  %v1760_v21 = vmul.f32 %v9879_v47, %v9857_v20  ;;  %v9890_v52 = vpop.eup %7652  ;;  %v12067_v40 = vld [vmem:[#allocation111_spill] sm:$0xff]  ;;  %vm1766_vm15 = vweird.f32 %v9879_v47 }
 0x1c5   : > { %v1774_v25 = vmul.f32 %v7649_v12, %v1773_v19  ;;  %v2467_v26 = vmul.f32 %v8972_v61, %v2201_v9  ;;  %v2468_v4 = vmul.f32 %v8979_v38, %v2202_v54  ;;  %v2469_v35 = vmul.f32 %v8981_v16, %v2203_v3  ;;  %v12069_v19 = vld [vmem:[#allocation113_spill] sm:$0xff]  ;;  %v12071_v54 = vld [vmem:[#allocation115_spill] sm:$0xff]  ;;  %v12072_v3 = vld [vmem:[#allocation116_spill] sm:$0xff] }
 0x1c6   : > { %v2470_v41 = vmul.f32 %v9011_v42, %v2204_v8  ;;  %v1728_v44 = vsel %vm1727_vm12, %v7647_v24, %v1724_v13  ;;  %v1761_v37 = vmul.f32 %v9879_v47, %v1760_v21  ;;  %v1750_v29 = vmul.f32 %v9890_v52, %v9862_v50  ;;  %v9903_v23 = vpop.eup %7654  ;;  %v1183_v8 = vpop.xlane.xlu1 %1182  ;;  %vm1767_vm2 = vmor %vm1765_vm14, %vm1766_vm15  ;;  %v12075_v20 = vld [vmem:[#allocation119_spill] sm:$0xff] }
 0x1c7   : > { %v1778_v56 = vsel %vm1777_vm13, %v7649_v12, %v1774_v25  ;;  %v2667_v6 = vpack.c.bf16 %v2468_v4, %v2467_v26  ;;  %v2197_v11 = vmul.f32 %v1728_v44, %v12065_v7  ;;  %v2198_v18 = vmul.f32 %v1728_v44, %v12066_v33  ;;  %v12070_v12 = vld [vmem:[#allocation114_spill] sm:$0xff] }
 0x1c8   : > { %v2668_v60 = vpack.c.bf16 %v2470_v41, %v2469_v35  ;;  %v2199_v22 = vmul.f32 %v1728_v44, %v12067_v40  ;;  %v2200_v5 = vmul.f32 %v1728_v44, %v12068_v17  ;;  %v2217_v24 = vmul.f32 %v1778_v56, %v12069_v19 }
 0x1c9   : > { %v2218_v39 = vmul.f32 %v1778_v56, %v12070_v12  ;;  %2795 = vst [vmem:[#allocation2 + $0x1c0] sm:$0xff] %v2667_v6  ;;  %v2463_v9 = vmul.f32 %v8972_v61, %v2197_v11  ;;  %v2464_v28 = vmul.f32 %v8979_v38, %v2198_v18  ;;  %v2219_v63 = vmul.f32 %v1778_v56, %v12071_v54  ;;  %v1178_v11 = vpop.xlane.xlu0 %1177 }
 0x1ca   : > { %v2220_v2 = vmul.f32 %v1778_v56, %v12072_v3  ;;  %2796 = vst [vmem:[#allocation2 + $0x1c8] sm:$0xff] %v2668_v60  ;;  %v2465_v13 = vmul.f32 %v8981_v16, %v2199_v22  ;;  %v2466_v25 = vmul.f32 %v9011_v42, %v2200_v5  ;;  %v2483_v21 = vmul.f32 %v8972_v61, %v2217_v24  ;;  %v12076_v3 = vld [vmem:[#allocation120_spill] sm:$0xff] }
 0x1cb   : > { %v2484_v26 = vmul.f32 %v8979_v38, %v2218_v39  ;;  %v2665_v4 = vpack.c.bf16 %v2464_v28, %v2463_v9  ;;  %v2485_v35 = vmul.f32 %v8981_v16, %v2219_v63  ;;  %v1762_v44 = vmul.f32 0.5, %v1761_v37  ;;  %v12074_v28 = vld [vmem:[#allocation118_spill] sm:$0xff] }
 0x1cc   : > { %v2486_v41 = vmul.f32 %v9011_v42, %v2220_v2  ;;  %v2666_v6 = vpack.c.bf16 %v2466_v25, %v2465_v13  ;;  %v1751_v56 = vmul.f32 %v9890_v52, %v1750_v29  ;;  %v1358_v60 = vmul.f32 %v11942_v10, %v1183_v8  ;;  %v1203_v8 = vpop.xlane.xlu2 %1202 }
 0x1cd   : > { %v2675_v7 = vpack.c.bf16 %v2484_v26, %v2483_v21  ;;  %2793 = vst [vmem:[#allocation2 + $0x1b0] sm:$0xff] %v2665_v4  ;;  %v1763_v18 = vsub.f32 1.5, %v1762_v44  ;;  %v1800_v40 = vmul.f32 %v9903_v23, %v9864_v30  ;;  %vm1805_vm1 = vweird.f32 %v9864_v30 }
 0x1ce   : > { %v2676_v33 = vpack.c.bf16 %v2486_v41, %v2485_v35  ;;  %2794 = vst [vmem:[#allocation2 + $0x1b8] sm:$0xff] %v2666_v6  ;;  %v1752_v22 = vmul.f32 0.5, %v1751_v56  ;;  %7656 = vrsqrt.f32 %v9875_v31  ;;  %v9931_v17 = vadd.f32 1e-06, %v1359_v0  ;;  %v12073_v0 = vld [vmem:[#allocation117_spill] sm:$0xff] }
 0x1cf   : > { %2803 = vst [vmem:[#allocation2 + $0x200] sm:$0xff] %v2675_v7  ;;  %v1764_v37 = vmul.f32 %v9879_v47, %v1763_v18  ;;  %v1801_v29 = vmul.f32 %v9903_v23, %v1800_v40  ;;  %v1357_v5 = vmul.f32 %v11942_v10, %v1178_v11  ;;  %vm1756_vm3 = vweird.f32 %v9890_v52  ;;  %v12077_v18 = vld [vmem:[#allocation121_spill] sm:$0xff] }
 0x1d0   : > { %2804 = vst [vmem:[#allocation2 + $0x208] sm:$0xff] %v2676_v33  ;;  %v1753_v19 = vsub.f32 1.5, %v1752_v22  ;;  %7658 = vrsqrt.f32 %v9877_v46  ;;  %v9938_v24 = vadd.f32 1e-06, %v1358_v60  ;;  %vm1806_vm4 = vweird.f32 %v9903_v23  ;;  %vm1757_vm5 = vmor %vm1755_vm0, %vm1756_vm3  ;;  %v12078_v22 = vld [vmem:[#allocation122_spill] sm:$0xff] }
 0x1d1   : > { %v1768_v12 = vsel %vm1767_vm2, %v9879_v47, %v1764_v37  ;;  %v1802_v39 = vmul.f32 0.5, %v1801_v29  ;;  %7660 = vrsqrt.f32 %v9931_v17  ;;  %v9949_v47 = vadd.f32 1e-06, %v1357_v5  ;;  %vm1807_vm7 = vmor %vm1805_vm1, %vm1806_vm4  ;;  %v12079_v37 = vld [vmem:[#allocation123_spill] sm:$0xff]  ;;  %v12080_v5 = vld [vmem:[#allocation124_spill] sm:$0xff] }
 0x1d2   : > { %v2213_v9 = vmul.f32 %v1768_v12, %v12073_v0  ;;  %v2214_v54 = vmul.f32 %v1768_v12, %v12074_v28  ;;  %v2215_v63 = vmul.f32 %v1768_v12, %v12075_v20  ;;  %v2216_v2 = vmul.f32 %v1768_v12, %v12076_v3  ;;  %v12081_v28 = vld [vmem:[#allocation125_spill] sm:$0xff]  ;;  %v12082_v20 = vld [vmem:[#allocation126_spill] sm:$0xff] }
 0x1d3   : > { %v1754_v13 = vmul.f32 %v9890_v52, %v1753_v19  ;;  %v1803_v25 = vsub.f32 1.5, %v1802_v39  ;;  %7662 = vrsqrt.f32 %v9938_v24  ;;  %vm1795_vm6 = vweird.f32 %v9875_v31 }
 0x1d4   : > { %v9951_v21 = vpop.eup %7656  ;;  %v2479_v26 = vmul.f32 %v8972_v61, %v2213_v9  ;;  %v2480_v4 = vmul.f32 %v8979_v38, %v2214_v54  ;;  %v2481_v35 = vmul.f32 %v8981_v16, %v2215_v63  ;;  %v2482_v41 = vmul.f32 %v9011_v42, %v2216_v2 }
 0x1d5   : > { %v1758_v44 = vsel %vm1757_vm5, %v9890_v52, %v1754_v13  ;;  %v1804_v6 = vmul.f32 %v9903_v23, %v1803_v25  ;;  %v1790_v7 = vmul.f32 %v9951_v21, %v9875_v31  ;;  %v1362_v56 = vmul.f32 %v11942_v10, %v1203_v8  ;;  %v12083_v8 = vld [vmem:[#allocation127_spill] sm:$0xff]  ;;  %v12084_v13 = vld [vmem:[#allocation128_spill] sm:$0xff] }
 0x1d6   : > { %v9967_v60 = vpop.eup %7658  ;;  %v2673_v11 = vpack.c.bf16 %v2480_v4, %v2479_v26  ;;  %v2674_v33 = vpack.c.bf16 %v2482_v41, %v2481_v35  ;;  %v2209_v40 = vmul.f32 %v1758_v44, %v12077_v18  ;;  %v2210_v50 = vmul.f32 %v1758_v44, %v12078_v22 }
 0x1d7   : > { %v9975_v52 = vpop.eup %7660  ;;  %v2211_v29 = vmul.f32 %v1758_v44, %v12079_v37  ;;  %v2212_v19 = vmul.f32 %v1758_v44, %v12080_v5  ;;  %v1808_v12 = vsel %vm1807_vm7, %v9903_v23, %v1804_v6  ;;  %v1791_v39 = vmul.f32 %v9951_v21, %v1790_v7 }
 0x1d8   : > { %2801 = vst [vmem:[#allocation2 + $0x1f0] sm:$0xff] %v2673_v11  ;;  %v2475_v0 = vmul.f32 %v8972_v61, %v2209_v40  ;;  %v2476_v9 = vmul.f32 %v8979_v38, %v2210_v50  ;;  %v2229_v54 = vmul.f32 %v1808_v12, %v12081_v28  ;;  %v2230_v30 = vmul.f32 %v1808_v12, %v12082_v20  ;;  %v12086_v20 = vld [vmem:[#allocation130_spill] sm:$0xff] }
 0x1d9   : > { %v9985_v63 = vpop.eup %7662  ;;  %2802 = vst [vmem:[#allocation2 + $0x1f8] sm:$0xff] %v2674_v33  ;;  %v2477_v3 = vmul.f32 %v8981_v16, %v2211_v29  ;;  %v2478_v2 = vmul.f32 %v9011_v42, %v2212_v19  ;;  %v2231_v23 = vmul.f32 %v1808_v12, %v12083_v8  ;;  %v2232_v25 = vmul.f32 %v1808_v12, %v12084_v13  ;;  %v12088_v8 = vld [vmem:[#allocation132_spill] sm:$0xff] }
 0x1da   : > { %v2671_v26 = vpack.c.bf16 %v2476_v9, %v2475_v0  ;;  %v2495_v4 = vmul.f32 %v8972_v61, %v2229_v54  ;;  %v2496_v35 = vmul.f32 %v8979_v38, %v2230_v30  ;;  %v1792_v41 = vmul.f32 0.5, %v1791_v39  ;;  %v1198_v39 = vpop.xlane.xlu1 %1197  ;;  %v12085_v54 = vld [vmem:[#allocation129_spill] sm:$0xff] }
 0x1db   : > { %v2672_v44 = vpack.c.bf16 %v2478_v2, %v2477_v3  ;;  %v2497_v6 = vmul.f32 %v8981_v16, %v2231_v23  ;;  %v2498_v7 = vmul.f32 %v9011_v42, %v2232_v25  ;;  %v1780_v11 = vmul.f32 %v9967_v60, %v9877_v46  ;;  %v12087_v3 = vld [vmem:[#allocation131_spill] sm:$0xff] }
 0x1dc   : > { %2799 = vst [vmem:[#allocation2 + $0x1e0] sm:$0xff] %v2671_v26  ;;  %v2681_v33 = vpack.c.bf16 %v2496_v35, %v2495_v4  ;;  %v1793_v18 = vsub.f32 1.5, %v1792_v41  ;;  %vm1796_vm8 = vweird.f32 %v9951_v21  ;;  %v1830_v40 = vmul.f32 %v9975_v52, %v9931_v17  ;;  %v1193_v35 = vpop.xlane.xlu0 %1192 }
 0x1dd   : > { %2800 = vst [vmem:[#allocation2 + $0x1e8] sm:$0xff] %v2672_v44  ;;  %v2682_v22 = vpack.c.bf16 %v2498_v7, %v2497_v6  ;;  %v1781_v50 = vmul.f32 %v9967_v60, %v1780_v11  ;;  %vm1785_vm9 = vweird.f32 %v9877_v46  ;;  %v1820_v37 = vmul.f32 %v9985_v63, %v9938_v24  ;;  %vm1797_vm11 = vmor %vm1795_vm6, %vm1796_vm8 }
 0x1de   : > { %2809 = vst [vmem:[#allocation2 + $0x230] sm:$0xff] %v2681_v33  ;;  %v1794_v29 = vmul.f32 %v9951_v21, %v1793_v18  ;;  %v1831_v5 = vmul.f32 %v9975_v52, %v1830_v40  ;;  %vm1835_vm10 = vweird.f32 %v9931_v17  ;;  %7664 = vrsqrt.f32 %v9949_v47  ;;  %v12091_v17 = vld [vmem:[#allocation135_spill] sm:$0xff] }
 0x1df   : > { %2810 = vst [vmem:[#allocation2 + $0x238] sm:$0xff] %v2682_v22  ;;  %v1782_v19 = vmul.f32 0.5, %v1781_v50  ;;  %vm1786_vm12 = vweird.f32 %v9967_v60  ;;  %vm1836_vm13 = vweird.f32 %v9975_v52  ;;  %v1821_v12 = vmul.f32 %v9985_v63, %v1820_v37 }
 0x1e0   : > { %vm1825_vm14 = vweird.f32 %v9938_v24  ;;  %v1798_v0 = vsel %vm1797_vm11, %v9951_v21, %v1794_v29  ;;  %v1832_v9 = vmul.f32 0.5, %v1831_v5  ;;  %vm1826_vm15 = vweird.f32 %v9985_v63  ;;  %vm1787_vm0 = vmor %vm1785_vm9, %vm1786_vm12 }
 0x1e1   : > { %v10016_v28 = vadd.f32 1e-06, %v1362_v56  ;;  %v2225_v31 = vmul.f32 %v1798_v0, %v12085_v54  ;;  %v2226_v30 = vmul.f32 %v1798_v0, %v12086_v20  ;;  %v2227_v2 = vmul.f32 %v1798_v0, %v12087_v3  ;;  %vm1837_vm1 = vmor %vm1835_vm10, %vm1836_vm13  ;;  %v12092_v54 = vld [vmem:[#allocation136_spill] sm:$0xff]  ;;  %v12093_v20 = vld [vmem:[#allocation137_spill] sm:$0xff] }
 0x1e2   : > { %v2228_v23 = vmul.f32 %v1798_v0, %v12088_v8  ;;  %v1783_v13 = vsub.f32 1.5, %v1782_v19  ;;  %v1833_v25 = vsub.f32 1.5, %v1832_v9  ;;  %v1822_v26 = vmul.f32 0.5, %v1821_v12  ;;  %v12089_v19 = vld [vmem:[#allocation133_spill] sm:$0xff]  ;;  %v12094_v3 = vld [vmem:[#allocation138_spill] sm:$0xff]  ;;  %v12096_v8 = vld [vmem:[#allocation140_spill] sm:$0xff] }
 0x1e3   : > { %v1361_v4 = vmul.f32 %v11942_v10, %v1198_v39  ;;  %v2491_v21 = vmul.f32 %v8972_v61, %v2225_v31  ;;  %v2492_v41 = vmul.f32 %v8979_v38, %v2226_v30  ;;  %v2493_v56 = vmul.f32 %v8981_v16, %v2227_v2  ;;  %v12090_v39 = vld [vmem:[#allocation134_spill] sm:$0xff]  ;;  %v12095_v2 = vld [vmem:[#allocation139_spill] sm:$0xff]  ;;  %vm1827_vm2 = vmor %vm1825_vm14, %vm1826_vm15 }
 0x1e4   : > { %v2494_v44 = vmul.f32 %v9011_v42, %v2228_v23  ;;  %v10027_v6 = vpop.eup %7664  ;;  %v1784_v7 = vmul.f32 %v9967_v60, %v1783_v13  ;;  %v1834_v11 = vmul.f32 %v9975_v52, %v1833_v25  ;;  %v1823_v33 = vsub.f32 1.5, %v1822_v26 }
 0x1e5   : > { %7666 = vrsqrt.f32 %v10016_v28  ;;  %v2679_v18 = vpack.c.bf16 %v2492_v41, %v2491_v21  ;;  %v1810_v22 = vmul.f32 %v10027_v6, %v9949_v47  ;;  %v1360_v50 = vmul.f32 %v11942_v10, %v1193_v35 }
 0x1e6   : > { %v2680_v40 = vpack.c.bf16 %v2494_v44, %v2493_v56  ;;  %v1788_v46 = vsel %vm1787_vm0, %v9967_v60, %v1784_v7  ;;  %v1838_v37 = vsel %vm1837_vm1, %v9975_v52, %v1834_v11  ;;  %v1824_v29 = vmul.f32 %v9985_v63, %v1823_v33 }
 0x1e7   : > { %v10046_v5 = vadd.f32 1e-06, %v1361_v4  ;;  %2807 = vst [vmem:[#allocation2 + $0x220] sm:$0xff] %v2679_v18  ;;  %v2221_v12 = vmul.f32 %v1788_v46, %v12089_v19  ;;  %v2222_v0 = vmul.f32 %v1788_v46, %v12090_v39  ;;  %v2223_v9 = vmul.f32 %v1788_v46, %v12091_v17 }
 0x1e8   : > { %v2224_v31 = vmul.f32 %v1788_v46, %v12092_v54  ;;  %2808 = vst [vmem:[#allocation2 + $0x228] sm:$0xff] %v2680_v40  ;;  %v2241_v30 = vmul.f32 %v1838_v37, %v12093_v20  ;;  %v2242_v60 = vmul.f32 %v1838_v37, %v12094_v3  ;;  %v2243_v52 = vmul.f32 %v1838_v37, %v12095_v2  ;;  %v1218_v20 = vpop.xlane.xlu2 %1217 }
 0x1e9   : > { %v2244_v23 = vmul.f32 %v1838_v37, %v12096_v8  ;;  %v2487_v13 = vmul.f32 %v8972_v61, %v2221_v12  ;;  %v2488_v25 = vmul.f32 %v8979_v38, %v2222_v0  ;;  %v2489_v26 = vmul.f32 %v8981_v16, %v2223_v9  ;;  %v12097_v37 = vld [vmem:[#allocation141_spill] sm:$0xff]  ;;  %v12098_v12 = vld [vmem:[#allocation142_spill] sm:$0xff]  ;;  %v12099_v0 = vld [vmem:[#allocation143_spill] sm:$0xff] }
 0x1ea   : > { %v2490_v4 = vmul.f32 %v9011_v42, %v2224_v31  ;;  %v2507_v21 = vmul.f32 %v8972_v61, %v2241_v30  ;;  %v2508_v41 = vmul.f32 %v8979_v38, %v2242_v60  ;;  %v2509_v56 = vmul.f32 %v8981_v16, %v2243_v52  ;;  %v12100_v9 = vld [vmem:[#allocation144_spill] sm:$0xff] }
 0x1eb   : > { %v10060_v35 = vpop.eup %7666  ;;  %v2510_v44 = vmul.f32 %v9011_v42, %v2244_v23  ;;  %v2677_v7 = vpack.c.bf16 %v2488_v25, %v2487_v13  ;;  %v1828_v33 = vsel %vm1827_vm2, %v9985_v63, %v1824_v29  ;;  %v1811_v18 = vmul.f32 %v10027_v6, %v1810_v22  ;;  %v1213_v29 = vpop.xlane.xlu1 %1212 }
 0x1ec   : > { %v2678_v11 = vpack.c.bf16 %v2490_v4, %v2489_v26  ;;  %v2687_v40 = vpack.c.bf16 %v2508_v41, %v2507_v21  ;;  %v2237_v19 = vmul.f32 %v1828_v33, %v12097_v37  ;;  %v2238_v39 = vmul.f32 %v1828_v33, %v12098_v12 }
 0x1ed   : > { %v2688_v46 = vpack.c.bf16 %v2510_v44, %v2509_v56  ;;  %2805 = vst [vmem:[#allocation2 + $0x210] sm:$0xff] %v2677_v7  ;;  %v2239_v17 = vmul.f32 %v1828_v33, %v12099_v0  ;;  %v2240_v54 = vmul.f32 %v1828_v33, %v12100_v9  ;;  %v1812_v31 = vmul.f32 0.5, %v1811_v18  ;;  %v12101_v44 = vld [vmem:[#allocation145_spill] sm:$0xff]  ;;  %v12103_v18 = vld [vmem:[#allocation147_spill] sm:$0xff] }
 0x1ee   : > { %v1860_v24 = vmul.f32 %v10060_v35, %v10016_v28  ;;  %2806 = vst [vmem:[#allocation2 + $0x218] sm:$0xff] %v2678_v11  ;;  %v2503_v63 = vmul.f32 %v8972_v61, %v2237_v19  ;;  %v2504_v22 = vmul.f32 %v8979_v38, %v2238_v39  ;;  %vm1816_vm3 = vweird.f32 %v10027_v6  ;;  %v12102_v11 = vld [vmem:[#allocation146_spill] sm:$0xff]  ;;  %v1208_v19 = vpop.xlane.xlu0 %1207 }
 0x1ef   : > { %7668 = vrsqrt.f32 %v10046_v5  ;;  %2815 = vst [vmem:[#allocation2 + $0x260] sm:$0xff] %v2687_v40  ;;  %v2505_v30 = vmul.f32 %v8981_v16, %v2239_v17  ;;  %v2506_v3 = vmul.f32 %v9011_v42, %v2240_v54  ;;  %v1813_v60 = vsub.f32 1.5, %v1812_v31 }
 0x1f0   : > { %v1861_v2 = vmul.f32 %v10060_v35, %v1860_v24  ;;  %2816 = vst [vmem:[#allocation2 + $0x268] sm:$0xff] %v2688_v46  ;;  %v2685_v52 = vpack.c.bf16 %v2504_v22, %v2503_v63  ;;  %vm1815_vm4 = vweird.f32 %v9949_v47  ;;  %v10086_v8 = vadd.f32 1e-06, %v1360_v50  ;;  %v12104_v46 = vld [vmem:[#allocation148_spill] sm:$0xff] }
 0x1f1   : > { %v1365_v23 = vmul.f32 %v11942_v10, %v1218_v20  ;;  %v2686_v13 = vpack.c.bf16 %v2506_v3, %v2505_v30  ;;  %v1814_v25 = vmul.f32 %v10027_v6, %v1813_v60  ;;  %v1364_v4 = vmul.f32 %v11942_v10, %v1213_v29  ;;  %vm1817_vm5 = vmor %vm1815_vm4, %vm1816_vm3  ;;  %v1233_v20 = vpop.xlane.xlu2 %1232  ;;  %v12105_v30 = vld [vmem:[#allocation149_spill] sm:$0xff]  ;;  %v12106_v60 = vld [vmem:[#allocation150_spill] sm:$0xff] }
 0x1f2   : > { %v1862_v26 = vmul.f32 0.5, %v1861_v2  ;;  %2813 = vst [vmem:[#allocation2 + $0x250] sm:$0xff] %v2685_v52  ;;  %vm1865_vm6 = vweird.f32 %v10016_v28  ;;  %7670 = vrsqrt.f32 %v10086_v8  ;;  %vm1866_vm7 = vweird.f32 %v10060_v35  ;;  %v12107_v52 = vld [vmem:[#allocation151_spill] sm:$0xff] }
 0x1f3   : > { %v10095_v21 = vadd.f32 1e-06, %v1365_v23  ;;  %2814 = vst [vmem:[#allocation2 + $0x258] sm:$0xff] %v2686_v13  ;;  %v1818_v47 = vsel %vm1817_vm5, %v10027_v6, %v1814_v25  ;;  %v10099_v41 = vadd.f32 1e-06, %v1364_v4  ;;  %vm1855_vm8 = vweird.f32 %v10046_v5  ;;  %vm1867_vm9 = vmor %vm1865_vm6, %vm1866_vm7  ;;  %v12108_v13 = vld [vmem:[#allocation152_spill] sm:$0xff] }
 0x1f4   : > { %v1863_v50 = vsub.f32 1.5, %v1862_v26  ;;  %v2233_v7 = vmul.f32 %v1818_v47, %v12101_v44  ;;  %v2234_v33 = vmul.f32 %v1818_v47, %v12102_v11  ;;  %v2235_v40 = vmul.f32 %v1818_v47, %v12103_v18 }
 0x1f5   : > { %v7669_v56 = vpop.eup %7668  ;;  %v2236_v37 = vmul.f32 %v1818_v47, %v12104_v46  ;;  %7672 = vrsqrt.f32 %v10095_v21  ;;  %v1363_v24 = vmul.f32 %v11942_v10, %v1208_v19  ;;  %vm1845_vm10 = vweird.f32 %v10086_v8 }
 0x1f6   : > { %v1864_v12 = vmul.f32 %v10060_v35, %v1863_v50  ;;  %v1850_v39 = vmul.f32 %v7669_v56, %v10046_v5  ;;  %v2499_v6 = vmul.f32 %v8972_v61, %v2233_v7  ;;  %v2500_v0 = vmul.f32 %v8979_v38, %v2234_v33  ;;  %v12110_v5 = vld [vmem:[#allocation154_spill] sm:$0xff] }
 0x1f7   : > { %v2501_v17 = vmul.f32 %v8981_v16, %v2235_v40  ;;  %v2502_v9 = vmul.f32 %v9011_v42, %v2236_v37  ;;  %7674 = vrsqrt.f32 %v10099_v41  ;;  %vm1856_vm11 = vweird.f32 %v7669_v56 }
 0x1f8   : > { %v1868_v54 = vsel %vm1867_vm9, %v10060_v35, %v1864_v12  ;;  %v1851_v31 = vmul.f32 %v7669_v56, %v1850_v39  ;;  %v7671_v63 = vpop.eup %7670  ;;  %v2683_v22 = vpack.c.bf16 %v2500_v0, %v2499_v6  ;;  %v1368_v47 = vmul.f32 %v11942_v10, %v1233_v20  ;;  %vm1857_vm14 = vmor %vm1855_vm8, %vm1856_vm11 }
 0x1f9   : > { %v2684_v29 = vpack.c.bf16 %v2502_v9, %v2501_v17  ;;  %v2253_v3 = vmul.f32 %v1868_v54, %v12105_v30  ;;  %v2254_v2 = vmul.f32 %v1868_v54, %v12106_v60  ;;  %v2255_v23 = vmul.f32 %v1868_v54, %v12107_v52  ;;  %v12112_v30 = vld [vmem:[#allocation156_spill] sm:$0xff] }
 0x1fa   : > { %v2256_v28 = vmul.f32 %v1868_v54, %v12108_v13  ;;  %v1852_v25 = vmul.f32 0.5, %v1851_v31  ;;  %v1840_v35 = vmul.f32 %v7671_v63, %v10086_v8  ;;  %2811 = vst [vmem:[#allocation2 + $0x240] sm:$0xff] %v2683_v22  ;;  %vm1895_vm12 = vweird.f32 %v10095_v21  ;;  %v12109_v31 = vld [vmem:[#allocation153_spill] sm:$0xff]  ;;  %v12111_v22 = vld [vmem:[#allocation155_spill] sm:$0xff] }
 0x1fb   : > { %v2519_v26 = vmul.f32 %v8972_v61, %v2253_v3  ;;  %v2520_v4 = vmul.f32 %v8979_v38, %v2254_v2  ;;  %v10129_v50 = vpop.eup %7672  ;;  %2812 = vst [vmem:[#allocation2 + $0x248] sm:$0xff] %v2684_v29  ;;  %v2521_v44 = vmul.f32 %v8981_v16, %v2255_v23  ;;  %v10136_v46 = vadd.f32 1e-06, %v1363_v24 }
 0x1fc   : > { %v2522_v7 = vmul.f32 %v9011_v42, %v2256_v28  ;;  %v1853_v11 = vsub.f32 1.5, %v1852_v25  ;;  %v1841_v33 = vmul.f32 %v7671_v63, %v1840_v35  ;;  %v1890_v40 = vmul.f32 %v10129_v50, %v10095_v21  ;;  %v12118_v21 = vld [vmem:[#allocation162_spill] sm:$0xff] }
 0x1fd   : > { %v2693_v18 = vpack.c.bf16 %v2520_v4, %v2519_v26  ;;  %v10138_v37 = vpop.eup %7674  ;;  %vm1846_vm13 = vweird.f32 %v7671_v63  ;;  %vm1885_vm15 = vweird.f32 %v10099_v41  ;;  %7676 = vrsqrt.f32 %v10136_v46 }
 0x1fe   : > { %v2694_v19 = vpack.c.bf16 %v2522_v7, %v2521_v44  ;;  %v1854_v12 = vmul.f32 %v7669_v56, %v1853_v11  ;;  %v1842_v39 = vmul.f32 0.5, %v1841_v33  ;;  %v1891_v6 = vmul.f32 %v10129_v50, %v1890_v40  ;;  %vm1847_vm2 = vmor %vm1845_vm10, %vm1846_vm13  ;;  %v12113_v11 = vld [vmem:[#allocation157_spill] sm:$0xff] }
 0x1ff   : > { %2821 = vst [vmem:[#allocation2 + $0x290] sm:$0xff] %v2693_v18  ;;  %v1880_v0 = vmul.f32 %v10138_v37, %v10099_v41  ;;  %vm1896_vm0 = vweird.f32 %v10129_v50  ;;  %v10149_v54 = vadd.f32 1e-06, %v1368_v47  ;;  %vm1886_vm1 = vweird.f32 %v10138_v37  ;;  %v12114_v18 = vld [vmem:[#allocation158_spill] sm:$0xff] }
 0x200   : > { %2822 = vst [vmem:[#allocation2 + $0x298] sm:$0xff] %v2694_v19  ;;  %v1858_v17 = vsel %vm1857_vm14, %v7669_v56, %v1854_v12  ;;  %v1843_v9 = vsub.f32 1.5, %v1842_v39  ;;  %v1892_v2 = vmul.f32 0.5, %v1891_v6  ;;  %v1228_v56 = vpop.xlane.xlu1 %1227  ;;  %v12115_v19 = vld [vmem:[#allocation159_spill] sm:$0xff]  ;;  %v12116_v39 = vld [vmem:[#allocation160_spill] sm:$0xff]  ;;  %vm1897_vm3 = vmor %vm1895_vm12, %vm1896_vm0  ;;  %vm1875_vm6 = vweird.f32 %v10136_v46 }
 0x201   : > { %v2249_v24 = vmul.f32 %v1858_v17, %v12109_v31  ;;  %v2250_v20 = vmul.f32 %v1858_v17, %v12110_v5  ;;  %v2251_v29 = vmul.f32 %v1858_v17, %v12111_v22  ;;  %v2252_v3 = vmul.f32 %v1858_v17, %v12112_v30  ;;  %v1248_v30 = vpop.xlane.xlu2 %1247  ;;  %vm1887_vm4 = vmor %vm1885_vm15, %vm1886_vm1 }
 0x202   : > { %v1844_v60 = vmul.f32 %v7671_v63, %v1843_v9  ;;  %v1881_v52 = vmul.f32 %v10138_v37, %v1880_v0  ;;  %v1893_v26 = vsub.f32 1.5, %v1892_v2  ;;  %7678 = vrsqrt.f32 %v10149_v54 }
 0x203   : > { %v2515_v23 = vmul.f32 %v8972_v61, %v2249_v24  ;;  %v2516_v13 = vmul.f32 %v8979_v38, %v2250_v20  ;;  %v2517_v28 = vmul.f32 %v8981_v16, %v2251_v29  ;;  %v2518_v25 = vmul.f32 %v9011_v42, %v2252_v3  ;;  %v10165_v47 = vpop.eup %7676 }
 0x204   : > { %v1848_v35 = vsel %vm1847_vm2, %v7671_v63, %v1844_v60  ;;  %v1882_v4 = vmul.f32 0.5, %v1881_v52  ;;  %v1894_v8 = vmul.f32 %v10129_v50, %v1893_v26  ;;  %v1223_v63 = vpop.xlane.xlu0 %1222  ;;  %v1870_v31 = vmul.f32 %v10165_v47, %v10136_v46  ;;  %v12117_v60 = vld [vmem:[#allocation161_spill] sm:$0xff] }
 0x205   : > { %v2691_v44 = vpack.c.bf16 %v2516_v13, %v2515_v23  ;;  %v2692_v7 = vpack.c.bf16 %v2518_v25, %v2517_v28  ;;  %v2245_v33 = vmul.f32 %v1848_v35, %v12113_v11  ;;  %v2246_v40 = vmul.f32 %v1848_v35, %v12114_v18  ;;  %v12119_v23 = vld [vmem:[#allocation163_spill] sm:$0xff]  ;;  %v12120_v25 = vld [vmem:[#allocation164_spill] sm:$0xff]  ;;  %v12121_v11 = vld [vmem:[#allocation165_spill] sm:$0xff] }
 0x206   : > { %v2247_v12 = vmul.f32 %v1848_v35, %v12115_v19  ;;  %v2248_v6 = vmul.f32 %v1848_v35, %v12116_v39  ;;  %v1883_v0 = vsub.f32 1.5, %v1882_v4  ;;  %v1367_v24 = vmul.f32 %v11942_v10, %v1228_v56  ;;  %v12122_v18 = vld [vmem:[#allocation166_spill] sm:$0xff]  ;;  %v12123_v19 = vld [vmem:[#allocation167_spill] sm:$0xff]  ;;  %v12124_v39 = vld [vmem:[#allocation168_spill] sm:$0xff] }
 0x207   : > { %2819 = vst [vmem:[#allocation2 + $0x280] sm:$0xff] %v2691_v44  ;;  %v2511_v17 = vmul.f32 %v8972_v61, %v2245_v33  ;;  %v2512_v9 = vmul.f32 %v8979_v38, %v2246_v40  ;;  %v1898_v22 = vsel %vm1897_vm3, %v10129_v50, %v1894_v8  ;;  %v1871_v26 = vmul.f32 %v10165_v47, %v1870_v31 }
 0x208   : > { %2820 = vst [vmem:[#allocation2 + $0x288] sm:$0xff] %v2692_v7  ;;  %v2513_v5 = vmul.f32 %v8981_v16, %v2247_v12  ;;  %v2514_v20 = vmul.f32 %v9011_v42, %v2248_v6  ;;  %v1884_v29 = vmul.f32 %v10138_v37, %v1883_v0  ;;  %v2265_v2 = vmul.f32 %v1898_v22, %v12117_v60  ;;  %v10192_v56 = vpop.eup %7678  ;;  %v1243_v6 = vpop.xlane.xlu1 %1242 }
 0x209   : > { %v2689_v3 = vpack.c.bf16 %v2512_v9, %v2511_v17  ;;  %v2266_v52 = vmul.f32 %v1898_v22, %v12118_v21  ;;  %v2267_v13 = vmul.f32 %v1898_v22, %v12119_v23  ;;  %v2268_v50 = vmul.f32 %v1898_v22, %v12120_v25 }
 0x20a   : > { %v2690_v28 = vpack.c.bf16 %v2514_v20, %v2513_v5  ;;  %v1888_v35 = vsel %vm1887_vm4, %v10138_v37, %v1884_v29  ;;  %v2531_v4 = vmul.f32 %v8972_v61, %v2265_v2  ;;  %v1872_v17 = vmul.f32 0.5, %v1871_v26 }
 0x20b   : > { %2817 = vst [vmem:[#allocation2 + $0x270] sm:$0xff] %v2689_v3  ;;  %v2532_v44 = vmul.f32 %v8979_v38, %v2266_v52  ;;  %v2533_v7 = vmul.f32 %v8981_v16, %v2267_v13  ;;  %v2261_v33 = vmul.f32 %v1888_v35, %v12121_v11  ;;  %v2534_v41 = vmul.f32 %v9011_v42, %v2268_v50 }
 0x20c   : > { %2818 = vst [vmem:[#allocation2 + $0x278] sm:$0xff] %v2690_v28  ;;  %v2262_v40 = vmul.f32 %v1888_v35, %v12122_v18  ;;  %v2263_v12 = vmul.f32 %v1888_v35, %v12123_v19  ;;  %v2264_v37 = vmul.f32 %v1888_v35, %v12124_v39  ;;  %v1920_v9 = vmul.f32 %v10192_v56, %v10149_v54  ;;  %v1238_v13 = vpop.xlane.xlu0 %1237  ;;  %v12128_v18 = vld [vmem:[#allocation172_spill] sm:$0xff] }
 0x20d   : > { %v2699_v8 = vpack.c.bf16 %v2532_v44, %v2531_v4  ;;  %v2527_v0 = vmul.f32 %v8972_v61, %v2261_v33  ;;  %v2700_v31 = vpack.c.bf16 %v2534_v41, %v2533_v7  ;;  %v1873_v29 = vsub.f32 1.5, %v1872_v17  ;;  %v12125_v4 = vld [vmem:[#allocation169_spill] sm:$0xff]  ;;  %v12126_v7 = vld [vmem:[#allocation170_spill] sm:$0xff]  ;;  %v12127_v33 = vld [vmem:[#allocation171_spill] sm:$0xff] }
 0x20e   : > { %v2528_v5 = vmul.f32 %v8979_v38, %v2262_v40  ;;  %v2529_v20 = vmul.f32 %v8981_v16, %v2263_v12  ;;  %v2530_v22 = vmul.f32 %v9011_v42, %v2264_v37  ;;  %vm1876_vm5 = vweird.f32 %v10165_v47 }
 0x20f   : > { %2827 = vst [vmem:[#allocation2 + $0x2c0] sm:$0xff] %v2699_v8  ;;  %v1921_v3 = vmul.f32 %v10192_v56, %v1920_v9  ;;  %v10213_v60 = vadd.f32 1e-06, %v1367_v24  ;;  %v1366_v52 = vmul.f32 %v11942_v10, %v1223_v63  ;;  %v1371_v23 = vmul.f32 %v11942_v10, %v1248_v30  ;;  %vm1877_vm7 = vmor %vm1875_vm6, %vm1876_vm5  ;;  %v1263_v63 = vpop.xlane.xlu2 %1262 }
 0x210   : > { %2828 = vst [vmem:[#allocation2 + $0x2c8] sm:$0xff] %v2700_v31  ;;  %v2697_v2 = vpack.c.bf16 %v2528_v5, %v2527_v0  ;;  %v2698_v21 = vpack.c.bf16 %v2530_v22, %v2529_v20  ;;  %v1874_v28 = vmul.f32 %v10165_v47, %v1873_v29  ;;  %vm1925_vm8 = vweird.f32 %v10149_v54  ;;  %v1258_v8 = vpop.xlane.xlu1 %1257  ;;  %v12129_v22 = vld [vmem:[#allocation173_spill] sm:$0xff]  ;;  %v12132_v54 = vld [vmem:[#allocation176_spill] sm:$0xff] }
 0x211   : > { %v1922_v25 = vmul.f32 0.5, %v1921_v3  ;;  %7680 = vrsqrt.f32 %v10213_v60  ;;  %vm1926_vm9 = vweird.f32 %v10192_v56  ;;  %v10222_v24 = vadd.f32 1e-06, %v1366_v52  ;;  %v12130_v3 = vld [vmem:[#allocation174_spill] sm:$0xff] }
 0x212   : > { %2825 = vst [vmem:[#allocation2 + $0x2b0] sm:$0xff] %v2697_v2  ;;  %v10224_v50 = vadd.f32 1e-06, %v1371_v23  ;;  %v1878_v30 = vsel %vm1877_vm7, %v10165_v47, %v1874_v28  ;;  %v1370_v46 = vmul.f32 %v11942_v10, %v1243_v6  ;;  %v1369_v26 = vmul.f32 %v11942_v10, %v1238_v13  ;;  %vm1927_vm10 = vmor %vm1925_vm8, %vm1926_vm9 }
 0x213   : > { %2826 = vst [vmem:[#allocation2 + $0x2b8] sm:$0xff] %v2698_v21  ;;  %v1923_v35 = vsub.f32 1.5, %v1922_v25  ;;  %v2257_v44 = vmul.f32 %v1878_v30, %v12125_v4  ;;  %v2258_v11 = vmul.f32 %v1878_v30, %v12126_v7  ;;  %v2259_v41 = vmul.f32 %v1878_v30, %v12127_v33  ;;  %v12131_v21 = vld [vmem:[#allocation175_spill] sm:$0xff] }
 0x214   : > { %v2260_v40 = vmul.f32 %v1878_v30, %v12128_v18  ;;  %7682 = vrsqrt.f32 %v10222_v24  ;;  %v1374_v12 = vmul.f32 %v11942_v10, %v1263_v63  ;;  %v10246_v9 = vadd.f32 1e-06, %v1370_v46 }
 0x215   : > { %v1924_v19 = vmul.f32 %v10192_v56, %v1923_v35  ;;  %v2523_v47 = vmul.f32 %v8972_v61, %v2257_v44  ;;  %v2524_v39 = vmul.f32 %v8979_v38, %v2258_v11  ;;  %v2525_v37 = vmul.f32 %v8981_v16, %v2259_v41 }
 0x216   : > { %v2526_v6 = vmul.f32 %v9011_v42, %v2260_v40  ;;  %7684 = vrsqrt.f32 %v10224_v50  ;;  %v10248_v31 = vadd.f32 1e-06, %v1369_v26  ;;  %v1253_v26 = vpop.xlane.xlu0 %1252  ;;  %vm1915_vm11 = vweird.f32 %v10213_v60 }
 0x217   : > { %v7681_v0 = vpop.eup %7680  ;;  %v1928_v17 = vsel %vm1927_vm10, %v10192_v56, %v1924_v19  ;;  %v2695_v5 = vpack.c.bf16 %v2524_v39, %v2523_v47  ;;  %v1373_v56 = vmul.f32 %v11942_v10, %v1258_v8  ;;  %7686 = vrsqrt.f32 %v10246_v9 }
 0x218   : > { %v2696_v20 = vpack.c.bf16 %v2526_v6, %v2525_v37  ;;  %v2277_v29 = vmul.f32 %v1928_v17, %v12129_v22  ;;  %v2278_v2 = vmul.f32 %v1928_v17, %v12130_v3  ;;  %v2279_v52 = vmul.f32 %v1928_v17, %v12131_v21 }
 0x219   : > { %v2280_v23 = vmul.f32 %v1928_v17, %v12132_v54  ;;  %v1910_v13 = vmul.f32 %v7681_v0, %v10213_v60  ;;  %2823 = vst [vmem:[#allocation2 + $0x2a0] sm:$0xff] %v2695_v5  ;;  %7688 = vrsqrt.f32 %v10248_v31  ;;  %v10266_v41 = vadd.f32 1e-06, %v1374_v12  ;;  %v1278_v17 = vpop.xlane.xlu2 %1277 }
 0x21a   : > { %v2543_v28 = vmul.f32 %v8972_v61, %v2277_v29  ;;  %v2544_v25 = vmul.f32 %v8979_v38, %v2278_v2  ;;  %v7683_v63 = vpop.eup %7682  ;;  %2824 = vst [vmem:[#allocation2 + $0x2a8] sm:$0xff] %v2696_v20  ;;  %v2545_v30 = vmul.f32 %v8981_v16, %v2279_v52  ;;  %v10268_v18 = vadd.f32 1e-06, %v1373_v56  ;;  %v12134_v56 = vld [vmem:[#allocation178_spill] sm:$0xff] }
 0x21b   : > { %v2546_v35 = vmul.f32 %v9011_v42, %v2280_v23  ;;  %v1911_v46 = vmul.f32 %v7681_v0, %v1910_v13  ;;  %v1900_v44 = vmul.f32 %v7683_v63, %v10222_v24  ;;  %vm1905_vm12 = vweird.f32 %v10222_v24  ;;  %v12133_v23 = vld [vmem:[#allocation177_spill] sm:$0xff] }
 0x21c   : > { %v2705_v4 = vpack.c.bf16 %v2544_v25, %v2543_v28  ;;  %v10264_v7 = vpop.eup %7684  ;;  %v1372_v47 = vmul.f32 %v11942_v10, %v1253_v26  ;;  %vm1916_vm13 = vweird.f32 %v7681_v0  ;;  %vm1906_vm14 = vweird.f32 %v7683_v63  ;;  %v12135_v28 = vld [vmem:[#allocation179_spill] sm:$0xff] }
 0x21d   : > { %v2706_v11 = vpack.c.bf16 %v2546_v35, %v2545_v30  ;;  %v1912_v33 = vmul.f32 0.5, %v1911_v46  ;;  %v1901_v40 = vmul.f32 %v7683_v63, %v1900_v44  ;;  %v1950_v19 = vmul.f32 %v10264_v7, %v10224_v50  ;;  %v10275_v37 = vpop.eup %7686  ;;  %vm1917_vm2 = vmor %vm1915_vm11, %vm1916_vm13  ;;  %v12136_v30 = vld [vmem:[#allocation180_spill] sm:$0xff] }
 0x21e   : > { %2833 = vst [vmem:[#allocation2 + $0x2f0] sm:$0xff] %v2705_v4  ;;  %vm1955_vm15 = vweird.f32 %v10224_v50  ;;  %vm1945_vm0 = vweird.f32 %v10246_v9  ;;  %7690 = vrsqrt.f32 %v10266_v41  ;;  %v10280_v8 = vadd.f32 1e-06, %v1372_v47  ;;  %vm1907_vm4 = vmor %vm1905_vm12, %vm1906_vm14 }
 0x21f   : > { %2834 = vst [vmem:[#allocation2 + $0x2f8] sm:$0xff] %v2706_v11  ;;  %v1913_v39 = vsub.f32 1.5, %v1912_v33  ;;  %v1902_v12 = vmul.f32 0.5, %v1901_v40  ;;  %v1951_v6 = vmul.f32 %v10264_v7, %v1950_v19  ;;  %v10282_v5 = vpop.eup %7688  ;;  %vm1956_vm1 = vweird.f32 %v10264_v7 }
 0x220   : > { %v1940_v22 = vmul.f32 %v10275_v37, %v10246_v9  ;;  %7692 = vrsqrt.f32 %v10268_v18  ;;  %vm1946_vm3 = vweird.f32 %v10275_v37  ;;  %v1930_v2 = vmul.f32 %v10282_v5, %v10248_v31  ;;  %vm1957_vm6 = vmor %vm1955_vm15, %vm1956_vm1  ;;  %v12146_v9 = vld [vmem:[#allocation191_spill] sm:$0xff] }
 0x221   : > { %v1914_v20 = vmul.f32 %v7681_v0, %v1913_v39  ;;  %v1903_v29 = vsub.f32 1.5, %v1902_v12  ;;  %v1952_v3 = vmul.f32 0.5, %v1951_v6  ;;  %7694 = vrsqrt.f32 %v10280_v8  ;;  %vm1947_vm8 = vmor %vm1945_vm0, %vm1946_vm3 }
 0x222   : > { %v1941_v52 = vmul.f32 %v10275_v37, %v1940_v22  ;;  %v10297_v54 = vmul.f32 %v11942_v10, %v1278_v17  ;;  %vm1936_vm5 = vweird.f32 %v10282_v5  ;;  %vm1935_vm7 = vweird.f32 %v10248_v31 }
 0x223   : > { %v1918_v21 = vsel %vm1917_vm2, %v7681_v0, %v1914_v20  ;;  %v1904_v46 = vmul.f32 %v7683_v63, %v1903_v29  ;;  %v1953_v26 = vsub.f32 1.5, %v1952_v3  ;;  %v1931_v0 = vmul.f32 %v10282_v5, %v1930_v2  ;;  %v12137_v29 = vld [vmem:[#allocation181_spill] sm:$0xff]  ;;  %v12138_v2 = vld [vmem:[#allocation182_spill] sm:$0xff]  ;;  %vm1937_vm12 = vmor %vm1935_vm7, %vm1936_vm5 }
 0x224   : > { %v2273_v13 = vmul.f32 %v1918_v21, %v12133_v23  ;;  %v2274_v60 = vmul.f32 %v1918_v21, %v12134_v56  ;;  %v2275_v25 = vmul.f32 %v1918_v21, %v12135_v28  ;;  %v2276_v35 = vmul.f32 %v1918_v21, %v12136_v30  ;;  %v10304_v44 = vpop.eup %7690  ;;  %v12140_v23 = vld [vmem:[#allocation184_spill] sm:$0xff]  ;;  %v12141_v30 = vld [vmem:[#allocation185_spill] sm:$0xff] }
 0x225   : > { %v1942_v4 = vmul.f32 0.5, %v1941_v52  ;;  %v1908_v39 = vsel %vm1907_vm4, %v7683_v63, %v1904_v46  ;;  %v1954_v12 = vmul.f32 %v10264_v7, %v1953_v26  ;;  %v1932_v17 = vmul.f32 0.5, %v1931_v0  ;;  %v12139_v63 = vld [vmem:[#allocation183_spill] sm:$0xff]  ;;  %v10334_v26 = vpop.xlane.xlu0 %1267 }
 0x226   : > { %v2539_v11 = vmul.f32 %v8972_v61, %v2273_v13  ;;  %v2540_v33 = vmul.f32 %v8979_v38, %v2274_v60  ;;  %v2541_v40 = vmul.f32 %v8981_v16, %v2275_v25  ;;  %v2542_v19 = vmul.f32 %v9011_v42, %v2276_v35  ;;  %v10313_v47 = vpop.eup %7692  ;;  %v12142_v35 = vld [vmem:[#allocation186_spill] sm:$0xff]  ;;  %v12143_v0 = vld [vmem:[#allocation187_spill] sm:$0xff] }
 0x227   : > { %v1943_v6 = vsub.f32 1.5, %v1942_v4  ;;  %v2269_v3 = vmul.f32 %v1908_v39, %v12137_v29  ;;  %v2270_v21 = vmul.f32 %v1908_v39, %v12138_v2  ;;  %v10323_v24 = vpop.eup %7694  ;;  %v2271_v52 = vmul.f32 %v1908_v39, %v12139_v63 }
 0x228   : > { %v2703_v20 = vpack.c.bf16 %v2540_v33, %v2539_v11  ;;  %v2704_v22 = vpack.c.bf16 %v2542_v19, %v2541_v40  ;;  %v2272_v13 = vmul.f32 %v1908_v39, %v12140_v23  ;;  %v1958_v56 = vsel %vm1957_vm6, %v10264_v7, %v1954_v12  ;;  %v12144_v33 = vld [vmem:[#allocation188_spill] sm:$0xff] }
 0x229   : > { %v1944_v60 = vmul.f32 %v10275_v37, %v1943_v6  ;;  %v2535_v28 = vmul.f32 %v8972_v61, %v2269_v3  ;;  %v2536_v25 = vmul.f32 %v8979_v38, %v2270_v21  ;;  %v2289_v50 = vmul.f32 %v1958_v56, %v12141_v30  ;;  %v12145_v3 = vld [vmem:[#allocation189_spill] sm:$0xff] }
 0x22a   : > { %2831 = vst [vmem:[#allocation2 + $0x2e0] sm:$0xff] %v2703_v20  ;;  %v2290_v46 = vmul.f32 %v1958_v56, %v12142_v35  ;;  %v2537_v4 = vmul.f32 %v8981_v16, %v2271_v52  ;;  %v2538_v7 = vmul.f32 %v9011_v42, %v2272_v13  ;;  %v2291_v11 = vmul.f32 %v1958_v56, %v12143_v0  ;;  %v12147_v52 = vld [vmem:[#allocation192_spill] sm:$0xff]  ;;  %v12148_v13 = vld [vmem:[#allocation193_spill] sm:$0xff] }
 0x22b   : > { %2832 = vst [vmem:[#allocation2 + $0x2e8] sm:$0xff] %v2704_v22  ;;  %v2292_v40 = vmul.f32 %v1958_v56, %v12144_v33  ;;  %v2701_v19 = vpack.c.bf16 %v2536_v25, %v2535_v28  ;;  %v2555_v39 = vmul.f32 %v8972_v61, %v2289_v50  ;;  %v1948_v6 = vsel %vm1947_vm8, %v10275_v37, %v1944_v60  ;;  %v1273_v33 = vpop.xlane.xlu1 %1272 }
 0x22c   : > { %v2556_v12 = vmul.f32 %v8979_v38, %v2290_v46  ;;  %v2702_v20 = vpack.c.bf16 %v2538_v7, %v2537_v4  ;;  %v2557_v22 = vmul.f32 %v8981_v16, %v2291_v11  ;;  %v2285_v2 = vmul.f32 %v1948_v6, %v12145_v3 }
 0x22d   : > { %v2558_v29 = vmul.f32 %v9011_v42, %v2292_v40  ;;  %vm1985_vm9 = vweird.f32 %v10266_v41  ;;  %2829 = vst [vmem:[#allocation2 + $0x2d0] sm:$0xff] %v2701_v19  ;;  %v2286_v63 = vmul.f32 %v1948_v6, %v12146_v9  ;;  %v2287_v23 = vmul.f32 %v1948_v6, %v12147_v52  ;;  %v10383_v9 = vpop.xlane.xlu0 %1282 }
 0x22e   : > { %v2711_v21 = vpack.c.bf16 %v2556_v12, %v2555_v39  ;;  %v2288_v56 = vmul.f32 %v1948_v6, %v12148_v13  ;;  %2830 = vst [vmem:[#allocation2 + $0x2d8] sm:$0xff] %v2702_v20  ;;  %v2551_v37 = vmul.f32 %v8972_v61, %v2285_v2  ;;  %v1933_v60 = vsub.f32 1.5, %v1932_v17  ;;  %v12149_v6 = vld [vmem:[#allocation194_spill] sm:$0xff]  ;;  %v12152_v2 = vld [vmem:[#allocation197_spill] sm:$0xff] }
 0x22f   : > { %v2712_v28 = vpack.c.bf16 %v2558_v29, %v2557_v22  ;;  %v1980_v25 = vmul.f32 %v10304_v44, %v10266_v41  ;;  %v2552_v30 = vmul.f32 %v8979_v38, %v2286_v63  ;;  %v2553_v50 = vmul.f32 %v8981_v16, %v2287_v23  ;;  %v12150_v22 = vld [vmem:[#allocation195_spill] sm:$0xff]  ;;  %v12151_v29 = vld [vmem:[#allocation196_spill] sm:$0xff] }
 0x230   : > { %2839 = vst [vmem:[#allocation2 + $0x320] sm:$0xff] %v2711_v21  ;;  %v2554_v35 = vmul.f32 %v9011_v42, %v2288_v56  ;;  %vm1975_vm10 = vweird.f32 %v10268_v18  ;;  %v1934_v46 = vmul.f32 %v10282_v5, %v1933_v60  ;;  %vm1986_vm11 = vweird.f32 %v10304_v44 }
 0x231   : > { %2840 = vst [vmem:[#allocation2 + $0x328] sm:$0xff] %v2712_v28  ;;  %v1981_v4 = vmul.f32 %v10304_v44, %v1980_v25  ;;  %v1970_v17 = vmul.f32 %v10313_v47, %v10268_v18  ;;  %v2709_v7 = vpack.c.bf16 %v2552_v30, %v2551_v37  ;;  %vm1976_vm13 = vweird.f32 %v10313_v47  ;;  %v1293_v28 = vpop.xlane.xlu2 %1292  ;;  %vm1987_vm0 = vmor %vm1985_vm9, %vm1986_vm11 }
 0x232   : > { %v2710_v0 = vpack.c.bf16 %v2554_v35, %v2553_v50  ;;  %v1960_v11 = vmul.f32 %v10323_v24, %v10280_v8  ;;  %v1938_v40 = vsel %vm1937_vm12, %v10282_v5, %v1934_v46  ;;  %v10376_v12 = vadd.f32 1e-06, %v10297_v54  ;;  %vm1977_vm1 = vmor %vm1975_vm10, %vm1976_vm13 }
 0x233   : > { %v1982_v19 = vmul.f32 0.5, %v1981_v4  ;;  %v1971_v39 = vmul.f32 %v10313_v47, %v1970_v17  ;;  %2837 = vst [vmem:[#allocation2 + $0x310] sm:$0xff] %v2709_v7  ;;  %v2281_v20 = vmul.f32 %v1938_v40, %v12149_v6  ;;  %v2282_v31 = vmul.f32 %v1938_v40, %v12150_v22  ;;  %v1288_v6 = vpop.xlane.xlu1 %1287 }
 0x234   : > { %v2283_v3 = vmul.f32 %v1938_v40, %v12151_v29  ;;  %v2284_v21 = vmul.f32 %v1938_v40, %v12152_v2  ;;  %vm1965_vm14 = vweird.f32 %v10280_v8  ;;  %2838 = vst [vmem:[#allocation2 + $0x318] sm:$0xff] %v2710_v0  ;;  %v1961_v52 = vmul.f32 %v10323_v24, %v1960_v11 }
 0x235   : > { %v1983_v5 = vsub.f32 1.5, %v1982_v19  ;;  %v1972_v63 = vmul.f32 0.5, %v1971_v39  ;;  %7696 = vrsqrt.f32 %v10376_v12  ;;  %v2547_v54 = vmul.f32 %v8972_v61, %v2281_v20 }
 0x236   : > { %v2548_v23 = vmul.f32 %v8979_v38, %v2282_v31  ;;  %v2549_v13 = vmul.f32 %v8981_v16, %v2283_v3  ;;  %v2550_v56 = vmul.f32 %v9011_v42, %v2284_v21  ;;  %v1962_v25 = vmul.f32 0.5, %v1961_v52 }
 0x237   : > { %v1984_v37 = vmul.f32 %v10304_v44, %v1983_v5  ;;  %v1973_v60 = vsub.f32 1.5, %v1972_v63  ;;  %vm1966_vm15 = vweird.f32 %v10323_v24  ;;  %v1376_v35 = vmul.f32 %v11942_v10, %v1273_v33  ;;  %v1298_v5 = vpop.xlane.xlu0 %1297 }
 0x238   : > { %v2707_v30 = vpack.c.bf16 %v2548_v23, %v2547_v54  ;;  %v2708_v50 = vpack.c.bf16 %v2550_v56, %v2549_v13  ;;  %v1375_v46 = vmul.f32 %v11942_v10, %v10334_v26  ;;  %v1963_v7 = vsub.f32 1.5, %v1962_v25  ;;  %vm1967_vm2 = vmor %vm1965_vm14, %vm1966_vm15 }
 0x239   : > { %v1988_v4 = vsel %vm1987_vm0, %v10304_v44, %v1984_v37  ;;  %v1974_v17 = vmul.f32 %v10313_v47, %v1973_v60  ;;  %v1380_v0 = vmul.f32 %v11942_v10, %v1293_v28  ;;  %v10415_v39 = vadd.f32 1e-06, %v1376_v35  ;;  %v1308_v35 = vpop.xlane.xlu2 %1307 }
 0x23a   : > { %2835 = vst [vmem:[#allocation2 + $0x300] sm:$0xff] %v2707_v30  ;;  %v2301_v11 = vmul.f32 %v1988_v4, %v9142_v1  ;;  %v2302_v40 = vmul.f32 %v1988_v4, %v9145_v57  ;;  %v2303_v41 = vmul.f32 %v1988_v4, %v9147_v48  ;;  %v2304_v19 = vmul.f32 %v1988_v4, %v9149_v15 }
 0x23b   : > { %v10411_v44 = vpop.eup %7696  ;;  %2836 = vst [vmem:[#allocation2 + $0x308] sm:$0xff] %v2708_v50  ;;  %v1978_v26 = vsel %vm1977_vm1, %v10313_v47, %v1974_v17  ;;  %v1964_v33 = vmul.f32 %v10323_v24, %v1963_v7  ;;  %v10417_v1 = vadd.f32 1e-06, %v1375_v46  ;;  %vm2015_vm3 = vweird.f32 %v10376_v12  ;;  %v1303_v46 = vpop.xlane.xlu1 %1302 }
 0x23c   : > { %v2567_v57 = vmul.f32 %v8972_v61, %v2301_v11  ;;  %v2568_v48 = vmul.f32 %v8979_v38, %v2302_v40  ;;  %v2569_v15 = vmul.f32 %v8981_v16, %v2303_v41  ;;  %v2570_v18 = vmul.f32 %v9011_v42, %v2304_v19 }
 0x23d   : > { %v2297_v20 = vmul.f32 %v1978_v26, %v9186_v55  ;;  %v2298_v22 = vmul.f32 %v1978_v26, %v9191_v49  ;;  %v2299_v47 = vmul.f32 %v1978_v26, %v9195_v32  ;;  %v2300_v31 = vmul.f32 %v1978_v26, %v9197_v53 }
 0x23e   : > { %v2717_v29 = vpack.c.bf16 %v2568_v48, %v2567_v57  ;;  %v2718_v3 = vpack.c.bf16 %v2570_v18, %v2569_v15  ;;  %v1968_v2 = vsel %vm1967_vm2, %v10323_v24, %v1964_v33  ;;  %v2010_v21 = vmul.f32 %v10411_v44, %v10376_v12 }
 0x23f   : > { %v2563_v55 = vmul.f32 %v8972_v61, %v2297_v20  ;;  %v2564_v49 = vmul.f32 %v8979_v38, %v2298_v22  ;;  %v2565_v32 = vmul.f32 %v8981_v16, %v2299_v47  ;;  %v2566_v53 = vmul.f32 %v9011_v42, %v2300_v31 }
 0x240   : > { %2845 = vst [vmem:[#allocation2 + $0x350] sm:$0xff] %v2717_v29  ;;  %v2293_v8 = vmul.f32 %v1968_v2, %v9207_v62  ;;  %v2294_v63 = vmul.f32 %v1968_v2, %v9209_v34  ;;  %v2295_v52 = vmul.f32 %v1968_v2, %v9211_v14  ;;  %v2296_v24 = vmul.f32 %v1968_v2, %v9214_v43 }
 0x241   : > { %2846 = vst [vmem:[#allocation2 + $0x358] sm:$0xff] %v2718_v3  ;;  %v2715_v54 = vpack.c.bf16 %v2564_v49, %v2563_v55  ;;  %v2716_v23 = vpack.c.bf16 %v2566_v53, %v2565_v32  ;;  %v2011_v13 = vmul.f32 %v10411_v44, %v2010_v21  ;;  %7698 = vrsqrt.f32 %v10415_v39 }
 0x242   : > { %v2559_v56 = vmul.f32 %v8972_v61, %v2293_v8  ;;  %v2560_v28 = vmul.f32 %v8979_v38, %v2294_v63  ;;  %v2561_v37 = vmul.f32 %v8981_v16, %v2295_v52  ;;  %v2562_v60 = vmul.f32 %v9011_v42, %v2296_v24 }
 0x243   : > { %2843 = vst [vmem:[#allocation2 + $0x340] sm:$0xff] %v2715_v54  ;;  %v2012_v62 = vmul.f32 0.5, %v2011_v13  ;;  %7700 = vrsqrt.f32 %v10417_v1  ;;  %v10450_v43 = vadd.f32 1e-06, %v1380_v0  ;;  %vm2016_vm4 = vweird.f32 %v10411_v44  ;;  %v1313_v0 = vpop.xlane.xlu0 %1312 }
 0x244   : > { %2844 = vst [vmem:[#allocation2 + $0x348] sm:$0xff] %v2716_v23  ;;  %v2713_v34 = vpack.c.bf16 %v2560_v28, %v2559_v56  ;;  %v2714_v14 = vpack.c.bf16 %v2562_v60, %v2561_v37  ;;  %v1379_v30 = vmul.f32 %v11942_v10, %v1288_v6  ;;  %v1378_v50 = vmul.f32 %v11942_v10, %v10383_v9  ;;  %vm2017_vm5 = vmor %vm2015_vm3, %vm2016_vm4 }
 0x245   : > { %v2013_v25 = vsub.f32 1.5, %v2012_v62  ;;  %7702 = vrsqrt.f32 %v10450_v43  ;;  %vm2005_vm6 = vweird.f32 %v10415_v39  ;;  %v1383_v7 = vmul.f32 %v11942_v10, %v1308_v35 }
 0x246   : > { %2841 = vst [vmem:[#allocation2 + $0x330] sm:$0xff] %v2713_v34  ;;  %v10458_v17 = vadd.f32 1e-06, %v1379_v30  ;;  %v10466_v40 = vadd.f32 1e-06, %v1378_v50  ;;  %v1382_v41 = vmul.f32 %v11942_v10, %v1303_v46  ;;  %vm1995_vm7 = vweird.f32 %v10417_v1  ;;  %v12154_v30 = vld [vmem:[#allocation20_spill] sm:$0xff] }
 0x247   : > { %2842 = vst [vmem:[#allocation2 + $0x338] sm:$0xff] %v2714_v14  ;;  %v2014_v4 = vmul.f32 %v10411_v44, %v2013_v25  ;;  %v7699_v11 = vpop.eup %7698  ;;  %v1384_v18 = vmul.f32 %v11942_v10, %v1313_v0  ;;  %v10486_v31 = vadd.f32 1e-06, %v1383_v7  ;;  %vm2045_vm10 = vweird.f32 %v10450_v43  ;;  %v12155_v46 = vld [vmem:[#allocation190_spill] sm:$0xff]  ;;  %v12156_v7 = vld [vmem:[#allocation21_spill] sm:$0xff] }
 0x248   : > { %7704 = vrsqrt.f32 %v10458_v17  ;;  %v2000_v48 = vmul.f32 %v7699_v11, %v10415_v39  ;;  %vm2006_vm8 = vweird.f32 %v7699_v11  ;;  %vm2035_vm11 = vweird.f32 %v10458_v17 }
 0x249   : > { %v2018_v9 = vsel %vm2017_vm5, %v10411_v44, %v2014_v4  ;;  %v7701_v19 = vpop.eup %7700  ;;  %v1381_v44 = vmul.f32 %v11942_v10, %v1298_v5  ;;  %7706 = vrsqrt.f32 %v10466_v40  ;;  %v10489_v10 = vadd.f32 1e-06, %v1382_v41  ;;  %vm2007_vm12 = vmor %vm2005_vm6, %vm2006_vm8  ;;  %v12158_v41 = vld [vmem:[#allocation23_spill] sm:$0xff] }
 0x24a   : > { %v2313_v26 = vmul.f32 %v2018_v9, %v9257_v58  ;;  %v2314_v12 = vmul.f32 %v2018_v9, %v9259_v59  ;;  %v2315_v33 = vmul.f32 %v2018_v9, %v9265_v45  ;;  %v2316_v57 = vmul.f32 %v2018_v9, %v9267_v51 }
 0x24b   : > { %v1990_v15 = vmul.f32 %v7701_v19, %v10417_v1  ;;  %v10478_v6 = vpop.eup %7702  ;;  %v2001_v20 = vmul.f32 %v7699_v11, %v2000_v48  ;;  %v10494_v49 = vadd.f32 1e-06, %v1381_v44  ;;  %vm1996_vm9 = vweird.f32 %v7701_v19  ;;  %v12153_v1 = vld [vmem:[#allocation19_spill] sm:$0xff] }
 0x24c   : > { %v2579_v58 = vmul.f32 %v8972_v61, %v2313_v26  ;;  %v2580_v59 = vmul.f32 %v8979_v38, %v2314_v12  ;;  %v2581_v45 = vmul.f32 %v8981_v16, %v2315_v33  ;;  %v2582_v51 = vmul.f32 %v9011_v42, %v2316_v57  ;;  %vm1997_vm13 = vmor %vm1995_vm7, %vm1996_vm9 }
 0x24d   : > { %v1991_v22 = vmul.f32 %v7701_v19, %v1990_v15  ;;  %v2040_v47 = vmul.f32 %v10478_v6, %v10450_v43  ;;  %v2002_v21 = vmul.f32 0.5, %v2001_v20  ;;  %7708 = vrsqrt.f32 %v10486_v31  ;;  %v12162_v43 = vld [vmem:[#allocation27_spill] sm:$0xff] }
 0x24e   : > { %v2723_v29 = vpack.c.bf16 %v2580_v59, %v2579_v58  ;;  %v2724_v3 = vpack.c.bf16 %v2582_v51, %v2581_v45  ;;  %v10491_v2 = vpop.eup %7704  ;;  %7710 = vrsqrt.f32 %v10489_v10  ;;  %v10503_v24 = vadd.f32 1e-06, %v1384_v18 }
 0x24f   : > { %v1992_v5 = vmul.f32 0.5, %v1991_v22  ;;  %v2041_v55 = vmul.f32 %v10478_v6, %v2040_v47  ;;  %v2030_v32 = vmul.f32 %v10491_v2, %v10458_v17  ;;  %v2003_v53 = vsub.f32 1.5, %v2002_v21  ;;  %v10508_v56 = vpop.eup %7706  ;;  %v12160_v21 = vld [vmem:[#allocation25_spill] sm:$0xff] }
 0x250   : > { %2851 = vst [vmem:[#allocation2 + $0x380] sm:$0xff] %v2723_v29  ;;  %7712 = vrsqrt.f32 %v10494_v49  ;;  %vm2046_vm14 = vweird.f32 %v10478_v6  ;;  %vm2036_vm15 = vweird.f32 %v10491_v2  ;;  %v2020_v62 = vmul.f32 %v10508_v56, %v10466_v40  ;;  %v12159_v29 = vld [vmem:[#allocation24_spill] sm:$0xff] }
 0x251   : > { %2852 = vst [vmem:[#allocation2 + $0x388] sm:$0xff] %v2724_v3  ;;  %v1993_v8 = vsub.f32 1.5, %v1992_v5  ;;  %v2042_v63 = vmul.f32 0.5, %v2041_v55  ;;  %v2031_v52 = vmul.f32 %v10491_v2, %v2030_v32  ;;  %v2004_v54 = vmul.f32 %v7699_v11, %v2003_v53  ;;  %vm2047_vm0 = vmor %vm2045_vm10, %vm2046_vm14  ;;  %v12161_v55 = vld [vmem:[#allocation26_spill] sm:$0xff] }
 0x252   : > { %7714 = vrsqrt.f32 %v10503_v24  ;;  %vm2025_vm1 = vweird.f32 %v10466_v40  ;;  %vm2075_vm2 = vweird.f32 %v10486_v31  ;;  %vm2037_vm3 = vmor %vm2035_vm11, %vm2036_vm15  ;;  %vm2026_vm4 = vweird.f32 %v10508_v56  ;;  %v12168_v40 = vld [vmem:[#allocation33_spill] sm:$0xff] }
 0x253   : > { %v1994_v23 = vmul.f32 %v7701_v19, %v1993_v8  ;;  %v2043_v13 = vsub.f32 1.5, %v2042_v63  ;;  %v2032_v28 = vmul.f32 0.5, %v2031_v52  ;;  %v2008_v37 = vsel %vm2007_vm12, %v7699_v11, %v2004_v54  ;;  %v10523_v35 = vpop.eup %7708  ;;  %v12157_v11 = vld [vmem:[#allocation22_spill] sm:$0xff]  ;;  %vm2027_vm7 = vmor %vm2025_vm1, %vm2026_vm4 }
 0x254   : > { %v2309_v34 = vmul.f32 %v2008_v37, %v9279_v27  ;;  %v2310_v14 = vmul.f32 %v2008_v37, %v9281_v36  ;;  %v2311_v25 = vmul.f32 %v2008_v37, %v12153_v1  ;;  %v2312_v50 = vmul.f32 %v2008_v37, %v12154_v30  ;;  %v10529_v26 = vpop.eup %7710  ;;  %v12166_v30 = vld [vmem:[#allocation31_spill] sm:$0xff] }
 0x255   : > { %v1998_v39 = vsel %vm1997_vm13, %v7701_v19, %v1994_v23  ;;  %v2044_v60 = vmul.f32 %v10478_v6, %v2043_v13  ;;  %v2033_v20 = vsub.f32 1.5, %v2032_v28  ;;  %v2021_v63 = vmul.f32 %v10508_v56, %v2020_v62 }
 0x256   : > { %v2305_v4 = vmul.f32 %v1998_v39, %v12155_v46  ;;  %v2306_v0 = vmul.f32 %v1998_v39, %v12156_v7  ;;  %v2307_v9 = vmul.f32 %v1998_v39, %v12157_v11  ;;  %v2308_v19 = vmul.f32 %v1998_v39, %v12158_v41  ;;  %v10535_v57 = vpop.eup %7712 }
 0x257   : > { %v2575_v27 = vmul.f32 %v8972_v61, %v2309_v34  ;;  %v2576_v36 = vmul.f32 %v8979_v38, %v2310_v14  ;;  %v2577_v12 = vmul.f32 %v8981_v16, %v2311_v25  ;;  %v2578_v33 = vmul.f32 %v9011_v42, %v2312_v50  ;;  %v12164_v34 = vld [vmem:[#allocation29_spill] sm:$0xff]  ;;  %v12165_v14 = vld [vmem:[#allocation30_spill] sm:$0xff] }
 0x258   : > { %v2571_v48 = vmul.f32 %v8972_v61, %v2305_v4  ;;  %v2572_v15 = vmul.f32 %v8979_v38, %v2306_v0  ;;  %v2573_v44 = vmul.f32 %v8981_v16, %v2307_v9  ;;  %v2574_v18 = vmul.f32 %v9011_v42, %v2308_v19  ;;  %v10545_v58 = vpop.eup %7714 }
 0x259   : > { %v2721_v59 = vpack.c.bf16 %v2576_v36, %v2575_v27  ;;  %v2722_v45 = vpack.c.bf16 %v2578_v33, %v2577_v12  ;;  %v2048_v51 = vsel %vm2047_vm0, %v10478_v6, %v2044_v60  ;;  %v2034_v8 = vmul.f32 %v10491_v2, %v2033_v20  ;;  %v12163_v60 = vld [vmem:[#allocation28_spill] sm:$0xff]  ;;  %v12170_v20 = vld [vmem:[#allocation35_spill] sm:$0xff] }
 0x25a   : > { %v2719_v22 = vpack.c.bf16 %v2572_v15, %v2571_v48  ;;  %v2720_v47 = vpack.c.bf16 %v2574_v18, %v2573_v44  ;;  %v2325_v3 = vmul.f32 %v2048_v51, %v12159_v29  ;;  %v2326_v5 = vmul.f32 %v2048_v51, %v12160_v21  ;;  %v12167_v44 = vld [vmem:[#allocation32_spill] sm:$0xff] }
 0x25b   : > { %2849 = vst [vmem:[#allocation2 + $0x370] sm:$0xff] %v2721_v59  ;;  %v2327_v32 = vmul.f32 %v2048_v51, %v12161_v55  ;;  %v2328_v53 = vmul.f32 %v2048_v51, %v12162_v43  ;;  %v2070_v54 = vmul.f32 %v10523_v35, %v10486_v31  ;;  %v2038_v28 = vsel %vm2037_vm3, %v10491_v2, %v2034_v8 }
 0x25c   : > { %2850 = vst [vmem:[#allocation2 + $0x378] sm:$0xff] %v2722_v45  ;;  %v2591_v6 = vmul.f32 %v8972_v61, %v2325_v3  ;;  %v2592_v52 = vmul.f32 %v8979_v38, %v2326_v5  ;;  %v2022_v37 = vmul.f32 0.5, %v2021_v63  ;;  %v2321_v62 = vmul.f32 %v2038_v28, %v12163_v60  ;;  %v12169_v45 = vld [vmem:[#allocation34_spill] sm:$0xff]  ;;  %v12174_v60 = vld [vmem:[#allocation39_spill] sm:$0xff] }
 0x25d   : > { %2847 = vst [vmem:[#allocation2 + $0x360] sm:$0xff] %v2719_v22  ;;  %v2593_v23 = vmul.f32 %v8981_v16, %v2327_v32  ;;  %v2594_v13 = vmul.f32 %v9011_v42, %v2328_v53  ;;  %v2322_v17 = vmul.f32 %v2038_v28, %v12164_v34  ;;  %v2323_v1 = vmul.f32 %v2038_v28, %v12165_v14 }
 0x25e   : > { %2848 = vst [vmem:[#allocation2 + $0x368] sm:$0xff] %v2720_v47  ;;  %v2729_v39 = vpack.c.bf16 %v2592_v52, %v2591_v6  ;;  %v2324_v50 = vmul.f32 %v2038_v28, %v12166_v30  ;;  %v2023_v46 = vsub.f32 1.5, %v2022_v37  ;;  %v2071_v4 = vmul.f32 %v10523_v35, %v2070_v54  ;;  %v12171_v54 = vld [vmem:[#allocation36_spill] sm:$0xff]  ;;  %v12173_v37 = vld [vmem:[#allocation38_spill] sm:$0xff] }
 0x25f   : > { %v2730_v25 = vpack.c.bf16 %v2594_v13, %v2593_v23  ;;  %vm2065_vm5 = vweird.f32 %v10489_v10  ;;  %v2587_v2 = vmul.f32 %v8972_v61, %v2321_v62  ;;  %v2588_v7 = vmul.f32 %v8979_v38, %v2322_v17  ;;  %v12172_v13 = vld [vmem:[#allocation37_spill] sm:$0xff] }
 0x260   : > { %2857 = vst [vmem:[#allocation2 + $0x3b0] sm:$0xff] %v2729_v39  ;;  %v2589_v0 = vmul.f32 %v8981_v16, %v2323_v1  ;;  %vm2076_vm6 = vweird.f32 %v10523_v35  ;;  %v2590_v11 = vmul.f32 %v9011_v42, %v2324_v50  ;;  %v2024_v9 = vmul.f32 %v10508_v56, %v2023_v46 }
 0x261   : > { %2858 = vst [vmem:[#allocation2 + $0x3b8] sm:$0xff] %v2730_v25  ;;  %v2072_v41 = vmul.f32 0.5, %v2071_v4  ;;  %v2060_v19 = vmul.f32 %v10529_v26, %v10489_v10  ;;  %v2727_v27 = vpack.c.bf16 %v2588_v7, %v2587_v2  ;;  %vm2066_vm8 = vweird.f32 %v10529_v26  ;;  %vm2077_vm11 = vmor %vm2075_vm2, %vm2076_vm6  ;;  %v12175_v4 = vld [vmem:[#allocation40_spill] sm:$0xff]  ;;  %v12176_v7 = vld [vmem:[#allocation41_spill] sm:$0xff] }
 0x262   : > { %v2050_v36 = vmul.f32 %v10535_v57, %v10494_v49  ;;  %vm2056_vm9 = vweird.f32 %v10535_v57  ;;  %v2728_v12 = vpack.c.bf16 %v2590_v11, %v2589_v0  ;;  %v2028_v33 = vsel %vm2027_vm7, %v10508_v56, %v2024_v9  ;;  %vm2067_vm12 = vmor %vm2065_vm5, %vm2066_vm8  ;;  %v12177_v11 = vld [vmem:[#allocation42_spill] sm:$0xff] }
 0x263   : > { %v2073_v48 = vsub.f32 1.5, %v2072_v41  ;;  %v2061_v15 = vmul.f32 %v10529_v26, %v2060_v19  ;;  %vm2055_vm10 = vweird.f32 %v10494_v49  ;;  %2855 = vst [vmem:[#allocation2 + $0x3a0] sm:$0xff] %v2727_v27  ;;  %v2317_v18 = vmul.f32 %v2028_v33, %v12167_v44  ;;  %v12178_v41 = vld [vmem:[#allocation43_spill] sm:$0xff]  ;;  %v12180_v49 = vld [vmem:[#allocation45_spill] sm:$0xff] }
 0x264   : > { %v2318_v59 = vmul.f32 %v2028_v33, %v12168_v40  ;;  %v2319_v51 = vmul.f32 %v2028_v33, %v12169_v45  ;;  %v2320_v22 = vmul.f32 %v2028_v33, %v12170_v20  ;;  %2856 = vst [vmem:[#allocation2 + $0x3a8] sm:$0xff] %v2728_v12  ;;  %v2051_v56 = vmul.f32 %v10535_v57, %v2050_v36  ;;  %vm2057_vm14 = vmor %vm2055_vm10, %vm2056_vm9  ;;  %v12181_v40 = vld [vmem:[#allocation46_spill] sm:$0xff]  ;;  %v12182_v45 = vld [vmem:[#allocation47_spill] sm:$0xff] }
 0x265   : > { %v2074_v47 = vmul.f32 %v10523_v35, %v2073_v48  ;;  %v2062_v29 = vmul.f32 0.5, %v2061_v15  ;;  %v2080_v3 = vmul.f32 %v10545_v58, %v10503_v24  ;;  %v2583_v21 = vmul.f32 %v8972_v61, %v2317_v18  ;;  %v12179_v48 = vld [vmem:[#allocation44_spill] sm:$0xff] }
 0x266   : > { %v2584_v5 = vmul.f32 %v8979_v38, %v2318_v59  ;;  %v2585_v55 = vmul.f32 %v8981_v16, %v2319_v51  ;;  %v2586_v32 = vmul.f32 %v9011_v42, %v2320_v22  ;;  %v2052_v8 = vmul.f32 0.5, %v2051_v56 }
 0x267   : > { %v2078_v43 = vsel %vm2077_vm11, %v10523_v35, %v2074_v47  ;;  %v2063_v53 = vsub.f32 1.5, %v2062_v29  ;;  %v2081_v63 = vmul.f32 %v10545_v58, %v2080_v3  ;;  %vm2086_vm13 = vweird.f32 %v10545_v58 }
 0x268   : > { %v2725_v6 = vpack.c.bf16 %v2584_v5, %v2583_v21  ;;  %v2726_v52 = vpack.c.bf16 %v2586_v32, %v2585_v55  ;;  %v2337_v23 = vmul.f32 %v2078_v43, %v12171_v54  ;;  %v2338_v28 = vmul.f32 %v2078_v43, %v12172_v13  ;;  %v12183_v32 = vld [vmem:[#allocation48_spill] sm:$0xff] }
 0x269   : > { %v2339_v39 = vmul.f32 %v2078_v43, %v12173_v37  ;;  %v2340_v62 = vmul.f32 %v2078_v43, %v12174_v60  ;;  %v2064_v34 = vmul.f32 %v10529_v26, %v2063_v53  ;;  %v2053_v31 = vsub.f32 1.5, %v2052_v8  ;;  %v12184_v53 = vld [vmem:[#allocation49_spill] sm:$0xff]  ;;  %v12185_v8 = vld [vmem:[#allocation50_spill] sm:$0xff] }
 0x26a   : > { %2853 = vst [vmem:[#allocation2 + $0x390] sm:$0xff] %v2725_v6  ;;  %v2603_v35 = vmul.f32 %v8972_v61, %v2337_v23  ;;  %v2604_v17 = vmul.f32 %v8979_v38, %v2338_v28  ;;  %v2082_v14 = vmul.f32 0.5, %v2081_v63  ;;  %vm2085_vm15 = vweird.f32 %v10503_v24  ;;  %v12186_v6 = vld [vmem:[#allocation51_spill] sm:$0xff] }
 0x26b   : > { %2854 = vst [vmem:[#allocation2 + $0x398] sm:$0xff] %v2726_v52  ;;  %v2605_v1 = vmul.f32 %v8981_v16, %v2339_v39  ;;  %v2606_v25 = vmul.f32 %v9011_v42, %v2340_v62  ;;  %v2068_v30 = vsel %vm2067_vm12, %v10529_v26, %v2064_v34  ;;  %v2054_v50 = vmul.f32 %v10535_v57, %v2053_v31  ;;  %vm2087_vm0 = vmor %vm2085_vm15, %vm2086_vm13 }
 0x26c   : > { %v2735_v46 = vpack.c.bf16 %v2604_v17, %v2603_v35  ;;  %v2333_v2 = vmul.f32 %v2068_v30, %v12175_v4  ;;  %v2334_v0 = vmul.f32 %v2068_v30, %v12176_v7  ;;  %v2335_v10 = vmul.f32 %v2068_v30, %v12177_v11 }
 0x26d   : > { %v2736_v9 = vpack.c.bf16 %v2606_v25, %v2605_v1  ;;  %v2336_v19 = vmul.f32 %v2068_v30, %v12178_v41  ;;  %v2058_v27 = vsel %vm2057_vm14, %v10535_v57, %v2054_v50  ;;  %v2083_v26 = vsub.f32 1.5, %v2082_v14 }
 0x26e   : > { %2863 = vst [vmem:[#allocation2 + $0x3e0] sm:$0xff] %v2735_v46  ;;  %v2599_v36 = vmul.f32 %v8972_v61, %v2333_v2  ;;  %v2600_v12 = vmul.f32 %v8979_v38, %v2334_v0  ;;  %v2601_v33 = vmul.f32 %v8981_v16, %v2335_v10  ;;  %v2329_v15 = vmul.f32 %v2058_v27, %v12179_v48 }
 0x26f   : > { %2864 = vst [vmem:[#allocation2 + $0x3e8] sm:$0xff] %v2736_v9  ;;  %v2602_v44 = vmul.f32 %v9011_v42, %v2336_v19  ;;  %v2330_v18 = vmul.f32 %v2058_v27, %v12180_v49  ;;  %v2331_v59 = vmul.f32 %v2058_v27, %v12181_v40  ;;  %v2332_v51 = vmul.f32 %v2058_v27, %v12182_v45 }
 0x270   : > { %v2733_v57 = vpack.c.bf16 %v2600_v12, %v2599_v36  ;;  %v2595_v20 = vmul.f32 %v8972_v61, %v2329_v15  ;;  %v2084_v22 = vmul.f32 %v10545_v58, %v2083_v26 }
 0x271   : > { %v2734_v47 = vpack.c.bf16 %v2602_v44, %v2601_v33  ;;  %v2596_v29 = vmul.f32 %v8979_v38, %v2330_v18  ;;  %v2597_v56 = vmul.f32 %v8981_v16, %v2331_v59  ;;  %v2598_v3 = vmul.f32 %v9011_v42, %v2332_v51 }
 0x272   : > { %2861 = vst [vmem:[#allocation2 + $0x3d0] sm:$0xff] %v2733_v57  ;;  %v2088_v21 = vsel %vm2087_vm0, %v10545_v58, %v2084_v22 }
 0x273   : > { %2862 = vst [vmem:[#allocation2 + $0x3d8] sm:$0xff] %v2734_v47  ;;  %v2731_v5 = vpack.c.bf16 %v2596_v29, %v2595_v20  ;;  %v2732_v55 = vpack.c.bf16 %v2598_v3, %v2597_v56  ;;  %v2341_v43 = vmul.f32 %v2088_v21, %v12183_v32  ;;  %v2342_v24 = vmul.f32 %v2088_v21, %v12184_v53 }
 0x274   : > { %v2343_v63 = vmul.f32 %v2088_v21, %v12185_v8  ;;  %v2344_v52 = vmul.f32 %v2088_v21, %v12186_v6 }
 0x275   : > { %2859 = vst [vmem:[#allocation2 + $0x3c0] sm:$0xff] %v2731_v5  ;;  %v2607_v54 = vmul.f32 %v8972_v61, %v2341_v43  ;;  %v2608_v23 = vmul.f32 %v8979_v38, %v2342_v24 }
 0x276   : > { %2860 = vst [vmem:[#allocation2 + $0x3c8] sm:$0xff] %v2732_v55  ;;  %v2609_v13 = vmul.f32 %v8981_v16, %v2343_v63  ;;  %v2610_v58 = vmul.f32 %v9011_v42, %v2344_v52 }
 0x277   : > { %v2737_v28 = vpack.c.bf16 %v2608_v23, %v2607_v54 }
 0x278   : > { %v2738_v37 = vpack.c.bf16 %v2610_v58, %v2609_v13 }
 0x279   : > { %2865 = vst [vmem:[#allocation2 + $0x3f0] sm:$0xff] %v2737_v28 }
 0x27a   : > { %2866 = vst [vmem:[#allocation2 + $0x3f8] sm:$0xff] %v2738_v37 }
 0x27b PF: > { %v6873_v61 = vld [vmem:[%s8140_s16 + $0x38] sm:$0xff]  ;;  %v6872_v39 = vld [vmem:[%s8140_s16 + $0x30] sm:$0xff]  ;;  %v6871_v31 = vld [vmem:[%s8140_s16 + $0x28] sm:$0xff]  ;;  %p6730_p1 = scmp.ge.s32.totalorder %s7956_s21, 4 }
 0x27c   : > { %v6881_v38 = vld [vmem:[%s8140_s16 + $0x78] sm:$0xff]  ;;  %3891 = vmatpush.bf16.msra.mxu0 %v6873_v61  ;;  %v6880_v60 = vld [vmem:[%s8140_s16 + $0x70] sm:$0xff]  ;;  %v6879_v35 = vld [vmem:[%s8140_s16 + $0x68] sm:$0xff]  ;;  %s7977_s24 = smov (!%p6730_p1), 64  }
 0x27d   : > { %v6889_v16 = vld [vmem:[%s8140_s16 + $0xb8] sm:$0xff]  ;;  %4060 = vmatpush.bf16.msra.mxu1 %v6881_v38  ;;  %v6888_v62 = vld [vmem:[%s8140_s16 + $0xb0] sm:$0xff]  ;;  %v6887_v17 = vld [vmem:[%s8140_s16 + $0xa8] sm:$0xff] }
 0x27e   : > { %v6897_v42 = vld [vmem:[%s8140_s16 + $0xf8] sm:$0xff]  ;;  %4229 = vmatpush.bf16.msra.mxu2 %v6889_v16  ;;  %v6896_v34 = vld [vmem:[%s8140_s16 + $0xf0] sm:$0xff]  ;;  %v6895_v14 = vld [vmem:[%s8140_s16 + $0xe8] sm:$0xff] }
 0x27f   : > { %4398 = vmatpush.bf16.msra.mxu3 %v6897_v42  ;;  %v6870_v1 = vld [vmem:[%s8140_s16 + $0x20] sm:$0xff]  ;;  %v6869_v46 = vld [vmem:[%s8140_s16 + $0x18] sm:$0xff]  ;;  %v6868_v0 = vld [vmem:[%s8140_s16 + $0x10] sm:$0xff] }
 0x280   : > { %3892 = vmatpush.bf16.msra.mxu0 %v6872_v39  ;;  %v6878_v25 = vld [vmem:[%s8140_s16 + $0x60] sm:$0xff]  ;;  %v6877_v4 = vld [vmem:[%s8140_s16 + $0x58] sm:$0xff]  ;;  %v6876_v11 = vld [vmem:[%s8140_s16 + $0x50] sm:$0xff] }
 0x281   : > { %4061 = vmatpush.bf16.msra.mxu1 %v6880_v60  ;;  %v6886_v30 = vld [vmem:[%s8140_s16 + $0xa0] sm:$0xff]  ;;  %v6885_v2 = vld [vmem:[%s8140_s16 + $0x98] sm:$0xff]  ;;  %v6884_v10 = vld [vmem:[%s8140_s16 + $0x90] sm:$0xff] }
 0x282   : > { %4230 = vmatpush.bf16.msra.mxu2 %v6888_v62  ;;  %v6894_v50 = vld [vmem:[%s8140_s16 + $0xe0] sm:$0xff]  ;;  %v6893_v7 = vld [vmem:[%s8140_s16 + $0xd8] sm:$0xff]  ;;  %v6892_v9 = vld [vmem:[%s8140_s16 + $0xd0] sm:$0xff] }
 0x283   : > { %4399 = vmatpush.bf16.msra.mxu3 %v6896_v34  ;;  %v6867_v41 = vld [vmem:[%s8140_s16 + $0x8] sm:$0xff]  ;;  %v6866_v36 = vld [vmem:[%s8140_s16] sm:$0xff]  ;;  %v6092_v15 = vld [vmem:[#allocation2] sm:$0xf] }
 0x284   : > { %3893 = vmatpush.bf16.msra.mxu0 %v6871_v31  ;;  %v6875_v19 = vld [vmem:[%s8140_s16 + $0x48] sm:$0xff]  ;;  %v6874_v12 = vld [vmem:[%s8140_s16 + $0x40] sm:$0xff]  ;;  %v6094_v18 = vld [vmem:[#allocation2 + $0x10] sm:$0xf0] }
 0x285   : > { %4062 = vmatpush.bf16.msra.mxu1 %v6879_v35  ;;  %v6883_v27 = vld [vmem:[%s8140_s16 + $0x88] sm:$0xff]  ;;  %v6882_v33 = vld [vmem:[%s8140_s16 + $0x80] sm:$0xff]  ;;  %v6741_v59 = vld [vmem:[#allocation2 + $0x14] sm:$0xf0] }
 0x286   : > { %4231 = vmatpush.bf16.msra.mxu2 %v6887_v17  ;;  %v6891_v26 = vld [vmem:[%s8140_s16 + $0xc8] sm:$0xff]  ;;  %v6890_v48 = vld [vmem:[%s8140_s16 + $0xc0] sm:$0xff]  ;;  %v6102_v51 = vld [vmem:[#allocation2 + $0x18] sm:$0xf0] }
 0x287   : > { %4400 = vmatpush.bf16.msra.mxu3 %v6895_v14  ;;  %v6740_v44 = vld [vmem:[#allocation2 + $0xc] sm:$0xf0]  ;;  %v6738_v49 = vld [vmem:[#allocation2 + $0x4] sm:$0xf]  ;;  %v6100_v40 = vld [vmem:[#allocation2 + $0x8] sm:$0xf] }
 0x288   : > { %3894 = vmatpush.bf16.msra.mxu0 %v6870_v1  ;;  %v6739_v45 = vld [vmem:[#allocation2 + $0xc] sm:$0xf]  ;;  %v6093_v57 = vor.u32 %v6740_v44, %v6092_v15  ;;  %v6097_v20 = vor.u32 %v6738_v49, %v6094_v18  ;;  %v6101_v22 = vor.u32 %v6741_v59, %v6100_v40  ;;  %v6108_v29 = vld [vmem:[#allocation2 + $0x20] sm:$0xf]  ;;  %v6744_v56 = vld [vmem:[#allocation2 + $0x2c] sm:$0xf0] }
 0x289   : > { %4063 = vmatpush.bf16.msra.mxu1 %v6878_v25  ;;  %v6105_v47 = vor.u32 %v6739_v45, %v6102_v51  ;;  %v6742_v3 = vld [vmem:[#allocation2 + $0x24] sm:$0xf]  ;;  %v6110_v21 = vld [vmem:[#allocation2 + $0x30] sm:$0xf0]  ;;  %v6116_v5 = vld [vmem:[#allocation2 + $0x28] sm:$0xf]  ;;  %v6109_v53 = vor.u32 %v6744_v56, %v6108_v29 }
 0x28a   : > { %4232 = vmatpush.bf16.msra.mxu2 %v6886_v30  ;;  %v6745_v55 = vld [vmem:[#allocation2 + $0x34] sm:$0xf0]  ;;  %v6743_v32 = vld [vmem:[#allocation2 + $0x2c] sm:$0xf]  ;;  %v6118_v43 = vld [vmem:[#allocation2 + $0x38] sm:$0xf0]  ;;  %v6113_v24 = vor.u32 %v6742_v3, %v6110_v21 }
 0x28b   : > { %4401 = vmatpush.bf16.msra.mxu3 %v6894_v50  ;;  %v6117_v8 = vor.u32 %v6745_v55, %v6116_v5  ;;  %v6121_v63 = vor.u32 %v6743_v32, %v6118_v43  ;;  %v6124_v6 = vld [vmem:[#allocation2 + $0x40] sm:$0xf]  ;;  %v6748_v52 = vld [vmem:[#allocation2 + $0x4c] sm:$0xf0]  ;;  %v6746_v54 = vld [vmem:[#allocation2 + $0x44] sm:$0xf] }
 0x28c   : > { %3895 = vmatpush.bf16.msra.mxu0 %v6869_v46  ;;  %v6126_v23 = vld [vmem:[#allocation2 + $0x50] sm:$0xf0]  ;;  %v6132_v13 = vld [vmem:[#allocation2 + $0x48] sm:$0xf]  ;;  %v6749_v58 = vld [vmem:[#allocation2 + $0x54] sm:$0xf0]  ;;  %v6125_v61 = vor.u32 %v6748_v52, %v6124_v6 }
 0x28d   : > { %4064 = vmatpush.bf16.msra.mxu1 %v6877_v4  ;;  %v6747_v28 = vld [vmem:[#allocation2 + $0x4c] sm:$0xf]  ;;  %v6134_v37 = vld [vmem:[#allocation2 + $0x58] sm:$0xf0]  ;;  %v6129_v38 = vor.u32 %v6746_v54, %v6126_v23  ;;  %v6133_v16 = vor.u32 %v6749_v58, %v6132_v13  ;;  %v6140_v39 = vld [vmem:[#allocation2 + $0x60] sm:$0xf] }
 0x28e   : > { %4233 = vmatpush.bf16.msra.mxu2 %v6885_v2  ;;  %v6137_v42 = vor.u32 %v6747_v28, %v6134_v37  ;;  %v6752_v60 = vld [vmem:[#allocation2 + $0x6c] sm:$0xf0]  ;;  %v6750_v62 = vld [vmem:[#allocation2 + $0x64] sm:$0xf]  ;;  %v6142_v34 = vld [vmem:[#allocation2 + $0x70] sm:$0xf0] }
 0x28f   : > { %4402 = vmatpush.bf16.msra.mxu3 %v6893_v7  ;;  %v6148_v31 = vld [vmem:[#allocation2 + $0x68] sm:$0xf]  ;;  %v6753_v35 = vld [vmem:[#allocation2 + $0x74] sm:$0xf0]  ;;  %v6751_v17 = vld [vmem:[#allocation2 + $0x6c] sm:$0xf]  ;;  %v6141_v1 = vor.u32 %v6752_v60, %v6140_v39  ;;  %v6145_v25 = vor.u32 %v6750_v62, %v6142_v34 }
 0x290   : > { %3896 = vmatpush.bf16.msra.mxu0 %v6868_v0  ;;  %v6150_v14 = vld [vmem:[#allocation2 + $0x78] sm:$0xf0]  ;;  %v6149_v30 = vor.u32 %v6753_v35, %v6148_v31  ;;  %v6156_v46 = vld [vmem:[#allocation2 + $0x80] sm:$0xf]  ;;  %v6756_v4 = vld [vmem:[#allocation2 + $0x8c] sm:$0xf0] }
 0x291   : > { %4065 = vmatpush.bf16.msra.mxu1 %v6876_v11  ;;  %v6153_v50 = vor.u32 %v6751_v17, %v6150_v14  ;;  %v6754_v2 = vld [vmem:[#allocation2 + $0x84] sm:$0xf]  ;;  %v6158_v7 = vld [vmem:[#allocation2 + $0x90] sm:$0xf0]  ;;  %v6164_v0 = vld [vmem:[#allocation2 + $0x88] sm:$0xf] }
 0x292   : > { %4234 = vmatpush.bf16.msra.mxu2 %v6884_v10  ;;  %v6757_v11 = vld [vmem:[#allocation2 + $0x94] sm:$0xf0]  ;;  %v6755_v10 = vld [vmem:[#allocation2 + $0x8c] sm:$0xf]  ;;  %v6180_v15 = vld [vmem:[#allocation2 + $0xa8] sm:$0xf] }
 0x293   : > { %4403 = vmatpush.bf16.msra.mxu3 %v6892_v9  ;;  %v6166_v9 = vld [vmem:[#allocation2 + $0x98] sm:$0xf0]  ;;  %v6761_v44 = vld [vmem:[#allocation2 + $0xb4] sm:$0xf0]  ;;  %v6759_v49 = vld [vmem:[#allocation2 + $0xac] sm:$0xf] }
 0x294   : > { %3897 = vmatpush.bf16.msra.mxu0 %v6867_v41  ;;  %v6157_v41 = vor.u32 %v6756_v4, %v6156_v46  ;;  %v6182_v18 = vld [vmem:[#allocation2 + $0xb8] sm:$0xf0]  ;;  %v6181_v45 = vor.u32 %v6761_v44, %v6180_v15  ;;  %v6196_v29 = vld [vmem:[#allocation2 + $0xc8] sm:$0xf]  ;;  %v6765_v56 = vld [vmem:[#allocation2 + $0xd4] sm:$0xf0] }
 0x295   : > { %4066 = vmatpush.bf16.msra.mxu1 %v6875_v19  ;;  %v6161_v19 = vor.u32 %v6754_v2, %v6158_v7  ;;  %v6185_v51 = vor.u32 %v6759_v49, %v6182_v18  ;;  %v6763_v3 = vld [vmem:[#allocation2 + $0xcc] sm:$0xf]  ;;  %v6198_v21 = vld [vmem:[#allocation2 + $0xd8] sm:$0xf0]  ;;  %v6197_v32 = vor.u32 %v6765_v56, %v6196_v29  ;;  %v6212_v6 = vld [vmem:[#allocation2 + $0xe8] sm:$0xf] }
 0x296   : > { %4235 = vmatpush.bf16.msra.mxu2 %v6883_v27  ;;  %v6165_v27 = vor.u32 %v6757_v11, %v6164_v0  ;;  %v6201_v43 = vor.u32 %v6763_v3, %v6198_v21  ;;  %v6769_v52 = vld [vmem:[#allocation2 + $0xf4] sm:$0xf0]  ;;  %v6767_v54 = vld [vmem:[#allocation2 + $0xec] sm:$0xf]  ;;  %v6214_v23 = vld [vmem:[#allocation2 + $0xf8] sm:$0xf0] }
 0x297   : > { %4404 = vmatpush.bf16.msra.mxu3 %v6891_v26  ;;  %v6169_v26 = vor.u32 %v6755_v10, %v6166_v9  ;;  %v6213_v28 = vor.u32 %v6769_v52, %v6212_v6  ;;  %v6217_v37 = vor.u32 %v6767_v54, %v6214_v23  ;;  %v6228_v39 = vld [vmem:[#allocation2 + $0x108] sm:$0xf]  ;;  %v6773_v60 = vld [vmem:[#allocation2 + $0x114] sm:$0xf0]  ;;  %v6771_v62 = vld [vmem:[#allocation2 + $0x10c] sm:$0xf] }
 0x298   : > { %3898 = vmatpush.bf16.msra.mxu0 %v6866_v36  ;;  %v6172_v36 = vld [vmem:[#allocation2 + $0xa0] sm:$0xf]  ;;  %v6230_v34 = vld [vmem:[#allocation2 + $0x118] sm:$0xf0]  ;;  %v6776_v9 = vld [vmem:[#allocation2 + $0x12c] sm:$0xf0] }
 0x299   : > { %4067 = vmatpush.bf16.msra.mxu1 %v6874_v12  ;;  %v6760_v12 = vld [vmem:[#allocation2 + $0xac] sm:$0xf0]  ;;  %v6236_v10 = vld [vmem:[#allocation2 + $0x120] sm:$0xf] }
 0x29a   : > { %4236 = vmatpush.bf16.msra.mxu2 %v6882_v33  ;;  %v6758_v33 = vld [vmem:[#allocation2 + $0xa4] sm:$0xf]  ;;  %v6173_v40 = vor.u32 %v6760_v12, %v6172_v36  ;;  %v6775_v36 = vld [vmem:[#allocation2 + $0x12c] sm:$0xf]  ;;  %v6246_v12 = vld [vmem:[#allocation2 + $0x138] sm:$0xf0]  ;;  %v6237_v15 = vor.u32 %v6776_v9, %v6236_v10 }
 0x29b   : > { %4405 = vmatpush.bf16.msra.mxu3 %v6890_v48  ;;  %3899 = vmatmul.bf16.vlgmr.msra.gmra.mxu0 %v6093_v57  ;;  %v6174_v48 = vld [vmem:[#allocation2 + $0xb0] sm:$0xf0]  ;;  %v6188_v57 = vld [vmem:[#allocation2 + $0xc0] sm:$0xf] }
 0x29c   : > { %4068 = vmatmul.bf16.vlgmr.msra.gmra.mxu1 %v6097_v20  ;;  %v6177_v59 = vor.u32 %v6758_v33, %v6174_v48  ;;  %v6764_v20 = vld [vmem:[#allocation2 + $0xcc] sm:$0xf0] }
 0x29d   : > { %4237 = vmatmul.bf16.vlgmr.msra.gmra.mxu2 %v6101_v22  ;;  %v6762_v22 = vld [vmem:[#allocation2 + $0xc4] sm:$0xf]  ;;  %v6189_v5 = vor.u32 %v6764_v20, %v6188_v57 }
 0x29e   : > { %4406 = vmatmul.bf16.vlgmr.msra.gmra.mxu3 %v6105_v47  ;;  %v6190_v47 = vld [vmem:[#allocation2 + $0xd0] sm:$0xf0] }
 0x29f   : > { %v6193_v55 = vor.u32 %v6762_v22, %v6190_v47 }
 0x2ab   : > { %3904 = vmatmul.bf16.gmra.mxu0 %v6109_v53  ;;  %v6204_v53 = vld [vmem:[#allocation2 + $0xe0] sm:$0xf] }
 0x2ac   : > { %4073 = vmatmul.bf16.gmra.mxu1 %v6113_v24  ;;  %v6768_v24 = vld [vmem:[#allocation2 + $0xec] sm:$0xf0] }
 0x2ad   : > { %4242 = vmatmul.bf16.gmra.mxu2 %v6117_v8  ;;  %v6766_v8 = vld [vmem:[#allocation2 + $0xe4] sm:$0xf]  ;;  %v6205_v13 = vor.u32 %v6768_v24, %v6204_v53  ;;  %v6260_v53 = vld [vmem:[#allocation2 + $0x148] sm:$0xf]  ;;  %v6781_v24 = vld [vmem:[#allocation2 + $0x154] sm:$0xf0] }
 0x2ae   : > { %4411 = vmatmul.bf16.gmra.mxu3 %v6121_v63  ;;  %v6206_v63 = vld [vmem:[#allocation2 + $0xf0] sm:$0xf0] }
 0x2af   : > { %v6209_v58 = vor.u32 %v6766_v8, %v6206_v63  ;;  %v6779_v8 = vld [vmem:[#allocation2 + $0x14c] sm:$0xf]  ;;  %v6262_v63 = vld [vmem:[#allocation2 + $0x158] sm:$0xf0] }
 0x2bb   : > { %3909 = vmatmul.bf16.gmra.mxu0 %v6125_v61  ;;  %v6220_v61 = vld [vmem:[#allocation2 + $0x100] sm:$0xf] }
 0x2bc   : > { %4078 = vmatmul.bf16.gmra.mxu1 %v6129_v38  ;;  %v6772_v38 = vld [vmem:[#allocation2 + $0x10c] sm:$0xf0] }
 0x2bd   : > { %4247 = vmatmul.bf16.gmra.mxu2 %v6133_v16  ;;  %v6770_v16 = vld [vmem:[#allocation2 + $0x104] sm:$0xf]  ;;  %v6221_v31 = vor.u32 %v6772_v38, %v6220_v61  ;;  %v6265_v61 = vor.u32 %v6779_v8, %v6262_v63 }
 0x2be   : > { %4416 = vmatmul.bf16.gmra.mxu3 %v6137_v42  ;;  %v6222_v42 = vld [vmem:[#allocation2 + $0x110] sm:$0xf0] }
 0x2bf   : > { %v6225_v35 = vor.u32 %v6770_v16, %v6222_v42 }
 0x2cb   : > { %3914 = vmatmul.bf16.gmra.mxu0 %v6141_v1  ;;  %v6229_v1 = vor.u32 %v6773_v60, %v6228_v39 }
 0x2cc   : > { %4083 = vmatmul.bf16.gmra.mxu1 %v6145_v25  ;;  %v6233_v25 = vor.u32 %v6771_v62, %v6230_v34 }
 0x2cd   : > { %4252 = vmatmul.bf16.gmra.mxu2 %v6149_v30 }
 0x2ce   : > { %4421 = vmatmul.bf16.gmra.mxu3 %v6153_v50 }
 0x2db   : > { %3919 = vmatmul.bf16.gmra.mxu0 %v6157_v41  ;;  %v6774_v41 = vld [vmem:[#allocation2 + $0x124] sm:$0xf] }
 0x2dc   : > { %4088 = vmatmul.bf16.gmra.mxu1 %v6161_v19  ;;  %v6238_v19 = vld [vmem:[#allocation2 + $0x130] sm:$0xf0] }
 0x2dd   : > { %4257 = vmatmul.bf16.gmra.mxu2 %v6165_v27  ;;  %v6244_v27 = vld [vmem:[#allocation2 + $0x128] sm:$0xf]  ;;  %v6241_v44 = vor.u32 %v6774_v41, %v6238_v19 }
 0x2de   : > { %4426 = vmatmul.bf16.gmra.mxu3 %v6169_v26  ;;  %v6777_v26 = vld [vmem:[#allocation2 + $0x134] sm:$0xf0] }
 0x2eb   : > { %3924 = vmatmul.bf16.gmra.mxu0 %v6173_v40 }
 0x2ec   : > { %4093 = vmatmul.bf16.gmra.mxu1 %v6177_v59  ;;  %v6245_v59 = vor.u32 %v6777_v26, %v6244_v27 }
 0x2ed   : > { %4262 = vmatmul.bf16.gmra.mxu2 %v6181_v45  ;;  %v6249_v45 = vor.u32 %v6775_v36, %v6246_v12 }
 0x2ee   : > { %4431 = vmatmul.bf16.gmra.mxu3 %v6185_v51 }
 0x2fb   : > { %3929 = vmatmul.bf16.gmra.mxu0 %v6189_v5  ;;  %v6252_v5 = vld [vmem:[#allocation2 + $0x140] sm:$0xf] }
 0x2fc   : > { %4098 = vmatmul.bf16.gmra.mxu1 %v6193_v55  ;;  %v6780_v55 = vld [vmem:[#allocation2 + $0x14c] sm:$0xf0] }
 0x2fd   : > { %4267 = vmatmul.bf16.gmra.mxu2 %v6197_v32  ;;  %v6778_v32 = vld [vmem:[#allocation2 + $0x144] sm:$0xf]  ;;  %v6253_v54 = vor.u32 %v6780_v55, %v6252_v5 }
 0x2fe   : > { %4436 = vmatmul.bf16.gmra.mxu3 %v6201_v43  ;;  %v6254_v43 = vld [vmem:[#allocation2 + $0x150] sm:$0xf0] }
 0x2ff   : > { %v6257_v23 = vor.u32 %v6778_v32, %v6254_v43 }
 0x30b   : > { %3934 = vmatmul.bf16.gmra.mxu0 %v6205_v13 }
 0x30c   : > { %4103 = vmatmul.bf16.gmra.mxu1 %v6209_v58 }
 0x30d   : > { %4272 = vmatmul.bf16.gmra.mxu2 %v6213_v28 }
 0x30e   : > { %4441 = vmatmul.bf16.gmra.mxu3 %v6217_v37  ;;  %v6261_v37 = vor.u32 %v6781_v24, %v6260_v53 }
 0x318   : > { %v3900_v17 = vpop.f32.mrf.mxu0 }
 0x319   : > { %v4069_v14 = vpop.f32.mrf.mxu1 }
 0x31a   : > { %v4070_v30 = vadd.f32 %v4069_v14, %v3900_v17  ;;  %v6268_v17 = vld [vmem:[#allocation2 + $0x160] sm:$0xf]  ;;  %v6784_v14 = vld [vmem:[#allocation2 + $0x16c] sm:$0xf0] }
 0x31b   : > { %3939 = vmatmul.bf16.gmra.mxu0 %v6221_v31 }
 0x31c   : > { %4108 = vmatmul.bf16.gmra.mxu1 %v6225_v35 }
 0x31d   : > { %4277 = vmatmul.bf16.gmra.mxu2 %v6229_v1  ;;  %v6782_v1 = vld [vmem:[#allocation2 + $0x164] sm:$0xf] }
 0x31e   : > { %4446 = vmatmul.bf16.gmra.mxu3 %v6233_v25  ;;  %v6270_v25 = vld [vmem:[#allocation2 + $0x170] sm:$0xf0] }
 0x31f   : > { %v6273_v10 = vor.u32 %v6782_v1, %v6270_v25 }
 0x320   : > { %v4238_v50 = vpop.f32.mrf.mxu2  ;;  %v3902_v2 = vpop.f32.mrf.mxu0 }
 0x321   : > { %v4407_v46 = vpop.f32.mrf.mxu3  ;;  %v4239_v4 = vadd.f32 %v4238_v50, %v4070_v30  ;;  %v4071_v7 = vpop.f32.mrf.mxu1  ;;  %v6276_v30 = vld [vmem:[#allocation2 + $0x168] sm:$0xf]  ;;  %v6785_v50 = vld [vmem:[#allocation2 + $0x174] sm:$0xf0] }
 0x322   : > { %v4072_v0 = vadd.f32 %v4071_v7, %v3902_v2  ;;  %v6277_v27 = vor.u32 %v6785_v50, %v6276_v30 }
 0x323   : > { %v10693_v11 = vadd.f32 %v4407_v46, %v4239_v4  ;;  %v6783_v46 = vld [vmem:[#allocation2 + $0x16c] sm:$0xf]  ;;  %v6278_v4 = vld [vmem:[#allocation2 + $0x178] sm:$0xf0] }
 0x324   : > { %v6281_v26 = vor.u32 %v6783_v46, %v6278_v4 }
 0x325   : > { %12187 = vst [vmem:[#allocation198_spill] sm:$0xff] %v10693_v11 }
 0x328   : > { %v4240_v33 = vpop.f32.mrf.mxu2  ;;  %v3905_v18 = vpop.f32.mrf.mxu0 }
 0x329   : > { %v4409_v48 = vpop.f32.mrf.mxu3  ;;  %v4241_v49 = vadd.f32 %v4240_v33, %v4072_v0  ;;  %v4074_v40 = vpop.f32.mrf.mxu1  ;;  %v6269_v0 = vor.u32 %v6784_v14, %v6268_v17  ;;  %v6310_v17 = vld [vmem:[#allocation2 + $0x1b8] sm:$0xf0] }
 0x32a   : > { %v4075_v51 = vadd.f32 %v4074_v40, %v3905_v18 }
 0x32b   : > { %v10695_v57 = vadd.f32 %v4409_v48, %v4241_v49  ;;  %3944 = vmatmul.bf16.gmra.mxu0 %v6237_v15 }
 0x32c   : > { %4113 = vmatmul.bf16.gmra.mxu1 %v6241_v44 }
 0x32d   : > { %12188 = vst [vmem:[#allocation199_spill] sm:$0xff] %v10695_v57  ;;  %4282 = vmatmul.bf16.gmra.mxu2 %v6245_v59  ;;  %v6284_v59 = vld [vmem:[#allocation2 + $0x180] sm:$0xf] }
 0x32e   : > { %4451 = vmatmul.bf16.gmra.mxu3 %v6249_v45  ;;  %v6788_v45 = vld [vmem:[#allocation2 + $0x18c] sm:$0xf0] }
 0x32f   : > { %v6285_v55 = vor.u32 %v6788_v45, %v6284_v59  ;;  %v6797_v59 = vld [vmem:[#allocation2 + $0x1d4] sm:$0xf0]  ;;  %v6795_v45 = vld [vmem:[#allocation2 + $0x1cc] sm:$0xf] }
 0x330   : > { %v4243_v20 = vpop.f32.mrf.mxu2  ;;  %v3907_v29 = vpop.f32.mrf.mxu0 }
 0x331   : > { %v4412_v22 = vpop.f32.mrf.mxu3  ;;  %v4244_v47 = vadd.f32 %v4243_v20, %v4075_v51  ;;  %v4076_v56 = vpop.f32.mrf.mxu1  ;;  %v6786_v51 = vld [vmem:[#allocation2 + $0x184] sm:$0xf]  ;;  %v6286_v20 = vld [vmem:[#allocation2 + $0x190] sm:$0xf0] }
 0x332   : > { %v4077_v3 = vadd.f32 %v4076_v56, %v3907_v29  ;;  %v6787_v29 = vld [vmem:[#allocation2 + $0x18c] sm:$0xf]  ;;  %v6294_v56 = vld [vmem:[#allocation2 + $0x198] sm:$0xf0]  ;;  %v6289_v32 = vor.u32 %v6786_v51, %v6286_v20 }
 0x333   : > { %v10697_v21 = vadd.f32 %v4412_v22, %v4244_v47  ;;  %v6292_v22 = vld [vmem:[#allocation2 + $0x188] sm:$0xf]  ;;  %v6789_v47 = vld [vmem:[#allocation2 + $0x194] sm:$0xf0]  ;;  %v6297_v63 = vor.u32 %v6787_v29, %v6294_v56  ;;  %v6326_v51 = vld [vmem:[#allocation2 + $0x1d8] sm:$0xf0] }
 0x334   : > { %v6293_v8 = vor.u32 %v6789_v47, %v6292_v22 }
 0x335   : > { %12189 = vst [vmem:[#allocation200_spill] sm:$0xff] %v10697_v21 }
 0x338   : > { %v4245_v6 = vpop.f32.mrf.mxu2  ;;  %v3910_v58 = vpop.f32.mrf.mxu0 }
 0x339   : > { %v4414_v52 = vpop.f32.mrf.mxu3  ;;  %v4246_v13 = vadd.f32 %v4245_v6, %v4077_v3  ;;  %v4079_v28 = vpop.f32.mrf.mxu1 }
 0x33a   : > { %v4080_v38 = vadd.f32 %v4079_v28, %v3910_v58 }
 0x33b   : > { %v10699_v16 = vadd.f32 %v4414_v52, %v4246_v13  ;;  %3949 = vmatmul.bf16.gmra.mxu0 %v6253_v54 }
 0x33c   : > { %4118 = vmatmul.bf16.gmra.mxu1 %v6257_v23 }
 0x33d   : > { %12190 = vst [vmem:[#allocation201_spill] sm:$0xff] %v10699_v16  ;;  %4287 = vmatmul.bf16.gmra.mxu2 %v6261_v37 }
 0x33e   : > { %4456 = vmatmul.bf16.gmra.mxu3 %v6265_v61 }
 0x340   : > { %v4248_v42 = vpop.f32.mrf.mxu2  ;;  %v3912_v62 = vpop.f32.mrf.mxu0 }
 0x341   : > { %v4417_v39 = vpop.f32.mrf.mxu3  ;;  %v4249_v60 = vadd.f32 %v4248_v42, %v4080_v38  ;;  %v4081_v34 = vpop.f32.mrf.mxu1  ;;  %v6300_v38 = vld [vmem:[#allocation2 + $0x1a0] sm:$0xf]  ;;  %v6792_v42 = vld [vmem:[#allocation2 + $0x1ac] sm:$0xf0] }
 0x342   : > { %v4082_v31 = vadd.f32 %v4081_v34, %v3912_v62  ;;  %v6308_v62 = vld [vmem:[#allocation2 + $0x1a8] sm:$0xf]  ;;  %v6793_v34 = vld [vmem:[#allocation2 + $0x1b4] sm:$0xf0]  ;;  %v6301_v25 = vor.u32 %v6792_v42, %v6300_v38  ;;  %v6334_v38 = vld [vmem:[#allocation2 + $0x1f0] sm:$0xf0] }
 0x343   : > { %v10701_v35 = vadd.f32 %v4417_v39, %v4249_v60  ;;  %v6790_v39 = vld [vmem:[#allocation2 + $0x1a4] sm:$0xf]  ;;  %v6302_v60 = vld [vmem:[#allocation2 + $0x1b0] sm:$0xf0]  ;;  %v6340_v42 = vld [vmem:[#allocation2 + $0x1e8] sm:$0xf] }
 0x344   : > { %v6305_v30 = vor.u32 %v6790_v39, %v6302_v60  ;;  %v6801_v39 = vld [vmem:[#allocation2 + $0x1f4] sm:$0xf0]  ;;  %v6799_v60 = vld [vmem:[#allocation2 + $0x1ec] sm:$0xf] }
 0x345   : > { %12191 = vst [vmem:[#allocation202_spill] sm:$0xff] %v10701_v35 }
 0x348   : > { %v4250_v2 = vpop.f32.mrf.mxu2  ;;  %v3915_v41 = vpop.f32.mrf.mxu0 }
 0x349   : > { %v4419_v7 = vpop.f32.mrf.mxu3  ;;  %v4251_v9 = vadd.f32 %v4250_v2, %v4082_v31  ;;  %v4084_v19 = vpop.f32.mrf.mxu1  ;;  %v6791_v31 = vld [vmem:[#allocation2 + $0x1ac] sm:$0xf]  ;;  %v6309_v2 = vor.u32 %v6793_v34, %v6308_v62  ;;  %v6342_v62 = vld [vmem:[#allocation2 + $0x1f8] sm:$0xf0] }
 0x34a   : > { %v4085_v36 = vadd.f32 %v4084_v19, %v3915_v41 }
 0x34b   : > { %v10703_v12 = vadd.f32 %v4419_v7, %v4251_v9  ;;  %3954 = vmatmul.bf16.gmra.mxu0 %v6269_v0  ;;  %v6313_v7 = vor.u32 %v6791_v31, %v6310_v17 }
 0x34c   : > { %4123 = vmatmul.bf16.gmra.mxu1 %v6273_v10 }
 0x34d   : > { %12192 = vst [vmem:[#allocation203_spill] sm:$0xff] %v10703_v12  ;;  %4292 = vmatmul.bf16.gmra.mxu2 %v6277_v27 }
 0x34e   : > { %4461 = vmatmul.bf16.gmra.mxu3 %v6281_v26 }
 0x350   : > { %v4253_v33 = vpop.f32.mrf.mxu2  ;;  %v3917_v44 = vpop.f32.mrf.mxu0 }
 0x351   : > { %v4422_v48 = vpop.f32.mrf.mxu3  ;;  %v4254_v15 = vadd.f32 %v4253_v33, %v4085_v36  ;;  %v4086_v49 = vpop.f32.mrf.mxu1 }
 0x352   : > { %v4087_v18 = vadd.f32 %v4086_v49, %v3917_v44  ;;  %v6794_v44 = vld [vmem:[#allocation2 + $0x1c4] sm:$0xf]  ;;  %v6318_v49 = vld [vmem:[#allocation2 + $0x1d0] sm:$0xf0] }
 0x353   : > { %v10705_v40 = vadd.f32 %v4422_v48, %v4254_v15  ;;  %v6316_v48 = vld [vmem:[#allocation2 + $0x1c0] sm:$0xf]  ;;  %v6796_v15 = vld [vmem:[#allocation2 + $0x1cc] sm:$0xf0]  ;;  %v6321_v29 = vor.u32 %v6794_v44, %v6318_v49  ;;  %v6350_v44 = vld [vmem:[#allocation2 + $0x210] sm:$0xf0] }
 0x354   : > { %v6317_v47 = vor.u32 %v6796_v15, %v6316_v48  ;;  %v6804_v48 = vld [vmem:[#allocation2 + $0x20c] sm:$0xf0]  ;;  %v6802_v15 = vld [vmem:[#allocation2 + $0x204] sm:$0xf]  ;;  %v6356_v49 = vld [vmem:[#allocation2 + $0x208] sm:$0xf] }
 0x355   : > { %12193 = vst [vmem:[#allocation204_spill] sm:$0xff] %v10705_v40 }
 0x358   : > { %v4255_v3 = vpop.f32.mrf.mxu2  ;;  %v3920_v53 = vpop.f32.mrf.mxu0 }
 0x359   : > { %v4424_v5 = vpop.f32.mrf.mxu3  ;;  %v4256_v43 = vadd.f32 %v4255_v3, %v4087_v18  ;;  %v4089_v24 = vpop.f32.mrf.mxu1  ;;  %v6324_v18 = vld [vmem:[#allocation2 + $0x1c8] sm:$0xf] }
 0x35a   : > { %v4090_v6 = vadd.f32 %v4089_v24, %v3920_v53 }
 0x35b   : > { %v10707_v52 = vadd.f32 %v4424_v5, %v4256_v43  ;;  %3959 = vmatmul.bf16.gmra.mxu0 %v6285_v55  ;;  %v6325_v55 = vor.u32 %v6797_v59, %v6324_v18  ;;  %v6805_v18 = vld [vmem:[#allocation2 + $0x214] sm:$0xf0]  ;;  %v6803_v59 = vld [vmem:[#allocation2 + $0x20c] sm:$0xf] }
 0x35c   : > { %4128 = vmatmul.bf16.gmra.mxu1 %v6289_v32  ;;  %v6329_v32 = vor.u32 %v6795_v45, %v6326_v51  ;;  %v6358_v45 = vld [vmem:[#allocation2 + $0x218] sm:$0xf0] }
 0x35d   : > { %12194 = vst [vmem:[#allocation205_spill] sm:$0xff] %v10707_v52  ;;  %4297 = vmatmul.bf16.gmra.mxu2 %v6293_v8 }
 0x35e   : > { %4466 = vmatmul.bf16.gmra.mxu3 %v6297_v63 }
 0x360   : > { %v4258_v54 = vpop.f32.mrf.mxu2  ;;  %v3922_v58 = vpop.f32.mrf.mxu0 }
 0x361   : > { %v4427_v23 = vpop.f32.mrf.mxu3  ;;  %v4259_v13 = vadd.f32 %v4258_v54, %v4090_v6  ;;  %v4091_v28 = vpop.f32.mrf.mxu1 }
 0x362   : > { %v4092_v37 = vadd.f32 %v4091_v28, %v3922_v58  ;;  %v6332_v58 = vld [vmem:[#allocation2 + $0x1e0] sm:$0xf]  ;;  %v6800_v28 = vld [vmem:[#allocation2 + $0x1ec] sm:$0xf0] }
 0x363   : > { %v10709_v61 = vadd.f32 %v4427_v23, %v4259_v13  ;;  %v6333_v17 = vor.u32 %v6800_v28, %v6332_v58  ;;  %v6364_v28 = vld [vmem:[#allocation2 + $0x220] sm:$0xf] }
 0x368   : > { %v4260_v14 = vpop.f32.mrf.mxu2  ;;  %v3925_v46 = vpop.f32.mrf.mxu0 }
 0x369   : > { %v4429_v1 = vpop.f32.mrf.mxu3  ;;  %v4261_v50 = vadd.f32 %v4260_v14, %v4092_v37  ;;  %v4094_v4 = vpop.f32.mrf.mxu1  ;;  %v6798_v37 = vld [vmem:[#allocation2 + $0x1e4] sm:$0xf] }
 0x36a   : > { %v4095_v0 = vadd.f32 %v4094_v4, %v3925_v46  ;;  %v6337_v14 = vor.u32 %v6798_v37, %v6334_v38  ;;  %v6345_v46 = vor.u32 %v6799_v60, %v6342_v62  ;;  %v6808_v37 = vld [vmem:[#allocation2 + $0x22c] sm:$0xf0]  ;;  %v6806_v38 = vld [vmem:[#allocation2 + $0x224] sm:$0xf]  ;;  %v6809_v60 = vld [vmem:[#allocation2 + $0x234] sm:$0xf0] }
 0x36b   : > { %v10711_v10 = vadd.f32 %v4429_v1, %v4261_v50  ;;  %3964 = vmatmul.bf16.gmra.mxu0 %v6301_v25  ;;  %v6341_v50 = vor.u32 %v6801_v39, %v6340_v42  ;;  %v6366_v42 = vld [vmem:[#allocation2 + $0x230] sm:$0xf0]  ;;  %v6372_v39 = vld [vmem:[#allocation2 + $0x228] sm:$0xf]  ;;  %v6807_v62 = vld [vmem:[#allocation2 + $0x22c] sm:$0xf] }
 0x36c   : > { %4133 = vmatmul.bf16.gmra.mxu1 %v6305_v30 }
 0x36d   : > { %12195 = vst [vmem:[#allocation206_spill] sm:$0xff] %v10711_v10  ;;  %4302 = vmatmul.bf16.gmra.mxu2 %v6309_v2 }
 0x36e   : > { %4471 = vmatmul.bf16.gmra.mxu3 %v6313_v7 }
 0x370   : > { %v4263_v9 = vpop.f32.mrf.mxu2  ;;  %v3927_v27 = vpop.f32.mrf.mxu0 }
 0x371   : > { %v4432_v41 = vpop.f32.mrf.mxu3  ;;  %v4264_v19 = vadd.f32 %v4263_v9, %v4095_v0  ;;  %v4096_v26 = vpop.f32.mrf.mxu1 }
 0x372   : > { %v4097_v36 = vadd.f32 %v4096_v26, %v3927_v27 }
 0x373   : > { %v10713_v33 = vadd.f32 %v4432_v41, %v4264_v19 }
 0x375   : > { %12196 = vst [vmem:[#allocation207_spill] sm:$0xff] %v10713_v33 }
 0x378   : > { %v4265_v20 = vpop.f32.mrf.mxu2  ;;  %v3930_v3 = vpop.f32.mrf.mxu0 }
 0x379   : > { %v4434_v22 = vpop.f32.mrf.mxu3  ;;  %v4266_v56 = vadd.f32 %v4265_v20, %v4097_v36  ;;  %v4099_v5 = vpop.f32.mrf.mxu1  ;;  %v6348_v36 = vld [vmem:[#allocation2 + $0x200] sm:$0xf] }
 0x37a   : > { %v4100_v43 = vadd.f32 %v4099_v5, %v3930_v3  ;;  %v6357_v5 = vor.u32 %v6805_v18, %v6356_v49  ;;  %v6812_v49 = vld [vmem:[#allocation2 + $0x24c] sm:$0xf0]  ;;  %v6810_v18 = vld [vmem:[#allocation2 + $0x244] sm:$0xf] }
 0x37b   : > { %v10715_v53 = vadd.f32 %v4434_v22, %v4266_v56  ;;  %3969 = vmatmul.bf16.gmra.mxu0 %v6317_v47  ;;  %v6349_v22 = vor.u32 %v6804_v48, %v6348_v36  ;;  %v6353_v47 = vor.u32 %v6802_v15, %v6350_v44  ;;  %v6380_v44 = vld [vmem:[#allocation2 + $0x240] sm:$0xf] }
 0x37c   : > { %4138 = vmatmul.bf16.gmra.mxu1 %v6321_v29 }
 0x37d   : > { %12197 = vst [vmem:[#allocation208_spill] sm:$0xff] %v10715_v53  ;;  %4307 = vmatmul.bf16.gmra.mxu2 %v6325_v55  ;;  %v6361_v55 = vor.u32 %v6803_v59, %v6358_v45  ;;  %v6382_v59 = vld [vmem:[#allocation2 + $0x250] sm:$0xf0]  ;;  %v6388_v45 = vld [vmem:[#allocation2 + $0x248] sm:$0xf] }
 0x37e   : > { %4476 = vmatmul.bf16.gmra.mxu3 %v6329_v32 }
 0x380   : > { %v4268_v24 = vpop.f32.mrf.mxu2  ;;  %v3932_v6 = vpop.f32.mrf.mxu0 }
 0x381   : > { %v4437_v8 = vpop.f32.mrf.mxu3  ;;  %v4269_v63 = vadd.f32 %v4268_v24, %v4100_v43  ;;  %v4101_v54 = vpop.f32.mrf.mxu1 }
 0x382   : > { %v4102_v23 = vadd.f32 %v4101_v54, %v3932_v6 }
 0x383   : > { %v10717_v13 = vadd.f32 %v4437_v8, %v4269_v63 }
 0x385   : > { %12198 = vst [vmem:[#allocation209_spill] sm:$0xff] %v10717_v13 }
 0x388   : > { %v4270_v34 = vpop.f32.mrf.mxu2  ;;  %v3935_v25 = vpop.f32.mrf.mxu0 }
 0x389   : > { %v4439_v31 = vpop.f32.mrf.mxu3  ;;  %v4271_v1 = vadd.f32 %v4270_v34, %v4102_v23  ;;  %v4104_v30 = vpop.f32.mrf.mxu1  ;;  %v6374_v34 = vld [vmem:[#allocation2 + $0x238] sm:$0xf0] }
 0x38a   : > { %v4105_v4 = vadd.f32 %v4104_v30, %v3935_v25 }
 0x38b   : > { %v10719_v2 = vadd.f32 %v4439_v31, %v4271_v1  ;;  %3974 = vmatmul.bf16.gmra.mxu0 %v6333_v17  ;;  %v6369_v1 = vor.u32 %v6806_v38, %v6366_v42 }
 0x38c   : > { %4143 = vmatmul.bf16.gmra.mxu1 %v6337_v14  ;;  %v6365_v14 = vor.u32 %v6808_v37, %v6364_v28 }
 0x38d   : > { %12199 = vst [vmem:[#allocation210_spill] sm:$0xff] %v10719_v2  ;;  %4312 = vmatmul.bf16.gmra.mxu2 %v6341_v50 }
 0x38e   : > { %4481 = vmatmul.bf16.gmra.mxu3 %v6345_v46  ;;  %v6373_v46 = vor.u32 %v6809_v60, %v6372_v39  ;;  %v6396_v60 = vld [vmem:[#allocation2 + $0x260] sm:$0xf] }
 0x390   : > { %v4273_v7 = vpop.f32.mrf.mxu2  ;;  %v3937_v41 = vpop.f32.mrf.mxu0 }
 0x391   : > { %v4442_v0 = vpop.f32.mrf.mxu3  ;;  %v4274_v9 = vadd.f32 %v4273_v7, %v4105_v4  ;;  %v4106_v19 = vpop.f32.mrf.mxu1  ;;  %v6377_v4 = vor.u32 %v6807_v62, %v6374_v34  ;;  %v6816_v62 = vld [vmem:[#allocation2 + $0x26c] sm:$0xf0]  ;;  %v6814_v34 = vld [vmem:[#allocation2 + $0x264] sm:$0xf] }
 0x392   : > { %v4107_v27 = vadd.f32 %v4106_v19, %v3937_v41 }
 0x393   : > { %v10721_v26 = vadd.f32 %v4442_v0, %v4274_v9 }
 0x398   : > { %v4275_v51 = vpop.f32.mrf.mxu2  ;;  %v3940_v56 = vpop.f32.mrf.mxu0 }
 0x399   : > { %v4444_v20 = vpop.f32.mrf.mxu3  ;;  %v4276_v29 = vadd.f32 %v4275_v51, %v4107_v27  ;;  %v4109_v3 = vpop.f32.mrf.mxu1  ;;  %v6813_v51 = vld [vmem:[#allocation2 + $0x254] sm:$0xf0] }
 0x39a   : > { %v4110_v32 = vadd.f32 %v4109_v3, %v3940_v56  ;;  %v6381_v56 = vor.u32 %v6812_v49, %v6380_v44  ;;  %v6385_v3 = vor.u32 %v6810_v18, %v6382_v59 }
 0x39b   : > { %v10723_v43 = vadd.f32 %v4444_v20, %v4276_v29  ;;  %3979 = vmatmul.bf16.gmra.mxu0 %v6349_v22  ;;  %v6811_v20 = vld [vmem:[#allocation2 + $0x24c] sm:$0xf]  ;;  %v6390_v22 = vld [vmem:[#allocation2 + $0x258] sm:$0xf0] }
 0x39c   : > { %4148 = vmatmul.bf16.gmra.mxu1 %v6353_v47 }
 0x39d   : > { %4317 = vmatmul.bf16.gmra.mxu2 %v6357_v5 }
 0x39e   : > { %4486 = vmatmul.bf16.gmra.mxu3 %v6361_v55 }
 0x3a0   : > { %v4278_v24 = vpop.f32.mrf.mxu2  ;;  %v3942_v6 = vpop.f32.mrf.mxu0 }
 0x3a1   : > { %v4447_v8 = vpop.f32.mrf.mxu3  ;;  %v4279_v63 = vadd.f32 %v4278_v24, %v4110_v32  ;;  %v4111_v54 = vpop.f32.mrf.mxu1  ;;  %v6389_v24 = vor.u32 %v6813_v51, %v6388_v45 }
 0x3a2   : > { %v4112_v23 = vadd.f32 %v4111_v54, %v3942_v6 }
 0x3a3   : > { %v10725_v58 = vadd.f32 %v4447_v8, %v4279_v63  ;;  %v6393_v8 = vor.u32 %v6811_v20, %v6390_v22  ;;  %v6412_v22 = vld [vmem:[#allocation2 + $0x280] sm:$0xf] }
 0x3a5   : > { %12200 = vst [vmem:[#allocation211_spill] sm:$0xff] %v10725_v58 }
 0x3a8   : > { %v4280_v31 = vpop.f32.mrf.mxu2  ;;  %v3945_v30 = vpop.f32.mrf.mxu0 }
 0x3a9   : > { %v4449_v17 = vpop.f32.mrf.mxu3  ;;  %v4281_v25 = vadd.f32 %v4280_v31, %v4112_v23  ;;  %v4114_v50 = vpop.f32.mrf.mxu1  ;;  %v6398_v31 = vld [vmem:[#allocation2 + $0x270] sm:$0xf0] }
 0x3aa   : > { %v4115_v7 = vadd.f32 %v4114_v50, %v3945_v30 }
 0x3ab   : > { %v10727_v0 = vadd.f32 %v4449_v17, %v4281_v25  ;;  %3984 = vmatmul.bf16.gmra.mxu0 %v6365_v14  ;;  %v6404_v17 = vld [vmem:[#allocation2 + $0x268] sm:$0xf]  ;;  %v6817_v14 = vld [vmem:[#allocation2 + $0x274] sm:$0xf0]  ;;  %v6406_v25 = vld [vmem:[#allocation2 + $0x278] sm:$0xf0] }
 0x3ac   : > { %4153 = vmatmul.bf16.gmra.mxu1 %v6369_v1  ;;  %v6815_v1 = vld [vmem:[#allocation2 + $0x26c] sm:$0xf] }
 0x3ad   : > { %12201 = vst [vmem:[#allocation212_spill] sm:$0xff] %v10727_v0  ;;  %4322 = vmatmul.bf16.gmra.mxu2 %v6373_v46  ;;  %v6397_v46 = vor.u32 %v6816_v62, %v6396_v60 }
 0x3ae   : > { %4491 = vmatmul.bf16.gmra.mxu3 %v6377_v4  ;;  %v6401_v4 = vor.u32 %v6814_v34, %v6398_v31 }
 0x3b0   : > { %v4283_v9 = vpop.f32.mrf.mxu2  ;;  %v3947_v27 = vpop.f32.mrf.mxu0 }
 0x3b1   : > { %v4452_v41 = vpop.f32.mrf.mxu3  ;;  %v4284_v19 = vadd.f32 %v4283_v9, %v4115_v7  ;;  %v4116_v36 = vpop.f32.mrf.mxu1 }
 0x3b2   : > { %v4117_v48 = vadd.f32 %v4116_v36, %v3947_v27  ;;  %v6409_v27 = vor.u32 %v6815_v1, %v6406_v25 }
 0x3b3   : > { %v10729_v15 = vadd.f32 %v4452_v41, %v4284_v19  ;;  %v6405_v19 = vor.u32 %v6817_v14, %v6404_v17 }
 0x3b5   : > { %12202 = vst [vmem:[#allocation213_spill] sm:$0xff] %v10729_v15 }
 0x3b8   : > { %v4285_v47 = vpop.f32.mrf.mxu2  ;;  %v3950_v55 = vpop.f32.mrf.mxu0 }
 0x3b9   : > { %v4454_v29 = vpop.f32.mrf.mxu3  ;;  %v4286_v5 = vadd.f32 %v4285_v47, %v4117_v48  ;;  %v4119_v32 = vpop.f32.mrf.mxu1  ;;  %v6820_v47 = vld [vmem:[#allocation2 + $0x28c] sm:$0xf0] }
 0x3ba   : > { %v4120_v63 = vadd.f32 %v4119_v32, %v3950_v55  ;;  %v6819_v55 = vld [vmem:[#allocation2 + $0x28c] sm:$0xf]  ;;  %v6422_v32 = vld [vmem:[#allocation2 + $0x298] sm:$0xf0] }
 0x3bb   : > { %v10731_v6 = vadd.f32 %v4454_v29, %v4286_v5  ;;  %3989 = vmatmul.bf16.gmra.mxu0 %v6381_v56  ;;  %v6818_v29 = vld [vmem:[#allocation2 + $0x284] sm:$0xf]  ;;  %v6414_v56 = vld [vmem:[#allocation2 + $0x290] sm:$0xf0]  ;;  %v6821_v5 = vld [vmem:[#allocation2 + $0x294] sm:$0xf0] }
 0x3bc   : > { %4158 = vmatmul.bf16.gmra.mxu1 %v6385_v3  ;;  %v6420_v3 = vld [vmem:[#allocation2 + $0x288] sm:$0xf] }
 0x3bd   : > { %12203 = vst [vmem:[#allocation214_spill] sm:$0xff] %v10731_v6  ;;  %4327 = vmatmul.bf16.gmra.mxu2 %v6389_v24 }
 0x3be   : > { %4496 = vmatmul.bf16.gmra.mxu3 %v6393_v8 }
 0x3c0   : > { %v4288_v54 = vpop.f32.mrf.mxu2  ;;  %v3952_v37 = vpop.f32.mrf.mxu0 }
 0x3c1   : > { %v4457_v23 = vpop.f32.mrf.mxu3  ;;  %v4289_v28 = vadd.f32 %v4288_v54, %v4120_v63  ;;  %v4121_v38 = vpop.f32.mrf.mxu1  ;;  %v6413_v63 = vor.u32 %v6820_v47, %v6412_v22  ;;  %v6417_v54 = vor.u32 %v6818_v29, %v6414_v56 }
 0x3c2   : > { %v4122_v42 = vadd.f32 %v4121_v38, %v3952_v37  ;;  %v6421_v38 = vor.u32 %v6821_v5, %v6420_v3 }
 0x3c3   : > { %v10733_v39 = vadd.f32 %v4457_v23, %v4289_v28 }
 0x3c8   : > { %v4290_v30 = vpop.f32.mrf.mxu2  ;;  %v3955_v9 = vpop.f32.mrf.mxu0 }
 0x3c9   : > { %v4459_v50 = vpop.f32.mrf.mxu3  ;;  %v4291_v7 = vadd.f32 %v4290_v30, %v4122_v42  ;;  %v4124_v41 = vpop.f32.mrf.mxu1  ;;  %v6425_v42 = vor.u32 %v6819_v55, %v6422_v32 }
 0x3ca   : > { %v4125_v36 = vadd.f32 %v4124_v41, %v3955_v9  ;;  %v6436_v9 = vld [vmem:[#allocation2 + $0x2a8] sm:$0xf]  ;;  %v6825_v41 = vld [vmem:[#allocation2 + $0x2b4] sm:$0xf0] }
 0x3cb   : > { %v10735_v48 = vadd.f32 %v4459_v50, %v4291_v7  ;;  %3994 = vmatmul.bf16.gmra.mxu0 %v6397_v46  ;;  %v6428_v50 = vld [vmem:[#allocation2 + $0x2a0] sm:$0xf]  ;;  %v6824_v46 = vld [vmem:[#allocation2 + $0x2ac] sm:$0xf0]  ;;  %v6430_v7 = vld [vmem:[#allocation2 + $0x2b0] sm:$0xf0]  ;;  %v6437_v22 = vor.u32 %v6825_v41, %v6436_v9 }
 0x3cc   : > { %4163 = vmatmul.bf16.gmra.mxu1 %v6401_v4  ;;  %v6822_v4 = vld [vmem:[#allocation2 + $0x2a4] sm:$0xf] }
 0x3cd   : > { %4332 = vmatmul.bf16.gmra.mxu2 %v6405_v19  ;;  %v6823_v19 = vld [vmem:[#allocation2 + $0x2ac] sm:$0xf] }
 0x3ce   : > { %4501 = vmatmul.bf16.gmra.mxu3 %v6409_v27  ;;  %v6438_v27 = vld [vmem:[#allocation2 + $0x2b8] sm:$0xf0] }
 0x3cf   : > { %v6441_v47 = vor.u32 %v6823_v19, %v6438_v27 }
 0x3d0   : > { %v4293_v44 = vpop.f32.mrf.mxu2  ;;  %v3957_v59 = vpop.f32.mrf.mxu0 }
 0x3d1   : > { %v4462_v49 = vpop.f32.mrf.mxu3  ;;  %v4294_v18 = vadd.f32 %v4293_v44, %v4125_v36  ;;  %v4126_v45 = vpop.f32.mrf.mxu1 }
 0x3d2   : > { %v4127_v51 = vadd.f32 %v4126_v45, %v3957_v59 }
 0x3d3   : > { %v10737_v20 = vadd.f32 %v4462_v49, %v4294_v18  ;;  %v6429_v49 = vor.u32 %v6824_v46, %v6428_v50  ;;  %v6433_v18 = vor.u32 %v6822_v4, %v6430_v7 }
 0x3d8   : > { %v4295_v24 = vpop.f32.mrf.mxu2  ;;  %v3960_v28 = vpop.f32.mrf.mxu0 }
 0x3d9   : > { %v4464_v8 = vpop.f32.mrf.mxu3  ;;  %v4296_v23 = vadd.f32 %v4295_v24, %v4127_v51  ;;  %v4129_v37 = vpop.f32.mrf.mxu1 }
 0x3da   : > { %v4130_v60 = vadd.f32 %v4129_v37, %v3960_v28  ;;  %v6826_v28 = vld [vmem:[#allocation2 + $0x2c4] sm:$0xf]  ;;  %v6446_v37 = vld [vmem:[#allocation2 + $0x2d0] sm:$0xf0] }
 0x3db   : > { %v10739_v62 = vadd.f32 %v4464_v8, %v4296_v23  ;;  %3999 = vmatmul.bf16.gmra.mxu0 %v6413_v63  ;;  %v6828_v23 = vld [vmem:[#allocation2 + $0x2cc] sm:$0xf0] }
 0x3dc   : > { %4168 = vmatmul.bf16.gmra.mxu1 %v6417_v54  ;;  %v6444_v54 = vld [vmem:[#allocation2 + $0x2c0] sm:$0xf] }
 0x3dd   : > { %12204 = vst [vmem:[#allocation215_spill] sm:$0xff] %v10739_v62  ;;  %4337 = vmatmul.bf16.gmra.mxu2 %v6421_v38  ;;  %v6452_v38 = vld [vmem:[#allocation2 + $0x2c8] sm:$0xf] }
 0x3de   : > { %4506 = vmatmul.bf16.gmra.mxu3 %v6425_v42  ;;  %v6829_v42 = vld [vmem:[#allocation2 + $0x2d4] sm:$0xf0] }
 0x3df   : > { %v6453_v4 = vor.u32 %v6829_v42, %v6452_v38 }
 0x3e0   : > { %v4298_v34 = vpop.f32.mrf.mxu2  ;;  %v3962_v14 = vpop.f32.mrf.mxu0 }
 0x3e1   : > { %v4467_v31 = vpop.f32.mrf.mxu3  ;;  %v4299_v17 = vadd.f32 %v4298_v34, %v4130_v60  ;;  %v4131_v1 = vpop.f32.mrf.mxu1  ;;  %v6827_v60 = vld [vmem:[#allocation2 + $0x2cc] sm:$0xf]  ;;  %v6454_v34 = vld [vmem:[#allocation2 + $0x2d8] sm:$0xf0] }
 0x3e2   : > { %v4132_v25 = vadd.f32 %v4131_v1, %v3962_v14  ;;  %v6445_v14 = vor.u32 %v6828_v23, %v6444_v54  ;;  %v6449_v1 = vor.u32 %v6826_v28, %v6446_v37  ;;  %v6457_v7 = vor.u32 %v6827_v60, %v6454_v34 }
 0x3e3   : > { %v10741_v30 = vadd.f32 %v4467_v31, %v4299_v17 }
 0x3e5   : > { %12205 = vst [vmem:[#allocation216_spill] sm:$0xff] %v10741_v30 }
 0x3e8   : > { %v4300_v36 = vpop.f32.mrf.mxu2  ;;  %v3965_v45 = vpop.f32.mrf.mxu0 }
 0x3e9   : > { %v4469_v44 = vpop.f32.mrf.mxu3  ;;  %v4301_v59 = vadd.f32 %v4300_v36, %v4132_v25  ;;  %v4134_v51 = vpop.f32.mrf.mxu1 }
 0x3ea   : > { %v4135_v29 = vadd.f32 %v4134_v51, %v3965_v45  ;;  %v6460_v45 = vld [vmem:[#allocation2 + $0x2e0] sm:$0xf]  ;;  %v6832_v51 = vld [vmem:[#allocation2 + $0x2ec] sm:$0xf0] }
 0x3eb   : > { %v10743_v56 = vadd.f32 %v4469_v44, %v4301_v59  ;;  %4004 = vmatmul.bf16.gmra.mxu0 %v6429_v49 }
 0x3ec   : > { %4173 = vmatmul.bf16.gmra.mxu1 %v6433_v18 }
 0x3ed   : > { %4342 = vmatmul.bf16.gmra.mxu2 %v6437_v22  ;;  %v6830_v22 = vld [vmem:[#allocation2 + $0x2e4] sm:$0xf] }
 0x3ee   : > { %4511 = vmatmul.bf16.gmra.mxu3 %v6441_v47  ;;  %v6462_v47 = vld [vmem:[#allocation2 + $0x2f0] sm:$0xf0] }
 0x3ef   : > { %v6465_v54 = vor.u32 %v6830_v22, %v6462_v47 }
 0x3f0   : > { %v4303_v3 = vpop.f32.mrf.mxu2  ;;  %v3967_v32 = vpop.f32.mrf.mxu0 }
 0x3f1   : > { %v4472_v5 = vpop.f32.mrf.mxu3  ;;  %v4304_v55 = vadd.f32 %v4303_v3, %v4135_v29  ;;  %v4136_v24 = vpop.f32.mrf.mxu1  ;;  %v6468_v29 = vld [vmem:[#allocation2 + $0x2e8] sm:$0xf]  ;;  %v6833_v3 = vld [vmem:[#allocation2 + $0x2f4] sm:$0xf0] }
 0x3f2   : > { %v4137_v8 = vadd.f32 %v4136_v24, %v3967_v32  ;;  %v6469_v38 = vor.u32 %v6833_v3, %v6468_v29 }
 0x3f3   : > { %v10745_v63 = vadd.f32 %v4472_v5, %v4304_v55  ;;  %v6831_v5 = vld [vmem:[#allocation2 + $0x2ec] sm:$0xf]  ;;  %v6470_v55 = vld [vmem:[#allocation2 + $0x2f8] sm:$0xf0] }
 0x3f4   : > { %v6473_v42 = vor.u32 %v6831_v5, %v6470_v55 }
 0x3f8   : > { %v4305_v31 = vpop.f32.mrf.mxu2  ;;  %v3970_v50 = vpop.f32.mrf.mxu0 }
 0x3f9   : > { %v4474_v17 = vpop.f32.mrf.mxu3  ;;  %v4306_v25 = vadd.f32 %v4305_v31, %v4137_v8  ;;  %v4139_v46 = vpop.f32.mrf.mxu1  ;;  %v6461_v8 = vor.u32 %v6832_v51, %v6460_v45 }
 0x3fa   : > { %v4140_v9 = vadd.f32 %v4139_v46, %v3970_v50 }
 0x3fb   : > { %v10747_v41 = vadd.f32 %v4474_v17, %v4306_v25  ;;  %4009 = vmatmul.bf16.gmra.mxu0 %v6445_v14 }
 0x3fc   : > { %4178 = vmatmul.bf16.gmra.mxu1 %v6449_v1 }
 0x3fd   : > { %4347 = vmatmul.bf16.gmra.mxu2 %v6453_v4  ;;  %v6476_v4 = vld [vmem:[#allocation2 + $0x300] sm:$0xf] }
 0x3fe   : > { %4516 = vmatmul.bf16.gmra.mxu3 %v6457_v7  ;;  %v6836_v7 = vld [vmem:[#allocation2 + $0x30c] sm:$0xf0] }
 0x3ff   : > { %v6477_v51 = vor.u32 %v6836_v7, %v6476_v4  ;;  %v6502_v4 = vld [vmem:[#allocation2 + $0x338] sm:$0xf0] }
 0x400   : > { %v4308_v19 = vpop.f32.mrf.mxu2  ;;  %v3972_v44 = vpop.f32.mrf.mxu0 }
 0x401   : > { %v4477_v27 = vpop.f32.mrf.mxu3  ;;  %v4309_v36 = vadd.f32 %v4308_v19, %v4140_v9  ;;  %v4141_v49 = vpop.f32.mrf.mxu1  ;;  %v6834_v9 = vld [vmem:[#allocation2 + $0x304] sm:$0xf]  ;;  %v6478_v19 = vld [vmem:[#allocation2 + $0x310] sm:$0xf0] }
 0x402   : > { %v4142_v18 = vadd.f32 %v4141_v49, %v3972_v44  ;;  %v6835_v44 = vld [vmem:[#allocation2 + $0x30c] sm:$0xf]  ;;  %v6486_v49 = vld [vmem:[#allocation2 + $0x318] sm:$0xf0]  ;;  %v6481_v22 = vor.u32 %v6834_v9, %v6478_v19 }
 0x403   : > { %v10749_v59 = vadd.f32 %v4477_v27, %v4309_v36  ;;  %v6484_v27 = vld [vmem:[#allocation2 + $0x308] sm:$0xf]  ;;  %v6837_v36 = vld [vmem:[#allocation2 + $0x314] sm:$0xf0]  ;;  %v6489_v55 = vor.u32 %v6835_v44, %v6486_v49 }
 0x404   : > { %v6485_v5 = vor.u32 %v6837_v36, %v6484_v27 }
 0x408   : > { %v4310_v32 = vpop.f32.mrf.mxu2  ;;  %v3975_v28 = vpop.f32.mrf.mxu0 }
 0x409   : > { %v4479_v24 = vpop.f32.mrf.mxu3  ;;  %v4311_v23 = vadd.f32 %v4310_v32, %v4142_v18  ;;  %v4144_v37 = vpop.f32.mrf.mxu1 }
 0x40a   : > { %v4145_v60 = vadd.f32 %v4144_v37, %v3975_v28 }
 0x40b   : > { %v10751_v34 = vadd.f32 %v4479_v24, %v4311_v23  ;;  %4014 = vmatmul.bf16.gmra.mxu0 %v6461_v8 }
 0x40c   : > { %4183 = vmatmul.bf16.gmra.mxu1 %v6465_v54 }
 0x40d   : > { %4352 = vmatmul.bf16.gmra.mxu2 %v6469_v38 }
 0x40e   : > { %4521 = vmatmul.bf16.gmra.mxu3 %v6473_v42 }
 0x410   : > { %v4313_v31 = vpop.f32.mrf.mxu2  ;;  %v3977_v1 = vpop.f32.mrf.mxu0 }
 0x411   : > { %v4482_v17 = vpop.f32.mrf.mxu3  ;;  %v4314_v14 = vadd.f32 %v4313_v31, %v4145_v60  ;;  %v4146_v25 = vpop.f32.mrf.mxu1  ;;  %v6492_v60 = vld [vmem:[#allocation2 + $0x320] sm:$0xf]  ;;  %v6840_v31 = vld [vmem:[#allocation2 + $0x32c] sm:$0xf0] }
 0x412   : > { %v4147_v50 = vadd.f32 %v4146_v25, %v3977_v1  ;;  %v6500_v1 = vld [vmem:[#allocation2 + $0x328] sm:$0xf]  ;;  %v6841_v25 = vld [vmem:[#allocation2 + $0x334] sm:$0xf0]  ;;  %v6493_v19 = vor.u32 %v6840_v31, %v6492_v60  ;;  %v6843_v31 = vld [vmem:[#allocation2 + $0x34c] sm:$0xf] }
 0x413   : > { %v10753_v46 = vadd.f32 %v4482_v17, %v4314_v14  ;;  %v6838_v17 = vld [vmem:[#allocation2 + $0x324] sm:$0xf]  ;;  %v6494_v14 = vld [vmem:[#allocation2 + $0x330] sm:$0xf0]  ;;  %v6845_v60 = vld [vmem:[#allocation2 + $0x354] sm:$0xf0] }
 0x414   : > { %v6497_v27 = vor.u32 %v6838_v17, %v6494_v14  ;;  %v6518_v17 = vld [vmem:[#allocation2 + $0x358] sm:$0xf0] }
 0x418   : > { %v4315_v18 = vpop.f32.mrf.mxu2  ;;  %v3980_v29 = vpop.f32.mrf.mxu0 }
 0x419   : > { %v4484_v45 = vpop.f32.mrf.mxu3  ;;  %v4316_v47 = vadd.f32 %v4315_v18, %v4147_v50  ;;  %v4149_v3 = vpop.f32.mrf.mxu1  ;;  %v6839_v50 = vld [vmem:[#allocation2 + $0x32c] sm:$0xf]  ;;  %v6501_v18 = vor.u32 %v6841_v25, %v6500_v1 }
 0x41a   : > { %v4150_v32 = vadd.f32 %v4149_v3, %v3980_v29 }
 0x41b   : > { %v10755_v24 = vadd.f32 %v4484_v45, %v4316_v47  ;;  %4019 = vmatmul.bf16.gmra.mxu0 %v6477_v51  ;;  %v6505_v45 = vor.u32 %v6839_v50, %v6502_v4 }
 0x41c   : > { %4188 = vmatmul.bf16.gmra.mxu1 %v6481_v22 }
 0x41d   : > { %4357 = vmatmul.bf16.gmra.mxu2 %v6485_v5 }
 0x41e   : > { %4526 = vmatmul.bf16.gmra.mxu3 %v6489_v55 }
 0x420   : > { %v4318_v8 = vpop.f32.mrf.mxu2  ;;  %v3982_v28 = vpop.f32.mrf.mxu0 }
 0x421   : > { %v4487_v54 = vpop.f32.mrf.mxu3  ;;  %v4319_v23 = vadd.f32 %v4318_v8, %v4150_v32  ;;  %v4151_v37 = vpop.f32.mrf.mxu1 }
 0x422   : > { %v4152_v38 = vadd.f32 %v4151_v37, %v3982_v28  ;;  %v6842_v28 = vld [vmem:[#allocation2 + $0x344] sm:$0xf]  ;;  %v6510_v37 = vld [vmem:[#allocation2 + $0x350] sm:$0xf0] }
 0x423   : > { %v10757_v42 = vadd.f32 %v4487_v54, %v4319_v23  ;;  %v6508_v54 = vld [vmem:[#allocation2 + $0x340] sm:$0xf]  ;;  %v6844_v23 = vld [vmem:[#allocation2 + $0x34c] sm:$0xf0]  ;;  %v6513_v50 = vor.u32 %v6842_v28, %v6510_v37  ;;  %v6849_v28 = vld [vmem:[#allocation2 + $0x374] sm:$0xf0] }
 0x424   : > { %v6509_v25 = vor.u32 %v6844_v23, %v6508_v54  ;;  %v6526_v54 = vld [vmem:[#allocation2 + $0x370] sm:$0xf0]  ;;  %v6532_v23 = vld [vmem:[#allocation2 + $0x368] sm:$0xf]  ;;  %v6847_v37 = vld [vmem:[#allocation2 + $0x36c] sm:$0xf] }
 0x428   : > { %v4320_v7 = vpop.f32.mrf.mxu2  ;;  %v3985_v44 = vpop.f32.mrf.mxu0 }
 0x429   : > { %v4489_v9 = vpop.f32.mrf.mxu3  ;;  %v4321_v36 = vadd.f32 %v4320_v7, %v4152_v38  ;;  %v4154_v49 = vpop.f32.mrf.mxu1  ;;  %v6516_v38 = vld [vmem:[#allocation2 + $0x348] sm:$0xf] }
 0x42a   : > { %v4155_v51 = vadd.f32 %v4154_v49, %v3985_v44 }
 0x42b   : > { %v10759_v22 = vadd.f32 %v4489_v9, %v4321_v36  ;;  %4024 = vmatmul.bf16.gmra.mxu0 %v6493_v19  ;;  %v6517_v19 = vor.u32 %v6845_v60, %v6516_v38  ;;  %v6534_v38 = vld [vmem:[#allocation2 + $0x378] sm:$0xf0] }
 0x42c   : > { %4193 = vmatmul.bf16.gmra.mxu1 %v6497_v27  ;;  %v6521_v27 = vor.u32 %v6843_v31, %v6518_v17 }
 0x42d   : > { %4362 = vmatmul.bf16.gmra.mxu2 %v6501_v18 }
 0x42e   : > { %4531 = vmatmul.bf16.gmra.mxu3 %v6505_v45 }
 0x430   : > { %v4323_v47 = vpop.f32.mrf.mxu2  ;;  %v3987_v5 = vpop.f32.mrf.mxu0 }
 0x431   : > { %v4492_v29 = vpop.f32.mrf.mxu3  ;;  %v4324_v3 = vadd.f32 %v4323_v47, %v4155_v51  ;;  %v4156_v55 = vpop.f32.mrf.mxu1 }
 0x432   : > { %v4157_v32 = vadd.f32 %v4156_v55, %v3987_v5  ;;  %v6524_v5 = vld [vmem:[#allocation2 + $0x360] sm:$0xf]  ;;  %v6848_v55 = vld [vmem:[#allocation2 + $0x36c] sm:$0xf0] }
 0x433   : > { %v10761_v8 = vadd.f32 %v4492_v29, %v4324_v3  ;;  %v6525_v17 = vor.u32 %v6848_v55, %v6524_v5  ;;  %v6852_v5 = vld [vmem:[#allocation2 + $0x38c] sm:$0xf0]  ;;  %v6850_v55 = vld [vmem:[#allocation2 + $0x384] sm:$0xf] }
 0x438   : > { %v4325_v14 = vpop.f32.mrf.mxu2  ;;  %v3990_v7 = vpop.f32.mrf.mxu0 }
 0x439   : > { %v4494_v1 = vpop.f32.mrf.mxu3  ;;  %v4326_v4 = vadd.f32 %v4325_v14, %v4157_v32  ;;  %v4159_v9 = vpop.f32.mrf.mxu1  ;;  %v6846_v32 = vld [vmem:[#allocation2 + $0x364] sm:$0xf] }
 0x43a   : > { %v4160_v36 = vadd.f32 %v4159_v9, %v3990_v7  ;;  %v6529_v14 = vor.u32 %v6846_v32, %v6526_v54  ;;  %v6537_v7 = vor.u32 %v6847_v37, %v6534_v38  ;;  %v6542_v32 = vld [vmem:[#allocation2 + $0x390] sm:$0xf0]  ;;  %v6548_v54 = vld [vmem:[#allocation2 + $0x388] sm:$0xf]  ;;  %v6550_v37 = vld [vmem:[#allocation2 + $0x398] sm:$0xf0] }
 0x43b   : > { %v10763_v44 = vadd.f32 %v4494_v1, %v4326_v4  ;;  %4029 = vmatmul.bf16.gmra.mxu0 %v6509_v25  ;;  %v6533_v4 = vor.u32 %v6849_v28, %v6532_v23  ;;  %v6853_v23 = vld [vmem:[#allocation2 + $0x394] sm:$0xf0]  ;;  %v6851_v28 = vld [vmem:[#allocation2 + $0x38c] sm:$0xf] }
 0x43c   : > { %4198 = vmatmul.bf16.gmra.mxu1 %v6513_v50 }
 0x43d   : > { %12206 = vst [vmem:[#allocation217_spill] sm:$0xff] %v10763_v44  ;;  %4367 = vmatmul.bf16.gmra.mxu2 %v6517_v19 }
 0x43e   : > { %4536 = vmatmul.bf16.gmra.mxu3 %v6521_v27 }
 0x440   : > { %v4328_v49 = vpop.f32.mrf.mxu2  ;;  %v3992_v51 = vpop.f32.mrf.mxu0 }
 0x441   : > { %v4497_v18 = vpop.f32.mrf.mxu3  ;;  %v4329_v45 = vadd.f32 %v4328_v49, %v4160_v36  ;;  %v4161_v47 = vpop.f32.mrf.mxu1 }
 0x442   : > { %v4162_v29 = vadd.f32 %v4161_v47, %v3992_v51 }
 0x443   : > { %v10765_v3 = vadd.f32 %v4497_v18, %v4329_v45 }
 0x445   : > { %12207 = vst [vmem:[#allocation218_spill] sm:$0xff] %v10765_v3 }
 0x448   : > { %v4330_v60 = vpop.f32.mrf.mxu2  ;;  %v3995_v25 = vpop.f32.mrf.mxu0 }
 0x449   : > { %v4499_v31 = vpop.f32.mrf.mxu3  ;;  %v4331_v1 = vadd.f32 %v4330_v60, %v4162_v29  ;;  %v4164_v50 = vpop.f32.mrf.mxu1  ;;  %v6540_v29 = vld [vmem:[#allocation2 + $0x380] sm:$0xf] }
 0x44a   : > { %v4165_v9 = vadd.f32 %v4164_v50, %v3995_v25  ;;  %v6549_v50 = vor.u32 %v6853_v23, %v6548_v54  ;;  %v6564_v54 = vld [vmem:[#allocation2 + $0x3a8] sm:$0xf]  ;;  %v6857_v23 = vld [vmem:[#allocation2 + $0x3b4] sm:$0xf0] }
 0x44b   : > { %v10767_v19 = vadd.f32 %v4499_v31, %v4331_v1  ;;  %4034 = vmatmul.bf16.gmra.mxu0 %v6525_v17  ;;  %v6541_v31 = vor.u32 %v6852_v5, %v6540_v29  ;;  %v6545_v17 = vor.u32 %v6850_v55, %v6542_v32  ;;  %v6856_v5 = vld [vmem:[#allocation2 + $0x3ac] sm:$0xf0]  ;;  %v6854_v55 = vld [vmem:[#allocation2 + $0x3a4] sm:$0xf]  ;;  %v6558_v32 = vld [vmem:[#allocation2 + $0x3b0] sm:$0xf0] }
 0x44c   : > { %4203 = vmatmul.bf16.gmra.mxu1 %v6529_v14 }
 0x44d   : > { %12208 = vst [vmem:[#allocation219_spill] sm:$0xff] %v10767_v19  ;;  %4372 = vmatmul.bf16.gmra.mxu2 %v6533_v4  ;;  %v6553_v4 = vor.u32 %v6851_v28, %v6550_v37  ;;  %v6855_v28 = vld [vmem:[#allocation2 + $0x3ac] sm:$0xf]  ;;  %v6566_v37 = vld [vmem:[#allocation2 + $0x3b8] sm:$0xf0] }
 0x44e   : > { %4541 = vmatmul.bf16.gmra.mxu3 %v6537_v7 }
 0x450   : > { %v4333_v27 = vpop.f32.mrf.mxu2  ;;  %v3997_v18 = vpop.f32.mrf.mxu0 }
 0x451   : > { %v4502_v36 = vpop.f32.mrf.mxu3  ;;  %v4334_v49 = vadd.f32 %v4333_v27, %v4165_v9  ;;  %v4166_v45 = vpop.f32.mrf.mxu1 }
 0x452   : > { %v4167_v51 = vadd.f32 %v4166_v45, %v3997_v18 }
 0x453   : > { %v10769_v47 = vadd.f32 %v4502_v36, %v4334_v49 }
 0x455   : > { %12209 = vst [vmem:[#allocation220_spill] sm:$0xff] %v10769_v47 }
 0x458   : > { %v4335_v38 = vpop.f32.mrf.mxu2  ;;  %v4000_v1 = vpop.f32.mrf.mxu0 }
 0x459   : > { %v4504_v60 = vpop.f32.mrf.mxu3  ;;  %v4336_v14 = vadd.f32 %v4335_v38, %v4167_v51  ;;  %v4169_v25 = vpop.f32.mrf.mxu1  ;;  %v6556_v51 = vld [vmem:[#allocation2 + $0x3a0] sm:$0xf] }
 0x45a   : > { %v4170_v7 = vadd.f32 %v4169_v25, %v4000_v1 }
 0x45b   : > { %v10771_v9 = vadd.f32 %v4504_v60, %v4336_v14  ;;  %4039 = vmatmul.bf16.gmra.mxu0 %v6541_v31  ;;  %v6557_v31 = vor.u32 %v6856_v5, %v6556_v51  ;;  %v6860_v5 = vld [vmem:[#allocation2 + $0x3cc] sm:$0xf0] }
 0x45c   : > { %4208 = vmatmul.bf16.gmra.mxu1 %v6545_v17  ;;  %v6561_v17 = vor.u32 %v6854_v55, %v6558_v32  ;;  %v6858_v55 = vld [vmem:[#allocation2 + $0x3c4] sm:$0xf]  ;;  %v6574_v32 = vld [vmem:[#allocation2 + $0x3d0] sm:$0xf0] }
 0x45d   : > { %12210 = vst [vmem:[#allocation221_spill] sm:$0xff] %v10771_v9  ;;  %4377 = vmatmul.bf16.gmra.mxu2 %v6549_v50  ;;  %v6565_v50 = vor.u32 %v6857_v23, %v6564_v54  ;;  %v6580_v54 = vld [vmem:[#allocation2 + $0x3c8] sm:$0xf]  ;;  %v6861_v23 = vld [vmem:[#allocation2 + $0x3d4] sm:$0xf0] }
 0x45e   : > { %4546 = vmatmul.bf16.gmra.mxu3 %v6553_v4  ;;  %v6569_v4 = vor.u32 %v6855_v28, %v6566_v37  ;;  %v6859_v28 = vld [vmem:[#allocation2 + $0x3cc] sm:$0xf]  ;;  %v6582_v37 = vld [vmem:[#allocation2 + $0x3d8] sm:$0xf0] }
 0x460   : > { %v4338_v27 = vpop.f32.mrf.mxu2  ;;  %v4002_v18 = vpop.f32.mrf.mxu0 }
 0x461   : > { %v4507_v36 = vpop.f32.mrf.mxu3  ;;  %v4339_v49 = vadd.f32 %v4338_v27, %v4170_v7  ;;  %v4171_v45 = vpop.f32.mrf.mxu1 }
 0x462   : > { %v4172_v47 = vadd.f32 %v4171_v45, %v4002_v18 }
 0x463   : > { %v10773_v29 = vadd.f32 %v4507_v36, %v4339_v49 }
 0x465   : > { %12211 = vst [vmem:[#allocation222_spill] sm:$0xff] %v10773_v29 }
 0x468   : > { %v4340_v38 = vpop.f32.mrf.mxu2  ;;  %v4005_v1 = vpop.f32.mrf.mxu0 }
 0x469   : > { %v4509_v60 = vpop.f32.mrf.mxu3  ;;  %v4341_v14 = vadd.f32 %v4340_v38, %v4172_v47  ;;  %v4174_v25 = vpop.f32.mrf.mxu1  ;;  %v6572_v47 = vld [vmem:[#allocation2 + $0x3c0] sm:$0xf] }
 0x46a   : > { %v4175_v7 = vadd.f32 %v4174_v25, %v4005_v1 }
 0x46b   : > { %v10775_v27 = vadd.f32 %v4509_v60, %v4341_v14  ;;  %4044 = vmatmul.bf16.gmra.mxu0 %v6557_v31  ;;  %v6573_v31 = vor.u32 %v6860_v5, %v6572_v47  ;;  %v6864_v5 = vld [vmem:[#allocation2 + $0x3ec] sm:$0xf0] }
 0x46c   : > { %4213 = vmatmul.bf16.gmra.mxu1 %v6561_v17  ;;  %v6577_v17 = vor.u32 %v6858_v55, %v6574_v32  ;;  %v6862_v55 = vld [vmem:[#allocation2 + $0x3e4] sm:$0xf]  ;;  %v6590_v32 = vld [vmem:[#allocation2 + $0x3f0] sm:$0xf0] }
 0x46d   : > { %12212 = vst [vmem:[#allocation223_spill] sm:$0xff] %v10775_v27  ;;  %4382 = vmatmul.bf16.gmra.mxu2 %v6565_v50  ;;  %v6581_v50 = vor.u32 %v6861_v23, %v6580_v54  ;;  %v6596_v54 = vld [vmem:[#allocation2 + $0x3e8] sm:$0xf]  ;;  %v6865_v23 = vld [vmem:[#allocation2 + $0x3f4] sm:$0xf0] }
 0x46e   : > { %4551 = vmatmul.bf16.gmra.mxu3 %v6569_v4  ;;  %v6585_v4 = vor.u32 %v6859_v28, %v6582_v37  ;;  %v6863_v28 = vld [vmem:[#allocation2 + $0x3ec] sm:$0xf]  ;;  %v6598_v37 = vld [vmem:[#allocation2 + $0x3f8] sm:$0xf0] }
 0x470   : > { %v4343_v36 = vpop.f32.mrf.mxu2  ;;  %v4007_v45 = vpop.f32.mrf.mxu0 }
 0x471   : > { %v4512_v49 = vpop.f32.mrf.mxu3  ;;  %v4344_v18 = vadd.f32 %v4343_v36, %v4175_v7  ;;  %v4176_v9 = vpop.f32.mrf.mxu1 }
 0x472   : > { %v4177_v29 = vadd.f32 %v4176_v9, %v4007_v45 }
 0x473   : > { %v10777_v51 = vadd.f32 %v4512_v49, %v4344_v18 }
 0x475   : > { %12213 = vst [vmem:[#allocation224_spill] sm:$0xff] %v10777_v51 }
 0x478   : > { %v4345_v38 = vpop.f32.mrf.mxu2  ;;  %v4010_v1 = vpop.f32.mrf.mxu0 }
 0x479   : > { %v4514_v60 = vpop.f32.mrf.mxu3  ;;  %v4346_v14 = vadd.f32 %v4345_v38, %v4177_v29  ;;  %v4179_v25 = vpop.f32.mrf.mxu1  ;;  %v6588_v29 = vld [vmem:[#allocation2 + $0x3e0] sm:$0xf] }
 0x47a   : > { %v4180_v9 = vadd.f32 %v4179_v25, %v4010_v1 }
 0x47b   : > { %v10779_v7 = vadd.f32 %v4514_v60, %v4346_v14  ;;  %4049 = vmatmul.bf16.gmra.mxu0 %v6573_v31  ;;  %v6589_v31 = vor.u32 %v6864_v5, %v6588_v29 }
 0x47c   : > { %4218 = vmatmul.bf16.gmra.mxu1 %v6577_v17  ;;  %v6593_v17 = vor.u32 %v6862_v55, %v6590_v32 }
 0x47d   : > { %12214 = vst [vmem:[#allocation225_spill] sm:$0xff] %v10779_v7  ;;  %4387 = vmatmul.bf16.gmra.mxu2 %v6581_v50  ;;  %v6597_v50 = vor.u32 %v6865_v23, %v6596_v54 }
 0x47e   : > { %4556 = vmatmul.bf16.gmra.mxu3 %v6585_v4  ;;  %v6601_v4 = vor.u32 %v6863_v28, %v6598_v37 }
 0x480   : > { %v4348_v36 = vpop.f32.mrf.mxu2  ;;  %v4012_v45 = vpop.f32.mrf.mxu0 }
 0x481   : > { %v4517_v49 = vpop.f32.mrf.mxu3  ;;  %v4349_v18 = vadd.f32 %v4348_v36, %v4180_v9  ;;  %v4181_v51 = vpop.f32.mrf.mxu1 }
 0x482   : > { %v4182_v27 = vadd.f32 %v4181_v51, %v4012_v45 }
 0x483   : > { %v10781_v47 = vadd.f32 %v4517_v49, %v4349_v18 }
 0x485   : > { %12215 = vst [vmem:[#allocation226_spill] sm:$0xff] %v10781_v47 }
 0x488   : > { %v4350_v38 = vpop.f32.mrf.mxu2  ;;  %v4015_v1 = vpop.f32.mrf.mxu0 }
 0x489   : > { %v4519_v60 = vpop.f32.mrf.mxu3  ;;  %v4351_v14 = vadd.f32 %v4350_v38, %v4182_v27  ;;  %v4184_v25 = vpop.f32.mrf.mxu1 }
 0x48a   : > { %v4185_v51 = vadd.f32 %v4184_v25, %v4015_v1 }
 0x48b   : > { %v10783_v9 = vadd.f32 %v4519_v60, %v4351_v14  ;;  %4054 = vmatmul.bf16.gmra.mxu0 %v6589_v31 }
 0x48c   : > { %4223 = vmatmul.bf16.gmra.mxu1 %v6593_v17 }
 0x48d   : > { %12216 = vst [vmem:[#allocation227_spill] sm:$0xff] %v10783_v9  ;;  %4392 = vmatmul.bf16.gmra.mxu2 %v6597_v50 }
 0x48e   : > { %4561 = vmatmul.bf16.gmra.mxu3 %v6601_v4 }
 0x490   : > { %v4353_v36 = vpop.f32.mrf.mxu2  ;;  %v4017_v45 = vpop.f32.mrf.mxu0 }
 0x491   : > { %v4522_v49 = vpop.f32.mrf.mxu3  ;;  %v4354_v18 = vadd.f32 %v4353_v36, %v4185_v51  ;;  %v4186_v47 = vpop.f32.mrf.mxu1 }
 0x492   : > { %v4187_v7 = vadd.f32 %v4186_v47, %v4017_v45 }
 0x493   : > { %v10785_v29 = vadd.f32 %v4522_v49, %v4354_v18 }
 0x495   : > { %12217 = vst [vmem:[#allocation228_spill] sm:$0xff] %v10785_v29 }
 0x498   : > { %v4355_v27 = vpop.f32.mrf.mxu2  ;;  %v4020_v32 = vpop.f32.mrf.mxu0 }
 0x499   : > { %v4524_v5 = vpop.f32.mrf.mxu3  ;;  %v4356_v55 = vadd.f32 %v4355_v27, %v4187_v7  ;;  %v4189_v54 = vpop.f32.mrf.mxu1 }
 0x49a   : > { %v4190_v23 = vadd.f32 %v4189_v54, %v4020_v32 }
 0x49b   : > { %v10787_v28 = vadd.f32 %v4524_v5, %v4356_v55 }
 0x4a0   : > { %v4358_v37 = vpop.f32.mrf.mxu2  ;;  %v4022_v31 = vpop.f32.mrf.mxu0 }
 0x4a1   : > { %v4527_v38 = vpop.f32.mrf.mxu3  ;;  %v4359_v60 = vadd.f32 %v4358_v37, %v4190_v23  ;;  %v4191_v17 = vpop.f32.mrf.mxu1 }
 0x4a2   : > { %v4192_v14 = vadd.f32 %v4191_v17, %v4022_v31 }
 0x4a3   : > { %v10789_v1 = vadd.f32 %v4527_v38, %v4359_v60 }
 0x4a5   : > { %12218 = vst [vmem:[#allocation229_spill] sm:$0xff] %v10789_v1 }
 0x4a8   : > { %v4360_v25 = vpop.f32.mrf.mxu2  ;;  %v4025_v4 = vpop.f32.mrf.mxu0 }
 0x4a9   : > { %v4529_v47 = vpop.f32.mrf.mxu3  ;;  %v4361_v50 = vadd.f32 %v4360_v25, %v4192_v14  ;;  %v4194_v51 = vpop.f32.mrf.mxu1 }
 0x4aa   : > { %v4195_v36 = vadd.f32 %v4194_v51, %v4025_v4 }
 0x4ab   : > { %v10791_v7 = vadd.f32 %v4529_v47, %v4361_v50 }
 0x4b0   : > { %v4363_v49 = vpop.f32.mrf.mxu2  ;;  %v4027_v27 = vpop.f32.mrf.mxu0 }
 0x4b1   : > { %v4532_v18 = vpop.f32.mrf.mxu3  ;;  %v4364_v45 = vadd.f32 %v4363_v49, %v4195_v36  ;;  %v4196_v5 = vpop.f32.mrf.mxu1 }
 0x4b2   : > { %v4197_v55 = vadd.f32 %v4196_v5, %v4027_v27 }
 0x4b3   : > { %v10793_v32 = vadd.f32 %v4532_v18, %v4364_v45 }
 0x4b5   : > { %12219 = vst [vmem:[#allocation230_spill] sm:$0xff] %v10793_v32 }
 0x4b8   : > { %v4365_v54 = vpop.f32.mrf.mxu2  ;;  %v4030_v38 = vpop.f32.mrf.mxu0 }
 0x4b9   : > { %v4534_v23 = vpop.f32.mrf.mxu3  ;;  %v4366_v37 = vadd.f32 %v4365_v54, %v4197_v55  ;;  %v4199_v60 = vpop.f32.mrf.mxu1 }
 0x4ba   : > { %v4200_v31 = vadd.f32 %v4199_v60, %v4030_v38 }
 0x4bb   : > { %v10795_v17 = vadd.f32 %v4534_v23, %v4366_v37 }
 0x4bd   : > { %12220 = vst [vmem:[#allocation231_spill] sm:$0xff] %v10795_v17 }
 0x4c0   : > { %v4368_v14 = vpop.f32.mrf.mxu2  ;;  %v4032_v50 = vpop.f32.mrf.mxu0 }
 0x4c1   : > { %v4537_v25 = vpop.f32.mrf.mxu3  ;;  %v4369_v47 = vadd.f32 %v4368_v14, %v4200_v31  ;;  %v4201_v4 = vpop.f32.mrf.mxu1 }
 0x4c2   : > { %v4202_v51 = vadd.f32 %v4201_v4, %v4032_v50 }
 0x4c3   : > { %v10797_v36 = vadd.f32 %v4537_v25, %v4369_v47 }
 0x4c5   : > { %12221 = vst [vmem:[#allocation232_spill] sm:$0xff] %v10797_v36 }
 0x4c8   : > { %v4370_v49 = vpop.f32.mrf.mxu2  ;;  %v4035_v45 = vpop.f32.mrf.mxu0 }
 0x4c9   : > { %v4539_v27 = vpop.f32.mrf.mxu3  ;;  %v4371_v18 = vadd.f32 %v4370_v49, %v4202_v51  ;;  %v4204_v5 = vpop.f32.mrf.mxu1 }
 0x4ca   : > { %v4205_v32 = vadd.f32 %v4204_v5, %v4035_v45 }
 0x4cb   : > { %v10799_v55 = vadd.f32 %v4539_v27, %v4371_v18 }
 0x4cd   : > { %12222 = vst [vmem:[#allocation233_spill] sm:$0xff] %v10799_v55 }
 0x4d0   : > { %v4373_v54 = vpop.f32.mrf.mxu2  ;;  %v4037_v37 = vpop.f32.mrf.mxu0 }
 0x4d1   : > { %v4542_v38 = vpop.f32.mrf.mxu3  ;;  %v4374_v23 = vadd.f32 %v4373_v54, %v4205_v32  ;;  %v4206_v60 = vpop.f32.mrf.mxu1 }
 0x4d2   : > { %v4207_v17 = vadd.f32 %v4206_v60, %v4037_v37 }
 0x4d3   : > { %v10801_v31 = vadd.f32 %v4542_v38, %v4374_v23 }
 0x4d5   : > { %12223 = vst [vmem:[#allocation234_spill] sm:$0xff] %v10801_v31 }
 0x4d8   : > { %v4375_v14 = vpop.f32.mrf.mxu2  ;;  %v4040_v47 = vpop.f32.mrf.mxu0 }
 0x4d9   : > { %v4544_v50 = vpop.f32.mrf.mxu3  ;;  %v4376_v25 = vadd.f32 %v4375_v14, %v4207_v17  ;;  %v4209_v4 = vpop.f32.mrf.mxu1 }
 0x4da   : > { %v4210_v51 = vadd.f32 %v4209_v4, %v4040_v47 }
 0x4db   : > { %v10803_v36 = vadd.f32 %v4544_v50, %v4376_v25 }
 0x4dd   : > { %12224 = vst [vmem:[#allocation235_spill] sm:$0xff] %v10803_v36 }
 0x4e0   : > { %v4378_v49 = vpop.f32.mrf.mxu2  ;;  %v4042_v18 = vpop.f32.mrf.mxu0 }
 0x4e1   : > { %v4547_v45 = vpop.f32.mrf.mxu3  ;;  %v4379_v27 = vadd.f32 %v4378_v49, %v4210_v51  ;;  %v4211_v5 = vpop.f32.mrf.mxu1 }
 0x4e2   : > { %v4212_v32 = vadd.f32 %v4211_v5, %v4042_v18 }
 0x4e3   : > { %v10805_v55 = vadd.f32 %v4547_v45, %v4379_v27 }
 0x4e5   : > { %12225 = vst [vmem:[#allocation236_spill] sm:$0xff] %v10805_v55 }
 0x4e8   : > { %v4380_v54 = vpop.f32.mrf.mxu2  ;;  %v4045_v23 = vpop.f32.mrf.mxu0 }
 0x4e9   : > { %v4549_v37 = vpop.f32.mrf.mxu3  ;;  %v4381_v38 = vadd.f32 %v4380_v54, %v4212_v32  ;;  %v4214_v60 = vpop.f32.mrf.mxu1 }
 0x4ea   : > { %v4215_v17 = vadd.f32 %v4214_v60, %v4045_v23 }
 0x4eb   : > { %v10807_v31 = vadd.f32 %v4549_v37, %v4381_v38 }
 0x4ed   : > { %12226 = vst [vmem:[#allocation237_spill] sm:$0xff] %v10807_v31 }
 0x4f0   : > { %v4383_v14 = vpop.f32.mrf.mxu2  ;;  %v4047_v47 = vpop.f32.mrf.mxu0 }
 0x4f1   : > { %v4552_v50 = vpop.f32.mrf.mxu3  ;;  %v4384_v25 = vadd.f32 %v4383_v14, %v4215_v17  ;;  %v4216_v4 = vpop.f32.mrf.mxu1 }
 0x4f2   : > { %v4217_v51 = vadd.f32 %v4216_v4, %v4047_v47 }
 0x4f3   : > { %v10809_v36 = vadd.f32 %v4552_v50, %v4384_v25 }
 0x4f5   : > { %12227 = vst [vmem:[#allocation238_spill] sm:$0xff] %v10809_v36 }
 0x4f8   : > { %v4385_v49 = vpop.f32.mrf.mxu2  ;;  %v4050_v18 = vpop.f32.mrf.mxu0 }
 0x4f9   : > { %v4554_v45 = vpop.f32.mrf.mxu3  ;;  %v4386_v27 = vadd.f32 %v4385_v49, %v4217_v51  ;;  %v4219_v5 = vpop.f32.mrf.mxu1 }
 0x4fa   : > { %v4220_v32 = vadd.f32 %v4219_v5, %v4050_v18 }
 0x4fb   : > { %v10811_v55 = vadd.f32 %v4554_v45, %v4386_v27 }
 0x4fd   : > { %12228 = vst [vmem:[#allocation239_spill] sm:$0xff] %v10811_v55 }
 0x500   : > { %v4388_v54 = vpop.f32.mrf.mxu2  ;;  %v4052_v23 = vpop.f32.mrf.mxu0 }
 0x501   : > { %v4557_v37 = vpop.f32.mrf.mxu3  ;;  %v4389_v38 = vadd.f32 %v4388_v54, %v4220_v32  ;;  %v4221_v60 = vpop.f32.mrf.mxu1 }
 0x502   : > { %v4222_v17 = vadd.f32 %v4221_v60, %v4052_v23 }
 0x503   : > { %v10813_v31 = vadd.f32 %v4557_v37, %v4389_v38 }
 0x508   : > { %v4390_v14 = vpop.f32.mrf.mxu2  ;;  %v4055_v47 = vpop.f32.mrf.mxu0 }
 0x509   : > { %v4559_v50 = vpop.f32.mrf.mxu3  ;;  %v4391_v25 = vadd.f32 %v4390_v14, %v4222_v17  ;;  %v4224_v4 = vpop.f32.mrf.mxu1 }
 0x50a   : > { %v4225_v51 = vadd.f32 %v4224_v4, %v4055_v47 }
 0x50b   : > { %v10815_v36 = vadd.f32 %v4559_v50, %v4391_v25 }
 0x510   : > { %v4393_v49 = vpop.f32.mrf.mxu2  ;;  %v4057_v5 = vpop.f32.mrf.mxu0 }
 0x511   : > { %v4562_v45 = vpop.f32.mrf.mxu3  ;;  %v4394_v27 = vadd.f32 %v4393_v49, %v4225_v51  ;;  %v4226_v32 = vpop.f32.mrf.mxu1 }
 0x512   : > { %v4227_v54 = vadd.f32 %v4226_v32, %v4057_v5 }
 0x513   : > { %v10817_v18 = vadd.f32 %v4562_v45, %v4394_v27 }
 0x517   : > { %4570 = sbr.rel (%p6730_p1) target bundleno = 1600 (0x640), region = 68 }
 0x518   : > { %v4395_v55 = vpop.f32.mrf.mxu2 }
 0x519   : > { %v4396_v37 = vadd.f32 %v4395_v55, %v4227_v54  ;;  %v4564_v38 = vpop.f32.mrf.mxu3 }
 0x51b   : > { %v10819_v23 = vadd.f32 %v4564_v38, %v4396_v37 }
 0x51c   : > { %4703 = vrot.lane.b32.xlu1 %v10697_v21, %s7977_s24  ;;  %4699 = vrot.lane.b32.xlu0 %v10693_v11, %s7977_s24  ;;  %v4831_v55 = vld [vmem:[#allocation10 + $0x20] sm:$0xff]  ;;  %v4576_v25 = vld [vmem:[#allocation9 + $0x28] sm:$0xff]  ;;  %v12229_v4 = vld [vmem:[#allocation220_spill] sm:$0xff] }
 0x51d   : > { %4707 = vrot.lane.b32.xlu2 %v10701_v35, %s7977_s24  ;;  %v4575_v17 = vld [vmem:[#allocation9 + $0x20] sm:$0xff]  ;;  %v4832_v47 = vld [vmem:[#allocation10 + $0x28] sm:$0xff]  ;;  %v4640_v49 = vmul.f32 %v4576_v25, %v10703_v12  ;;  %v12231_v37 = vld [vmem:[#allocation221_spill] sm:$0xff] }
 0x51e   : > { %v4639_v14 = vmul.f32 %v4575_v17, %v10701_v35  ;;  %v12230_v54 = vld [vmem:[#allocation222_spill] sm:$0xff]  ;;  %v4572_v35 = vld [vmem:[#allocation9 + $0x8] sm:$0xff] }
 0x51f   : > { %v12235_v25 = vld [vmem:[#allocation226_spill] sm:$0xff] }
 0x524   : > { %4705 = vrot.lane.b32.xlu1 %v10699_v16, %s7977_s24  ;;  %4701 = vrot.lane.b32.xlu0 %v10695_v57, %s7977_s24 }
 0x525   : > { %4709 = vrot.lane.b32.xlu2 %v10703_v12, %s7977_s24  ;;  %v4571_v12 = vld [vmem:[#allocation9] sm:$0xff] }
 0x52c   : > { %4713 = vrot.lane.b32.xlu1 %v10707_v52, %s7977_s24  ;;  %4711 = vrot.lane.b32.xlu0 %v10705_v40, %s7977_s24 }
 0x52d   : > { %4715 = vrot.lane.b32.xlu2 %v10709_v61, %s7977_s24 }
 0x534   : > { %4719 = vrot.lane.b32.xlu1 %v10713_v33, %s7977_s24  ;;  %4717 = vrot.lane.b32.xlu0 %v10711_v10, %s7977_s24 }
 0x535   : > { %4721 = vrot.lane.b32.xlu2 %v10715_v53, %s7977_s24 }
 0x53c   : > { %4725 = vrot.lane.b32.xlu1 %v10719_v2, %s7977_s24  ;;  %4723 = vrot.lane.b32.xlu0 %v10717_v13, %s7977_s24 }
 0x53d   : > { %4727 = vrot.lane.b32.xlu2 %v10721_v26, %s7977_s24 }
 0x544   : > { %4731 = vrot.lane.b32.xlu1 %v10725_v58, %s7977_s24  ;;  %4729 = vrot.lane.b32.xlu0 %v10723_v43, %s7977_s24 }
 0x545   : > { %4733 = vrot.lane.b32.xlu2 %v10727_v0, %s7977_s24 }
 0x54c   : > { %4737 = vrot.lane.b32.xlu1 %v10731_v6, %s7977_s24  ;;  %4735 = vrot.lane.b32.xlu0 %v10729_v15, %s7977_s24 }
 0x54d   : > { %4739 = vrot.lane.b32.xlu2 %v10733_v39, %s7977_s24 }
 0x554   : > { %4743 = vrot.lane.b32.xlu1 %v10737_v20, %s7977_s24  ;;  %4741 = vrot.lane.b32.xlu0 %v10735_v48, %s7977_s24 }
 0x555   : > { %4745 = vrot.lane.b32.xlu2 %v10739_v62, %s7977_s24 }
 0x55c   : > { %4749 = vrot.lane.b32.xlu1 %v10743_v56, %s7977_s24  ;;  %4747 = vrot.lane.b32.xlu0 %v10741_v30, %s7977_s24 }
 0x55d   : > { %4751 = vrot.lane.b32.xlu2 %v10745_v63, %s7977_s24 }
 0x564   : > { %4755 = vrot.lane.b32.xlu1 %v10749_v59, %s7977_s24  ;;  %4753 = vrot.lane.b32.xlu0 %v10747_v41, %s7977_s24 }
 0x565   : > { %4757 = vrot.lane.b32.xlu2 %v10751_v34, %s7977_s24 }
 0x56c   : > { %4761 = vrot.lane.b32.xlu1 %v10755_v24, %s7977_s24  ;;  %4759 = vrot.lane.b32.xlu0 %v10753_v46, %s7977_s24 }
 0x56d   : > { %4763 = vrot.lane.b32.xlu2 %v10757_v42, %s7977_s24 }
 0x574   : > { %4767 = vrot.lane.b32.xlu1 %v10761_v8, %s7977_s24  ;;  %4765 = vrot.lane.b32.xlu0 %v10759_v22, %s7977_s24 }
 0x575   : > { %4769 = vrot.lane.b32.xlu2 %v10763_v44, %s7977_s24 }
 0x577   : > { %v4708_v60 = vpop.permute.xlu2 %4707 }
 0x578   : > { %v4895_v50 = vmul.f32 %v4831_v55, %v4708_v60  ;;  %v12232_v55 = vld [vmem:[#allocation223_spill] sm:$0xff] }
 0x57a   : > { %v4959_v51 = vadd.f32 %v4895_v50, %v4639_v14  ;;  %v12233_v14 = vld [vmem:[#allocation225_spill] sm:$0xff]  ;;  %v12234_v50 = vld [vmem:[#allocation224_spill] sm:$0xff] }
 0x57c   : > { %4773 = vrot.lane.b32.xlu1 %v10767_v19, %s7977_s24  ;;  %4771 = vrot.lane.b32.xlu0 %v10765_v3, %s7977_s24  ;;  %v5023_v5 = vmul.f32 0.088388346, %v4959_v51  ;;  %v4577_v3 = vld [vmem:[#allocation9 + $0x30] sm:$0xff] }
 0x57d   : > { %4775 = vrot.lane.b32.xlu2 %v12229_v4, %s7977_s24  ;;  %v4636_v4 = vmul.f32 %v4572_v35, %v10695_v57  ;;  %v4834_v35 = vld [vmem:[#allocation10 + $0x38] sm:$0xff] }
 0x57f   : > { %v4710_v45 = vpop.permute.xlu2 %4709 }
 0x580   : > { %v4896_v27 = vmul.f32 %v4832_v47, %v4710_v45  ;;  %v4829_v47 = vld [vmem:[#allocation10 + $0x10] sm:$0xff] }
 0x582   : > { %v4960_v32 = vadd.f32 %v4896_v27, %v4640_v49  ;;  %v4573_v49 = vld [vmem:[#allocation9 + $0x10] sm:$0xff] }
 0x584   : > { %4779 = vrot.lane.b32.xlu1 %v12230_v54, %s7977_s24  ;;  %4777 = vrot.lane.b32.xlu0 %v12231_v37, %s7977_s24  ;;  %v5024_v38 = vmul.f32 0.088388346, %v4960_v32  ;;  %v4827_v32 = vld [vmem:[#allocation10] sm:$0xff] }
 0x585   : > { %4781 = vrot.lane.b32.xlu2 %v12232_v55, %s7977_s24 }
 0x586   : > { %v6912_v60 = vpack.c.bf16 %v5024_v38, %v5023_v5  ;;  %v4637_v5 = vmul.f32 %v4573_v49, %v10697_v21 }
 0x587   : > { %v4716_v17 = vpop.permute.xlu2 %4715 }
 0x588   : > { %7380 = vst [vmem:[%s8154_s17 + $0x10] sm:$0xff] %v6912_v60   ;;  %v4574_v60 = vld [vmem:[#allocation9 + $0x18] sm:$0xff] }
 0x589   : > { %v4638_v55 = vmul.f32 %v4574_v60, %v10699_v16 }
 0x58c   : > { %4785 = vrot.lane.b32.xlu1 %v12233_v14, %s7977_s24  ;;  %4783 = vrot.lane.b32.xlu0 %v12234_v50, %s7977_s24  ;;  %v4635_v14 = vmul.f32 %v4571_v12, %v10693_v11  ;;  %v4828_v50 = vld [vmem:[#allocation10 + $0x8] sm:$0xff] }
 0x58d   : > { %4787 = vrot.lane.b32.xlu2 %v12235_v25, %s7977_s24  ;;  %v4830_v25 = vld [vmem:[#allocation10 + $0x18] sm:$0xff] }
 0x58e   : > { %v4704_v51 = vpop.permute.xlu1 %4703  ;;  %v4700_v45 = vpop.permute.xlu0 %4699 }
 0x58f   : > { %v4722_v27 = vpop.permute.xlu2 %4721  ;;  %v4893_v38 = vmul.f32 %v4829_v47, %v4704_v51  ;;  %v4891_v37 = vmul.f32 %v4827_v32, %v4700_v45 }
 0x591   : > { %v4957_v54 = vadd.f32 %v4893_v38, %v4637_v5  ;;  %v4955_v12 = vadd.f32 %v4891_v37, %v4635_v14  ;;  %v4833_v37 = vld [vmem:[#allocation10 + $0x30] sm:$0xff] }
 0x593   : > { %v5021_v11 = vmul.f32 0.088388346, %v4957_v54  ;;  %v5019_v5 = vmul.f32 0.088388346, %v4955_v12  ;;  %v4582_v12 = vld [vmem:[#allocation9 + $0x58] sm:$0xff] }
 0x594   : > { %4791 = vrot.lane.b32.xlu1 %v10785_v29, %s7977_s24  ;;  %4789 = vrot.lane.b32.xlu0 %v10783_v9, %s7977_s24  ;;  %v4578_v29 = vld [vmem:[#allocation9 + $0x38] sm:$0xff] }
 0x595   : > { %4793 = vrot.lane.b32.xlu2 %v10787_v28, %s7977_s24  ;;  %v4642_v54 = vmul.f32 %v4578_v29, %v10707_v52  ;;  %v4580_v52 = vld [vmem:[#allocation9 + $0x48] sm:$0xff] }
 0x596   : > { %v4706_v47 = vpop.permute.xlu1 %4705  ;;  %v4702_v51 = vpop.permute.xlu0 %4701 }
 0x597   : > { %v4894_v49 = vmul.f32 %v4830_v25, %v4706_v47  ;;  %v4892_v45 = vmul.f32 %v4828_v50, %v4702_v51  ;;  %v10927_v32 = vpop.permute.xlu2 %4727  ;;  %v4579_v25 = vld [vmem:[#allocation9 + $0x40] sm:$0xff]  ;;  %v4838_v51 = vld [vmem:[#allocation10 + $0x58] sm:$0xff] }
 0x599   : > { %v4958_v21 = vadd.f32 %v4894_v49, %v4638_v55  ;;  %v4956_v9 = vadd.f32 %v4892_v45, %v4636_v4  ;;  %v4641_v4 = vmul.f32 %v4577_v3, %v10705_v40  ;;  %v4835_v55 = vld [vmem:[#allocation10 + $0x40] sm:$0xff]  ;;  %v4581_v3 = vld [vmem:[#allocation9 + $0x50] sm:$0xff]  ;;  %v4902_v40 = vmul.f32 %v4838_v51, %v4722_v27  ;;  %v12239_v27 = vld [vmem:[#allocation233_spill] sm:$0xff] }
 0x59b   : > { %v5022_v38 = vmul.f32 0.088388346, %v4958_v21  ;;  %v5020_v60 = vmul.f32 0.088388346, %v4956_v9  ;;  %v12236_v21 = vld [vmem:[#allocation230_spill] sm:$0xff] }
 0x59c   : > { %4797 = vrot.lane.b32.xlu1 %v10791_v7, %s7977_s24  ;;  %4795 = vrot.lane.b32.xlu0 %v10789_v1, %s7977_s24  ;;  %v12237_v1 = vld [vmem:[#allocation232_spill] sm:$0xff] }
 0x59d   : > { %v6907_v14 = vpack.c.bf16 %v5022_v38, %v5021_v11  ;;  %v6902_v50 = vpack.c.bf16 %v5020_v60, %v5019_v5  ;;  %4799 = vrot.lane.b32.xlu2 %v12236_v21, %s7977_s24  ;;  %v4643_v11 = vmul.f32 %v4579_v25, %v10709_v61  ;;  %v4899_v5 = vmul.f32 %v4835_v55, %v4716_v17  ;;  %v4836_v17 = vld [vmem:[#allocation10 + $0x48] sm:$0xff] }
 0x59e   : > { %v4714_v9 = vpop.permute.xlu1 %4713  ;;  %v4712_v47 = vpop.permute.xlu0 %4711  ;;  %v4646_v60 = vmul.f32 %v4582_v12, %v10715_v53 }
 0x59f   : > { %7379 = vst [vmem:[%s8154_s17 + $0x8] sm:$0xff] %v6907_v14   ;;  %v4898_v49 = vmul.f32 %v4834_v35, %v4714_v9  ;;  %v4897_v45 = vmul.f32 %v4833_v37, %v4712_v47  ;;  %v4734_v57 = vpop.permute.xlu2 %4733  ;;  %v12238_v35 = vld [vmem:[#allocation231_spill] sm:$0xff]  ;;  %v4837_v37 = vld [vmem:[#allocation10 + $0x50] sm:$0xff]  ;;  %v4645_v14 = vmul.f32 %v4581_v3, %v10713_v33 }
 0x5a0   : > { %6903 = vst [vmem:[%s8154_s17] sm:$0xff] %v6902_v50   ;;  %v4966_v55 = vadd.f32 %v4902_v40, %v4646_v60  ;;  %v4584_v3 = vld [vmem:[#allocation9 + $0x68] sm:$0xff]  ;;  %v4839_v60 = vld [vmem:[#allocation10 + $0x60] sm:$0xff] }
 0x5a1   : > { %v4962_v29 = vadd.f32 %v4898_v49, %v4642_v54  ;;  %v4961_v38 = vadd.f32 %v4897_v45, %v4641_v4  ;;  %v4963_v54 = vadd.f32 %v4899_v5, %v4643_v11  ;;  %v4644_v4 = vmul.f32 %v4580_v52, %v10711_v10  ;;  %v12240_v40 = vld [vmem:[#allocation235_spill] sm:$0xff]  ;;  %v12241_v52 = vld [vmem:[#allocation234_spill] sm:$0xff] }
 0x5a2   : > { %v4840_v5 = vld [vmem:[#allocation10 + $0x68] sm:$0xff] }
 0x5a3   : > { %v5026_v16 = vmul.f32 0.088388346, %v4962_v29  ;;  %v5025_v21 = vmul.f32 0.088388346, %v4961_v38  ;;  %v5027_v49 = vmul.f32 0.088388346, %v4963_v54 }
 0x5a4   : > { %4803 = vrot.lane.b32.xlu1 %v12237_v1, %s7977_s24  ;;  %4801 = vrot.lane.b32.xlu0 %v12238_v35, %s7977_s24  ;;  %v5030_v38 = vmul.f32 0.088388346, %v4966_v55  ;;  %v4841_v54 = vld [vmem:[#allocation10 + $0x70] sm:$0xff] }
 0x5a5   : > { %v6917_v50 = vpack.c.bf16 %v5026_v16, %v5025_v21  ;;  %4805 = vrot.lane.b32.xlu2 %v12239_v27, %s7977_s24  ;;  %v4583_v16 = vld [vmem:[#allocation9 + $0x60] sm:$0xff]  ;;  %v12242_v55 = vld [vmem:[#allocation236_spill] sm:$0xff] }
 0x5a6   : > { %v4720_v25 = vpop.permute.xlu1 %4719  ;;  %v4718_v9 = vpop.permute.xlu0 %4717 }
 0x5a7   : > { %7381 = vst [vmem:[%s8154_s17 + $0x18] sm:$0xff] %v6917_v50   ;;  %v4901_v47 = vmul.f32 %v4837_v37, %v4720_v25  ;;  %v4900_v51 = vmul.f32 %v4836_v17, %v4718_v9  ;;  %v10950_v12 = vpop.permute.xlu2 %4739  ;;  %v4647_v50 = vmul.f32 %v4583_v16, %v10717_v13 }
 0x5a9   : > { %v4965_v45 = vadd.f32 %v4901_v47, %v4645_v14  ;;  %v4964_v29 = vadd.f32 %v4900_v51, %v4644_v4  ;;  %v4648_v14 = vmul.f32 %v4584_v3, %v10719_v2  ;;  %v4585_v4 = vld [vmem:[#allocation9 + $0x70] sm:$0xff]  ;;  %v4844_v47 = vld [vmem:[#allocation10 + $0x88] sm:$0xff]  ;;  %v4586_v2 = vld [vmem:[#allocation9 + $0x78] sm:$0xff] }
 0x5aa   : > { %v4588_v51 = vld [vmem:[#allocation9 + $0x88] sm:$0xff]  ;;  %v4908_v13 = vmul.f32 %v4844_v47, %v4734_v57 }
 0x5ab   : > { %v5029_v21 = vmul.f32 0.088388346, %v4965_v45  ;;  %v5028_v11 = vmul.f32 0.088388346, %v4964_v29  ;;  %v12245_v57 = vld [vmem:[#allocation239_spill] sm:$0xff] }
 0x5ac   : > { %4809 = vrot.lane.b32.xlu1 %v12240_v40, %s7977_s24  ;;  %4807 = vrot.lane.b32.xlu0 %v12241_v52, %s7977_s24 }
 0x5ad   : > { %v6922_v37 = vpack.c.bf16 %v5028_v11, %v5027_v49  ;;  %v6927_v17 = vpack.c.bf16 %v5030_v38, %v5029_v21  ;;  %4811 = vrot.lane.b32.xlu2 %v12242_v55, %s7977_s24  ;;  %v4649_v49 = vmul.f32 %v4585_v4, %v10721_v26  ;;  %v4905_v38 = vmul.f32 %v4841_v54, %v10927_v32  ;;  %v4587_v21 = vld [vmem:[#allocation9 + $0x80] sm:$0xff]  ;;  %v4842_v32 = vld [vmem:[#allocation10 + $0x78] sm:$0xff] }
 0x5ae   : > { %v4726_v25 = vpop.permute.xlu1 %4725  ;;  %v4724_v9 = vpop.permute.xlu0 %4723  ;;  %v4652_v11 = vmul.f32 %v4588_v51, %v10727_v0  ;;  %v4650_v54 = vmul.f32 %v4586_v2, %v10723_v43  ;;  %v4590_v0 = vld [vmem:[#allocation9 + $0x98] sm:$0xff]  ;;  %v4845_v2 = vld [vmem:[#allocation10 + $0x90] sm:$0xff] }
 0x5af   : > { %7382 = vst [vmem:[%s8154_s17 + $0x20] sm:$0xff] %v6922_v37   ;;  %v4904_v45 = vmul.f32 %v4840_v5, %v4726_v25  ;;  %v4903_v29 = vmul.f32 %v4839_v60, %v4724_v9  ;;  %v4746_v53 = vpop.permute.xlu2 %4745  ;;  %v12243_v37 = vld [vmem:[#allocation238_spill] sm:$0xff]  ;;  %v12244_v5 = vld [vmem:[#allocation237_spill] sm:$0xff] }
 0x5b0   : > { %7383 = vst [vmem:[%s8154_s17 + $0x28] sm:$0xff] %v6927_v17   ;;  %v4843_v60 = vld [vmem:[#allocation10 + $0x80] sm:$0xff]  ;;  %v4651_v17 = vmul.f32 %v4587_v21, %v10725_v58  ;;  %v4972_v4 = vadd.f32 %v4908_v13, %v4652_v11  ;;  %v4846_v13 = vld [vmem:[#allocation10 + $0x98] sm:$0xff] }
 0x5b1   : > { %v4968_v3 = vadd.f32 %v4904_v45, %v4648_v14  ;;  %v4967_v16 = vadd.f32 %v4903_v29, %v4647_v50  ;;  %v4969_v50 = vadd.f32 %v4905_v38, %v4649_v49 }
 0x5b2   : > { %v5036_v21 = vmul.f32 0.088388346, %v4972_v4  ;;  %v4850_v4 = vld [vmem:[#allocation10 + $0xb8] sm:$0xff] }
 0x5b3   : > { %v5032_v10 = vmul.f32 0.088388346, %v4968_v3  ;;  %v5031_v33 = vmul.f32 0.088388346, %v4967_v16  ;;  %v5033_v29 = vmul.f32 0.088388346, %v4969_v50 }
 0x5b4   : > { %4815 = vrot.lane.b32.xlu1 %v12243_v37, %s7977_s24  ;;  %4813 = vrot.lane.b32.xlu0 %v12244_v5, %s7977_s24 }
 0x5b5   : > { %v6932_v14 = vpack.c.bf16 %v5032_v10, %v5031_v33  ;;  %4817 = vrot.lane.b32.xlu2 %v12245_v57, %s7977_s24  ;;  %v4589_v10 = vld [vmem:[#allocation9 + $0x90] sm:$0xff] }
 0x5b6   : > { %v4732_v25 = vpop.permute.xlu1 %4731  ;;  %v4730_v9 = vpop.permute.xlu0 %4729 }
 0x5b7   : > { %7384 = vst [vmem:[%s8154_s17 + $0x30] sm:$0xff] %v6932_v14   ;;  %v4907_v47 = vmul.f32 %v4843_v60, %v4732_v25  ;;  %v4906_v51 = vmul.f32 %v4842_v32, %v4730_v9  ;;  %v10974_v45 = vpop.permute.xlu2 %4751  ;;  %v4654_v60 = vmul.f32 %v4590_v0, %v10731_v6  ;;  %v4847_v32 = vld [vmem:[#allocation10 + $0xa0] sm:$0xff]  ;;  %v4594_v25 = vld [vmem:[#allocation9 + $0xb8] sm:$0xff] }
 0x5b8   : > { %v4591_v14 = vld [vmem:[#allocation9 + $0xa0] sm:$0xff]  ;;  %v4911_v0 = vmul.f32 %v4847_v32, %v10950_v12 }
 0x5b9   : > { %v4971_v3 = vadd.f32 %v4907_v47, %v4651_v17  ;;  %v4970_v16 = vadd.f32 %v4906_v51, %v4650_v54  ;;  %v4653_v17 = vmul.f32 %v4589_v10, %v10729_v15  ;;  %v4658_v10 = vmul.f32 %v4594_v25, %v10739_v62 }
 0x5bb   : > { %v5035_v33 = vmul.f32 0.088388346, %v4971_v3  ;;  %v5034_v49 = vmul.f32 0.088388346, %v4970_v16 }
 0x5bc   : > { %4821 = vrot.lane.b32.xlu1 %v10815_v36, %s7977_s24  ;;  %4819 = vrot.lane.b32.xlu0 %v10813_v31, %s7977_s24 }
 0x5bd   : > { %v6937_v38 = vpack.c.bf16 %v5034_v49, %v5033_v29  ;;  %v6942_v11 = vpack.c.bf16 %v5036_v21, %v5035_v33  ;;  %4823 = vrot.lane.b32.xlu2 %v10817_v18, %s7977_s24  ;;  %v4655_v29 = vmul.f32 %v4591_v14, %v10733_v39  ;;  %v4593_v21 = vld [vmem:[#allocation9 + $0xb0] sm:$0xff]  ;;  %v4914_v33 = vmul.f32 %v4850_v4, %v4746_v53  ;;  %v4592_v49 = vld [vmem:[#allocation9 + $0xa8] sm:$0xff] }
 0x5be   : > { %v4738_v50 = vpop.permute.xlu1 %4737  ;;  %v4736_v54 = vpop.permute.xlu0 %4735  ;;  %v4656_v12 = vmul.f32 %v4592_v49, %v10735_v48 }
 0x5bf   : > { %7385 = vst [vmem:[%s8154_s17 + $0x38] sm:$0xff] %v6937_v38   ;;  %v4910_v9 = vmul.f32 %v4846_v13, %v4738_v50  ;;  %v4909_v47 = vmul.f32 %v4845_v2, %v4736_v54  ;;  %v4758_v51 = vpop.permute.xlu2 %4757  ;;  %v4849_v13 = vld [vmem:[#allocation10 + $0xb0] sm:$0xff]  ;;  %v4657_v2 = vmul.f32 %v4593_v21, %v10737_v20  ;;  %v4848_v38 = vld [vmem:[#allocation10 + $0xa8] sm:$0xff]  ;;  %v4975_v14 = vadd.f32 %v4911_v0, %v4655_v29  ;;  %v4851_v29 = vld [vmem:[#allocation10 + $0xc0] sm:$0xff] }
 0x5c0   : > { %7386 = vst [vmem:[%s8154_s17 + $0x40] sm:$0xff] %v6942_v11  }
 0x5c1   : > { %v4974_v3 = vadd.f32 %v4910_v9, %v4654_v60  ;;  %v4973_v16 = vadd.f32 %v4909_v47, %v4653_v17  ;;  %v4978_v60 = vadd.f32 %v4914_v33, %v4658_v10  ;;  %v5039_v4 = vmul.f32 0.088388346, %v4975_v14  ;;  %v4856_v14 = vld [vmem:[#allocation10 + $0xe8] sm:$0xff] }
 0x5c3   : > { %v5038_v15 = vmul.f32 0.088388346, %v4974_v3  ;;  %v5037_v6 = vmul.f32 0.088388346, %v4973_v16  ;;  %v5042_v47 = vmul.f32 0.088388346, %v4978_v60 }
 0x5c4   : > { %4825 = vrot.lane.b32.xlu0 %v10819_v23, %s7977_s24  ;;  %v4596_v3 = vld [vmem:[#allocation9 + $0xc8] sm:$0xff]  ;;  %v4595_v16 = vld [vmem:[#allocation9 + $0xc0] sm:$0xff] }
 0x5c5   : > { %v6947_v11 = vpack.c.bf16 %v5038_v15, %v5037_v6  ;;  %v4852_v6 = vld [vmem:[#allocation10 + $0xc8] sm:$0xff]  ;;  %v4660_v33 = vmul.f32 %v4596_v3, %v10743_v56  ;;  %v4659_v49 = vmul.f32 %v4595_v16, %v10741_v30  ;;  %v4920_v3 = vmul.f32 %v4856_v14, %v4758_v51  ;;  %v4598_v16 = vld [vmem:[#allocation9 + $0xd8] sm:$0xff]  ;;  %v4855_v30 = vld [vmem:[#allocation10 + $0xe0] sm:$0xff] }
 0x5c6   : > { %v4744_v17 = vpop.permute.xlu1 %4743  ;;  %v4742_v32 = vpop.permute.xlu0 %4741 }
 0x5c7   : > { %7387 = vst [vmem:[%s8154_s17 + $0x48] sm:$0xff] %v6947_v11   ;;  %v4913_v50 = vmul.f32 %v4849_v13, %v4744_v17  ;;  %v4912_v53 = vmul.f32 %v4848_v38, %v4742_v32  ;;  %v10994_v54 = vpop.permute.xlu2 %4763  ;;  %v4853_v13 = vld [vmem:[#allocation10 + $0xd0] sm:$0xff] }
 0x5c8   : > { %v4597_v38 = vld [vmem:[#allocation9 + $0xd0] sm:$0xff] }
 0x5c9   : > { %v4977_v25 = vadd.f32 %v4913_v50, %v4657_v2  ;;  %v4976_v9 = vadd.f32 %v4912_v53, %v4656_v12  ;;  %v4600_v12 = vld [vmem:[#allocation9 + $0xe8] sm:$0xff]  ;;  %v4661_v50 = vmul.f32 %v4597_v38, %v10745_v63  ;;  %v4917_v53 = vmul.f32 %v4853_v13, %v10974_v45 }
 0x5ca   : > { %v4662_v38 = vmul.f32 %v4598_v16, %v10747_v41 }
 0x5cb   : > { %v5041_v21 = vmul.f32 0.088388346, %v4977_v25  ;;  %v5040_v15 = vmul.f32 0.088388346, %v4976_v9  ;;  %v4599_v9 = vld [vmem:[#allocation9 + $0xe0] sm:$0xff] }
 0x5cd   : > { %v6952_v0 = vpack.c.bf16 %v5040_v15, %v5039_v4  ;;  %v6957_v10 = vpack.c.bf16 %v5042_v47, %v5041_v21  ;;  %v4664_v47 = vmul.f32 %v4600_v12, %v10751_v34 }
 0x5ce   : > { %v4750_v11 = vpop.permute.xlu1 %4749  ;;  %v4748_v2 = vpop.permute.xlu0 %4747 }
 0x5cf   : > { %7388 = vst [vmem:[%s8154_s17 + $0x50] sm:$0xff] %v6952_v0   ;;  %v4916_v60 = vmul.f32 %v4852_v6, %v4750_v11  ;;  %v4915_v17 = vmul.f32 %v4851_v29, %v4748_v2  ;;  %v4770_v32 = vpop.permute.xlu2 %4769  ;;  %v4663_v6 = vmul.f32 %v4599_v9, %v10749_v59  ;;  %v4854_v29 = vld [vmem:[#allocation10 + $0xd8] sm:$0xff]  ;;  %v4984_v11 = vadd.f32 %v4920_v3, %v4664_v47 }
 0x5d0   : > { %7389 = vst [vmem:[%s8154_s17 + $0x58] sm:$0xff] %v6957_v10   ;;  %v4981_v10 = vadd.f32 %v4917_v53, %v4661_v50  ;;  %v4858_v50 = vld [vmem:[#allocation10 + $0xf8] sm:$0xff]  ;;  %v4857_v53 = vld [vmem:[#allocation10 + $0xf0] sm:$0xff] }
 0x5d1   : > { %v4980_v4 = vadd.f32 %v4916_v60, %v4660_v33  ;;  %v4979_v25 = vadd.f32 %v4915_v17, %v4659_v49  ;;  %v5048_v60 = vmul.f32 0.088388346, %v4984_v11  ;;  %v4602_v17 = vld [vmem:[#allocation9 + $0xf8] sm:$0xff] }
 0x5d2   : > { %v5045_v51 = vmul.f32 0.088388346, %v4981_v10  ;;  %v4666_v16 = vmul.f32 %v4602_v17, %v10755_v24  ;;  %v4606_v10 = vld [vmem:[#allocation9 + $0x118] sm:$0xff]  ;;  %v4604_v17 = vld [vmem:[#allocation9 + $0x108] sm:$0xff] }
 0x5d3   : > { %v5044_v21 = vmul.f32 0.088388346, %v4980_v4  ;;  %v5043_v15 = vmul.f32 0.088388346, %v4979_v25  ;;  %v4601_v4 = vld [vmem:[#allocation9 + $0xf0] sm:$0xff] }
 0x5d5   : > { %v6962_v0 = vpack.c.bf16 %v5044_v21, %v5043_v15  ;;  %v4859_v21 = vld [vmem:[#allocation10 + $0x100] sm:$0xff] }
 0x5d6   : > { %v4756_v45 = vpop.permute.xlu1 %4755  ;;  %v4754_v33 = vpop.permute.xlu0 %4753  ;;  %v4603_v15 = vld [vmem:[#allocation9 + $0x100] sm:$0xff] }
 0x5d7   : > { %7390 = vst [vmem:[%s8154_s17 + $0x60] sm:$0xff] %v6962_v0   ;;  %v4919_v49 = vmul.f32 %v4855_v30, %v4756_v45  ;;  %v4918_v13 = vmul.f32 %v4854_v29, %v4754_v33  ;;  %v11006_v2 = vpop.permute.xlu2 %4775  ;;  %v4665_v30 = vmul.f32 %v4601_v4, %v10753_v46  ;;  %v4862_v0 = vld [vmem:[#allocation10 + $0x118] sm:$0xff]  ;;  %v4667_v45 = vmul.f32 %v4603_v15, %v10757_v42 }
 0x5d8   : > { %v4923_v33 = vmul.f32 %v4859_v21, %v10994_v54  ;;  %v4668_v15 = vmul.f32 %v4604_v17, %v10759_v22 }
 0x5d9   : > { %v4983_v14 = vadd.f32 %v4919_v49, %v4663_v6  ;;  %v4982_v12 = vadd.f32 %v4918_v13, %v4662_v38 }
 0x5db   : > { %v5047_v25 = vmul.f32 0.088388346, %v4983_v14  ;;  %v5046_v9 = vmul.f32 0.088388346, %v4982_v12  ;;  %v4670_v14 = vmul.f32 %v4606_v10, %v10763_v44  ;;  %v4926_v12 = vmul.f32 %v4862_v0, %v4770_v32  ;;  %v12249_v44 = vld [vmem:[#allocation222_spill] sm:$0xff] }
 0x5dd   : > { %v6967_v47 = vpack.c.bf16 %v5046_v9, %v5045_v51  ;;  %v6972_v3 = vpack.c.bf16 %v5048_v60, %v5047_v25  ;;  %v4605_v51 = vld [vmem:[#allocation9 + $0x110] sm:$0xff]  ;;  %v4990_v54 = vadd.f32 %v4926_v12, %v4670_v14 }
 0x5de   : > { %v4762_v29 = vpop.permute.xlu1 %4761  ;;  %v4760_v6 = vpop.permute.xlu0 %4759  ;;  %v4861_v9 = vld [vmem:[#allocation10 + $0x110] sm:$0xff] }
 0x5df   : > { %7391 = vst [vmem:[%s8154_s17 + $0x68] sm:$0xff] %v6967_v47   ;;  %v4922_v38 = vmul.f32 %v4858_v50, %v4762_v29  ;;  %v4921_v11 = vmul.f32 %v4857_v53, %v4760_v6  ;;  %v4782_v60 = vpop.permute.xlu2 %4781  ;;  %v4669_v50 = vmul.f32 %v4605_v51, %v10761_v8  ;;  %v4860_v53 = vld [vmem:[#allocation10 + $0x108] sm:$0xff]  ;;  %v5054_v10 = vmul.f32 0.088388346, %v4990_v54 }
 0x5e0   : > { %7392 = vst [vmem:[%s8154_s17 + $0x70] sm:$0xff] %v6972_v3   ;;  %v4987_v3 = vadd.f32 %v4923_v33, %v4667_v45  ;;  %v4864_v45 = vld [vmem:[#allocation10 + $0x128] sm:$0xff]  ;;  %v4863_v33 = vld [vmem:[#allocation10 + $0x120] sm:$0xff] }
 0x5e1   : > { %v4986_v49 = vadd.f32 %v4922_v38, %v4666_v16  ;;  %v4985_v13 = vadd.f32 %v4921_v11, %v4665_v30  ;;  %v4608_v38 = vld [vmem:[#allocation9 + $0x128] sm:$0xff]  ;;  %v4607_v11 = vld [vmem:[#allocation9 + $0x120] sm:$0xff] }
 0x5e2   : > { %v5051_v6 = vmul.f32 0.088388346, %v4987_v3  ;;  %v4672_v17 = vmul.f32 %v4608_v38, %v10767_v19  ;;  %v4868_v3 = vld [vmem:[#allocation10 + $0x148] sm:$0xff]  ;;  %v4867_v19 = vld [vmem:[#allocation10 + $0x140] sm:$0xff] }
 0x5e3   : > { %v5050_v4 = vmul.f32 0.088388346, %v4986_v49  ;;  %v5049_v25 = vmul.f32 0.088388346, %v4985_v13 }
 0x5e5   : > { %v6977_v47 = vpack.c.bf16 %v5050_v4, %v5049_v25  ;;  %v12246_v4 = vld [vmem:[#allocation218_spill] sm:$0xff] }
 0x5e6   : > { %v4768_v16 = vpop.permute.xlu1 %4767  ;;  %v4766_v30 = vpop.permute.xlu0 %4765  ;;  %v4671_v25 = vmul.f32 %v4607_v11, %v12246_v4  ;;  %v4932_v11 = vmul.f32 %v4868_v3, %v4782_v60 }
 0x5e7   : > { %7393 = vst [vmem:[%s8154_s17 + $0x78] sm:$0xff] %v6977_v47   ;;  %v4925_v21 = vmul.f32 %v4861_v9, %v4768_v16  ;;  %v4924_v29 = vmul.f32 %v4860_v53, %v4766_v30  ;;  %v11018_v51 = vpop.permute.xlu2 %4787  ;;  %v4865_v9 = vld [vmem:[#allocation10 + $0x130] sm:$0xff] }
 0x5e8   : > { %v12247_v30 = vld [vmem:[#allocation220_spill] sm:$0xff] }
 0x5e9   : > { %v4989_v32 = vadd.f32 %v4925_v21, %v4669_v50  ;;  %v4988_v0 = vadd.f32 %v4924_v29, %v4668_v15  ;;  %v4609_v50 = vld [vmem:[#allocation9 + $0x130] sm:$0xff]  ;;  %v4612_v15 = vld [vmem:[#allocation9 + $0x148] sm:$0xff]  ;;  %v4929_v29 = vmul.f32 %v4865_v9, %v11006_v2 }
 0x5ea   : > { %v4673_v21 = vmul.f32 %v4609_v50, %v12247_v30  ;;  %v4614_v30 = vld [vmem:[#allocation9 + $0x158] sm:$0xff] }
 0x5eb   : > { %v5053_v49 = vmul.f32 0.088388346, %v4989_v32  ;;  %v5052_v13 = vmul.f32 0.088388346, %v4988_v0  ;;  %v4611_v0 = vld [vmem:[#allocation9 + $0x140] sm:$0xff] }
 0x5ed   : > { %v6982_v14 = vpack.c.bf16 %v5052_v13, %v5051_v6  ;;  %v6987_v12 = vpack.c.bf16 %v5054_v10, %v5053_v49  ;;  %v12248_v10 = vld [vmem:[#allocation223_spill] sm:$0xff]  ;;  %v4610_v49 = vld [vmem:[#allocation9 + $0x138] sm:$0xff] }
 0x5ee   : > { %v4774_v53 = vpop.permute.xlu1 %4773  ;;  %v4772_v47 = vpop.permute.xlu0 %4771  ;;  %v4676_v38 = vmul.f32 %v4612_v15, %v12248_v10 }
 0x5ef   : > { %7394 = vst [vmem:[%s8154_s17 + $0x80] sm:$0xff] %v6982_v14   ;;  %v4928_v54 = vmul.f32 %v4864_v45, %v4774_v53  ;;  %v4927_v16 = vmul.f32 %v4863_v33, %v4772_v47  ;;  %v4675_v14 = vmul.f32 %v4611_v0, %v12249_v44  ;;  %v4866_v45 = vld [vmem:[#allocation10 + $0x138] sm:$0xff]  ;;  %v4794_v2 = vpop.permute.xlu2 %4793 }
 0x5f0   : > { %7395 = vst [vmem:[%s8154_s17 + $0x88] sm:$0xff] %v6987_v12   ;;  %v4993_v12 = vadd.f32 %v4929_v29, %v4673_v21  ;;  %v12250_v53 = vld [vmem:[#allocation221_spill] sm:$0xff]  ;;  %v4996_v47 = vadd.f32 %v4932_v11, %v4676_v38  ;;  %v4869_v21 = vld [vmem:[#allocation10 + $0x150] sm:$0xff] }
 0x5f1   : > { %v4992_v6 = vadd.f32 %v4928_v54, %v4672_v17  ;;  %v4991_v32 = vadd.f32 %v4927_v16, %v4671_v25  ;;  %v4674_v50 = vmul.f32 %v4610_v49, %v12250_v53  ;;  %v4870_v0 = vld [vmem:[#allocation10 + $0x158] sm:$0xff]  ;;  %v12252_v49 = vld [vmem:[#allocation224_spill] sm:$0xff] }
 0x5f2   : > { %v5057_v15 = vmul.f32 0.088388346, %v4993_v12  ;;  %v5060_v16 = vmul.f32 0.088388346, %v4996_v47  ;;  %v12251_v38 = vld [vmem:[#allocation225_spill] sm:$0xff] }
 0x5f3   : > { %v5056_v13 = vmul.f32 0.088388346, %v4992_v6  ;;  %v5055_v4 = vmul.f32 0.088388346, %v4991_v32  ;;  %v4613_v6 = vld [vmem:[#allocation9 + $0x150] sm:$0xff]  ;;  %v4678_v11 = vmul.f32 %v4614_v30, %v12251_v38  ;;  %v4618_v12 = vld [vmem:[#allocation9 + $0x178] sm:$0xff] }
 0x5f4   : > { %v4616_v30 = vld [vmem:[#allocation9 + $0x168] sm:$0xff] }
 0x5f5   : > { %v6992_v33 = vpack.c.bf16 %v5056_v13, %v5055_v4  ;;  %v4677_v13 = vmul.f32 %v4613_v6, %v12252_v49  ;;  %v4615_v4 = vld [vmem:[#allocation9 + $0x160] sm:$0xff]  ;;  %v12255_v49 = vld [vmem:[#allocation227_spill] sm:$0xff] }
 0x5f6   : > { %v4780_v17 = vpop.permute.xlu1 %4779  ;;  %v4778_v25 = vpop.permute.xlu0 %4777 }
 0x5f7   : > { %7396 = vst [vmem:[%s8154_s17 + $0x90] sm:$0xff] %v6992_v33   ;;  %v4931_v9 = vmul.f32 %v4867_v19, %v4780_v17  ;;  %v4930_v54 = vmul.f32 %v4866_v45, %v4778_v25  ;;  %v4871_v19 = vld [vmem:[#allocation10 + $0x160] sm:$0xff]  ;;  %v4874_v33 = vld [vmem:[#allocation10 + $0x178] sm:$0xff]  ;;  %v4800_v47 = vpop.permute.xlu2 %4799 }
 0x5f8   : > { %v12253_v17 = vld [vmem:[#allocation226_spill] sm:$0xff] }
 0x5f9   : > { %v4995_v60 = vadd.f32 %v4931_v9, %v4675_v14  ;;  %v4994_v3 = vadd.f32 %v4930_v54, %v4674_v50  ;;  %v4679_v25 = vmul.f32 %v4615_v4, %v12253_v17  ;;  %v4935_v9 = vmul.f32 %v4871_v19, %v11018_v51  ;;  %v4619_v17 = vld [vmem:[#allocation9 + $0x180] sm:$0xff] }
 0x5fa   : > { %v4680_v4 = vmul.f32 %v4616_v30, %v12255_v49  ;;  %v12256_v30 = vld [vmem:[#allocation229_spill] sm:$0xff] }
 0x5fb   : > { %v5059_v44 = vmul.f32 0.088388346, %v4995_v60  ;;  %v5058_v32 = vmul.f32 0.088388346, %v4994_v3  ;;  %v4617_v60 = vld [vmem:[#allocation9 + $0x170] sm:$0xff]  ;;  %v4682_v3 = vmul.f32 %v4618_v12, %v10787_v28 }
 0x5fd   : > { %v6997_v29 = vpack.c.bf16 %v5058_v32, %v5057_v15  ;;  %v7002_v10 = vpack.c.bf16 %v5060_v16, %v5059_v44  ;;  %v4938_v16 = vmul.f32 %v4874_v33, %v4794_v2  ;;  %v4873_v32 = vld [vmem:[#allocation10 + $0x170] sm:$0xff] }
 0x5fe   : > { %v4786_v45 = vpop.permute.xlu1 %4785  ;;  %v4784_v14 = vpop.permute.xlu0 %4783 }
 0x5ff   : > { %7397 = vst [vmem:[%s8154_s17 + $0x98] sm:$0xff] %v6997_v29   ;;  %v4934_v53 = vmul.f32 %v4870_v0, %v4786_v45  ;;  %v4933_v50 = vmul.f32 %v4869_v21, %v4784_v14  ;;  %v12254_v29 = vld [vmem:[#allocation228_spill] sm:$0xff]  ;;  %v4872_v21 = vld [vmem:[#allocation10 + $0x168] sm:$0xff]  ;;  %v5002_v45 = vadd.f32 %v4938_v16, %v4682_v3 }
 0x600   : > { %7398 = vst [vmem:[%s8154_s17 + $0xa0] sm:$0xff] %v7002_v10   ;;  %v4681_v0 = vmul.f32 %v4617_v60, %v12254_v29  ;;  %v4999_v10 = vadd.f32 %v4935_v9, %v4679_v25  ;;  %v4876_v25 = vld [vmem:[#allocation10 + $0x188] sm:$0xff]  ;;  %v4875_v9 = vld [vmem:[#allocation10 + $0x180] sm:$0xff] }
 0x601   : > { %v4998_v54 = vadd.f32 %v4934_v53, %v4678_v11  ;;  %v4997_v15 = vadd.f32 %v4933_v50, %v4677_v13  ;;  %v5066_v33 = vmul.f32 0.088388346, %v5002_v45  ;;  %v4806_v53 = vpop.permute.xlu2 %4805  ;;  %v4620_v50 = vld [vmem:[#allocation9 + $0x188] sm:$0xff] }
 0x602   : > { %v5063_v14 = vmul.f32 0.088388346, %v4999_v10  ;;  %v4684_v16 = vmul.f32 %v4620_v50, %v10791_v7 }
 0x603   : > { %v5062_v6 = vmul.f32 0.088388346, %v4998_v54  ;;  %v5061_v44 = vmul.f32 0.088388346, %v4997_v15 }
 0x605   : > { %v7007_v38 = vpack.c.bf16 %v5062_v6, %v5061_v44  ;;  %v4683_v6 = vmul.f32 %v4619_v17, %v12256_v30  ;;  %v4877_v44 = vld [vmem:[#allocation10 + $0x190] sm:$0xff] }
 0x606   : > { %v4792_v51 = vpop.permute.xlu1 %4791  ;;  %v4790_v11 = vpop.permute.xlu0 %4789 }
 0x607   : > { %7399 = vst [vmem:[%s8154_s17 + $0xa8] sm:$0xff] %v7007_v38   ;;  %v4937_v13 = vmul.f32 %v4873_v32, %v4792_v51  ;;  %v4936_v19 = vmul.f32 %v4872_v21, %v4790_v11  ;;  %v4621_v32 = vld [vmem:[#allocation9 + $0x190] sm:$0xff]  ;;  %v4880_v21 = vld [vmem:[#allocation10 + $0x1a8] sm:$0xff]  ;;  %v4941_v51 = vmul.f32 %v4877_v44, %v4800_v47 }
 0x608   : > { %v4624_v38 = vld [vmem:[#allocation9 + $0x1a8] sm:$0xff] }
 0x609   : > { %v5001_v12 = vadd.f32 %v4937_v13, %v4681_v0  ;;  %v5000_v2 = vadd.f32 %v4936_v19, %v4680_v4  ;;  %v12257_v4 = vld [vmem:[#allocation230_spill] sm:$0xff]  ;;  %v4812_v17 = vpop.permute.xlu2 %4811 }
 0x60a   : > { %v4685_v45 = vmul.f32 %v4621_v32, %v12257_v4  ;;  %v4623_v19 = vld [vmem:[#allocation9 + $0x1a0] sm:$0xff] }
 0x60b   : > { %v5065_v54 = vmul.f32 0.088388346, %v5001_v12  ;;  %v5064_v15 = vmul.f32 0.088388346, %v5000_v2  ;;  %v4944_v12 = vmul.f32 %v4880_v21, %v4806_v53  ;;  %v4622_v2 = vld [vmem:[#allocation9 + $0x198] sm:$0xff]  ;;  %v4625_v21 = vld [vmem:[#allocation9 + $0x1b0] sm:$0xff] }
 0x60d   : > { %v7012_v60 = vpack.c.bf16 %v5064_v15, %v5063_v14  ;;  %v7017_v3 = vpack.c.bf16 %v5066_v33, %v5065_v54  ;;  %v4688_v14 = vmul.f32 %v4624_v38, %v12239_v27  ;;  %v4879_v54 = vld [vmem:[#allocation10 + $0x1a0] sm:$0xff]  ;;  %v4687_v15 = vmul.f32 %v4623_v19, %v12237_v1 }
 0x60e   : > { %v4798_v29 = vpop.permute.xlu1 %4797  ;;  %v4796_v0 = vpop.permute.xlu0 %4795 }
 0x60f   : > { %7400 = vst [vmem:[%s8154_s17 + $0xb0] sm:$0xff] %v7012_v60   ;;  %v4940_v10 = vmul.f32 %v4876_v25, %v4798_v29  ;;  %v4939_v49 = vmul.f32 %v4875_v9, %v4796_v0  ;;  %v4878_v25 = vld [vmem:[#allocation10 + $0x198] sm:$0xff]  ;;  %v5005_v60 = vadd.f32 %v4941_v51, %v4685_v45  ;;  %v5008_v47 = vadd.f32 %v4944_v12, %v4688_v14 }
 0x610   : > { %7401 = vst [vmem:[%s8154_s17 + $0xb8] sm:$0xff] %v7017_v3   ;;  %v4686_v3 = vmul.f32 %v4622_v2, %v12238_v35  ;;  %v4626_v0 = vld [vmem:[#allocation9 + $0x1b8] sm:$0xff]  ;;  %v4689_v51 = vmul.f32 %v4625_v21, %v12241_v52 }
 0x611   : > { %v5004_v11 = vadd.f32 %v4940_v10, %v4684_v16  ;;  %v5003_v13 = vadd.f32 %v4939_v49, %v4683_v6  ;;  %v5069_v27 = vmul.f32 0.088388346, %v5005_v60  ;;  %v5072_v29 = vmul.f32 0.088388346, %v5008_v47  ;;  %v4882_v10 = vld [vmem:[#allocation10 + $0x1b8] sm:$0xff]  ;;  %v4881_v49 = vld [vmem:[#allocation10 + $0x1b0] sm:$0xff]  ;;  %v4818_v19 = vpop.permute.xlu2 %4817 }
 0x612   : > { %v4690_v45 = vmul.f32 %v4626_v0, %v12240_v40  ;;  %v4886_v2 = vld [vmem:[#allocation10 + $0x1d8] sm:$0xff]  ;;  %v4629_v40 = vld [vmem:[#allocation9 + $0x1d0] sm:$0xff]  ;;  %v4628_v47 = vld [vmem:[#allocation9 + $0x1c8] sm:$0xff] }
 0x613   : > { %v5068_v33 = vmul.f32 0.088388346, %v5004_v11  ;;  %v5067_v50 = vmul.f32 0.088388346, %v5003_v13  ;;  %v4883_v11 = vld [vmem:[#allocation10 + $0x1c0] sm:$0xff] }
 0x614   : > { %v4627_v13 = vld [vmem:[#allocation9 + $0x1c0] sm:$0xff] }
 0x615   : > { %v7022_v9 = vpack.c.bf16 %v5068_v33, %v5067_v50  ;;  %v4630_v33 = vld [vmem:[#allocation9 + $0x1d8] sm:$0xff] }
 0x616   : > { %v4804_v16 = vpop.permute.xlu1 %4803  ;;  %v4802_v30 = vpop.permute.xlu0 %4801  ;;  %v4694_v52 = vmul.f32 %v4630_v33, %v12245_v57 }
 0x617   : > { %7402 = vst [vmem:[%s8154_s17 + $0xc0] sm:$0xff] %v7022_v9   ;;  %v4943_v6 = vmul.f32 %v4879_v54, %v4804_v16  ;;  %v4942_v44 = vmul.f32 %v4878_v25, %v4802_v30  ;;  %v4947_v25 = vmul.f32 %v4883_v11, %v4812_v17  ;;  %v4887_v11 = vld [vmem:[#allocation10 + $0x1e0] sm:$0xff] }
 0x619   : > { %v5007_v53 = vadd.f32 %v4943_v6, %v4687_v15  ;;  %v5006_v32 = vadd.f32 %v4942_v44, %v4686_v3  ;;  %v4691_v15 = vmul.f32 %v4627_v13, %v12242_v55  ;;  %v4950_v3 = vmul.f32 %v4886_v2, %v4818_v19  ;;  %v4885_v6 = vld [vmem:[#allocation10 + $0x1d0] sm:$0xff] }
 0x61a   : > { %v4693_v44 = vmul.f32 %v4629_v40, %v12243_v37 }
 0x61b   : > { %v5071_v38 = vmul.f32 0.088388346, %v5007_v53  ;;  %v5070_v1 = vmul.f32 0.088388346, %v5006_v32  ;;  %v5011_v32 = vadd.f32 %v4947_v25, %v4691_v15  ;;  %v5014_v55 = vadd.f32 %v4950_v3, %v4694_v52  ;;  %v4634_v3 = vld [vmem:[#allocation9 + $0x1f8] sm:$0xff] }
 0x61d   : > { %v7027_v4 = vpack.c.bf16 %v5070_v1, %v5069_v27  ;;  %v7032_v35 = vpack.c.bf16 %v5072_v29, %v5071_v38  ;;  %v4884_v27 = vld [vmem:[#allocation10 + $0x1c8] sm:$0xff]  ;;  %v4692_v29 = vmul.f32 %v4628_v47, %v12244_v5  ;;  %v5075_v1 = vmul.f32 0.088388346, %v5011_v32 }
 0x61e   : > { %v4810_v14 = vpop.permute.xlu1 %4809  ;;  %v4808_v12 = vpop.permute.xlu0 %4807 }
 0x61f   : > { %7403 = vst [vmem:[%s8154_s17 + $0xc8] sm:$0xff] %v7027_v4   ;;  %v4946_v50 = vmul.f32 %v4882_v10, %v4810_v14  ;;  %v4945_v54 = vmul.f32 %v4881_v49, %v4808_v12  ;;  %v5078_v49 = vmul.f32 0.088388346, %v5014_v55  ;;  %v4632_v4 = vld [vmem:[#allocation9 + $0x1e8] sm:$0xff]  ;;  %v4824_v12 = vpop.permute.xlu2 %4823 }
 0x620   : > { %7404 = vst [vmem:[%s8154_s17 + $0xd0] sm:$0xff] %v7032_v35   ;;  %v4631_v35 = vld [vmem:[#allocation9 + $0x1e0] sm:$0xff]  ;;  %v4696_v19 = vmul.f32 %v4632_v4, %v10815_v36 }
 0x621   : > { %v5010_v9 = vadd.f32 %v4946_v50, %v4690_v45  ;;  %v5009_v60 = vadd.f32 %v4945_v54, %v4689_v51  ;;  %v4888_v51 = vld [vmem:[#allocation10 + $0x1e8] sm:$0xff]  ;;  %v4695_v14 = vmul.f32 %v4631_v35, %v10813_v31  ;;  %v4889_v50 = vld [vmem:[#allocation10 + $0x1f0] sm:$0xff] }
 0x622   : > { %v4633_v54 = vld [vmem:[#allocation9 + $0x1f0] sm:$0xff]  ;;  %v4953_v52 = vmul.f32 %v4889_v50, %v4824_v12 }
 0x623   : > { %v5074_v16 = vmul.f32 0.088388346, %v5010_v9  ;;  %v5073_v30 = vmul.f32 0.088388346, %v5009_v60  ;;  %v4697_v40 = vmul.f32 %v4633_v54, %v10817_v18 }
 0x625   : > { %v7037_v53 = vpack.c.bf16 %v5074_v16, %v5073_v30  ;;  %v4890_v30 = vld [vmem:[#allocation10 + $0x1f8] sm:$0xff] }
 0x626   : > { %v4816_v17 = vpop.permute.xlu1 %4815  ;;  %v4814_v0 = vpop.permute.xlu0 %4813 }
 0x627   : > { %7405 = vst [vmem:[%s8154_s17 + $0xd8] sm:$0xff] %v7037_v53   ;;  %v4949_v21 = vmul.f32 %v4885_v6, %v4816_v17  ;;  %v4948_v38 = vmul.f32 %v4884_v27, %v4814_v0  ;;  %v4698_v27 = vmul.f32 %v4634_v3, %v10819_v23 }
 0x629   : > { %v5013_v57 = vadd.f32 %v4949_v21, %v4693_v44  ;;  %v5012_v10 = vadd.f32 %v4948_v38, %v4692_v29  ;;  %v5017_v44 = vadd.f32 %v4953_v52, %v4697_v40 }
 0x62b   : > { %v5077_v45 = vmul.f32 0.088388346, %v5013_v57  ;;  %v5076_v37 = vmul.f32 0.088388346, %v5012_v10  ;;  %v5081_v29 = vmul.f32 0.088388346, %v5017_v44 }
 0x62d   : > { %v7042_v13 = vpack.c.bf16 %v5076_v37, %v5075_v1  ;;  %v7047_v5 = vpack.c.bf16 %v5078_v49, %v5077_v45 }
 0x62e   : > { %v4822_v2 = vpop.permute.xlu1 %4821  ;;  %v4820_v33 = vpop.permute.xlu0 %4819 }
 0x62f   : > { %7406 = vst [vmem:[%s8154_s17 + $0xe0] sm:$0xff] %v7042_v13   ;;  %v4952_v15 = vmul.f32 %v4888_v51, %v4822_v2  ;;  %v4951_v25 = vmul.f32 %v4887_v11, %v4820_v33 }
 0x630   : > { %7407 = vst [vmem:[%s8154_s17 + $0xe8] sm:$0xff] %v7047_v5  }
 0x631   : > { %v5016_v9 = vadd.f32 %v4952_v15, %v4696_v19  ;;  %v5015_v60 = vadd.f32 %v4951_v25, %v4695_v14 }
 0x633   : > { %v5080_v47 = vmul.f32 0.088388346, %v5016_v9  ;;  %v5079_v16 = vmul.f32 0.088388346, %v5015_v60 }
 0x635   : > { %v7052_v6 = vpack.c.bf16 %v5080_v47, %v5079_v16 }
 0x636   : > { %v4826_v53 = vpop.permute.xlu0 %4825 }
 0x637   : > { %7408 = vst [vmem:[%s8154_s17 + $0xf0] sm:$0xff] %v7052_v6   ;;  %v4954_v32 = vmul.f32 %v4890_v30, %v4826_v53 }
 0x639   : > { %v5018_v55 = vadd.f32 %v4954_v32, %v4698_v27 }
 0x63b   : > { %v5082_v17 = vmul.f32 0.088388346, %v5018_v55 }
 0x63d   : > { %v7057_v0 = vpack.c.bf16 %v5082_v17, %v5081_v29 }
 0x63f   : > { %7409 = vst [vmem:[%s8154_s17 + $0xf8] sm:$0xff] %v7057_v0  }
 0x640 PF: > { %p5212_p4 = scmp.lt.s32.totalorder %s7956_s21, 6 }
 0x642   : > { %p5213_p9 = pnand %p6730_p1, %p5212_p4 }
 0x643   : > { %s7978_s26 = smov (!%p5213_p9), 64  }
 0x644   : > { %5216 = sbr.rel (%p5213_p9) target bundleno = 1900 (0x76c), region = 72 }
 0x649   : > { %v12258_v21 = vld [vmem:[#allocation200_spill] sm:$0xff]  ;;  %v12259_v38 = vld [vmem:[#allocation198_spill] sm:$0xff]  ;;  %v12261_v57 = vld [vmem:[#allocation201_spill] sm:$0xff] }
 0x64a   : > { %5349 = vrot.lane.b32.xlu1 %v12258_v21, %s7978_s26  ;;  %5345 = vrot.lane.b32.xlu0 %v12259_v38, %s7978_s26  ;;  %v12260_v1 = vld [vmem:[#allocation202_spill] sm:$0xff]  ;;  %v12262_v10 = vld [vmem:[#allocation199_spill] sm:$0xff]  ;;  %v12264_v4 = vld [vmem:[#allocation205_spill] sm:$0xff] }
 0x64b   : > { %5353 = vrot.lane.b32.xlu2 %v12260_v1, %s7978_s26  ;;  %v12263_v49 = vld [vmem:[#allocation203_spill] sm:$0xff]  ;;  %v12265_v35 = vld [vmem:[#allocation204_spill] sm:$0xff]  ;;  %v12267_v37 = vld [vmem:[#allocation206_spill] sm:$0xff] }
 0x64c   : > { %v12266_v45 = vld [vmem:[#allocation207_spill] sm:$0xff]  ;;  %v12268_v51 = vld [vmem:[#allocation208_spill] sm:$0xff]  ;;  %v12269_v11 = vld [vmem:[#allocation210_spill] sm:$0xff] }
 0x64d   : > { %v12270_v13 = vld [vmem:[#allocation209_spill] sm:$0xff]  ;;  %v12271_v5 = vld [vmem:[#allocation212_spill] sm:$0xff]  ;;  %v12272_v19 = vld [vmem:[#allocation214_spill] sm:$0xff] }
 0x64e   : > { %v12273_v14 = vld [vmem:[#allocation213_spill] sm:$0xff]  ;;  %v12274_v12 = vld [vmem:[#allocation216_spill] sm:$0xff]  ;;  %v5477_v50 = vld [vmem:[#allocation10 + $0x20] sm:$0xff] }
 0x64f   : > { %v12275_v2 = vld [vmem:[#allocation217_spill] sm:$0xff]  ;;  %v5221_v54 = vld [vmem:[#allocation9 + $0x20] sm:$0xff]  ;;  %v5222_v15 = vld [vmem:[#allocation9 + $0x28] sm:$0xff] }
 0x650   : > { %v12276_v25 = vld [vmem:[#allocation219_spill] sm:$0xff]  ;;  %v12277_v9 = vld [vmem:[#allocation218_spill] sm:$0xff]  ;;  %v5285_v60 = vmul.f32 %v5221_v54, %v12260_v1  ;;  %v12278_v3 = vld [vmem:[#allocation220_spill] sm:$0xff]  ;;  %v5286_v47 = vmul.f32 %v5222_v15, %v12263_v49 }
 0x651   : > { %v5478_v52 = vld [vmem:[#allocation10 + $0x28] sm:$0xff]  ;;  %v12279_v27 = vld [vmem:[#allocation222_spill] sm:$0xff]  ;;  %v12280_v53 = vld [vmem:[#allocation221_spill] sm:$0xff] }
 0x652   : > { %5351 = vrot.lane.b32.xlu1 %v12261_v57, %s7978_s26  ;;  %5347 = vrot.lane.b32.xlu0 %v12262_v10, %s7978_s26  ;;  %v12281_v29 = vld [vmem:[#allocation223_spill] sm:$0xff]  ;;  %v12282_v17 = vld [vmem:[#allocation225_spill] sm:$0xff]  ;;  %v12283_v0 = vld [vmem:[#allocation224_spill] sm:$0xff] }
 0x653   : > { %5355 = vrot.lane.b32.xlu2 %v12263_v49, %s7978_s26  ;;  %v12284_v1 = vld [vmem:[#allocation226_spill] sm:$0xff]  ;;  %v5475_v54 = vld [vmem:[#allocation10 + $0x10] sm:$0xff] }
 0x654   : > { %v5219_v15 = vld [vmem:[#allocation9 + $0x10] sm:$0xff] }
 0x65a   : > { %5359 = vrot.lane.b32.xlu1 %v12264_v4, %s7978_s26  ;;  %5357 = vrot.lane.b32.xlu0 %v12265_v35, %s7978_s26 }
 0x65b   : > { %5361 = vrot.lane.b32.xlu2 %v10709_v61, %s7978_s26 }
 0x662   : > { %5365 = vrot.lane.b32.xlu1 %v12266_v45, %s7978_s26  ;;  %5363 = vrot.lane.b32.xlu0 %v12267_v37, %s7978_s26 }
 0x663   : > { %5367 = vrot.lane.b32.xlu2 %v12268_v51, %s7978_s26 }
 0x66a   : > { %5371 = vrot.lane.b32.xlu1 %v12269_v11, %s7978_s26  ;;  %5369 = vrot.lane.b32.xlu0 %v12270_v13, %s7978_s26 }
 0x66b   : > { %5373 = vrot.lane.b32.xlu2 %v10721_v26, %s7978_s26 }
 0x672   : > { %5377 = vrot.lane.b32.xlu1 %v10725_v58, %s7978_s26  ;;  %5375 = vrot.lane.b32.xlu0 %v10723_v43, %s7978_s26 }
 0x673   : > { %5379 = vrot.lane.b32.xlu2 %v12271_v5, %s7978_s26 }
 0x67a   : > { %5383 = vrot.lane.b32.xlu1 %v12272_v19, %s7978_s26  ;;  %5381 = vrot.lane.b32.xlu0 %v12273_v14, %s7978_s26 }
 0x67b   : > { %5385 = vrot.lane.b32.xlu2 %v10733_v39, %s7978_s26 }
 0x682   : > { %5389 = vrot.lane.b32.xlu1 %v10737_v20, %s7978_s26  ;;  %5387 = vrot.lane.b32.xlu0 %v10735_v48, %s7978_s26 }
 0x683   : > { %5391 = vrot.lane.b32.xlu2 %v10739_v62, %s7978_s26 }
 0x68a   : > { %5395 = vrot.lane.b32.xlu1 %v10743_v56, %s7978_s26  ;;  %5393 = vrot.lane.b32.xlu0 %v12274_v12, %s7978_s26 }
 0x68b   : > { %5397 = vrot.lane.b32.xlu2 %v10745_v63, %s7978_s26 }
 0x692   : > { %5401 = vrot.lane.b32.xlu1 %v10749_v59, %s7978_s26  ;;  %5399 = vrot.lane.b32.xlu0 %v10747_v41, %s7978_s26 }
 0x693   : > { %5403 = vrot.lane.b32.xlu2 %v10751_v34, %s7978_s26 }
 0x69a   : > { %5407 = vrot.lane.b32.xlu1 %v10755_v24, %s7978_s26  ;;  %5405 = vrot.lane.b32.xlu0 %v10753_v46, %s7978_s26 }
 0x69b   : > { %5409 = vrot.lane.b32.xlu2 %v10757_v42, %s7978_s26 }
 0x6a2   : > { %5413 = vrot.lane.b32.xlu1 %v10761_v8, %s7978_s26  ;;  %5411 = vrot.lane.b32.xlu0 %v10759_v22, %s7978_s26 }
 0x6a3   : > { %5415 = vrot.lane.b32.xlu2 %v12275_v2, %s7978_s26 }
 0x6a5   : > { %v5354_v33 = vpop.permute.xlu2 %5353 }
 0x6a6   : > { %v5541_v40 = vmul.f32 %v5477_v50, %v5354_v33 }
 0x6a8   : > { %v5605_v30 = vadd.f32 %v5541_v40, %v5285_v60  ;;  %v5473_v60 = vld [vmem:[#allocation10] sm:$0xff] }
 0x6a9   : > { %v5217_v40 = vld [vmem:[#allocation9] sm:$0xff] }
 0x6aa   : > { %5419 = vrot.lane.b32.xlu1 %v12276_v25, %s7978_s26  ;;  %5417 = vrot.lane.b32.xlu0 %v12277_v9, %s7978_s26 }
 0x6ab   : > { %5421 = vrot.lane.b32.xlu2 %v12278_v3, %s7978_s26 }
 0x6ad   : > { %v5356_v16 = vpop.permute.xlu2 %5355 }
 0x6ae   : > { %v5542_v6 = vmul.f32 %v5478_v52, %v5356_v16  ;;  %v5220_v52 = vld [vmem:[#allocation9 + $0x18] sm:$0xff]  ;;  %v5283_v16 = vmul.f32 %v5219_v15, %v12258_v21 }
 0x6b0   : > { %v5606_v44 = vadd.f32 %v5542_v6, %v5286_v47  ;;  %v5218_v47 = vld [vmem:[#allocation9 + $0x8] sm:$0xff]  ;;  %v12285_v6 = vld [vmem:[#allocation228_spill] sm:$0xff] }
 0x6b2   : > { %5425 = vrot.lane.b32.xlu1 %v12279_v27, %s7978_s26  ;;  %5423 = vrot.lane.b32.xlu0 %v12280_v53, %s7978_s26  ;;  %v7072_v32 = vpack.c.bf16 %v5606_v44, %v5605_v30  ;;  %v12286_v44 = vld [vmem:[#allocation227_spill] sm:$0xff]  ;;  %v5284_v53 = vmul.f32 %v5220_v52, %v12261_v57  ;;  %v5282_v27 = vmul.f32 %v5218_v47, %v12262_v10  ;;  %v12287_v10 = vld [vmem:[#allocation229_spill] sm:$0xff]  ;;  %v5479_v47 = vld [vmem:[#allocation10 + $0x30] sm:$0xff] }
 0x6b3   : > { %5427 = vrot.lane.b32.xlu2 %v12281_v29, %s7978_s26  ;;  %v5480_v52 = vld [vmem:[#allocation10 + $0x38] sm:$0xff] }
 0x6b4   : > { %7411 = vst [vmem:[%s8154_s17 + $0x10] sm:$0xff] %v7072_v32   ;;  %v5476_v32 = vld [vmem:[#allocation10 + $0x18] sm:$0xff] }
 0x6b5   : > { %v5362_v55 = vpop.permute.xlu2 %5361 }
 0x6ba   : > { %5431 = vrot.lane.b32.xlu1 %v12282_v17, %s7978_s26  ;;  %5429 = vrot.lane.b32.xlu0 %v12283_v0, %s7978_s26  ;;  %v5281_v0 = vmul.f32 %v5217_v40, %v12259_v38 }
 0x6bb   : > { %5433 = vrot.lane.b32.xlu2 %v12284_v1, %s7978_s26  ;;  %v5474_v1 = vld [vmem:[#allocation10 + $0x8] sm:$0xff] }
 0x6bc   : > { %v5350_v49 = vpop.permute.xlu1 %5349  ;;  %v5346_v33 = vpop.permute.xlu0 %5345 }
 0x6bd   : > { %v5368_v50 = vpop.permute.xlu2 %5367  ;;  %v5539_v30 = vmul.f32 %v5475_v54, %v5350_v49  ;;  %v5537_v17 = vmul.f32 %v5473_v60, %v5346_v33  ;;  %v5224_v33 = vld [vmem:[#allocation9 + $0x38] sm:$0xff]  ;;  %v5223_v60 = vld [vmem:[#allocation9 + $0x30] sm:$0xff] }
 0x6bf   : > { %v5603_v54 = vadd.f32 %v5539_v30, %v5283_v16  ;;  %v5287_v16 = vmul.f32 %v5223_v60, %v12265_v35  ;;  %v5225_v30 = vld [vmem:[#allocation9 + $0x40] sm:$0xff]  ;;  %v5226_v35 = vld [vmem:[#allocation9 + $0x48] sm:$0xff] }
 0x6c2   : > { %5437 = vrot.lane.b32.xlu1 %v12285_v6, %s7978_s26  ;;  %5435 = vrot.lane.b32.xlu0 %v12286_v44, %s7978_s26  ;;  %v5601_v44 = vadd.f32 %v5537_v17, %v5281_v0 }
 0x6c3   : > { %5439 = vrot.lane.b32.xlu2 %v10787_v28, %s7978_s26 }
 0x6c4   : > { %v5352_v21 = vpop.permute.xlu1 %5351  ;;  %v5348_v49 = vpop.permute.xlu0 %5347 }
 0x6c5   : > { %v5540_v15 = vmul.f32 %v5476_v32, %v5352_v21  ;;  %v5538_v6 = vmul.f32 %v5474_v1, %v5348_v49  ;;  %v11174_v29 = vpop.permute.xlu2 %5373  ;;  %v5288_v1 = vmul.f32 %v5224_v33, %v12264_v4  ;;  %v5484_v32 = vld [vmem:[#allocation10 + $0x58] sm:$0xff]  ;;  %v5289_v4 = vmul.f32 %v5225_v30, %v10709_v61 }
 0x6c6   : > { %v5228_v21 = vld [vmem:[#allocation9 + $0x58] sm:$0xff] }
 0x6c7   : > { %v5604_v3 = vadd.f32 %v5540_v15, %v5284_v53  ;;  %v5602_v38 = vadd.f32 %v5538_v6, %v5282_v27  ;;  %v12288_v53 = vld [vmem:[#allocation230_spill] sm:$0xff]  ;;  %v5227_v15 = vld [vmem:[#allocation9 + $0x50] sm:$0xff]  ;;  %v5292_v60 = vmul.f32 %v5228_v21, %v12268_v51 }
 0x6c9   : > { %v7067_v57 = vpack.c.bf16 %v5604_v3, %v5603_v54  ;;  %v7062_v40 = vpack.c.bf16 %v5602_v38, %v5601_v44  ;;  %v5481_v44 = vld [vmem:[#allocation10 + $0x40] sm:$0xff] }
 0x6ca   : > { %5443 = vrot.lane.b32.xlu1 %v10791_v7, %s7978_s26  ;;  %5441 = vrot.lane.b32.xlu0 %v12287_v10, %s7978_s26  ;;  %v5545_v33 = vmul.f32 %v5481_v44, %v5362_v55 }
 0x6cb   : > { %7410 = vst [vmem:[%s8154_s17 + $0x8] sm:$0xff] %v7067_v57   ;;  %5445 = vrot.lane.b32.xlu2 %v12288_v53, %s7978_s26  ;;  %v5548_v57 = vmul.f32 %v5484_v32, %v5368_v50 }
 0x6cc   : > { %7063 = vst [vmem:[%s8154_s17] sm:$0xff] %v7062_v40   ;;  %v5360_v27 = vpop.permute.xlu1 %5359  ;;  %v5358_v3 = vpop.permute.xlu0 %5357  ;;  %v12289_v40 = vld [vmem:[#allocation232_spill] sm:$0xff]  ;;  %v5609_v51 = vadd.f32 %v5545_v33, %v5289_v4  ;;  %v5485_v4 = vld [vmem:[#allocation10 + $0x60] sm:$0xff] }
 0x6cd   : > { %v5544_v17 = vmul.f32 %v5480_v52, %v5360_v27  ;;  %v5543_v0 = vmul.f32 %v5479_v47, %v5358_v3  ;;  %v5380_v6 = vpop.permute.xlu2 %5379  ;;  %v12290_v52 = vld [vmem:[#allocation231_spill] sm:$0xff]  ;;  %v5483_v47 = vld [vmem:[#allocation10 + $0x50] sm:$0xff]  ;;  %v12291_v3 = vld [vmem:[#allocation233_spill] sm:$0xff]  ;;  %v5612_v30 = vadd.f32 %v5548_v57, %v5292_v60 }
 0x6ce   : > { %v5482_v27 = vld [vmem:[#allocation10 + $0x48] sm:$0xff]  ;;  %v12294_v57 = vld [vmem:[#allocation236_spill] sm:$0xff] }
 0x6cf   : > { %v5608_v49 = vadd.f32 %v5544_v17, %v5288_v1  ;;  %v5607_v54 = vadd.f32 %v5543_v0, %v5287_v16  ;;  %v5291_v1 = vmul.f32 %v5227_v15, %v12266_v45  ;;  %v5290_v16 = vmul.f32 %v5226_v35, %v12267_v37  ;;  %v12292_v37 = vld [vmem:[#allocation235_spill] sm:$0xff]  ;;  %v12293_v35 = vld [vmem:[#allocation234_spill] sm:$0xff] }
 0x6d1   : > { %v7077_v38 = vpack.c.bf16 %v5608_v49, %v5607_v54  ;;  %v5230_v49 = vld [vmem:[#allocation9 + $0x68] sm:$0xff]  ;;  %v5229_v54 = vld [vmem:[#allocation9 + $0x60] sm:$0xff] }
 0x6d2   : > { %5449 = vrot.lane.b32.xlu1 %v12289_v40, %s7978_s26  ;;  %5447 = vrot.lane.b32.xlu0 %v12290_v52, %s7978_s26  ;;  %v5294_v33 = vmul.f32 %v5230_v49, %v12269_v11  ;;  %v5293_v60 = vmul.f32 %v5229_v54, %v12270_v13  ;;  %v5232_v13 = vld [vmem:[#allocation9 + $0x78] sm:$0xff] }
 0x6d3   : > { %7412 = vst [vmem:[%s8154_s17 + $0x18] sm:$0xff] %v7077_v38   ;;  %5451 = vrot.lane.b32.xlu2 %v12291_v3, %s7978_s26  ;;  %v5486_v38 = vld [vmem:[#allocation10 + $0x68] sm:$0xff] }
 0x6d4   : > { %v5366_v55 = vpop.permute.xlu1 %5365  ;;  %v5364_v17 = vpop.permute.xlu0 %5363 }
 0x6d5   : > { %v5547_v50 = vmul.f32 %v5483_v47, %v5366_v55  ;;  %v5546_v0 = vmul.f32 %v5482_v27, %v5364_v17  ;;  %v11197_v44 = vpop.permute.xlu2 %5385  ;;  %v5231_v55 = vld [vmem:[#allocation9 + $0x70] sm:$0xff] }
 0x6d6   : > { %v5295_v11 = vmul.f32 %v5231_v55, %v10721_v26 }
 0x6d7   : > { %v5611_v32 = vadd.f32 %v5547_v50, %v5291_v1  ;;  %v5610_v21 = vadd.f32 %v5546_v0, %v5290_v16  ;;  %v5490_v50 = vld [vmem:[#allocation10 + $0x88] sm:$0xff] }
 0x6d8   : > { %v5234_v0 = vld [vmem:[#allocation9 + $0x88] sm:$0xff] }
 0x6d9   : > { %v7082_v45 = vpack.c.bf16 %v5610_v21, %v5609_v51  ;;  %v7087_v15 = vpack.c.bf16 %v5612_v30, %v5611_v32  ;;  %v5487_v51 = vld [vmem:[#allocation10 + $0x70] sm:$0xff]  ;;  %v5233_v21 = vld [vmem:[#allocation9 + $0x80] sm:$0xff] }
 0x6da   : > { %5455 = vrot.lane.b32.xlu1 %v12292_v37, %s7978_s26  ;;  %5453 = vrot.lane.b32.xlu0 %v12293_v35, %s7978_s26  ;;  %v5551_v54 = vmul.f32 %v5487_v51, %v11174_v29 }
 0x6db   : > { %7413 = vst [vmem:[%s8154_s17 + $0x20] sm:$0xff] %v7082_v45   ;;  %5457 = vrot.lane.b32.xlu2 %v12294_v57, %s7978_s26  ;;  %v5298_v45 = vmul.f32 %v5234_v0, %v12271_v5 }
 0x6dc   : > { %7414 = vst [vmem:[%s8154_s17 + $0x28] sm:$0xff] %v7087_v15   ;;  %v5372_v47 = vpop.permute.xlu1 %5371  ;;  %v5370_v27 = vpop.permute.xlu0 %5369  ;;  %v5554_v15 = vmul.f32 %v5490_v50, %v5380_v6  ;;  %v5615_v5 = vadd.f32 %v5551_v54, %v5295_v11  ;;  %v5491_v11 = vld [vmem:[#allocation10 + $0x90] sm:$0xff] }
 0x6dd   : > { %v5550_v1 = vmul.f32 %v5486_v38, %v5372_v47  ;;  %v5549_v16 = vmul.f32 %v5485_v4, %v5370_v27  ;;  %v5392_v17 = vpop.permute.xlu2 %5391  ;;  %v12295_v38 = vld [vmem:[#allocation238_spill] sm:$0xff]  ;;  %v12296_v4 = vld [vmem:[#allocation237_spill] sm:$0xff] }
 0x6de   : > { %v5489_v47 = vld [vmem:[#allocation10 + $0x80] sm:$0xff]  ;;  %v5488_v27 = vld [vmem:[#allocation10 + $0x78] sm:$0xff]  ;;  %v5618_v51 = vadd.f32 %v5554_v15, %v5298_v45 }
 0x6df   : > { %v5614_v30 = vadd.f32 %v5550_v1, %v5294_v33  ;;  %v5613_v32 = vadd.f32 %v5549_v16, %v5293_v60  ;;  %v5297_v33 = vmul.f32 %v5233_v21, %v10725_v58  ;;  %v5296_v60 = vmul.f32 %v5232_v13, %v10723_v43  ;;  %v12297_v1 = vld [vmem:[#allocation239_spill] sm:$0xff]  ;;  %v5492_v13 = vld [vmem:[#allocation10 + $0x98] sm:$0xff] }
 0x6e1   : > { %v7092_v49 = vpack.c.bf16 %v5614_v30, %v5613_v32  ;;  %v5236_v32 = vld [vmem:[#allocation9 + $0x98] sm:$0xff] }
 0x6e2   : > { %5461 = vrot.lane.b32.xlu1 %v12295_v38, %s7978_s26  ;;  %5459 = vrot.lane.b32.xlu0 %v12296_v4, %s7978_s26  ;;  %v5300_v54 = vmul.f32 %v5236_v32, %v12272_v19 }
 0x6e3   : > { %7415 = vst [vmem:[%s8154_s17 + $0x30] sm:$0xff] %v7092_v49   ;;  %5463 = vrot.lane.b32.xlu2 %v12297_v1, %s7978_s26  ;;  %v5235_v49 = vld [vmem:[#allocation9 + $0x90] sm:$0xff] }
 0x6e4   : > { %v5378_v29 = vpop.permute.xlu1 %5377  ;;  %v5376_v16 = vpop.permute.xlu0 %5375  ;;  %v5299_v45 = vmul.f32 %v5235_v49, %v12273_v14  ;;  %v5238_v14 = vld [vmem:[#allocation9 + $0xa8] sm:$0xff] }
 0x6e5   : > { %v5553_v6 = vmul.f32 %v5489_v47, %v5378_v29  ;;  %v5552_v55 = vmul.f32 %v5488_v27, %v5376_v16  ;;  %v11221_v50 = vpop.permute.xlu2 %5397  ;;  %v5493_v16 = vld [vmem:[#allocation10 + $0xa0] sm:$0xff] }
 0x6e6   : > { %v5557_v32 = vmul.f32 %v5493_v16, %v11197_v44 }
 0x6e7   : > { %v5617_v0 = vadd.f32 %v5553_v6, %v5297_v33  ;;  %v5616_v30 = vadd.f32 %v5552_v55, %v5296_v60  ;;  %v5237_v60 = vld [vmem:[#allocation9 + $0xa0] sm:$0xff]  ;;  %v5240_v6 = vld [vmem:[#allocation9 + $0xb8] sm:$0xff] }
 0x6e8   : > { %v5301_v19 = vmul.f32 %v5237_v60, %v10733_v39 }
 0x6e9   : > { %v7097_v21 = vpack.c.bf16 %v5616_v30, %v5615_v5  ;;  %v7102_v58 = vpack.c.bf16 %v5618_v51, %v5617_v0  ;;  %v5496_v5 = vld [vmem:[#allocation10 + $0xb8] sm:$0xff]  ;;  %v5239_v0 = vld [vmem:[#allocation9 + $0xb0] sm:$0xff] }
 0x6ea   : > { %5467 = vrot.lane.b32.xlu1 %v10815_v36, %s7978_s26  ;;  %5465 = vrot.lane.b32.xlu0 %v10813_v31, %s7978_s26  ;;  %v5560_v49 = vmul.f32 %v5496_v5, %v5392_v17  ;;  %v5242_v5 = vld [vmem:[#allocation9 + $0xc8] sm:$0xff] }
 0x6eb   : > { %7416 = vst [vmem:[%s8154_s17 + $0x38] sm:$0xff] %v7097_v21   ;;  %5469 = vrot.lane.b32.xlu2 %v10817_v18, %s7978_s26  ;;  %v5495_v21 = vld [vmem:[#allocation10 + $0xb0] sm:$0xff] }
 0x6ec   : > { %7417 = vst [vmem:[%s8154_s17 + $0x40] sm:$0xff] %v7102_v58   ;;  %v5384_v15 = vpop.permute.xlu1 %5383  ;;  %v5382_v47 = vpop.permute.xlu0 %5381  ;;  %v5304_v58 = vmul.f32 %v5240_v6, %v10739_v62  ;;  %v5241_v6 = vld [vmem:[#allocation9 + $0xc0] sm:$0xff] }
 0x6ed   : > { %v5556_v27 = vmul.f32 %v5492_v13, %v5384_v15  ;;  %v5555_v33 = vmul.f32 %v5491_v11, %v5382_v47  ;;  %v5404_v29 = vpop.permute.xlu2 %5403  ;;  %v5494_v13 = vld [vmem:[#allocation10 + $0xa8] sm:$0xff]  ;;  %v5303_v11 = vmul.f32 %v5239_v0, %v10737_v20  ;;  %v5621_v47 = vadd.f32 %v5557_v32, %v5301_v19  ;;  %v5497_v0 = vld [vmem:[#allocation10 + $0xc0] sm:$0xff] }
 0x6ee   : > { %v5305_v62 = vmul.f32 %v5241_v6, %v12274_v12  ;;  %v5501_v6 = vld [vmem:[#allocation10 + $0xe0] sm:$0xff] }
 0x6ef   : > { %v5620_v55 = vadd.f32 %v5556_v27, %v5300_v54  ;;  %v5619_v51 = vadd.f32 %v5555_v33, %v5299_v45  ;;  %v5302_v54 = vmul.f32 %v5238_v14, %v10735_v48  ;;  %v5624_v33 = vadd.f32 %v5560_v49, %v5304_v58  ;;  %v5243_v49 = vld [vmem:[#allocation9 + $0xd0] sm:$0xff] }
 0x6f0   : > { %v5306_v14 = vmul.f32 %v5242_v5, %v10743_v56 }
 0x6f1   : > { %v7107_v30 = vpack.c.bf16 %v5620_v55, %v5619_v51 }
 0x6f2   : > { %5471 = vrot.lane.b32.xlu0 %v10819_v23, %s7978_s26 }
 0x6f3   : > { %7418 = vst [vmem:[%s8154_s17 + $0x48] sm:$0xff] %v7107_v30   ;;  %v5498_v30 = vld [vmem:[#allocation10 + $0xc8] sm:$0xff] }
 0x6f4   : > { %v5390_v45 = vpop.permute.xlu1 %5389  ;;  %v5388_v15 = vpop.permute.xlu0 %5387 }
 0x6f5   : > { %v5559_v27 = vmul.f32 %v5495_v21, %v5390_v45  ;;  %v5558_v44 = vmul.f32 %v5494_v13, %v5388_v15  ;;  %v11241_v60 = vpop.permute.xlu2 %5409  ;;  %v5246_v45 = vld [vmem:[#allocation9 + $0xe8] sm:$0xff] }
 0x6f7   : > { %v5623_v17 = vadd.f32 %v5559_v27, %v5303_v11  ;;  %v5622_v16 = vadd.f32 %v5558_v44, %v5302_v54  ;;  %v5499_v11 = vld [vmem:[#allocation10 + $0xd0] sm:$0xff]  ;;  %v5502_v54 = vld [vmem:[#allocation10 + $0xe8] sm:$0xff]  ;;  %v5307_v27 = vmul.f32 %v5243_v49, %v10745_v63  ;;  %v5245_v44 = vld [vmem:[#allocation9 + $0xe0] sm:$0xff] }
 0x6f8   : > { %v5563_v12 = vmul.f32 %v5499_v11, %v11221_v50  ;;  %v5566_v5 = vmul.f32 %v5502_v54, %v5404_v29  ;;  %v5248_v29 = vld [vmem:[#allocation9 + $0xf8] sm:$0xff]  ;;  %v5247_v11 = vld [vmem:[#allocation9 + $0xf0] sm:$0xff] }
 0x6f9   : > { %v7112_v55 = vpack.c.bf16 %v5622_v16, %v5621_v47  ;;  %v7117_v51 = vpack.c.bf16 %v5624_v33, %v5623_v17  ;;  %v5244_v33 = vld [vmem:[#allocation9 + $0xd8] sm:$0xff]  ;;  %v5310_v16 = vmul.f32 %v5246_v45, %v10751_v34 }
 0x6fb   : > { %7419 = vst [vmem:[%s8154_s17 + $0x50] sm:$0xff] %v7112_v55   ;;  %v5500_v55 = vld [vmem:[#allocation10 + $0xd8] sm:$0xff] }
 0x6fc   : > { %7420 = vst [vmem:[%s8154_s17 + $0x58] sm:$0xff] %v7117_v51   ;;  %v5396_v19 = vpop.permute.xlu1 %5395  ;;  %v5394_v32 = vpop.permute.xlu0 %5393  ;;  %v5309_v51 = vmul.f32 %v5245_v44, %v10749_v59  ;;  %v5312_v44 = vmul.f32 %v5248_v29, %v10755_v24 }
 0x6fd   : > { %v5562_v21 = vmul.f32 %v5498_v30, %v5396_v19  ;;  %v5561_v58 = vmul.f32 %v5497_v0, %v5394_v32  ;;  %v5416_v13 = vpop.permute.xlu2 %5415  ;;  %v5308_v30 = vmul.f32 %v5244_v33, %v10747_v41  ;;  %v5311_v33 = vmul.f32 %v5247_v11, %v10753_v46  ;;  %v5507_v11 = vld [vmem:[#allocation10 + $0x110] sm:$0xff] }
 0x6ff   : > { %v5626_v15 = vadd.f32 %v5562_v21, %v5306_v14  ;;  %v5625_v47 = vadd.f32 %v5561_v58, %v5305_v62  ;;  %v5627_v14 = vadd.f32 %v5563_v12, %v5307_v27  ;;  %v5630_v21 = vadd.f32 %v5566_v5, %v5310_v16  ;;  %v5249_v5 = vld [vmem:[#allocation9 + $0x100] sm:$0xff] }
 0x701   : > { %v7122_v17 = vpack.c.bf16 %v5626_v15, %v5625_v47  ;;  %v5504_v15 = vld [vmem:[#allocation10 + $0xf8] sm:$0xff]  ;;  %v5503_v47 = vld [vmem:[#allocation10 + $0xf0] sm:$0xff] }
 0x703   : > { %7421 = vst [vmem:[%s8154_s17 + $0x60] sm:$0xff] %v7122_v17  }
 0x704   : > { %v5402_v0 = vpop.permute.xlu1 %5401  ;;  %v5400_v62 = vpop.permute.xlu0 %5399 }
 0x705   : > { %v5565_v19 = vmul.f32 %v5501_v6, %v5402_v0  ;;  %v5564_v32 = vmul.f32 %v5500_v55, %v5400_v62  ;;  %v11253_v49 = vpop.permute.xlu2 %5421  ;;  %v5505_v6 = vld [vmem:[#allocation10 + $0x100] sm:$0xff]  ;;  %v5508_v55 = vld [vmem:[#allocation10 + $0x118] sm:$0xff]  ;;  %v5313_v62 = vmul.f32 %v5249_v5, %v10757_v42 }
 0x707   : > { %v5629_v58 = vadd.f32 %v5565_v19, %v5309_v51  ;;  %v5628_v50 = vadd.f32 %v5564_v32, %v5308_v30  ;;  %v5252_v51 = vld [vmem:[#allocation9 + $0x118] sm:$0xff]  ;;  %v5250_v19 = vld [vmem:[#allocation9 + $0x108] sm:$0xff] }
 0x709   : > { %v7127_v54 = vpack.c.bf16 %v5628_v50, %v5627_v14  ;;  %v7132_v45 = vpack.c.bf16 %v5630_v21, %v5629_v58  ;;  %v5251_v14 = vld [vmem:[#allocation9 + $0x110] sm:$0xff]  ;;  %v5569_v21 = vmul.f32 %v5505_v6, %v11241_v60  ;;  %v5316_v58 = vmul.f32 %v5252_v51, %v12275_v2  ;;  %v5254_v2 = vld [vmem:[#allocation9 + $0x128] sm:$0xff]  ;;  %v5509_v51 = vld [vmem:[#allocation10 + $0x120] sm:$0xff] }
 0x70a   : > { %v5572_v50 = vmul.f32 %v5508_v55, %v5416_v13  ;;  %v5253_v13 = vld [vmem:[#allocation9 + $0x120] sm:$0xff]  ;;  %v5510_v55 = vld [vmem:[#allocation10 + $0x128] sm:$0xff] }
 0x70b   : > { %7422 = vst [vmem:[%s8154_s17 + $0x68] sm:$0xff] %v7127_v54   ;;  %v5506_v54 = vld [vmem:[#allocation10 + $0x108] sm:$0xff] }
 0x70c   : > { %7423 = vst [vmem:[%s8154_s17 + $0x70] sm:$0xff] %v7132_v45   ;;  %v5408_v27 = vpop.permute.xlu1 %5407  ;;  %v5406_v17 = vpop.permute.xlu0 %5405  ;;  %v5315_v45 = vmul.f32 %v5251_v14, %v10761_v8 }
 0x70d   : > { %v5568_v12 = vmul.f32 %v5504_v15, %v5408_v27  ;;  %v5567_v16 = vmul.f32 %v5503_v47, %v5406_v17  ;;  %v5428_v29 = vpop.permute.xlu2 %5427  ;;  %v5314_v15 = vmul.f32 %v5250_v19, %v10759_v22 }
 0x70f   : > { %v5632_v30 = vadd.f32 %v5568_v12, %v5312_v44  ;;  %v5631_v0 = vadd.f32 %v5567_v16, %v5311_v33  ;;  %v5633_v33 = vadd.f32 %v5569_v21, %v5313_v62  ;;  %v5636_v12 = vadd.f32 %v5572_v50, %v5316_v58  ;;  %v5255_v58 = vld [vmem:[#allocation9 + $0x130] sm:$0xff] }
 0x710   : > { %v5511_v50 = vld [vmem:[#allocation10 + $0x130] sm:$0xff] }
 0x711   : > { %v7137_v32 = vpack.c.bf16 %v5632_v30, %v5631_v0  ;;  %v5318_v30 = vmul.f32 %v5254_v2, %v12276_v25  ;;  %v5317_v0 = vmul.f32 %v5253_v13, %v12277_v9  ;;  %v5575_v9 = vmul.f32 %v5511_v50, %v11253_v49  ;;  %v5512_v2 = vld [vmem:[#allocation10 + $0x138] sm:$0xff]  ;;  %v12300_v13 = vld [vmem:[#allocation222_spill] sm:$0xff] }
 0x712   : > { %v5260_v50 = vld [vmem:[#allocation9 + $0x158] sm:$0xff] }
 0x713   : > { %7424 = vst [vmem:[%s8154_s17 + $0x78] sm:$0xff] %v7137_v32  }
 0x714   : > { %v5414_v47 = vpop.permute.xlu1 %5413  ;;  %v5412_v44 = vpop.permute.xlu0 %5411 }
 0x715   : > { %v5571_v27 = vmul.f32 %v5507_v11, %v5414_v47  ;;  %v5570_v17 = vmul.f32 %v5506_v54, %v5412_v44  ;;  %v5434_v14 = vpop.permute.xlu2 %5433  ;;  %v5514_v11 = vld [vmem:[#allocation10 + $0x148] sm:$0xff]  ;;  %v12298_v47 = vld [vmem:[#allocation220_spill] sm:$0xff] }
 0x716   : > { %v5258_v54 = vld [vmem:[#allocation9 + $0x148] sm:$0xff]  ;;  %v5319_v44 = vmul.f32 %v5255_v58, %v12298_v47  ;;  %v12302_v47 = vld [vmem:[#allocation225_spill] sm:$0xff] }
 0x717   : > { %v5635_v60 = vadd.f32 %v5571_v27, %v5315_v45  ;;  %v5634_v16 = vadd.f32 %v5570_v17, %v5314_v15  ;;  %v5256_v27 = vld [vmem:[#allocation9 + $0x138] sm:$0xff]  ;;  %v12299_v17 = vld [vmem:[#allocation223_spill] sm:$0xff] }
 0x719   : > { %v7142_v5 = vpack.c.bf16 %v5634_v16, %v5633_v33  ;;  %v7147_v6 = vpack.c.bf16 %v5636_v12, %v5635_v60  ;;  %v5257_v33 = vld [vmem:[#allocation9 + $0x140] sm:$0xff]  ;;  %v5322_v12 = vmul.f32 %v5258_v54, %v12299_v17  ;;  %v5578_v60 = vmul.f32 %v5514_v11, %v5428_v29  ;;  %v5259_v29 = vld [vmem:[#allocation9 + $0x150] sm:$0xff] }
 0x71a   : > { %v5513_v16 = vld [vmem:[#allocation10 + $0x140] sm:$0xff] }
 0x71b   : > { %7425 = vst [vmem:[%s8154_s17 + $0x80] sm:$0xff] %v7142_v5   ;;  %v5321_v5 = vmul.f32 %v5257_v33, %v12300_v13  ;;  %v5324_v33 = vmul.f32 %v5260_v50, %v12302_v47  ;;  %v5264_v13 = vld [vmem:[#allocation9 + $0x178] sm:$0xff]  ;;  %v5519_v50 = vld [vmem:[#allocation10 + $0x170] sm:$0xff] }
 0x71c   : > { %7426 = vst [vmem:[%s8154_s17 + $0x88] sm:$0xff] %v7147_v6   ;;  %v5420_v62 = vpop.permute.xlu1 %5419  ;;  %v5418_v19 = vpop.permute.xlu0 %5417  ;;  %v12301_v6 = vld [vmem:[#allocation221_spill] sm:$0xff] }
 0x71d   : > { %v5574_v32 = vmul.f32 %v5510_v55, %v5420_v62  ;;  %v5573_v21 = vmul.f32 %v5509_v51, %v5418_v19  ;;  %v5320_v55 = vmul.f32 %v5256_v27, %v12301_v6  ;;  %v12303_v27 = vld [vmem:[#allocation224_spill] sm:$0xff] }
 0x71f   : > { %v5638_v45 = vadd.f32 %v5574_v32, %v5318_v30  ;;  %v5637_v15 = vadd.f32 %v5573_v21, %v5317_v0  ;;  %v5639_v0 = vadd.f32 %v5575_v9, %v5319_v44  ;;  %v5642_v32 = vadd.f32 %v5578_v60, %v5322_v12  ;;  %v5440_v21 = vpop.permute.xlu2 %5439  ;;  %v5261_v12 = vld [vmem:[#allocation9 + $0x160] sm:$0xff] }
 0x720   : > { %v5517_v60 = vld [vmem:[#allocation10 + $0x160] sm:$0xff] }
 0x721   : > { %v7152_v25 = vpack.c.bf16 %v5638_v45, %v5637_v15  ;;  %v5516_v45 = vld [vmem:[#allocation10 + $0x158] sm:$0xff]  ;;  %v5515_v15 = vld [vmem:[#allocation10 + $0x150] sm:$0xff] }
 0x723   : > { %7427 = vst [vmem:[%s8154_s17 + $0x90] sm:$0xff] %v7152_v25   ;;  %v5323_v25 = vmul.f32 %v5259_v29, %v12303_v27  ;;  %v5518_v29 = vld [vmem:[#allocation10 + $0x168] sm:$0xff] }
 0x724   : > { %v5426_v51 = vpop.permute.xlu1 %5425  ;;  %v5424_v30 = vpop.permute.xlu0 %5423 }
 0x725   : > { %v5577_v62 = vmul.f32 %v5513_v16, %v5426_v51  ;;  %v5576_v19 = vmul.f32 %v5512_v2, %v5424_v30  ;;  %v5520_v2 = vld [vmem:[#allocation10 + $0x178] sm:$0xff]  ;;  %v12304_v51 = vld [vmem:[#allocation226_spill] sm:$0xff] }
 0x726   : > { %v5325_v30 = vmul.f32 %v5261_v12, %v12304_v51  ;;  %v5265_v12 = vld [vmem:[#allocation9 + $0x180] sm:$0xff] }
 0x727   : > { %v5641_v49 = vadd.f32 %v5577_v62, %v5321_v5  ;;  %v5640_v58 = vadd.f32 %v5576_v19, %v5320_v55  ;;  %v5446_v55 = vpop.permute.xlu2 %5445  ;;  %v5262_v62 = vld [vmem:[#allocation9 + $0x168] sm:$0xff]  ;;  %v5329_v51 = vmul.f32 %v5265_v12, %v12287_v10 }
 0x729   : > { %v7157_v11 = vpack.c.bf16 %v5640_v58, %v5639_v0  ;;  %v7162_v54 = vpack.c.bf16 %v5642_v32, %v5641_v49  ;;  %v5263_v0 = vld [vmem:[#allocation9 + $0x170] sm:$0xff]  ;;  %v5581_v32 = vmul.f32 %v5517_v60, %v5434_v14  ;;  %v5328_v49 = vmul.f32 %v5264_v13, %v10787_v28  ;;  %v5522_v13 = vld [vmem:[#allocation10 + $0x188] sm:$0xff] }
 0x72a   : > { %v5584_v58 = vmul.f32 %v5520_v2, %v5440_v21 }
 0x72b   : > { %7428 = vst [vmem:[%s8154_s17 + $0x98] sm:$0xff] %v7157_v11   ;;  %v12305_v11 = vld [vmem:[#allocation228_spill] sm:$0xff]  ;;  %v5645_v27 = vadd.f32 %v5581_v32, %v5325_v30 }
 0x72c   : > { %7429 = vst [vmem:[%s8154_s17 + $0xa0] sm:$0xff] %v7162_v54   ;;  %v5432_v44 = vpop.permute.xlu1 %5431  ;;  %v5430_v9 = vpop.permute.xlu0 %5429  ;;  %v5327_v54 = vmul.f32 %v5263_v0, %v12305_v11  ;;  %v5267_v32 = vld [vmem:[#allocation9 + $0x190] sm:$0xff] }
 0x72d   : > { %v5580_v17 = vmul.f32 %v5516_v45, %v5432_v44  ;;  %v5579_v16 = vmul.f32 %v5515_v15, %v5430_v9  ;;  %v12306_v45 = vld [vmem:[#allocation227_spill] sm:$0xff]  ;;  %v5648_v9 = vadd.f32 %v5584_v58, %v5328_v49  ;;  %v5523_v49 = vld [vmem:[#allocation10 + $0x190] sm:$0xff] }
 0x72e   : > { %v5326_v15 = vmul.f32 %v5262_v62, %v12306_v45  ;;  %v5526_v58 = vld [vmem:[#allocation10 + $0x1a8] sm:$0xff]  ;;  %v5269_v45 = vld [vmem:[#allocation9 + $0x1a0] sm:$0xff] }
 0x72f   : > { %v5644_v5 = vadd.f32 %v5580_v17, %v5324_v33  ;;  %v5643_v6 = vadd.f32 %v5579_v16, %v5323_v25  ;;  %v5266_v16 = vld [vmem:[#allocation9 + $0x188] sm:$0xff]  ;;  %v5452_v2 = vpop.permute.xlu2 %5451 }
 0x731   : > { %v7167_v19 = vpack.c.bf16 %v5644_v5, %v5643_v6  ;;  %v5521_v5 = vld [vmem:[#allocation10 + $0x180] sm:$0xff]  ;;  %v5330_v6 = vmul.f32 %v5266_v16, %v10791_v7 }
 0x733   : > { %7430 = vst [vmem:[%s8154_s17 + $0xa8] sm:$0xff] %v7167_v19  }
 0x734   : > { %v5438_v47 = vpop.permute.xlu1 %5437  ;;  %v5436_v33 = vpop.permute.xlu0 %5435 }
 0x735   : > { %v5583_v25 = vmul.f32 %v5519_v50, %v5438_v47  ;;  %v5582_v44 = vmul.f32 %v5518_v29, %v5436_v33  ;;  %v5270_v50 = vld [vmem:[#allocation9 + $0x1a8] sm:$0xff]  ;;  %v5587_v33 = vmul.f32 %v5523_v49, %v5446_v55 }
 0x736   : > { %v5334_v10 = vmul.f32 %v5270_v50, %v12291_v3  ;;  %v5272_v3 = vld [vmem:[#allocation9 + $0x1b8] sm:$0xff]  ;;  %v5529_v50 = vld [vmem:[#allocation10 + $0x1c0] sm:$0xff] }
 0x737   : > { %v5647_v17 = vadd.f32 %v5583_v25, %v5327_v54  ;;  %v5646_v14 = vadd.f32 %v5582_v44, %v5326_v15  ;;  %v5331_v54 = vmul.f32 %v5267_v32, %v12288_v53  ;;  %v5268_v15 = vld [vmem:[#allocation9 + $0x198] sm:$0xff]  ;;  %v5525_v25 = vld [vmem:[#allocation10 + $0x1a0] sm:$0xff] }
 0x738   : > { %v5524_v44 = vld [vmem:[#allocation10 + $0x198] sm:$0xff] }
 0x739   : > { %v7172_v21 = vpack.c.bf16 %v5646_v14, %v5645_v27  ;;  %v7177_v60 = vpack.c.bf16 %v5648_v9, %v5647_v17  ;;  %v5590_v27 = vmul.f32 %v5526_v58, %v5452_v2  ;;  %v5333_v9 = vmul.f32 %v5269_v45, %v12289_v40  ;;  %v5458_v14 = vpop.permute.xlu2 %5457  ;;  %v5271_v2 = vld [vmem:[#allocation9 + $0x1b0] sm:$0xff]  ;;  %v5273_v58 = vld [vmem:[#allocation9 + $0x1c0] sm:$0xff] }
 0x73a   : > { %v5332_v17 = vmul.f32 %v5268_v15, %v12290_v52  ;;  %v5651_v53 = vadd.f32 %v5587_v33, %v5331_v54  ;;  %v5336_v40 = vmul.f32 %v5272_v3, %v12292_v37  ;;  %v5335_v52 = vmul.f32 %v5271_v2, %v12293_v35  ;;  %v5276_v54 = vld [vmem:[#allocation9 + $0x1d8] sm:$0xff]  ;;  %v5275_v33 = vld [vmem:[#allocation9 + $0x1d0] sm:$0xff] }
 0x73b   : > { %7431 = vst [vmem:[%s8154_s17 + $0xb0] sm:$0xff] %v7172_v21   ;;  %v5340_v35 = vmul.f32 %v5276_v54, %v12297_v1  ;;  %v5277_v1 = vld [vmem:[#allocation9 + $0x1e0] sm:$0xff] }
 0x73c   : > { %7432 = vst [vmem:[%s8154_s17 + $0xb8] sm:$0xff] %v7177_v60   ;;  %v5444_v30 = vpop.permute.xlu1 %5443  ;;  %v5442_v0 = vpop.permute.xlu0 %5441 }
 0x73d   : > { %v5586_v62 = vmul.f32 %v5522_v13, %v5444_v30  ;;  %v5585_v19 = vmul.f32 %v5521_v5, %v5442_v0  ;;  %v5654_v13 = vadd.f32 %v5590_v27, %v5334_v10  ;;  %v5528_v30 = vld [vmem:[#allocation10 + $0x1b8] sm:$0xff]  ;;  %v5527_v0 = vld [vmem:[#allocation10 + $0x1b0] sm:$0xff]  ;;  %v5274_v10 = vld [vmem:[#allocation9 + $0x1c8] sm:$0xff]  ;;  %v5593_v27 = vmul.f32 %v5529_v50, %v5458_v14 }
 0x73e   : > { %v5280_v50 = vld [vmem:[#allocation9 + $0x1f8] sm:$0xff] }
 0x73f   : > { %v5650_v29 = vadd.f32 %v5586_v62, %v5330_v6  ;;  %v5649_v11 = vadd.f32 %v5585_v19, %v5329_v51 }
 0x741   : > { %v7182_v47 = vpack.c.bf16 %v5650_v29, %v5649_v11  ;;  %v5532_v29 = vld [vmem:[#allocation10 + $0x1d8] sm:$0xff]  ;;  %v5464_v11 = vpop.permute.xlu2 %5463 }
 0x743   : > { %7433 = vst [vmem:[%s8154_s17 + $0xc0] sm:$0xff] %v7182_v47   ;;  %v5337_v47 = vmul.f32 %v5273_v58, %v12294_v57 }
 0x744   : > { %v5450_v16 = vpop.permute.xlu1 %5449  ;;  %v5448_v12 = vpop.permute.xlu0 %5447 }
 0x745   : > { %v5589_v21 = vmul.f32 %v5525_v25, %v5450_v16  ;;  %v5588_v60 = vmul.f32 %v5524_v44, %v5448_v12  ;;  %v5596_v25 = vmul.f32 %v5532_v29, %v5464_v11  ;;  %v5531_v44 = vld [vmem:[#allocation10 + $0x1d0] sm:$0xff]  ;;  %v5338_v16 = vmul.f32 %v5274_v10, %v12296_v4 }
 0x746   : > { %v5341_v4 = vmul.f32 %v5277_v1, %v10813_v31 }
 0x747   : > { %v5653_v55 = vadd.f32 %v5589_v21, %v5333_v9  ;;  %v5652_v5 = vadd.f32 %v5588_v60, %v5332_v17  ;;  %v5530_v9 = vld [vmem:[#allocation10 + $0x1c8] sm:$0xff]  ;;  %v5339_v17 = vmul.f32 %v5275_v33, %v12295_v38  ;;  %v5657_v21 = vadd.f32 %v5593_v27, %v5337_v47 }
 0x749   : > { %v7187_v6 = vpack.c.bf16 %v5652_v5, %v5651_v53  ;;  %v7192_v51 = vpack.c.bf16 %v5654_v13, %v5653_v55  ;;  %v5660_v13 = vadd.f32 %v5596_v25, %v5340_v35  ;;  %v5278_v5 = vld [vmem:[#allocation9 + $0x1e8] sm:$0xff] }
 0x74a   : > { %v5342_v38 = vmul.f32 %v5278_v5, %v10815_v36 }
 0x74b   : > { %7434 = vst [vmem:[%s8154_s17 + $0xc8] sm:$0xff] %v7187_v6   ;;  %v5534_v6 = vld [vmem:[#allocation10 + $0x1e8] sm:$0xff] }
 0x74c   : > { %7435 = vst [vmem:[%s8154_s17 + $0xd0] sm:$0xff] %v7192_v51   ;;  %v5456_v62 = vpop.permute.xlu1 %5455  ;;  %v5454_v19 = vpop.permute.xlu0 %5453  ;;  %v5533_v51 = vld [vmem:[#allocation10 + $0x1e0] sm:$0xff] }
 0x74d   : > { %v5592_v32 = vmul.f32 %v5528_v30, %v5456_v62  ;;  %v5591_v49 = vmul.f32 %v5527_v0, %v5454_v19  ;;  %v5535_v62 = vld [vmem:[#allocation10 + $0x1f0] sm:$0xff]  ;;  %v5470_v19 = vpop.permute.xlu2 %5469 }
 0x74e   : > { %v5599_v54 = vmul.f32 %v5535_v62, %v5470_v19 }
 0x74f   : > { %v5656_v45 = vadd.f32 %v5592_v32, %v5336_v40  ;;  %v5655_v15 = vadd.f32 %v5591_v49, %v5335_v52  ;;  %v5279_v32 = vld [vmem:[#allocation9 + $0x1f0] sm:$0xff] }
 0x750   : > { %v5343_v11 = vmul.f32 %v5279_v32, %v10817_v18 }
 0x751   : > { %v7197_v37 = vpack.c.bf16 %v5656_v45, %v5655_v15  ;;  %v5536_v45 = vld [vmem:[#allocation10 + $0x1f8] sm:$0xff]  ;;  %v5344_v15 = vmul.f32 %v5280_v50, %v10819_v23 }
 0x752   : > { %v5663_v33 = vadd.f32 %v5599_v54, %v5343_v11 }
 0x753   : > { %7436 = vst [vmem:[%s8154_s17 + $0xd8] sm:$0xff] %v7197_v37  }
 0x754   : > { %v5462_v12 = vpop.permute.xlu1 %5461  ;;  %v5460_v53 = vpop.permute.xlu0 %5459 }
 0x755   : > { %v5595_v57 = vmul.f32 %v5531_v44, %v5462_v12  ;;  %v5594_v60 = vmul.f32 %v5530_v9, %v5460_v53 }
 0x757   : > { %v5659_v55 = vadd.f32 %v5595_v57, %v5339_v17  ;;  %v5658_v14 = vadd.f32 %v5594_v60, %v5338_v16 }
 0x759   : > { %v7202_v3 = vpack.c.bf16 %v5658_v14, %v5657_v21  ;;  %v7207_v2 = vpack.c.bf16 %v5660_v13, %v5659_v55 }
 0x75b   : > { %7437 = vst [vmem:[%s8154_s17 + $0xe0] sm:$0xff] %v7202_v3  }
 0x75c   : > { %7438 = vst [vmem:[%s8154_s17 + $0xe8] sm:$0xff] %v7207_v2   ;;  %v5468_v30 = vpop.permute.xlu1 %5467  ;;  %v5466_v0 = vpop.permute.xlu0 %5465 }
 0x75d   : > { %v5598_v40 = vmul.f32 %v5534_v6, %v5468_v30  ;;  %v5597_v52 = vmul.f32 %v5533_v51, %v5466_v0 }
 0x75f   : > { %v5662_v49 = vadd.f32 %v5598_v40, %v5342_v38  ;;  %v5661_v58 = vadd.f32 %v5597_v52, %v5341_v4 }
 0x761   : > { %v7212_v29 = vpack.c.bf16 %v5662_v49, %v5661_v58 }
 0x763   : > { %7439 = vst [vmem:[%s8154_s17 + $0xf0] sm:$0xff] %v7212_v29  }
 0x764   : > { %v5472_v47 = vpop.permute.xlu0 %5471 }
 0x765   : > { %v5600_v10 = vmul.f32 %v5536_v45, %v5472_v47 }
 0x767   : > { %v5664_v37 = vadd.f32 %v5600_v10, %v5344_v15 }
 0x769   : > { %v7217_v27 = vpack.c.bf16 %v5664_v37, %v5663_v33 }
 0x76b   : > { %7440 = vst [vmem:[%s8154_s17 + $0xf8] sm:$0xff] %v7217_v27  }
 0x76c PF: > { %5796 = sbr.rel (%p5212_p4) target bundleno = 1939 (0x793), region = 76 }
 0x771   : > { %v12307_v35 = vld [vmem:[#allocation198_spill] sm:$0xff]  ;;  %v12308_v25 = vld [vmem:[#allocation199_spill] sm:$0xff]  ;;  %v12309_v9 = vld [vmem:[#allocation200_spill] sm:$0xff]  ;;  %v7257_v38 = vpack.c.bf16 %v10723_v43, %v10721_v26  ;;  %v7272_v62 = vpack.c.bf16 %v10735_v48, %v10733_v39  ;;  %v7287_v49 = vpack.c.bf16 %v10747_v41, %v10745_v63  ;;  %v7292_v39 = vpack.c.bf16 %v10751_v34, %v10749_v59 }
 0x772   : > { %v7222_v44 = vpack.c.bf16 %v12308_v25, %v12307_v35  ;;  %v12310_v17 = vld [vmem:[#allocation201_spill] sm:$0xff]  ;;  %v12311_v12 = vld [vmem:[#allocation202_spill] sm:$0xff]  ;;  %v12312_v53 = vld [vmem:[#allocation203_spill] sm:$0xff]  ;;  %v7297_v48 = vpack.c.bf16 %v10755_v24, %v10753_v46 }
 0x773   : > { %v7227_v16 = vpack.c.bf16 %v12310_v17, %v12309_v9  ;;  %v7232_v21 = vpack.c.bf16 %v12312_v53, %v12311_v12  ;;  %v12313_v57 = vld [vmem:[#allocation204_spill] sm:$0xff]  ;;  %v12314_v60 = vld [vmem:[#allocation205_spill] sm:$0xff]  ;;  %v12315_v55 = vld [vmem:[#allocation206_spill] sm:$0xff]  ;;  %7447 = vst [vmem:[%s8154_s17 + $0x38] sm:$0xff] %v7257_v38  }
 0x774   : > { %v7237_v13 = vpack.c.bf16 %v12314_v60, %v12313_v57  ;;  %7223 = vst [vmem:[%s8154_s17] sm:$0xff] %v7222_v44   ;;  %v7242_v14 = vpack.c.bf16 %v12315_v55, %v10709_v61  ;;  %v12316_v5 = vld [vmem:[#allocation207_spill] sm:$0xff]  ;;  %v12317_v1 = vld [vmem:[#allocation208_spill] sm:$0xff]  ;;  %v12318_v2 = vld [vmem:[#allocation209_spill] sm:$0xff]  ;;  %v7372_v55 = vpack.c.bf16 %v10815_v36, %v10813_v31 }
 0x775   : > { %7441 = vst [vmem:[%s8154_s17 + $0x8] sm:$0xff] %v7227_v16   ;;  %v7247_v3 = vpack.c.bf16 %v12317_v1, %v12316_v5  ;;  %v12319_v6 = vld [vmem:[#allocation210_spill] sm:$0xff]  ;;  %v12320_v4 = vld [vmem:[#allocation211_spill] sm:$0xff]  ;;  %v12321_v30 = vld [vmem:[#allocation212_spill] sm:$0xff] }
 0x776   : > { %7442 = vst [vmem:[%s8154_s17 + $0x10] sm:$0xff] %v7232_v21   ;;  %v7252_v51 = vpack.c.bf16 %v12319_v6, %v12318_v2  ;;  %v7262_v61 = vpack.c.bf16 %v12321_v30, %v12320_v4  ;;  %v12322_v0 = vld [vmem:[#allocation213_spill] sm:$0xff]  ;;  %v12323_v40 = vld [vmem:[#allocation214_spill] sm:$0xff]  ;;  %v12324_v19 = vld [vmem:[#allocation215_spill] sm:$0xff] }
 0x777   : > { %7443 = vst [vmem:[%s8154_s17 + $0x18] sm:$0xff] %v7237_v13   ;;  %v7267_v52 = vpack.c.bf16 %v12323_v40, %v12322_v0  ;;  %v7277_v26 = vpack.c.bf16 %v12324_v19, %v10737_v20  ;;  %v12325_v43 = vld [vmem:[#allocation216_spill] sm:$0xff]  ;;  %v7302_v20 = vpack.c.bf16 %v10759_v22, %v10757_v42  ;;  %v12327_v41 = vld [vmem:[#allocation218_spill] sm:$0xff]  ;;  %v12328_v58 = vld [vmem:[#allocation219_spill] sm:$0xff] }
 0x778   : > { %7444 = vst [vmem:[%s8154_s17 + $0x20] sm:$0xff] %v7242_v14   ;;  %v7282_v32 = vpack.c.bf16 %v10743_v56, %v12325_v43  ;;  %v12326_v56 = vld [vmem:[#allocation217_spill] sm:$0xff]  ;;  %v7312_v59 = vpack.c.bf16 %v12328_v58, %v12327_v41  ;;  %v12329_v34 = vld [vmem:[#allocation220_spill] sm:$0xff]  ;;  %v12331_v24 = vld [vmem:[#allocation222_spill] sm:$0xff]  ;;  %v7377_v14 = vpack.c.bf16 %v10819_v23, %v10817_v18 }
 0x779   : > { %7445 = vst [vmem:[%s8154_s17 + $0x28] sm:$0xff] %v7247_v3   ;;  %v7307_v63 = vpack.c.bf16 %v12326_v56, %v10761_v8  ;;  %v12330_v50 = vld [vmem:[#allocation221_spill] sm:$0xff]  ;;  %v12332_v29 = vld [vmem:[#allocation223_spill] sm:$0xff]  ;;  %v12333_v22 = vld [vmem:[#allocation224_spill] sm:$0xff] }
 0x77a   : > { %7446 = vst [vmem:[%s8154_s17 + $0x30] sm:$0xff] %v7252_v51   ;;  %v7317_v46 = vpack.c.bf16 %v12330_v50, %v12329_v34  ;;  %v7322_v42 = vpack.c.bf16 %v12332_v29, %v12331_v24  ;;  %v12334_v11 = vld [vmem:[#allocation225_spill] sm:$0xff]  ;;  %v12335_v54 = vld [vmem:[#allocation226_spill] sm:$0xff]  ;;  %v12336_v45 = vld [vmem:[#allocation227_spill] sm:$0xff] }
 0x77b   : > { %7448 = vst [vmem:[%s8154_s17 + $0x40] sm:$0xff] %v7262_v61   ;;  %v7327_v8 = vpack.c.bf16 %v12334_v11, %v12333_v22  ;;  %v7332_v15 = vpack.c.bf16 %v12336_v45, %v12335_v54  ;;  %v12337_v47 = vld [vmem:[#allocation228_spill] sm:$0xff]  ;;  %v12338_v10 = vld [vmem:[#allocation229_spill] sm:$0xff]  ;;  %v12339_v27 = vld [vmem:[#allocation230_spill] sm:$0xff] }
 0x77c   : > { %7449 = vst [vmem:[%s8154_s17 + $0x48] sm:$0xff] %v7267_v52   ;;  %v7337_v33 = vpack.c.bf16 %v10787_v28, %v12337_v47  ;;  %v7342_v37 = vpack.c.bf16 %v10791_v7, %v12338_v10  ;;  %v12340_v35 = vld [vmem:[#allocation231_spill] sm:$0xff]  ;;  %v12341_v44 = vld [vmem:[#allocation232_spill] sm:$0xff]  ;;  %v12342_v9 = vld [vmem:[#allocation233_spill] sm:$0xff] }
 0x77d   : > { %7450 = vst [vmem:[%s8154_s17 + $0x50] sm:$0xff] %v7272_v62   ;;  %v7347_v25 = vpack.c.bf16 %v12340_v35, %v12339_v27  ;;  %v7352_v17 = vpack.c.bf16 %v12342_v9, %v12341_v44  ;;  %v12343_v16 = vld [vmem:[#allocation234_spill] sm:$0xff]  ;;  %v12344_v12 = vld [vmem:[#allocation235_spill] sm:$0xff]  ;;  %v12345_v53 = vld [vmem:[#allocation236_spill] sm:$0xff] }
 0x77e   : > { %7451 = vst [vmem:[%s8154_s17 + $0x58] sm:$0xff] %v7277_v26   ;;  %v7357_v28 = vpack.c.bf16 %v12344_v12, %v12343_v16  ;;  %v12346_v21 = vld [vmem:[#allocation237_spill] sm:$0xff]  ;;  %v12347_v7 = vld [vmem:[#allocation238_spill] sm:$0xff]  ;;  %v12348_v60 = vld [vmem:[#allocation239_spill] sm:$0xff] }
 0x77f   : > { %7452 = vst [vmem:[%s8154_s17 + $0x60] sm:$0xff] %v7282_v32   ;;  %v7362_v57 = vpack.c.bf16 %v12346_v21, %v12345_v53  ;;  %v7367_v13 = vpack.c.bf16 %v12348_v60, %v12347_v7 }
 0x780   : > { %7453 = vst [vmem:[%s8154_s17 + $0x68] sm:$0xff] %v7287_v49  }
 0x781   : > { %7454 = vst [vmem:[%s8154_s17 + $0x70] sm:$0xff] %v7292_v39  }
 0x782   : > { %7455 = vst [vmem:[%s8154_s17 + $0x78] sm:$0xff] %v7297_v48  }
 0x783   : > { %7456 = vst [vmem:[%s8154_s17 + $0x80] sm:$0xff] %v7302_v20  }
 0x784   : > { %7457 = vst [vmem:[%s8154_s17 + $0x88] sm:$0xff] %v7307_v63  }
 0x785   : > { %7458 = vst [vmem:[%s8154_s17 + $0x90] sm:$0xff] %v7312_v59  }
 0x786   : > { %7459 = vst [vmem:[%s8154_s17 + $0x98] sm:$0xff] %v7317_v46  }
 0x787   : > { %7460 = vst [vmem:[%s8154_s17 + $0xa0] sm:$0xff] %v7322_v42  }
 0x788   : > { %7461 = vst [vmem:[%s8154_s17 + $0xa8] sm:$0xff] %v7327_v8  }
 0x789   : > { %7462 = vst [vmem:[%s8154_s17 + $0xb0] sm:$0xff] %v7332_v15  }
 0x78a   : > { %7463 = vst [vmem:[%s8154_s17 + $0xb8] sm:$0xff] %v7337_v33  }
 0x78b   : > { %7464 = vst [vmem:[%s8154_s17 + $0xc0] sm:$0xff] %v7342_v37  }
 0x78c   : > { %7465 = vst [vmem:[%s8154_s17 + $0xc8] sm:$0xff] %v7347_v25  }
 0x78d   : > { %7466 = vst [vmem:[%s8154_s17 + $0xd0] sm:$0xff] %v7352_v17  }
 0x78e   : > { %7467 = vst [vmem:[%s8154_s17 + $0xd8] sm:$0xff] %v7357_v28  }
 0x78f   : > { %7468 = vst [vmem:[%s8154_s17 + $0xe0] sm:$0xff] %v7362_v57  }
 0x790   : > { %7469 = vst [vmem:[%s8154_s17 + $0xe8] sm:$0xff] %v7367_v13  }
 0x791   : > { %7470 = vst [vmem:[%s8154_s17 + $0xf0] sm:$0xff] %v7372_v55  }
 0x792   : > { %7471 = vst [vmem:[%s8154_s17 + $0xf8] sm:$0xff] %v7377_v14  }
 0x793 PF: > { %s6898_s28 = sshll.u32 %s7956_s21, 8  ;;  %s5940_s10 = sshll.u32 %s8154_s17, 4  ;;  %s5941_s10 = int_to_ptr.vmem [resolvable:$true] %s5940_s10 }
 0x794   : > { %s5939_s8 = scalar_lea.hbm %s11452_s5, %s6898_s28  ;;  %s5926_s13 = scalar_lea.sflag [#allocation5], %s306_s1 }
 0x795   : > { %s5942_s11 = sshll.u32 %s5939_s8, 4  ;;  %s7886_s21 = scalar_lea.hbm %s11452_s5, 2048  ;;  %s5943_s11 = int_to_ptr.hbm [resolvable:$true] %s5942_s11 }
 0x796   : > { %s7880_s12 = sshra.s32 %s5943_s11, 4  ;;  %s7881_s12 = int_to_ptr.hbm [resolvable:$true] %s7880_s12 }
 0x797   : > { %s7882_s14 = scalar_lea.hbm %s7881_s12, 256  ;;  %p7887_p13 = scmp.lt.s32.totalorder %s7881_s12, %s11452_s5 }
 0x798   : > { %p7883_p10 = scmp.ne.s32.totalorder %s7881_s12, %s7882_s14  ;;  %p7888_p0 = scmp.lt.s32.totalorder %s7886_s21, %s7882_s14 }
 0x79a   : > { %p7884_p11 = pnand %p7883_p10, %p8107_p5  ;;  %p7889_p3 = por %p7888_p0, %p7887_p13 }
 0x79c   : > { %p7885_p12 = pneg %p7884_p11 }
 0x79e   : > { %p7890_p7 = pnand %p7889_p3, %p7885_p12 }
 0x7a0   : > { %7893 = shalt.err (!%p7890_p7)
}
 0x7a1   : > { %s7979_s1 = smov 64   ;;  %s7980_s16 = smov 4  }
 0x7a2   : > { %7490 = dma.vmem_to_hbm [thread:$0]  (%p8107_p5), %s5941_s10, 4096, %s5943_s11, %s5926_s13, %s7979_s1, %s7979_s1, %s7980_s16  }
 0x7a3 PF: > { %p7522_p2 = scmp.ge.s32.totalorder %s7964_s23, 2  ;;  %s5957_s17 = sand.u32 1, %s7944_s18  }
 0x7a4   : > { %s5958_s24 = scalar_lea.sflag [#allocation5], %s5957_s17 }
 0x7a5   : > { %p7510_p8 = pnand %p7522_p2, %p8056_p6 }
 0x7a7   : > { %p7511_p1 = pneg %p7510_p8 }
 0x7a9   : > { %7939 = dma.done.wait (%p7511_p1), %s5958_s24, 4096  }
 0x7aa   : > { %7941 = vsyncadd (%p7511_p1), %s5958_s24, 4294963200  ;;  %s21_s23 = sadd.s32 1, %s7964_s23   ;;  %s12349_s18 = smov %s7948_s19 }
 0x7ab   : > { %p18_p4 = scmp.ge.s32.totalorder %s21_s23, 10   ;;  %s12350_s19 = smov %s7952_s20 }
 0x7ac   : > { %s12351_s20 = smov %s8117_s30  ;;  %s12352_s21 = smov %s7960_s22 }
 0x7ad   : > { %s12353_s22 = smov %s12355_s15  ;;  %20 = sbr.rel (!%p18_p4) target bundleno = 11 (0xb), region = 119 }
 0x7b2   :  { %5964 = vsyncpa [#allocation4], 1 }
 0x7b3   :  { %5966 = vsyncpa [#allocation4 + $0x1], 1 }
 0x7b4   :  { %5967 = vsyncpa [#allocation7], 1 }
 0x7b5   :  { %5968 = vsyncpa [#allocation11], 1 }
 0x7b6   :  { %5969 = vsyncpa [#allocation5], 1 }
 0x7b7   :  { %5971 = vsyncpa [#allocation5 + $0x1], 1 }

</bundles_post_ra>
